<compile_context>
chip_gen: v6e
topology: v6e:2x2x1
jax: 0.10.0
libtpu: 0.0.40
codegen_flags: <defaults>
</compile_context>

<pallas_src>
import math

import jax
import jax.numpy as jnp
import numpy as np
from jax.experimental import pallas as pl
from jax.experimental.pallas import tpu as pltpu

# ----------------------- small, module-consistent config ---------------------
B = 2          # batch
S = 128        # seq_len
H = 256        # hidden_size
NH = 8         # num_attention_heads
NKV = 4        # num_key_value_heads
D = H // NH    # head_dim = 32
NREP = NH // NKV
I = 512        # intermediate_size
EPS = 1e-5
ROPE_THETA = 10000.0
QKV_W = NH * D + 2 * NKV * D   # 512 (fused q|k|v output width)


# ------------------------------- Pallas kernel --------------------------------
def transformer_block_kernel(
    x_ref,      # (1, S, H)   f32
    cos_ref,    # (S, NH*D)   f32  interleaved cos, tiled per q-head
    sina_ref,   # (S, NH*D)   f32  -sin on even lanes, 0 on odd lanes
    sinb_ref,   # (S, NH*D)   f32  0 on even lanes, +sin on odd lanes
    anw_ref,    # (1, H)      f32  attention_norm weight
    fnw_ref,    # (1, H)      f32  ffn_norm weight
    wqkv_ref,   # (H, QKV_W)  bf16 [wq/sqrt(D) | wk | wv]
    wo_ref,     # (NH*D, H)   bf16
    w13_ref,    # (H, 2*I)    bf16 [w1 | w3]
    w2_ref,     # (I, H)      bf16
    o_ref,      # (1, S, H)   f32
):
    x = x_ref[0]  # (S, H) f32

    def rmsnorm(v, w):
        ms = jnp.mean(v * v, axis=-1, keepdims=True)
        return v * jax.lax.rsqrt(ms + EPS) * w

    # ---- attention pre-norm ----
    xn = rmsnorm(x, anw_ref[...])

    # ---- fused QKV projection (one MXU launch, lane-dense 512-wide output) ----
    qkv = jnp.dot(xn.astype(jnp.bfloat16), wqkv_ref[...],
                  preferred_element_type=jnp.float32)          # (S, QKV_W) f32
    xq = qkv[:, : NH * D]                                      # (S, 256)
    xk = qkv[:, NH * D: NH * D + NKV * D]                      # (S, 128)
    xv = qkv[:, NH * D + NKV * D:]                             # (S, 128)

    # ---- RoPE: 2 lane-rolls + FMAs; sign/parity folded into sin_a / sin_b ----
    # out[2i]   = t[2i]*cos_i   - t[2i+1]*sin_i
    # out[2i+1] = t[2i+1]*cos_i + t[2i]  *sin_i
    def rope(t, cos, sin_a, sin_b):
        n = t.shape[1]
        t_nxt = pltpu.roll(t, shift=n - 1, axis=1)   # out[i] = t[i+1] (wrap hits a 0 lane)
        t_prv = pltpu.roll(t, shift=1, axis=1)       # out[i] = t[i-1] (wrap hits a 0 lane)
        return t * cos + t_nxt * sin_a + t_prv * sin_b

    cos = cos_ref[...]
    sa = sina_ref[...]
    sb = sinb_ref[...]
    xq = rope(xq, cos, sa, sb)
    xk = rope(xk, cos[:, : NKV * D], sa[:, : NKV * D], sb[:, : NKV * D])

    # ---- batched GQA attention: (heads, S, D) einsums, single batched softmax ----
    xq = xq.astype(jnp.bfloat16)
    xk = xk.astype(jnp.bfloat16)
    xv = xv.astype(jnp.bfloat16)

    q3 = jnp.stack([xq[:, h * D:(h + 1) * D] for h in range(NH)], axis=0)   # (NH, S, D)
    k3 = jnp.stack([xk[:, (h // NREP) * D:((h // NREP) + 1) * D]
                    for h in range(NH)], axis=0)                            # (NH, S, D)
    v3 = jnp.stack([xv[:, (h // NREP) * D:((h // NREP) + 1) * D]
                    for h in range(NH)], axis=0)                            # (NH, S, D)

    # scores (1/sqrt(D) already folded into wq in the wrapper)
    scores = jnp.einsum('hqd,hkd->hqk', q3, k3,
                        preferred_element_type=jnp.float32)                 # (NH, S, S)

    # causal mask built in-kernel (two VPU compares, no DMA)
    row = jax.lax.broadcasted_iota(jnp.int32, (S, S), 0)
    col = jax.lax.broadcasted_iota(jnp.int32, (S, S), 1)
    mask = jnp.where(col <= row, 0.0, -1e9).astype(jnp.float32)
    scores = scores + mask[None, :, :]

    scores = scores - jnp.max(scores, axis=-1, keepdims=True)
    p = jnp.exp(scores)
    p = p * pl.reciprocal(jnp.sum(p, axis=-1, keepdims=True), approx=True)

    ctx = jnp.einsum('hqk,hkd->hqd', p.astype(jnp.bfloat16), v3,
                     preferred_element_type=jnp.float32)                    # (NH, S, D)
    attn = jnp.concatenate([ctx[h] for h in range(NH)], axis=-1)            # (S, NH*D)

    attn_o = jnp.dot(attn.astype(jnp.bfloat16), wo_ref[...],
                     preferred_element_type=jnp.float32)
    h_res = x + attn_o

    # ---- FFN pre-norm + SwiGLU (fused w1|w3 matmul) ----
    hn = rmsnorm(h_res, fnw_ref[...])
    gu = jnp.dot(hn.astype(jnp.bfloat16), w13_ref[...],
                 preferred_element_type=jnp.float32)                        # (S, 2*I)
    g = gu[:, :I]
    u = gu[:, I:]
    gated = (g * jax.nn.sigmoid(g)) * u
    ff = jnp.dot(gated.astype(jnp.bfloat16), w2_ref[...],
                 preferred_element_type=jnp.float32)

    o_ref[0] = (h_res + ff).astype(o_ref.dtype)


# ------------------------------- wrapper ---------------------------------------
def transformer_block(x, cos_t, sina_t, sinb_t, params):
    # Fuse & quantize weights once in the wrapper (scale 1/sqrt(D) folded into wq).
    wqkv = jnp.concatenate(
        [params["wq"] * (1.0 / math.sqrt(D)), params["wk"], params["wv"]], axis=1
    ).astype(jnp.bfloat16)                                     # (H, QKV_W)
    w13 = jnp.concatenate([params["w1"], params["w3"]], axis=1).astype(jnp.bfloat16)
    wo = params["wo"].astype(jnp.bfloat16)
    w2 = params["w2"].astype(jnp.bfloat16)

    in_specs = [
        pl.BlockSpec((1, S, H), lambda b: (b, 0, 0)),          # x
        pl.BlockSpec((S, NH * D), lambda b: (0, 0)),           # cos
        pl.BlockSpec((S, NH * D), lambda b: (0, 0)),           # sin_a
        pl.BlockSpec((S, NH * D), lambda b: (0, 0)),           # sin_b
        pl.BlockSpec((1, H), lambda b: (0, 0)),                # attn_norm w
        pl.BlockSpec((1, H), lambda b: (0, 0)),                # ffn_norm w
        pl.BlockSpec((H, QKV_W), lambda b: (0, 0)),            # wqkv
        pl.BlockSpec((NH * D, H), lambda b: (0, 0)),           # wo
        pl.BlockSpec((H, 2 * I), lambda b: (0, 0)),            # w13
        pl.BlockSpec((I, H), lambda b: (0, 0)),                # w2
    ]
    out_spec = pl.BlockSpec((1, S, H), lambda b: (b, 0, 0))

    return pl.pallas_call(
        transformer_block_kernel,
        out_shape=jax.ShapeDtypeStruct((B, S, H), jnp.float32),
        grid_spec=pltpu.PrefetchScalarGridSpec(
            num_scalar_prefetch=0,
            grid=(B,),
            in_specs=in_specs,
            out_specs=out_spec,
        ),
        compiler_params=pltpu.CompilerParams(
            dimension_semantics=("parallel",),   # batch -> 2 TCs on v7x; serial elsewhere
            vmem_limit_bytes=32 << 20,
        ),
    )(x, cos_t, sina_t, sinb_t,
      params["attn_norm"], params["ffn_norm"],
      wqkv, wo, w13, w2)


# --------------------------- pure-JAX f32 reference -----------------------------
def reference(x, cos_half, sin_half, mask, p):
    def rms(v, w):
        ms = jnp.mean(v * v, axis=-1, keepdims=True)
        return v / jnp.sqrt(ms + EPS) * w

    xn = rms(x, p["attn_norm"])
    xq = (xn @ p["wq"]).reshape(B, S, NH, D)
    xk = (xn @ p["wk"]).reshape(B, S, NKV, D)
    xv = (xn @ p["wv"]).reshape(B, S, NKV, D)

    def rope(t):
        tr = t.reshape(*t.shape[:-1], D // 2, 2)
        e, o = tr[..., 0], tr[..., 1]
        c = cos_half[None, :, None, :]
        s = sin_half[None, :, None, :]
        re = e * c - o * s
        im = e * s + o * c
        return jnp.stack([re, im], axis=-1).reshape(t.shape)

    xq, xk = rope(xq), rope(xk)
    xk = jnp.repeat(xk, NREP, axis=2)
    xv = jnp.repeat(xv, NREP, axis=2)
    xq, xk, xv = (t.transpose(0, 2, 1, 3) for t in (xq, xk, xv))
    scores = jnp.einsum("bhqd,bhkd->bhqk", xq, xk) / math.sqrt(D) + mask[None, None]
    w = jax.nn.softmax(scores, axis=-1)
    out = jnp.einsum("bhqk,bhkd->bhqd", w, xv)
    out = out.transpose(0, 2, 1, 3).reshape(B, S, H)
    h = x + out @ p["wo"]
    hn = rms(h, p["ffn_norm"])
    g = hn @ p["w1"]
    u = hn @ p["w3"]
    return h + (g * jax.nn.sigmoid(g) * u) @ p["w2"]


# ------------------------------------ main --------------------------------------
if __name__ == "__main__":
    key = jax.random.PRNGKey(0)
    keys = jax.random.split(key, 8)

    x = jax.random.normal(keys[0], (B, S, H), dtype=jnp.float32)

    scale = 0.05
    params = {
        "wq": scale * jax.random.normal(keys[1], (H, NH * D), dtype=jnp.float32),
        "wk": scale * jax.random.normal(keys[2], (H, NKV * D), dtype=jnp.float32),
        "wv": scale * jax.random.normal(keys[3], (H, NKV * D), dtype=jnp.float32),
        "wo": scale * jax.random.normal(keys[4], (NH * D, H), dtype=jnp.float32),
        "w1": scale * jax.random.normal(keys[5], (H, I), dtype=jnp.float32),
        "w3": scale * jax.random.normal(keys[6], (H, I), dtype=jnp.float32),
        "w2": scale * jax.random.normal(keys[7], (I, H), dtype=jnp.float32),
        "attn_norm": jnp.ones((1, H), dtype=jnp.float32),
        "ffn_norm": jnp.ones((1, H), dtype=jnp.float32),
    }

    # RoPE tables (same as torch precompute_freqs_cis with theta=10000)
    inv_freq = 1.0 / (ROPE_THETA ** (jnp.arange(0, D, 2, dtype=jnp.float32) / D))
    angles = jnp.arange(S, dtype=jnp.float32)[:, None] * inv_freq[None, :]  # (S, D/2)
    cos_half, sin_half = jnp.cos(angles), jnp.sin(angles)

    # Kernel-side tables: interleaved cos, sign/parity folded into sin_a / sin_b:
    #   out[2i]   = t[2i]*cos_i - t[2i+1]*sin_i   -> sin_a even lanes = -sin, odd = 0
    #   out[2i+1] = t[2i+1]*cos_i + t[2i]*sin_i   -> sin_b even lanes = 0,    odd = +sin
    zeros = jnp.zeros_like(sin_half)
    cos_i = jnp.repeat(cos_half, 2, axis=-1)                            # (S, D)
    sina_i = jnp.stack([-sin_half, zeros], axis=-1).reshape(S, D)       # (S, D)
    sinb_i = jnp.stack([zeros, sin_half], axis=-1).reshape(S, D)        # (S, D)
    cos_t = jnp.tile(cos_i, (1, NH))                                    # (S, NH*D)
    sina_t = jnp.tile(sina_i, (1, NH))
    sinb_t = jnp.tile(sinb_i, (1, NH))

    out = jax.block_until_ready(transformer_block(x, cos_t, sina_t, sinb_t, params))

    # Reference uses the explicit causal mask (same semantics as the module's mask input).
    row = jnp.arange(S)[:, None]
    col = jnp.arange(S)[None, :]
    mask = jnp.where(col <= row, 0.0, -1e9).astype(jnp.float32)
    ref = jax.block_until_ready(reference(x, cos_half, sin_half, mask, params))

    # Kernel runs MXU operands in bf16 (f32 accumulation) vs a pure-f32 reference,
    # so the comparison tolerance reflects bf16 quantization of weights/activations.
    np.testing.assert_allclose(np.asarray(out), np.asarray(ref), rtol=2e-2, atol=2e-2)

    print("KERNEL_OK")
</pallas_src>

<mosaic_0001>
module attributes {stable_mosaic.version = 11 : i64} {
  func.func @transformer_block_kernel(%arg0: i32, %arg1: memref<1x128x256xf32, #tpu.memory_space<vmem>>, %arg2: memref<128x256xf32, #tpu.memory_space<vmem>>, %arg3: memref<128x256xf32, #tpu.memory_space<vmem>>, %arg4: memref<128x256xf32, #tpu.memory_space<vmem>>, %arg5: memref<1x256xf32, #tpu.memory_space<vmem>>, %arg6: memref<1x256xf32, #tpu.memory_space<vmem>>, %arg7: memref<256x512xbf16, #tpu.memory_space<vmem>>, %arg8: memref<256x256xbf16, #tpu.memory_space<vmem>>, %arg9: memref<256x1024xbf16, #tpu.memory_space<vmem>>, %arg10: memref<512x256xbf16, #tpu.memory_space<vmem>>, %arg11: memref<1x128x256xf32, #tpu.memory_space<vmem>>) attributes {dimension_semantics = [#tpu.dimension_semantics<parallel>], iteration_bounds = array<i64: 2>, scalar_prefetch = 0 : i64, scratch_operands = 0 : i64, tpu.core_type = #tpu.core_type<tc>, window_params = [{transform_indices = @transform_0, window_bounds = array<i64: 1, 128, 256>}, {pipeline_mode = #tpu.pipeline_mode<synchronous>, transform_indices = @transform_1, window_bounds = array<i64: 128, 256>}, {pipeline_mode = #tpu.pipeline_mode<synchronous>, transform_indices = @transform_2, window_bounds = array<i64: 128, 256>}, {pipeline_mode = #tpu.pipeline_mode<synchronous>, transform_indices = @transform_3, window_bounds = array<i64: 128, 256>}, {pipeline_mode = #tpu.pipeline_mode<synchronous>, transform_indices = @transform_4, window_bounds = array<i64: 1, 256>}, {pipeline_mode = #tpu.pipeline_mode<synchronous>, transform_indices = @transform_5, window_bounds = array<i64: 1, 256>}, {pipeline_mode = #tpu.pipeline_mode<synchronous>, transform_indices = @transform_6, window_bounds = array<i64: 256, 512>}, {pipeline_mode = #tpu.pipeline_mode<synchronous>, transform_indices = @transform_7, window_bounds = array<i64: 256, 256>}, {pipeline_mode = #tpu.pipeline_mode<synchronous>, transform_indices = @transform_8, window_bounds = array<i64: 256, 1024>}, {pipeline_mode = #tpu.pipeline_mode<synchronous>, transform_indices = @transform_9, window_bounds = array<i64: 512, 256>}, {transform_indices = @transform_10, window_bounds = array<i64: 1, 128, 256>}]} {
    %c0 = arith.constant 0 : index
    %c0_0 = arith.constant 0 : index
    %c0_1 = arith.constant 0 : index
    %0 = vector.load %arg1[%c0, %c0_0, %c0_1] : memref<1x128x256xf32, #tpu.memory_space<vmem>>, vector<1x128x256xf32>
    %1 = vector.shape_cast %0 : vector<1x128x256xf32> to vector<128x256xf32>
    %c0_2 = arith.constant 0 : index
    %c0_3 = arith.constant 0 : index
    %2 = vector.load %arg5[%c0_2, %c0_3] : memref<1x256xf32, #tpu.memory_space<vmem>>, vector<1x256xf32>
    %3 = arith.mulf %1, %1 : vector<128x256xf32>
    %cst = arith.constant dense<0.000000e+00> : vector<128xf32>
    %4 = vector.multi_reduction <add>, %3, %cst [1] : vector<128x256xf32> to vector<128xf32>
    %5 = vector.shape_cast %4 : vector<128xf32> to vector<128x1xf32>
    %cst_4 = arith.constant 2.560000e+02 : f32
    %6 = vector.broadcast %cst_4 : f32 to vector<128x1xf32>
    %7 = arith.divf %5, %6 : vector<128x1xf32>
    %cst_5 = arith.constant 9.99999974E-6 : f32
    %8 = vector.broadcast %cst_5 : f32 to vector<128x1xf32>
    %9 = arith.addf %7, %8 : vector<128x1xf32>
    %10 = math.rsqrt %9 : vector<128x1xf32>
    %11 = vector.broadcast %10 : vector<128x1xf32> to vector<128x256xf32>
    %12 = arith.mulf %1, %11 : vector<128x256xf32>
    %13 = vector.broadcast %2 : vector<1x256xf32> to vector<128x256xf32>
    %14 = arith.mulf %12, %13 : vector<128x256xf32>
    %15 = arith.truncf %14 : vector<128x256xf32> to vector<128x256xbf16>
    %c0_6 = arith.constant 0 : index
    %c0_7 = arith.constant 0 : index
    %16 = vector.load %arg7[%c0_6, %c0_7] : memref<256x512xbf16, #tpu.memory_space<vmem>>, vector<256x512xbf16>
    %cst_8 = arith.constant dense<0.000000e+00> : vector<128x512xf32>
    %17 = tpu.matmul %15, %16, %cst_8 {dimension_numbers = #tpu.dot_dimension_numbers<[1], [0], [0], [1], [0, 0, 1, 1], [], []>} : vector<128x256xbf16>, vector<256x512xbf16>, vector<128x512xf32> -> vector<128x512xf32>
    %18 = vector.extract_strided_slice %17 {offsets = [0, 0], sizes = [128, 256], strides = [1, 1]} : vector<128x512xf32> to vector<128x256xf32>
    %19 = vector.extract_strided_slice %17 {offsets = [0, 256], sizes = [128, 128], strides = [1, 1]} : vector<128x512xf32> to vector<128x128xf32>
    %20 = vector.extract_strided_slice %17 {offsets = [0, 384], sizes = [128, 128], strides = [1, 1]} : vector<128x512xf32> to vector<128x128xf32>
    %c0_9 = arith.constant 0 : index
    %c0_10 = arith.constant 0 : index
    %21 = vector.load %arg2[%c0_9, %c0_10] : memref<128x256xf32, #tpu.memory_space<vmem>>, vector<128x256xf32>
    %c0_11 = arith.constant 0 : index
    %c0_12 = arith.constant 0 : index
    %22 = vector.load %arg3[%c0_11, %c0_12] : memref<128x256xf32, #tpu.memory_space<vmem>>, vector<128x256xf32>
    %c0_13 = arith.constant 0 : index
    %c0_14 = arith.constant 0 : index
    %23 = vector.load %arg4[%c0_13, %c0_14] : memref<128x256xf32, #tpu.memory_space<vmem>>, vector<128x256xf32>
    %c255_i32 = arith.constant 255 : i32
    %24 = tpu.dynamic_rotate %18 by %c255_i32 dim 1 : vector<128x256xf32>, i32 -> vector<128x256xf32>
    %c1_i32 = arith.constant 1 : i32
    %25 = tpu.dynamic_rotate %18 by %c1_i32 dim 1 : vector<128x256xf32>, i32 -> vector<128x256xf32>
    %26 = arith.mulf %18, %21 : vector<128x256xf32>
    %27 = arith.mulf %24, %22 : vector<128x256xf32>
    %28 = arith.addf %26, %27 : vector<128x256xf32>
    %29 = arith.mulf %25, %23 : vector<128x256xf32>
    %30 = arith.addf %28, %29 : vector<128x256xf32>
    %31 = vector.extract_strided_slice %21 {offsets = [0, 0], sizes = [128, 128], strides = [1, 1]} : vector<128x256xf32> to vector<128x128xf32>
    %32 = vector.extract_strided_slice %22 {offsets = [0, 0], sizes = [128, 128], strides = [1, 1]} : vector<128x256xf32> to vector<128x128xf32>
    %33 = vector.extract_strided_slice %23 {offsets = [0, 0], sizes = [128, 128], strides = [1, 1]} : vector<128x256xf32> to vector<128x128xf32>
    %c127_i32 = arith.constant 127 : i32
    %34 = tpu.dynamic_rotate %19 by %c127_i32 dim 1 : vector<128x128xf32>, i32 -> vector<128x128xf32>
    %c1_i32_15 = arith.constant 1 : i32
    %35 = tpu.dynamic_rotate %19 by %c1_i32_15 dim 1 : vector<128x128xf32>, i32 -> vector<128x128xf32>
    %36 = arith.mulf %19, %31 : vector<128x128xf32>
    %37 = arith.mulf %34, %32 : vector<128x128xf32>
    %38 = arith.addf %36, %37 : vector<128x128xf32>
    %39 = arith.mulf %35, %33 : vector<128x128xf32>
    %40 = arith.addf %38, %39 : vector<128x128xf32>
    %41 = arith.truncf %30 : vector<128x256xf32> to vector<128x256xbf16>
    %42 = arith.truncf %40 : vector<128x128xf32> to vector<128x128xbf16>
    %43 = arith.truncf %20 : vector<128x128xf32> to vector<128x128xbf16>
    %44 = vector.extract_strided_slice %41 {offsets = [0, 0], sizes = [128, 32], strides = [1, 1]} : vector<128x256xbf16> to vector<128x32xbf16>
    %45 = vector.extract_strided_slice %41 {offsets = [0, 32], sizes = [128, 32], strides = [1, 1]} : vector<128x256xbf16> to vector<128x32xbf16>
    %46 = vector.extract_strided_slice %41 {offsets = [0, 64], sizes = [128, 32], strides = [1, 1]} : vector<128x256xbf16> to vector<128x32xbf16>
    %47 = vector.extract_strided_slice %41 {offsets = [0, 96], sizes = [128, 32], strides = [1, 1]} : vector<128x256xbf16> to vector<128x32xbf16>
    %48 = vector.extract_strided_slice %41 {offsets = [0, 128], sizes = [128, 32], strides = [1, 1]} : vector<128x256xbf16> to vector<128x32xbf16>
    %49 = vector.extract_strided_slice %41 {offsets = [0, 160], sizes = [128, 32], strides = [1, 1]} : vector<128x256xbf16> to vector<128x32xbf16>
    %50 = vector.extract_strided_slice %41 {offsets = [0, 192], sizes = [128, 32], strides = [1, 1]} : vector<128x256xbf16> to vector<128x32xbf16>
    %51 = vector.extract_strided_slice %41 {offsets = [0, 224], sizes = [128, 32], strides = [1, 1]} : vector<128x256xbf16> to vector<128x32xbf16>
    %52 = vector.shape_cast %44 : vector<128x32xbf16> to vector<1x128x32xbf16>
    %53 = vector.shape_cast %45 : vector<128x32xbf16> to vector<1x128x32xbf16>
    %54 = vector.shape_cast %46 : vector<128x32xbf16> to vector<1x128x32xbf16>
    %55 = vector.shape_cast %47 : vector<128x32xbf16> to vector<1x128x32xbf16>
    %56 = vector.shape_cast %48 : vector<128x32xbf16> to vector<1x128x32xbf16>
    %57 = vector.shape_cast %49 : vector<128x32xbf16> to vector<1x128x32xbf16>
    %58 = vector.shape_cast %50 : vector<128x32xbf16> to vector<1x128x32xbf16>
    %59 = vector.shape_cast %51 : vector<128x32xbf16> to vector<1x128x32xbf16>
    %60 = tpu.concatenate %52, %53, %54, %55, %56, %57, %58, %59 in 0 : vector<1x128x32xbf16>, vector<1x128x32xbf16>, vector<1x128x32xbf16>, vector<1x128x32xbf16>, vector<1x128x32xbf16>, vector<1x128x32xbf16>, vector<1x128x32xbf16>, vector<1x128x32xbf16> -> vector<8x128x32xbf16>
    %61 = vector.extract_strided_slice %42 {offsets = [0, 0], sizes = [128, 32], strides = [1, 1]} : vector<128x128xbf16> to vector<128x32xbf16>
    %62 = vector.extract_strided_slice %42 {offsets = [0, 0], sizes = [128, 32], strides = [1, 1]} : vector<128x128xbf16> to vector<128x32xbf16>
    %63 = vector.extract_strided_slice %42 {offsets = [0, 32], sizes = [128, 32], strides = [1, 1]} : vector<128x128xbf16> to vector<128x32xbf16>
    %64 = vector.extract_strided_slice %42 {offsets = [0, 32], sizes = [128, 32], strides = [1, 1]} : vector<128x128xbf16> to vector<128x32xbf16>
    %65 = vector.extract_strided_slice %42 {offsets = [0, 64], sizes = [128, 32], strides = [1, 1]} : vector<128x128xbf16> to vector<128x32xbf16>
    %66 = vector.extract_strided_slice %42 {offsets = [0, 64], sizes = [128, 32], strides = [1, 1]} : vector<128x128xbf16> to vector<128x32xbf16>
    %67 = vector.extract_strided_slice %42 {offsets = [0, 96], sizes = [128, 32], strides = [1, 1]} : vector<128x128xbf16> to vector<128x32xbf16>
    %68 = vector.extract_strided_slice %42 {offsets = [0, 96], sizes = [128, 32], strides = [1, 1]} : vector<128x128xbf16> to vector<128x32xbf16>
    %69 = vector.shape_cast %61 : vector<128x32xbf16> to vector<1x128x32xbf16>
    %70 = vector.shape_cast %62 : vector<128x32xbf16> to vector<1x128x32xbf16>
    %71 = vector.shape_cast %63 : vector<128x32xbf16> to vector<1x128x32xbf16>
    %72 = vector.shape_cast %64 : vector<128x32xbf16> to vector<1x128x32xbf16>
    %73 = vector.shape_cast %65 : vector<128x32xbf16> to vector<1x128x32xbf16>
    %74 = vector.shape_cast %66 : vector<128x32xbf16> to vector<1x128x32xbf16>
    %75 = vector.shape_cast %67 : vector<128x32xbf16> to vector<1x128x32xbf16>
    %76 = vector.shape_cast %68 : vector<128x32xbf16> to vector<1x128x32xbf16>
    %77 = tpu.concatenate %69, %70, %71, %72, %73, %74, %75, %76 in 0 : vector<1x128x32xbf16>, vector<1x128x32xbf16>, vector<1x128x32xbf16>, vector<1x128x32xbf16>, vector<1x128x32xbf16>, vector<1x128x32xbf16>, vector<1x128x32xbf16>, vector<1x128x32xbf16> -> vector<8x128x32xbf16>
    %78 = vector.extract_strided_slice %43 {offsets = [0, 0], sizes = [128, 32], strides = [1, 1]} : vector<128x128xbf16> to vector<128x32xbf16>
    %79 = vector.extract_strided_slice %43 {offsets = [0, 0], sizes = [128, 32], strides = [1, 1]} : vector<128x128xbf16> to vector<128x32xbf16>
    %80 = vector.extract_strided_slice %43 {offsets = [0, 32], sizes = [128, 32], strides = [1, 1]} : vector<128x128xbf16> to vector<128x32xbf16>
    %81 = vector.extract_strided_slice %43 {offsets = [0, 32], sizes = [128, 32], strides = [1, 1]} : vector<128x128xbf16> to vector<128x32xbf16>
    %82 = vector.extract_strided_slice %43 {offsets = [0, 64], sizes = [128, 32], strides = [1, 1]} : vector<128x128xbf16> to vector<128x32xbf16>
    %83 = vector.extract_strided_slice %43 {offsets = [0, 64], sizes = [128, 32], strides = [1, 1]} : vector<128x128xbf16> to vector<128x32xbf16>
    %84 = vector.extract_strided_slice %43 {offsets = [0, 96], sizes = [128, 32], strides = [1, 1]} : vector<128x128xbf16> to vector<128x32xbf16>
    %85 = vector.extract_strided_slice %43 {offsets = [0, 96], sizes = [128, 32], strides = [1, 1]} : vector<128x128xbf16> to vector<128x32xbf16>
    %86 = vector.shape_cast %78 : vector<128x32xbf16> to vector<1x128x32xbf16>
    %87 = vector.shape_cast %79 : vector<128x32xbf16> to vector<1x128x32xbf16>
    %88 = vector.shape_cast %80 : vector<128x32xbf16> to vector<1x128x32xbf16>
    %89 = vector.shape_cast %81 : vector<128x32xbf16> to vector<1x128x32xbf16>
    %90 = vector.shape_cast %82 : vector<128x32xbf16> to vector<1x128x32xbf16>
    %91 = vector.shape_cast %83 : vector<128x32xbf16> to vector<1x128x32xbf16>
    %92 = vector.shape_cast %84 : vector<128x32xbf16> to vector<1x128x32xbf16>
    %93 = vector.shape_cast %85 : vector<128x32xbf16> to vector<1x128x32xbf16>
    %94 = tpu.concatenate %86, %87, %88, %89, %90, %91, %92, %93 in 0 : vector<1x128x32xbf16>, vector<1x128x32xbf16>, vector<1x128x32xbf16>, vector<1x128x32xbf16>, vector<1x128x32xbf16>, vector<1x128x32xbf16>, vector<1x128x32xbf16>, vector<1x128x32xbf16> -> vector<8x128x32xbf16>
    "tpu.trace_start"() <{level = 10 : i32, message = "hqd,hkd->hqk"}> : () -> ()
    %cst_16 = arith.constant dense<0.000000e+00> : vector<8x128x128xf32>
    %95 = tpu.matmul %60, %77, %cst_16 {dimension_numbers = #tpu.dot_dimension_numbers<[2], [2], [1], [1], [0, 0, 0, 1, 1, 1], [0], [0]>} : vector<8x128x32xbf16>, vector<8x128x32xbf16>, vector<8x128x128xf32> -> vector<8x128x128xf32>
    "tpu.trace_stop"() : () -> ()
    %96 = tpu.iota {dimensions = array<i32: 0>} : vector<128x128xi32>
    %97 = tpu.iota {dimensions = array<i32: 1>} : vector<128x128xi32>
    %98 = arith.cmpi sle, %97, %96 : vector<128x128xi32>
    %cst_17 = arith.constant 0.000000e+00 : f32
    %cst_18 = arith.constant -1.000000e+09 : f32
    %99 = vector.broadcast %cst_17 : f32 to vector<128x128xf32>
    %100 = vector.broadcast %cst_18 : f32 to vector<128x128xf32>
    %101 = arith.select %98, %99, %100 : vector<128x128xi1>, vector<128x128xf32>
    %102 = vector.shape_cast %101 : vector<128x128xf32> to vector<1x128x128xf32>
    %103 = vector.broadcast %102 : vector<1x128x128xf32> to vector<8x128x128xf32>
    %104 = arith.addf %95, %103 : vector<8x128x128xf32>
    %cst_19 = arith.constant dense<0xFF800000> : vector<8x128xf32>
    %105 = vector.multi_reduction <maximumf>, %104, %cst_19 [2] : vector<8x128x128xf32> to vector<8x128xf32>
    %106 = vector.shape_cast %105 : vector<8x128xf32> to vector<8x128x1xf32>
    %107 = vector.broadcast %106 : vector<8x128x1xf32> to vector<8x128x128xf32>
    %108 = arith.subf %104, %107 : vector<8x128x128xf32>
    %109 = math.exp %108 : vector<8x128x128xf32>
    %cst_20 = arith.constant dense<0.000000e+00> : vector<8x128xf32>
    %110 = vector.multi_reduction <add>, %109, %cst_20 [2] : vector<8x128x128xf32> to vector<8x128xf32>
    %111 = vector.shape_cast %110 : vector<8x128xf32> to vector<8x128x1xf32>
    %112 = tpu.reciprocal %111 {approx = true} : vector<8x128x1xf32> -> vector<8x128x1xf32>
    %113 = vector.broadcast %112 : vector<8x128x1xf32> to vector<8x128x128xf32>
    %114 = arith.mulf %109, %113 : vector<8x128x128xf32>
    %115 = arith.truncf %114 : vector<8x128x128xf32> to vector<8x128x128xbf16>
    "tpu.trace_start"() <{level = 10 : i32, message = "hqk,hkd->hqd"}> : () -> ()
    %cst_21 = arith.constant dense<0.000000e+00> : vector<8x128x32xf32>
    %116 = tpu.matmul %115, %94, %cst_21 {dimension_numbers = #tpu.dot_dimension_numbers<[2], [1], [1], [2], [0, 0, 0, 1, 1, 2], [0], [0]>} : vector<8x128x128xbf16>, vector<8x128x32xbf16>, vector<8x128x32xf32> -> vector<8x128x32xf32>
    "tpu.trace_stop"() : () -> ()
    %117 = vector.extract_strided_slice %116 {offsets = [0, 0, 0], sizes = [1, 128, 32], strides = [1, 1, 1]} : vector<8x128x32xf32> to vector<1x128x32xf32>
    %118 = vector.shape_cast %117 : vector<1x128x32xf32> to vector<128x32xf32>
    %119 = vector.extract_strided_slice %116 {offsets = [1, 0, 0], sizes = [1, 128, 32], strides = [1, 1, 1]} : vector<8x128x32xf32> to vector<1x128x32xf32>
    %120 = vector.shape_cast %119 : vector<1x128x32xf32> to vector<128x32xf32>
    %121 = vector.extract_strided_slice %116 {offsets = [2, 0, 0], sizes = [1, 128, 32], strides = [1, 1, 1]} : vector<8x128x32xf32> to vector<1x128x32xf32>
    %122 = vector.shape_cast %121 : vector<1x128x32xf32> to vector<128x32xf32>
    %123 = vector.extract_strided_slice %116 {offsets = [3, 0, 0], sizes = [1, 128, 32], strides = [1, 1, 1]} : vector<8x128x32xf32> to vector<1x128x32xf32>
    %124 = vector.shape_cast %123 : vector<1x128x32xf32> to vector<128x32xf32>
    %125 = vector.extract_strided_slice %116 {offsets = [4, 0, 0], sizes = [1, 128, 32], strides = [1, 1, 1]} : vector<8x128x32xf32> to vector<1x128x32xf32>
    %126 = vector.shape_cast %125 : vector<1x128x32xf32> to vector<128x32xf32>
    %127 = vector.extract_strided_slice %116 {offsets = [5, 0, 0], sizes = [1, 128, 32], strides = [1, 1, 1]} : vector<8x128x32xf32> to vector<1x128x32xf32>
    %128 = vector.shape_cast %127 : vector<1x128x32xf32> to vector<128x32xf32>
    %129 = vector.extract_strided_slice %116 {offsets = [6, 0, 0], sizes = [1, 128, 32], strides = [1, 1, 1]} : vector<8x128x32xf32> to vector<1x128x32xf32>
    %130 = vector.shape_cast %129 : vector<1x128x32xf32> to vector<128x32xf32>
    %131 = vector.extract_strided_slice %116 {offsets = [7, 0, 0], sizes = [1, 128, 32], strides = [1, 1, 1]} : vector<8x128x32xf32> to vector<1x128x32xf32>
    %132 = vector.shape_cast %131 : vector<1x128x32xf32> to vector<128x32xf32>
    %133 = tpu.concatenate %118, %120, %122, %124, %126, %128, %130, %132 in 1 : vector<128x32xf32>, vector<128x32xf32>, vector<128x32xf32>, vector<128x32xf32>, vector<128x32xf32>, vector<128x32xf32>, vector<128x32xf32>, vector<128x32xf32> -> vector<128x256xf32>
    %134 = arith.truncf %133 : vector<128x256xf32> to vector<128x256xbf16>
    %c0_22 = arith.constant 0 : index
    %c0_23 = arith.constant 0 : index
    %135 = vector.load %arg8[%c0_22, %c0_23] : memref<256x256xbf16, #tpu.memory_space<vmem>>, vector<256x256xbf16>
    %cst_24 = arith.constant dense<0.000000e+00> : vector<128x256xf32>
    %136 = tpu.matmul %134, %135, %cst_24 {dimension_numbers = #tpu.dot_dimension_numbers<[1], [0], [0], [1], [0, 0, 1, 1], [], []>} : vector<128x256xbf16>, vector<256x256xbf16>, vector<128x256xf32> -> vector<128x256xf32>
    %137 = arith.addf %1, %136 : vector<128x256xf32>
    %c0_25 = arith.constant 0 : index
    %c0_26 = arith.constant 0 : index
    %138 = vector.load %arg6[%c0_25, %c0_26] : memref<1x256xf32, #tpu.memory_space<vmem>>, vector<1x256xf32>
    %139 = arith.mulf %137, %137 : vector<128x256xf32>
    %cst_27 = arith.constant dense<0.000000e+00> : vector<128xf32>
    %140 = vector.multi_reduction <add>, %139, %cst_27 [1] : vector<128x256xf32> to vector<128xf32>
    %141 = vector.shape_cast %140 : vector<128xf32> to vector<128x1xf32>
    %cst_28 = arith.constant 2.560000e+02 : f32
    %142 = vector.broadcast %cst_28 : f32 to vector<128x1xf32>
    %143 = arith.divf %141, %142 : vector<128x1xf32>
    %cst_29 = arith.constant 9.99999974E-6 : f32
    %144 = vector.broadcast %cst_29 : f32 to vector<128x1xf32>
    %145 = arith.addf %143, %144 : vector<128x1xf32>
    %146 = math.rsqrt %145 : vector<128x1xf32>
    %147 = vector.broadcast %146 : vector<128x1xf32> to vector<128x256xf32>
    %148 = arith.mulf %137, %147 : vector<128x256xf32>
    %149 = vector.broadcast %138 : vector<1x256xf32> to vector<128x256xf32>
    %150 = arith.mulf %148, %149 : vector<128x256xf32>
    %151 = arith.truncf %150 : vector<128x256xf32> to vector<128x256xbf16>
    %c0_30 = arith.constant 0 : index
    %c0_31 = arith.constant 0 : index
    %152 = vector.load %arg9[%c0_30, %c0_31] : memref<256x1024xbf16, #tpu.memory_space<vmem>>, vector<256x1024xbf16>
    %cst_32 = arith.constant dense<0.000000e+00> : vector<128x1024xf32>
    %153 = tpu.matmul %151, %152, %cst_32 {dimension_numbers = #tpu.dot_dimension_numbers<[1], [0], [0], [1], [0, 0, 1, 1], [], []>} : vector<128x256xbf16>, vector<256x1024xbf16>, vector<128x1024xf32> -> vector<128x1024xf32>
    %154 = vector.extract_strided_slice %153 {offsets = [0, 0], sizes = [128, 512], strides = [1, 1]} : vector<128x1024xf32> to vector<128x512xf32>
    %155 = vector.extract_strided_slice %153 {offsets = [0, 512], sizes = [128, 512], strides = [1, 1]} : vector<128x1024xf32> to vector<128x512xf32>
    %156 = arith.negf %154 : vector<128x512xf32>
    %157 = math.exp %156 : vector<128x512xf32>
    %cst_33 = arith.constant 1.000000e+00 : f32
    %158 = vector.broadcast %cst_33 : f32 to vector<128x512xf32>
    %159 = arith.addf %158, %157 : vector<128x512xf32>
    %160 = arith.divf %158, %159 : vector<128x512xf32>
    %161 = arith.mulf %154, %160 : vector<128x512xf32>
    %162 = arith.mulf %161, %155 : vector<128x512xf32>
    %163 = arith.truncf %162 : vector<128x512xf32> to vector<128x512xbf16>
    %c0_34 = arith.constant 0 : index
    %c0_35 = arith.constant 0 : index
    %164 = vector.load %arg10[%c0_34, %c0_35] : memref<512x256xbf16, #tpu.memory_space<vmem>>, vector<512x256xbf16>
    %cst_36 = arith.constant dense<0.000000e+00> : vector<128x256xf32>
    %165 = tpu.matmul %163, %164, %cst_36 {dimension_numbers = #tpu.dot_dimension_numbers<[1], [0], [0], [1], [0, 0, 1, 1], [], []>} : vector<128x512xbf16>, vector<512x256xbf16>, vector<128x256xf32> -> vector<128x256xf32>
    %166 = arith.addf %137, %165 : vector<128x256xf32>
    %c0_37 = arith.constant 0 : index
    %c0_38 = arith.constant 0 : index
    %c0_39 = arith.constant 0 : index
    %167 = vector.load %arg11[%c0_37, %c0_38, %c0_39] : memref<1x128x256xf32, #tpu.memory_space<vmem>>, vector<1x128x256xf32>
    %168 = vector.shape_cast %167 : vector<1x128x256xf32> to vector<128x256xf32>
    %169 = vector.shape_cast %166 : vector<128x256xf32> to vector<1x128x256xf32>
    tpu.vector_store %arg11[%c0_37, %c0_38, %c0_39], %169 {strides = array<i32>} : memref<1x128x256xf32, #tpu.memory_space<vmem>>, vector<1x128x256xf32>,
    return
  }
  func.func @transform_0(%arg0: i32) -> (i32, i32, i32) {
    %c0_i32 = arith.constant 0 : i32
    %c0_i32_0 = arith.constant 0 : i32
    %c0_i32_1 = arith.constant 0 : i32
    return %arg0, %c0_i32, %c0_i32_0 : i32, i32, i32
  }
  func.func @transform_1(%arg0: i32) -> (i32, i32) {
    %c0_i32 = arith.constant 0 : i32
    %c0_i32_0 = arith.constant 0 : i32
    %c0_i32_1 = arith.constant 0 : i32
    return %c0_i32, %c0_i32_0 : i32, i32
  }
  func.func @transform_2(%arg0: i32) -> (i32, i32) {
    %c0_i32 = arith.constant 0 : i32
    %c0_i32_0 = arith.constant 0 : i32
    %c0_i32_1 = arith.constant 0 : i32
    return %c0_i32, %c0_i32_0 : i32, i32
  }
  func.func @transform_3(%arg0: i32) -> (i32, i32) {
    %c0_i32 = arith.constant 0 : i32
    %c0_i32_0 = arith.constant 0 : i32
    %c0_i32_1 = arith.constant 0 : i32
    return %c0_i32, %c0_i32_0 : i32, i32
  }
  func.func @transform_4(%arg0: i32) -> (i32, i32) {
    %c0_i32 = arith.constant 0 : i32
    %c0_i32_0 = arith.constant 0 : i32
    %c0_i32_1 = arith.constant 0 : i32
    return %c0_i32, %c0_i32_0 : i32, i32
  }
  func.func @transform_5(%arg0: i32) -> (i32, i32) {
    %c0_i32 = arith.constant 0 : i32
    %c0_i32_0 = arith.constant 0 : i32
    %c0_i32_1 = arith.constant 0 : i32
    return %c0_i32, %c0_i32_0 : i32, i32
  }
  func.func @transform_6(%arg0: i32) -> (i32, i32) {
    %c0_i32 = arith.constant 0 : i32
    %c0_i32_0 = arith.constant 0 : i32
    %c0_i32_1 = arith.constant 0 : i32
    return %c0_i32, %c0_i32_0 : i32, i32
  }
  func.func @transform_7(%arg0: i32) -> (i32, i32) {
    %c0_i32 = arith.constant 0 : i32
    %c0_i32_0 = arith.constant 0 : i32
    %c0_i32_1 = arith.constant 0 : i32
    return %c0_i32, %c0_i32_0 : i32, i32
  }
  func.func @transform_8(%arg0: i32) -> (i32, i32) {
    %c0_i32 = arith.constant 0 : i32
    %c0_i32_0 = arith.constant 0 : i32
    %c0_i32_1 = arith.constant 0 : i32
    return %c0_i32, %c0_i32_0 : i32, i32
  }
  func.func @transform_9(%arg0: i32) -> (i32, i32) {
    %c0_i32 = arith.constant 0 : i32
    %c0_i32_0 = arith.constant 0 : i32
    %c0_i32_1 = arith.constant 0 : i32
    return %c0_i32, %c0_i32_0 : i32, i32
  }
  func.func @transform_10(%arg0: i32) -> (i32, i32, i32) {
    %c0_i32 = arith.constant 0 : i32
    %c0_i32_0 = arith.constant 0 : i32
    %c0_i32_1 = arith.constant 0 : i32
    return %arg0, %c0_i32, %c0_i32_0 : i32, i32, i32
  }
}

</mosaic_0001>

<bundles_post_ra>
// kernel: tpu_custom_call.1
= control target key start
LH: loop header
LB: loop body
LE: loop exit
PB: predicated region body
PF: predicated region fallthrough
CT: control target
= control target key end

     0   :  { %s17141_s0 = inlined_call_operand.hbm [shape: f32[2,128,256], index: 0, kind: input, shape index: {}]   ;;  %s17142_s1 = inlined_call_operand.hbm [shape: f32[128,256], index: 1, kind: input, shape index: {}]   ;;  %s17143_s2 = inlined_call_operand.hbm [shape: f32[128,256], index: 2, kind: input, shape index: {}]   ;;  %s17144_s3 = inlined_call_operand.hbm [shape: f32[128,256], index: 3, kind: input, shape index: {}]   ;;  %s17145_s4 = inlined_call_operand.vmem [shape: f32[1,256], index: 4, kind: input, shape index: {}]   ;;  %s17146_s5 = inlined_call_operand.vmem [shape: f32[1,256], index: 5, kind: input, shape index: {}]   ;;  %s17147_s6 = inlined_call_operand.hbm [shape: bf16[256,512], index: 6, kind: input, shape index: {}]   ;;  %s17148_s7 = inlined_call_operand.hbm [shape: bf16[256,256], index: 7, kind: input, shape index: {}]   ;;  %s17149_s8 = inlined_call_operand.hbm [shape: bf16[256,1024], index: 8, kind: input, shape index: {}]   ;;  %s17150_s9 = inlined_call_operand.hbm [shape: bf16[512,256], index: 9, kind: input, shape index: {}]   ;;  %s17151_s10 = inlined_call_operand.hbm [shape: f32[2,128,256], index: 10, kind: output, shape index: {}]  }
   0x1   :  { %17475 = sst [smem:[#allocation163_spill]] %s17142_s1 }
   0x2   :  { %17476 = sst [smem:[#allocation164_spill]] %s17143_s2 }
   0x3   :  { %17477 = sst [smem:[#allocation165_spill]] %s17144_s3 }
   0x4   :  { %17478 = sst [smem:[#allocation166_spill]] %s17147_s6 }
   0x5   :  { %15 = vsyncpa [#allocation3], 0 }
   0x6   :  { %17 = vsyncpa [#allocation3 + $0x1], 0 }
   0x7   :  { %18 = vsyncpa [#allocation6], 0 }
   0x8   :  { %19 = vsyncpa [#allocation9], 0 }
   0x9   :  { %20 = vsyncpa [#allocation12], 0 }
   0xa   :  { %21 = vsyncpa [#allocation15], 0 }
   0xb   :  { %22 = vsyncpa [#allocation4], 0 }
   0xc   :  { %24 = vsyncpa [#allocation4 + $0x1], 0  ;;  %s12096_s13 = smov 0   ;;  %s12098_s14 = smov 0  }
   0xd   :  { %s12100_s15 = smov 0   ;;  %s12102_s16 = smov 0  }
   0xe LB: > { %s12018_s17 = smov [#allocation5]   ;;  %s12117_s19 = sadd.s32 4294967295, %s12016_s16   ;;  %s12016_s16 = sphi %s12102_s16, %s18228_s16   ;;  %s12012_s15 = sphi %s12100_s15, %s18227_s15   ;;  %s12008_s14 = sphi %s12098_s14, %s18226_s14   ;;  %s12004_s13 = sphi %s12096_s13, %s18225_s13  }
   0xf   : > { %s288_s18 = sshll.u32 %s12018_s17, 4  ;;  %p8974_p0 = scmp.ge.s32.totalorder %s12016_s16, 1  ;;  %s289_s18 = int_to_ptr.vmem [resolvable:$true] %s288_s18 }
  0x10   : > { %p17154_p1 = scmp.eq.s32.totalorder %s12117_s19, 0  ;;  %p276_p2 = scmp.lt.s32.totalorder %s12016_s16, 3 }
  0x11   : > { %s12019_s21 = smov [#allocation8]   ;;  %s12020_s24 = smov [#allocation11]  }
  0x12   : > { %p12122_p3 = pnand %p8974_p0, %p276_p2  ;;  %s314_s22 = sshll.u32 %s12019_s21, 4  ;;  %s12135_s22 = int_to_ptr.vmem [resolvable:$true] %s314_s22 }
  0x13   : > { %s346_s25 = sshll.u32 %s12020_s24, 4  ;;  %s11737_s27 = scalar_lea.vmem %s289_s18, 4096  ;;  %s12137_s25 = int_to_ptr.vmem [resolvable:$true] %s346_s25 }
  0x14   : > { %s17479_s20 = scalar_select %p12122_p3, 1, 0 }
  0x15   : > { %p10283_p5 = pneg %p12122_p3  ;;  %p11738_p8 = scmp.ne.s32.totalorder %s289_s18, %s11737_s27 }
  0x16   : > { %p11745_p11 = scmp.lt.s32.totalorder %s289_s18, %s289_s18  ;;  %p11746_p12 = scmp.lt.s32.totalorder %s11737_s27, %s11737_s27 }
  0x17   : > { %p12131_p6 = pnand %p10283_p5, %p17154_p1 }
  0x18   : > { %p11747_p13 = por %p11746_p12, %p11745_p11 }
  0x19   : > { %p12141_p7 = pneg %p12131_p6 }
  0x1b   : > { %p11740_p9 = pnand %p11738_p8, %p12141_p7 }
  0x1d   : > { %p11741_p10 = pneg %p11740_p9 }
  0x1f   : > { %p11748_p0 = pnand %p11747_p13, %p11741_p10 }
  0x21   : > { %11751 = shalt.err (!%p11748_p0)
}
  0x22   : > { %s17152_s28 = smov 256   ;;  %s17153_s29 = smov 16  }
  0x23   : > { %s17482_s1 = sld [smem:[#allocation163_spill]]  ;;  %s11763_s12 = scalar_lea.vmem %s12135_s22, 4096 }
  0x24   : > { %p11764_p2 = scmp.ne.s32.totalorder %s12135_s22, %s11763_s12  ;;  %p11771_p9 = scmp.lt.s32.totalorder %s12135_s22, %s12135_s22 }
  0x25   : > { %p11772_p10 = scmp.lt.s32.totalorder %s11763_s12, %s11763_s12 }
  0x26   : > { %p11766_p5 = pnand %p11764_p2, %p12141_p7 }
  0x27   : > { %p11773_p11 = por %p11772_p10, %p11771_p9 }
  0x28   : > { %p11767_p8 = pneg %p11766_p5 }
  0x29   : > { %10286 = dma.hbm_to_vmem [thread:$0]  (!%p12131_p6), %s17482_s1, 4096, %s289_s18, [#allocation6], %s17152_s28, %s17152_s28, %s17153_s29  }
  0x2a   : > { %p11774_p12 = pnand %p11773_p11, %p11767_p8 }
  0x2c   : > { %11777 = shalt.err (!%p11774_p12)
}
  0x2d   : > { %s17483_s3 = sld [smem:[#allocation165_spill]]  ;;  %s11789_s18 = scalar_lea.vmem %s12137_s25, 4096 }
  0x2e   : > { %p11790_p13 = scmp.ne.s32.totalorder %s12137_s25, %s11789_s18  ;;  %p11797_p5 = scmp.lt.s32.totalorder %s12137_s25, %s12137_s25 }
  0x2f   : > { %p11798_p8 = scmp.lt.s32.totalorder %s11789_s18, %s11789_s18 }
  0x30   : > { %p11792_p0 = pnand %p11790_p13, %p12141_p7 }
  0x31   : > { %p11799_p9 = por %p11798_p8, %p11797_p5 }
  0x32   : > { %p11793_p2 = pneg %p11792_p0 }
  0x33   : > { %10292 = dma.hbm_to_vmem [thread:$0]  (!%p12131_p6), %s17483_s3, 4096, %s12135_s22, [#allocation9], %s17152_s28, %s17152_s28, %s17153_s29  }
  0x34   : > { %p11800_p10 = pnand %p11799_p9, %p11793_p2 }
  0x36   : > { %11803 = shalt.err (!%p11800_p10)
}
  0x37   : > { %s12023_s24 = smov 128   ;;  %s12024_s27 = smov 8  }
  0x38   : > { %10298 = dma.hbm_to_vmem [thread:$0]  (!%p12131_p6), %s17148_s7, 4096, %s12137_s25, [#allocation12], %s12023_s24, %s12023_s24, %s12024_s27  }
  0x39   : > { %s12025_s11 = smov [#allocation7]   ;;  %s12026_s17 = smov [#allocation10]  }
  0x3a   : > { %s301_s12 = sshll.u32 %s12025_s11, 4  ;;  %s333_s21 = sshll.u32 %s12026_s17, 4  ;;  %s302_s12 = int_to_ptr.vmem [resolvable:$true] %s301_s12  ;;  %s334_s21 = int_to_ptr.vmem [resolvable:$true] %s333_s21 }
  0x3b   : > { %s11815_s18 = scalar_lea.vmem %s302_s12, 4096  ;;  %p11823_p0 = scmp.lt.s32.totalorder %s302_s12, %s302_s12 }
  0x3c   : > { %p11816_p11 = scmp.ne.s32.totalorder %s302_s12, %s11815_s18  ;;  %p11824_p2 = scmp.lt.s32.totalorder %s11815_s18, %s11815_s18 }
  0x3e   : > { %p11818_p12 = pnand %p11816_p11, %p12141_p7  ;;  %p11825_p5 = por %p11824_p2, %p11823_p0 }
  0x40   : > { %p11819_p13 = pneg %p11818_p12 }
  0x42   : > { %p11826_p8 = pnand %p11825_p5, %p11819_p13 }
  0x44   : > { %11829 = shalt.err (!%p11826_p8)
}
  0x45   : > { %s17484_s2 = sld [smem:[#allocation164_spill]]  ;;  %s11841_s30 = scalar_lea.vmem %s334_s21, 8192 }
  0x46   : > { %p11842_p9 = scmp.ne.s32.totalorder %s334_s21, %s11841_s30  ;;  %p11849_p12 = scmp.lt.s32.totalorder %s334_s21, %s334_s21 }
  0x47   : > { %p11850_p0 = scmp.lt.s32.totalorder %s11841_s30, %s11841_s30 }
  0x48   : > { %p11844_p10 = pnand %p11842_p9, %p12141_p7 }
  0x49   : > { %p11851_p13 = por %p11850_p0, %p11849_p12 }
  0x4a   : > { %p11845_p11 = pneg %p11844_p10 }
  0x4b   : > { %10289 = dma.hbm_to_vmem [thread:$0]  (!%p12131_p6), %s17484_s2, 4096, %s302_s12, [#allocation6], %s17152_s28, %s17152_s28, %s17153_s29  }
  0x4c   : > { %p11852_p2 = pnand %p11851_p13, %p11845_p11 }
  0x4e   : > { %11855 = shalt.err (!%p11852_p2)
}
  0x4f   : > { %s17485_s6 = sld [smem:[#allocation166_spill]]  ;;  %s12027_s12 = smov [#allocation13]  }
  0x50   : > { %s359_s18 = sshll.u32 %s12027_s12, 4  ;;  %s360_s18 = int_to_ptr.vmem [resolvable:$true] %s359_s18 }
  0x51   : > { %s11867_s25 = scalar_lea.vmem %s360_s18, 16384  ;;  %p11875_p10 = scmp.lt.s32.totalorder %s360_s18, %s360_s18 }
  0x52   : > { %p11868_p5 = scmp.ne.s32.totalorder %s360_s18, %s11867_s25  ;;  %p11876_p11 = scmp.lt.s32.totalorder %s11867_s25, %s11867_s25 }
  0x54   : > { %p11870_p8 = pnand %p11868_p5, %p12141_p7  ;;  %p11877_p12 = por %p11876_p11, %p11875_p10 }
  0x55   : > { %10295 = dma.hbm_to_vmem [thread:$0]  (!%p12131_p6), %s17485_s6, 8192, %s334_s21, [#allocation9], %s17152_s28, %s17152_s28, %s17153_s29  }
  0x56   : > { %p11871_p9 = pneg %p11870_p8 }
  0x58   : > { %p11878_p0 = pnand %p11877_p12, %p11871_p9 }
  0x5a   : > { %11881 = shalt.err (!%p11878_p0)
}
  0x5b   : > { %s12028_s22 = smov 512   ;;  %s12029_s30 = smov 32  }
  0x5c   : > { %10301 = dma.hbm_to_vmem [thread:$0]  (!%p12131_p6), %s17149_s8, 16384, %s360_s18, [#allocation12], %s12028_s22, %s12028_s22, %s12029_s30  }
  0x5d   : > { %s12030_s17 = smov [#allocation14]  }
  0x5e   : > { %s372_s12 = sshll.u32 %s12030_s17, 4  ;;  %s373_s12 = int_to_ptr.vmem [resolvable:$true] %s372_s12 }
  0x5f   : > { %s11893_s28 = scalar_lea.vmem %s373_s12, 8192  ;;  %p11901_p8 = scmp.lt.s32.totalorder %s373_s12, %s373_s12 }
  0x60   : > { %p11894_p13 = scmp.ne.s32.totalorder %s373_s12, %s11893_s28  ;;  %p11902_p9 = scmp.lt.s32.totalorder %s11893_s28, %s11893_s28 }
  0x62   : > { %p11896_p2 = pnand %p11894_p13, %p12141_p7  ;;  %p11903_p10 = por %p11902_p9, %p11901_p8 }
  0x64   : > { %p11897_p5 = pneg %p11896_p2 }
  0x66   : > { %p11904_p11 = pnand %p11903_p10, %p11897_p5 }
  0x68   : > { %11907 = shalt.err (!%p11904_p11)
}
  0x69   : > { %10304 = dma.hbm_to_vmem [thread:$0]  (!%p12131_p6), %s17150_s9, 8192, %s373_s12, [#allocation15], %s12023_s24, %s12023_s24, %s12024_s27  }
  0x6a   : > { %s8973_s23 = sadd.s32 4294967294, %s12016_s16   ;;  %s12224_s26 = sadd.s32 1, %s12016_s16  }
  0x6b   : > { %s37_s28 = sadd.s32 1, %s12012_s15  ;;  %s34_s22 = ssub.s32 %s12016_s16, %s12224_s26 }
  0x6c   : > { %p44_p7 = scmp.ne.s32.totalorder %s12012_s15, %s12008_s14  ;;  %p35_p12 = scmp.eq.s32.totalorder %s34_s22, 0 }
  0x6d   : > { %p45_p0 = scmp.eq.s32.totalorder %s12016_s16, 0  ;;  %p50_p13 = scmp.ne.s32.totalorder %s12008_s14, %s12004_s13 }
  0x6e   : > { %p263_p2 = scmp.eq.s32.totalorder %s12117_s19, 1  ;;  %p269_p9 = scmp.eq.s32.totalorder %s8973_s23, 1 }
  0x6f   : > { %s12236_s30 = scalar_select %p35_p12, %s12012_s15, %s37_s28  }
  0x70   : > { %p46_p5 = por %p45_p0, %p44_p7  ;;  %p12240_p8 = por %p17154_p1, %p50_p13 }
  0x71   : > { %p12244_p6 = por %p263_p2, %p44_p7  ;;  %p10320_p10 = scmp.lt.s32.totalorder %s12016_s16, 2 }
  0x72   : > { %s17486_s11 = scalar_select %p12240_p8, 1, 0 }
  0x73   : > { %s17487_s24 = scalar_select %p12244_p6, 1, 0 }
  0x74   : > { %s386_s27 = sand.u32 1, %s12012_s15   ;;  %p12250_p11 = por %p269_p9, %p50_p13 }
  0x75   : > { %s8983_s17 = sshll.u32 %s386_s27, 8  ;;  %s9417_s12 = sshll.u32 %s12016_s16, 12 }
  0x76   : > { %s17488_s21 = scalar_select %p12250_p11, 1, 0 }
  0x77   : > { %s12258_s28 = scalar_lea.hbm %s17141_s0, %s9417_s12  ;;  %s390_s22 = scalar_lea.vmem [#allocation2], %s8983_s17 }
  0x78   : > { %s397_s29 = sshll.u32 %s390_s22, 4  ;;  %p12260_p7 = pnand %p10320_p10, %p46_p5  ;;  %s12264_s29 = int_to_ptr.vmem [resolvable:$true] %s397_s29 }
  0x79   : > { %s12266_s1 = scalar_lea.sflag [#allocation3], %s386_s27  ;;  %s11908_s2 = scalar_lea.hbm %s12258_s28, 4096 }
  0x7a   : > { %p11909_p12 = scmp.ne.s32.totalorder %s12258_s28, %s11908_s2  ;;  %p11910_p0 = pneg %p12260_p7 }
  0x7b   : > { %s11913_s17 = scalar_lea.hbm %s17141_s0, 8192  ;;  %p11914_p5 = scmp.lt.s32.totalorder %s12258_s28, %s17141_s0 }
  0x7c   : > { %p11911_p13 = pnand %p11910_p0, %p11909_p12  ;;  %p11915_p9 = scmp.lt.s32.totalorder %s11913_s17, %s11908_s2 }
  0x7e   : > { %p11912_p2 = pneg %p11911_p13  ;;  %p11916_p10 = por %p11915_p9, %p11914_p5 }
  0x80   : > { %p11917_p4 = pnand %p11916_p10, %p11912_p2 }
  0x82   : > { %11920 = shalt.err (!%p11917_p4)
}
  0x83   : > { %s11921_s27 = scalar_lea.vmem %s12264_s29, 4096  ;;  %s12031_s3 = smov [#allocation2]  }
  0x84   : > { %p11922_p1 = scmp.ne.s32.totalorder %s12264_s29, %s11921_s27  ;;  %s11926_s6 = sshll.u32 %s12031_s3, 4  ;;  %s11927_s6 = int_to_ptr.vmem [resolvable:$false] %s11926_s6 }
  0x85   : > { %s11928_s12 = scalar_lea.vmem %s11927_s6, 8192  ;;  %p11929_p13 = scmp.lt.s32.totalorder %s12264_s29, %s11927_s6 }
  0x86   : > { %p11924_p11 = pnand %p11922_p1, %p11910_p0  ;;  %p11930_p6 = scmp.lt.s32.totalorder %s11928_s12, %s11921_s27 }
  0x88   : > { %p11925_p12 = pneg %p11924_p11  ;;  %p11931_p8 = por %p11930_p6, %p11929_p13 }
  0x8a   : > { %p11932_p3 = pnand %p11931_p8, %p11925_p12 }
  0x8c   : > { %11935 = shalt.err (!%p11932_p3)
}
  0x8d   : > { %s17490_s2 = smov 16   ;;  %s17491_s25 = smov 256  }
  0x8e   : > { %10308 = dma.hbm_to_vmem [thread:$0]  (!%p12260_p7), %s12258_s28, 4096, %s12264_s29, %s12266_s1, %s17491_s25, %s17491_s25, %s17490_s2  }
  0x8f   : > { %p17492_p1 = scmp.ne.s32.totalorder %s17479_s20, 0 }
  0x91   : > { %409 = sbr.rel (%p17492_p1) target bundleno = 3204 (0xc84), region = 60 }
  0x96   : > { %s12293_s3 = sand.u32 1, %s12008_s14   ;;  %p17493_p3 = scmp.ne.s32.totalorder %s17486_s11, 0 }
  0x97   : > { %s8987_s6 = sshll.u32 %s12293_s3, 8  ;;  %s412_s17 = scalar_lea.sflag [#allocation3], %s12293_s3 }
  0x98   : > { %s12299_s23 = scalar_lea.vmem [#allocation2], %s8987_s6 }
  0x99   : > { %11979 = dma.done.wait (%p17493_p3), %s412_s17, 4096  }
  0x9a   : > { %11981 = vsyncadd (%p17493_p3), %s412_s17, 4294963200  ;;  %p17494_p4 = scmp.eq.s32.totalorder %s12117_s19, 0 }
  0x9c   : > { %11983 = dma.done.wait (%p17494_p4), [#allocation6], 8192   ;;  %p17495_p8 = pmov %p17494_p4 }
  0x9d   : > { %p17496_p6 = pmov %p17494_p4 }
  0x9e   : > { %11985 = vsyncadd (%p17495_p8), [#allocation6], 4294959104 }
  0x9f   : > { %11987 = dma.done.wait (%p17496_p6), [#allocation9], 12288   ;;  %p17497_p11 = pmov %p17494_p4 }
  0xa0   : > { %p17498_p7 = pmov %p17494_p4 }
  0xa1   : > { %11989 = vsyncadd (%p17497_p11), [#allocation9], 4294955008 }
  0xa2   : > { %11991 = dma.done.wait (%p17498_p7), [#allocation12], 20480   ;;  %p17499_p0 = pmov %p17494_p4 }
  0xa4   : > { %11993 = vsyncadd (%p17499_p0), [#allocation12], 4294946816  ;;  %p17500_p2 = pmov %p17499_p0 }
  0xa5   : > { %p17501_p5 = pmov %p17499_p0 }
  0xa6   : > { %11995 = dma.done.wait (%p17500_p2), [#allocation15], 8192  }
  0xa7   : > { %11997 = vsyncadd (%p17501_p5), [#allocation15], 4294959104  ;;  %v12322_v0 = vld [vmem:[%s12299_s23] sm:$0xff]  ;;  %v12325_v1 = vld [vmem:[%s12299_s23 + $0x8] sm:$0xff]  ;;  %s12032_s29 = smov 127   ;;  %s12033_s11 = smov 1  }
  0xa8   : > { %v12328_v2 = vld [vmem:[%s12299_s23 + $0x10] sm:$0xff]  ;;  %v514_v3 = vmul.f32 %v12322_v0, %v12322_v0  ;;  %v515_v4 = vmul.f32 %v12325_v1, %v12325_v1  ;;  %v12335_v5 = vld [vmem:[%s12299_s23 + $0x18] sm:$0xff]  ;;  %v12340_v7 = vld [vmem:[%s12299_s23 + $0x20] sm:$0xff]  ;;  %s12034_s28 = smov 96   ;;  %s12035_s18 = smov 64   ;;  %vm2269_vm2 = vcmask 261120  }
  0xa9   : > { %v516_v6 = vmul.f32 %v12328_v2, %v12328_v2  ;;  %v12343_v8 = vld [vmem:[%s12299_s23 + $0x28] sm:$0xff]  ;;  %v517_v9 = vmul.f32 %v12335_v5, %v12335_v5  ;;  %v518_v10 = vmul.f32 %v12340_v7, %v12340_v7  ;;  %v12352_v12 = vld [vmem:[%s12299_s23 + $0x30] sm:$0xff]  ;;  %v12355_v13 = vld [vmem:[%s12299_s23 + $0x38] sm:$0xff]  ;;  %s12036_s22 = smov 32   ;;  %s17026_s2 = scalar_lea.vmem [#allocation16], %s8987_s6 }
  0xaa   : > { %v519_v11 = vmul.f32 %v12343_v8, %v12343_v8  ;;  %v12358_v14 = vld [vmem:[%s12299_s23 + $0x50] sm:$0xff]  ;;  %v546_v15 = vadd.f32 %v515_v4, %v514_v3  ;;  %v520_v16 = vmul.f32 %v12352_v12, %v12352_v12  ;;  %v521_v17 = vmul.f32 %v12355_v13, %v12355_v13  ;;  %v12365_v18 = vld [vmem:[%s12299_s23 + $0x58] sm:$0xff]  ;;  %v12368_v19 = vld [vmem:[%s12299_s23 + $0x40] sm:$0xff]  ;;  %s9418_s25 = sshll.u32 %s12117_s19, 12  ;;  %s8833_s6 = sshll.u32 %s17026_s2, 4  ;;  %s17095_s6 = int_to_ptr.vmem [resolvable:$true] %s8833_s6 }
  0xab   : > { %v12371_v20 = vld [vmem:[%s12299_s23 + $0x48] sm:$0xff]  ;;  %v549_v22 = vadd.f32 %v517_v9, %v516_v6  ;;  %v522_v23 = vmul.f32 %v12368_v19, %v12368_v19  ;;  %v12378_v25 = vld [vmem:[%s12299_s23 + $0x70] sm:$0xff]  ;;  %v12381_v26 = vld [vmem:[%s12299_s23 + $0x78] sm:$0xff]  ;;  %v524_v28 = vmul.f32 %v12358_v14, %v12358_v14  ;;  %v525_v29 = vmul.f32 %v12365_v18, %v12365_v18  ;;  %s17093_s1 = scalar_lea.hbm %s17151_s10, %s9418_s25  ;;  %s8820_s19 = scalar_lea.sflag [#allocation4], %s12293_s3 }
  0xac   : > { %v552_v21 = vadd.f32 %v519_v11, %v518_v10  ;;  %547 = vadd.xlane.f32.xlu0 %v546_v15  ;;  %v523_v24 = vmul.f32 %v12371_v20, %v12371_v20  ;;  %v555_v27 = vadd.f32 %v521_v17, %v520_v16  ;;  %v12388_v30 = vld [vmem:[%s12299_s23 + $0x60] sm:$0xff]  ;;  %v12391_v31 = vld [vmem:[%s12299_s23 + $0x68] sm:$0xff]  ;;  %v12404_v40 = vld [vmem:[%s12299_s23 + $0x90] sm:$0xff]  ;;  %v528_v44 = vmul.f32 %v12378_v25, %v12378_v25  ;;  %s11936_s20 = scalar_lea.vmem %s17095_s6, 4096  ;;  %p18222_p10 = scmp.ne.s32.totalorder %s17487_s24, 0 }
  0xad   : > { %v10622_v32 = vld [vmem:[#allocation10 + $0xe4] ss:$16 sps:$4 sm:$0xff]   ;;  %v12397_v34 = vld [vmem:[%s12299_s23 + $0x88] sm:$0xff]  ;;  %v10626_v36 = vld [vmem:[#allocation10 + $0xe0] ss:$16 sps:$4 sm:$0xff]   ;;  %v526_v38 = vmul.f32 %v12388_v30, %v12388_v30  ;;  %v527_v39 = vmul.f32 %v12391_v31, %v12391_v31  ;;  %v561_v43 = vadd.f32 %v525_v29, %v524_v28  ;;  %v529_v45 = vmul.f32 %v12381_v26, %v12381_v26  ;;  %p11937_p9 = scmp.ne.s32.totalorder %s17095_s6, %s11936_s20 }
  0xae   : > { %553 = vadd.xlane.f32.xlu1 %v552_v21  ;;  %v12394_v33 = vld [vmem:[%s12299_s23 + $0x80] sm:$0xff]  ;;  %v10624_v35 = vld [vmem:[#allocation10 + $0xec] ss:$16 sps:$4 sm:$0xff]   ;;  %v558_v37 = vadd.f32 %v523_v24, %v522_v23  ;;  %1118 = vmatprep.subr.bf16.mxu0 %v10622_v32  ;;  %v10627_v42 = vld [vmem:[#allocation10 + $0xe8] ss:$16 sps:$4 sm:$0xff]   ;;  %v531_v53 = vmul.f32 %v12397_v34, %v12397_v34  ;;  %v532_v56 = vmul.f32 %v12404_v40, %v12404_v40 }
  0xaf   : > { %v12407_v41 = vld [vmem:[%s12299_s23 + $0x98] sm:$0xff]  ;;  %1231 = vmatprep.subr.bf16.mxu1 %v10624_v35  ;;  %v10628_v46 = vld [vmem:[#allocation10 + $0xc4] ss:$16 sps:$4 sm:$0xff]   ;;  %1119 = vmatpush1.bf16.msra.mxu0 %v10626_v36  ;;  %v10632_v48 = vld [vmem:[#allocation10 + $0xc0] ss:$16 sps:$4 sm:$0xff]   ;;  %v564_v51 = vadd.f32 %v527_v39, %v526_v38  ;;  %v530_v52 = vmul.f32 %v12394_v33, %v12394_v33  ;;  %v567_v55 = vadd.f32 %v529_v45, %v528_v44  ;;  %p11938_p12 = pnand %p11937_p9, %p18222_p10 }
  0xb0   : > { %550 = vadd.xlane.f32.xlu0 %v549_v22  ;;  %1232 = vmatpush1.bf16.msra.mxu1 %v10627_v42  ;;  %v10630_v47 = vld [vmem:[#allocation10 + $0xcc] ss:$16 sps:$4 sm:$0xff]   ;;  %v10633_v49 = vld [vmem:[#allocation10 + $0xc8] ss:$16 sps:$4 sm:$0xff]   ;;  %v10634_v50 = vld [vmem:[#allocation10 + $0xa4] ss:$16 sps:$4 sm:$0xff]   ;;  %v533_v57 = vmul.f32 %v12407_v41, %v12407_v41 }
  0xb1   : > { %1120 = vmatprep.subr.bf16.mxu0 %v10628_v46  ;;  %1233 = vmatprep.subr.bf16.mxu1 %v10630_v47  ;;  %v10636_v54 = vld [vmem:[#allocation10 + $0xac] ss:$16 sps:$4 sm:$0xff]   ;;  %v10638_v58 = vld [vmem:[#allocation10 + $0xa0] ss:$16 sps:$4 sm:$0xff]   ;;  %v10639_v59 = vld [vmem:[#allocation10 + $0xa8] ss:$16 sps:$4 sm:$0xff]   ;;  %v570_v62 = vadd.f32 %v531_v53, %v530_v52  ;;  %p11939_p13 = pneg %p11938_p12 }
  0xb2   : > { %556 = vadd.xlane.f32.xlu1 %v555_v27  ;;  %v10640_v60 = vld [vmem:[#allocation10 + $0x84] ss:$16 sps:$4 sm:$0xff]   ;;  %v10642_v61 = vld [vmem:[#allocation10 + $0x8c] ss:$16 sps:$4 sm:$0xff]   ;;  %v573_v63 = vadd.f32 %v533_v57, %v532_v56  ;;  %v10644_v3 = vld [vmem:[#allocation10 + $0x80] ss:$16 sps:$4 sm:$0xff]  }
  0xb3   : > { %1121 = vmatpush1.bf16.msra.mxu0 %v10632_v48  ;;  %v10645_v4 = vld [vmem:[#allocation10 + $0x88] ss:$16 sps:$4 sm:$0xff]   ;;  %v10646_v6 = vld [vmem:[#allocation10 + $0x64] ss:$16 sps:$4 sm:$0xff]   ;;  %v10648_v9 = vld [vmem:[#allocation10 + $0x6c] ss:$16 sps:$4 sm:$0xff]  }
  0xb4   : > { %559 = vadd.xlane.f32.xlu0 %v558_v37  ;;  %1234 = vmatpush1.bf16.msra.mxu1 %v10633_v49  ;;  %v10650_v10 = vld [vmem:[#allocation10 + $0x60] ss:$16 sps:$4 sm:$0xff]   ;;  %v10651_v11 = vld [vmem:[#allocation10 + $0x68] ss:$16 sps:$4 sm:$0xff]   ;;  %v10652_v15 = vld [vmem:[#allocation10 + $0x44] ss:$16 sps:$4 sm:$0xff]  }
  0xb5   : > { %1122 = vmatprep.subr.bf16.mxu0 %v10634_v50  ;;  %1235 = vmatprep.subr.bf16.mxu1 %v10636_v54  ;;  %v10654_v16 = vld [vmem:[#allocation10 + $0x4c] ss:$16 sps:$4 sm:$0xff]   ;;  %v10656_v17 = vld [vmem:[#allocation10 + $0x40] ss:$16 sps:$4 sm:$0xff]   ;;  %v10657_v21 = vld [vmem:[#allocation10 + $0x48] ss:$16 sps:$4 sm:$0xff]  }
  0xb6   : > { %562 = vadd.xlane.f32.xlu1 %v561_v43  ;;  %v10658_v22 = vld [vmem:[#allocation10 + $0x24] ss:$16 sps:$4 sm:$0xff]   ;;  %v10660_v23 = vld [vmem:[#allocation10 + $0x2c] ss:$16 sps:$4 sm:$0xff]   ;;  %v10662_v38 = vld [vmem:[#allocation10 + $0x20] ss:$16 sps:$4 sm:$0xff]  }
  0xb7   : > { %1123 = vmatpush1.bf16.msra.mxu0 %v10638_v58  ;;  %v12422_v24 = vld [vmem:[%s12299_s23 + $0xb0] sm:$0xff]  ;;  %v12425_v27 = vld [vmem:[%s12299_s23 + $0xb8] sm:$0xff]  ;;  %v12428_v28 = vld [vmem:[%s12299_s23 + $0xa0] sm:$0xff] }
  0xb8   : > { %565 = vadd.xlane.f32.xlu0 %v564_v51  ;;  %1236 = vmatpush1.bf16.msra.mxu1 %v10639_v59  ;;  %v536_v29 = vmul.f32 %v12422_v24, %v12422_v24  ;;  %v537_v32 = vmul.f32 %v12425_v27, %v12425_v27  ;;  %v12435_v35 = vld [vmem:[%s12299_s23 + $0xa8] sm:$0xff]  ;;  %v534_v36 = vmul.f32 %v12428_v28, %v12428_v28  ;;  %v10664_v42 = vld [vmem:[#allocation10 + $0x4] ss:$16 sps:$4 sm:$0xff]   ;;  %v10668_v46 = vld [vmem:[#allocation10] ss:$16 sps:$4 sm:$0xff]  }
  0xb9   : > { %1124 = vmatprep.subr.bf16.mxu0 %v10640_v60  ;;  %1237 = vmatprep.subr.bf16.mxu1 %v10642_v61  ;;  %v535_v37 = vmul.f32 %v12435_v35, %v12435_v35  ;;  %v10663_v39 = vld [vmem:[#allocation10 + $0x28] ss:$16 sps:$4 sm:$0xff]   ;;  %v10666_v44 = vld [vmem:[#allocation10 + $0xc] ss:$16 sps:$4 sm:$0xff]   ;;  %v10670_v48 = vld [vmem:[#allocation10 + $0x1e4] ss:$16 sps:$4 sm:$0xff]  }
  0xba   : > { %568 = vadd.xlane.f32.xlu1 %v567_v55  ;;  %v579_v43 = vadd.f32 %v537_v32, %v536_v29  ;;  %v10669_v47 = vld [vmem:[#allocation10 + $0x8] ss:$16 sps:$4 sm:$0xff]   ;;  %v10672_v49 = vld [vmem:[#allocation10 + $0x1ec] ss:$16 sps:$4 sm:$0xff]   ;;  %v10674_v50 = vld [vmem:[#allocation10 + $0x1e0] ss:$16 sps:$4 sm:$0xff]  }
  0xbb   : > { %1125 = vmatpush1.bf16.msra.mxu0 %v10644_v3  ;;  %v576_v45 = vadd.f32 %v535_v37, %v534_v36  ;;  %v10675_v51 = vld [vmem:[#allocation10 + $0x1e8] ss:$16 sps:$4 sm:$0xff]   ;;  %v10676_v52 = vld [vmem:[#allocation10 + $0x1c4] ss:$16 sps:$4 sm:$0xff]   ;;  %v10678_v53 = vld [vmem:[#allocation10 + $0x1cc] ss:$16 sps:$4 sm:$0xff]  }
  0xbc   : > { %571 = vadd.xlane.f32.xlu0 %v570_v62  ;;  %1238 = vmatpush1.bf16.msra.mxu1 %v10645_v4  ;;  %v10680_v54 = vld [vmem:[#allocation10 + $0x1c0] ss:$16 sps:$4 sm:$0xff]   ;;  %v10681_v55 = vld [vmem:[#allocation10 + $0x1c8] ss:$16 sps:$4 sm:$0xff]   ;;  %v10682_v56 = vld [vmem:[#allocation10 + $0x1a4] ss:$16 sps:$4 sm:$0xff]  }
  0xbd   : > { %1126 = vmatprep.subr.bf16.mxu0 %v10646_v6  ;;  %1239 = vmatprep.subr.bf16.mxu1 %v10648_v9  ;;  %v10684_v57 = vld [vmem:[#allocation10 + $0x1ac] ss:$16 sps:$4 sm:$0xff]   ;;  %v10686_v58 = vld [vmem:[#allocation10 + $0x1a0] ss:$16 sps:$4 sm:$0xff]   ;;  %v10687_v4 = vld [vmem:[#allocation10 + $0x1a8] ss:$16 sps:$4 sm:$0xff]  }
  0xbe   : > { %574 = vadd.xlane.f32.xlu1 %v573_v63  ;;  %v12442_v59 = vld [vmem:[%s12299_s23 + $0xd0] sm:$0xff]  ;;  %v12445_v60 = vld [vmem:[%s12299_s23 + $0xd8] sm:$0xff]  ;;  %v12452_v63 = vld [vmem:[%s12299_s23 + $0xc0] sm:$0xff] }
  0xbf   : > { %1127 = vmatpush1.bf16.msra.mxu0 %v10650_v10  ;;  %v540_v61 = vmul.f32 %v12442_v59, %v12442_v59  ;;  %v541_v62 = vmul.f32 %v12445_v60, %v12445_v60  ;;  %v12455_v3 = vld [vmem:[%s12299_s23 + $0xc8] sm:$0xff]  ;;  %v538_v6 = vmul.f32 %v12452_v63, %v12452_v63  ;;  %v10688_v10 = vld [vmem:[#allocation10 + $0x184] ss:$16 sps:$4 sm:$0xff]   ;;  %v10698_v32 = vld [vmem:[#allocation10 + $0x160] ss:$16 sps:$4 sm:$0xff]  }
  0xc0   : > { %1240 = vmatpush1.bf16.msra.mxu1 %v10651_v11  ;;  %1128 = vmatprep.subr.bf16.mxu0 %v10652_v15  ;;  %v539_v9 = vmul.f32 %v12455_v3, %v12455_v3  ;;  %v10690_v11 = vld [vmem:[#allocation10 + $0x18c] ss:$16 sps:$4 sm:$0xff]   ;;  %v12462_v29 = vld [vmem:[%s12299_s23 + $0xf0] sm:$0xff]  ;;  %v10699_v36 = vld [vmem:[#allocation10 + $0x168] ss:$16 sps:$4 sm:$0xff]  }
  0xc1   : > { %1241 = vmatprep.subr.bf16.mxu1 %v10654_v16  ;;  %577 = vadd.xlane.f32.xlu0 %v576_v45  ;;  %v585_v15 = vadd.f32 %v541_v62, %v540_v61  ;;  %v12465_v37 = vld [vmem:[%s12299_s23 + $0xf8] sm:$0xff] }
  0xc2   : > { %580 = vadd.xlane.f32.xlu1 %v579_v43  ;;  %v582_v16 = vadd.f32 %v539_v9, %v538_v6  ;;  %v10702_v43 = vld [vmem:[#allocation10 + $0x14c] ss:$16 sps:$4 sm:$0xff]   ;;  %v545_v45 = vmul.f32 %v12465_v37, %v12465_v37  ;;  %v10717_v61 = vld [vmem:[#allocation10 + $0x108] ss:$16 sps:$4 sm:$0xff]  }
  0xc3   : > { %1129 = vmatpush1.bf16.msra.mxu0 %v10656_v17  ;;  %v10692_v17 = vld [vmem:[#allocation10 + $0x180] ss:$16 sps:$4 sm:$0xff]  }
  0xc4   : > { %1242 = vmatpush1.bf16.msra.mxu1 %v10657_v21  ;;  %1130 = vmatprep.subr.bf16.mxu0 %v10658_v22  ;;  %v10693_v21 = vld [vmem:[#allocation10 + $0x188] ss:$16 sps:$4 sm:$0xff]   ;;  %v10694_v22 = vld [vmem:[#allocation10 + $0x164] ss:$16 sps:$4 sm:$0xff]  }
  0xc5   : > { %1243 = vmatprep.subr.bf16.mxu1 %v10660_v23  ;;  %v10696_v23 = vld [vmem:[#allocation10 + $0x16c] ss:$16 sps:$4 sm:$0xff]   ;;  %583 = vadd.xlane.f32.xlu0 %v582_v16 }
  0xc6   : > { %586 = vadd.xlane.f32.xlu1 %v585_v15 }
  0xc7   : > { %1131 = vmatpush1.bf16.msra.mxu0 %v10662_v38  ;;  %v12468_v38 = vld [vmem:[%s12299_s23 + $0xe0] sm:$0xff] }
  0xc8   : > { %1244 = vmatpush1.bf16.msra.mxu1 %v10663_v39  ;;  %1132 = vmatprep.subr.bf16.mxu0 %v10664_v42  ;;  %v12471_v39 = vld [vmem:[%s12299_s23 + $0xe8] sm:$0xff]  ;;  %v10700_v42 = vld [vmem:[#allocation10 + $0x144] ss:$16 sps:$4 sm:$0xff]  }
  0xc9   : > { %1245 = vmatprep.subr.bf16.mxu1 %v10666_v44  ;;  %v544_v44 = vmul.f32 %v12462_v29, %v12462_v29 }
  0xcb   : > { %1133 = vmatpush1.bf16.msra.mxu0 %v10668_v46  ;;  %v542_v46 = vmul.f32 %v12468_v38, %v12468_v38 }
  0xcc   : > { %1246 = vmatpush1.bf16.msra.mxu1 %v10669_v47  ;;  %1134 = vmatprep.subr.bf16.mxu0 %v10670_v48  ;;  %v543_v47 = vmul.f32 %v12471_v39, %v12471_v39  ;;  %v591_v48 = vadd.f32 %v545_v45, %v544_v44 }
  0xcd   : > { %1247 = vmatprep.subr.bf16.mxu1 %v10672_v49 }
  0xce   : > { %v588_v49 = vadd.f32 %v543_v47, %v542_v46  ;;  %592 = vadd.xlane.f32.xlu1 %v591_v48 }
  0xcf   : > { %1135 = vmatpush2.bf16.msra.mxu0 %v10674_v50  ;;  %v10704_v50 = vld [vmem:[#allocation10 + $0x140] ss:$16 sps:$4 sm:$0xff]  }
  0xd0   : > { %1248 = vmatpush2.bf16.msra.mxu1 %v10675_v51  ;;  %1136 = vmatprep.subr.bf16.mxu0 %v10676_v52  ;;  %v10705_v51 = vld [vmem:[#allocation10 + $0x148] ss:$16 sps:$4 sm:$0xff]   ;;  %v10706_v52 = vld [vmem:[#allocation10 + $0x124] ss:$16 sps:$4 sm:$0xff]  }
  0xd1   : > { %1249 = vmatprep.subr.bf16.mxu1 %v10678_v53  ;;  %v10708_v53 = vld [vmem:[#allocation10 + $0x12c] ss:$16 sps:$4 sm:$0xff]   ;;  %589 = vadd.xlane.f32.xlu0 %v588_v49 }
  0xd3   : > { %1137 = vmatpush2.bf16.msra.mxu0 %v10680_v54  ;;  %v10710_v54 = vld [vmem:[#allocation10 + $0x120] ss:$16 sps:$4 sm:$0xff]  }
  0xd4   : > { %1250 = vmatpush2.bf16.msra.mxu1 %v10681_v55  ;;  %1138 = vmatprep.subr.bf16.mxu0 %v10682_v56  ;;  %v10711_v55 = vld [vmem:[#allocation10 + $0x128] ss:$16 sps:$4 sm:$0xff]   ;;  %v10712_v56 = vld [vmem:[#allocation10 + $0x104] ss:$16 sps:$4 sm:$0xff]  }
  0xd5   : > { %1251 = vmatprep.subr.bf16.mxu1 %v10684_v57  ;;  %v10714_v57 = vld [vmem:[#allocation10 + $0x10c] ss:$16 sps:$4 sm:$0xff]  }
  0xd7   : > { %1139 = vmatpush2.bf16.msra.mxu0 %v10686_v58  ;;  %v10716_v58 = vld [vmem:[#allocation10 + $0x100] ss:$16 sps:$4 sm:$0xff]  }
  0xd8   : > { %1252 = vmatpush2.bf16.msra.mxu1 %v10687_v4  ;;  %1140 = vmatprep.subr.bf16.mxu0 %v10688_v10 }
  0xd9   : > { %1253 = vmatprep.subr.bf16.mxu1 %v10690_v11 }
  0xdb   : > { %1141 = vmatpush2.bf16.msra.mxu0 %v10692_v17 }
  0xdc   : > { %1254 = vmatpush2.bf16.msra.mxu1 %v10693_v21  ;;  %1142 = vmatprep.subr.bf16.mxu0 %v10694_v22 }
  0xdd   : > { %1255 = vmatprep.subr.bf16.mxu1 %v10696_v23 }
  0xdf   : > { %1143 = vmatpush2.bf16.msra.mxu0 %v10698_v32 }
  0xe0   : > { %1256 = vmatpush2.bf16.msra.mxu1 %v10699_v36  ;;  %1144 = vmatprep.subr.bf16.mxu0 %v10700_v42  ;;  %v676_v36 = vlaneseq }
  0xe1   : > { %1257 = vmatprep.subr.bf16.mxu1 %v10702_v43 }
  0xe2   : > { %v12482_v48 = vshrl.u32 %v676_v36, 7 }
  0xe3   : > { %1145 = vmatpush2.bf16.msra.mxu0 %v10704_v50 }
  0xe4   : > { %1258 = vmatpush2.bf16.msra.mxu1 %v10705_v51  ;;  %1146 = vmatprep.subr.bf16.mxu0 %v10706_v52  ;;  %17502 = vst [vmem:[#allocation23_spill] sm:$0xff] %v12482_v48 }
  0xe5   : > { %1259 = vmatprep.subr.bf16.mxu1 %v10708_v53 }
  0xe7   : > { %1147 = vmatpush2.bf16.msra.mxu0 %v10710_v54 }
  0xe8   : > { %1260 = vmatpush2.bf16.msra.mxu1 %v10711_v55  ;;  %1148 = vmatprep.subr.bf16.mxu0 %v10712_v56  ;;  %v17159_v55 = vsub.s32 0, %v12482_v48  ;;  %v17158_v56 = vsub.s32 1, %v12482_v48 }
  0xe9   : > { %1261 = vmatprep.subr.bf16.mxu1 %v10714_v57 }
  0xeb   : > { %1149 = vmatpush2.bf16.msra.mxu0 %v10716_v58 }
  0xec   : > { %1262 = vmatpush2.bf16.msra.mxu1 %v10717_v61  ;;  %v513_v61 = vld [vmem:[%s17145_s4] sm:$0x3] }
 0x135   : > { %v548_v62 = vpop.xlane.xlu0 %547 }
 0x136   : > { %v595_v4 = vmul.f32 0.00390625, %v548_v62 }
 0x137   : > { %v554_v6 = vpop.xlane.xlu1 %553 }
 0x138   : > { %v597_v9 = vmul.f32 0.00390625, %v554_v6  ;;  %v611_v10 = vadd.f32 1e-05, %v595_v4 }
 0x139   : > { %v551_v11 = vpop.xlane.xlu0 %550 }
 0x13a   : > { %v613_v15 = vadd.f32 1e-05, %v597_v9  ;;  %10862 = vrsqrt.f32 %v611_v10  ;;  %v596_v16 = vmul.f32 0.00390625, %v551_v11  ;;  %v12493_v11 = vrot.slane %v513_v61, %v17159_v55 }
 0x13b   : > { %v557_v17 = vpop.xlane.xlu1 %556 }
 0x13c   : > { %10864 = vrsqrt.f32 %v613_v15  ;;  %v598_v21 = vmul.f32 0.00390625, %v557_v17  ;;  %v612_v22 = vadd.f32 1e-05, %v596_v16  ;;  %v12497_v15 = vrot.slane %v513_v61, %v17158_v56 }
 0x13d   : > { %v560_v32 = vpop.xlane.xlu0 %559 }
 0x13e   : > { %v614_v23 = vadd.f32 1e-05, %v598_v21  ;;  %10866 = vrsqrt.f32 %v612_v22  ;;  %v599_v43 = vmul.f32 0.00390625, %v560_v32 }
 0x13f   : > { %v563_v42 = vpop.xlane.xlu1 %562 }
 0x140   : > { %10868 = vrsqrt.f32 %v614_v23  ;;  %v600_v44 = vmul.f32 0.00390625, %v563_v42  ;;  %v615_v45 = vadd.f32 1e-05, %v599_v43 }
 0x141   : > { %v566_v47 = vpop.xlane.xlu0 %565 }
 0x142   : > { %v616_v46 = vadd.f32 1e-05, %v600_v44  ;;  %10870 = vrsqrt.f32 %v615_v45  ;;  %v601_v50 = vmul.f32 0.00390625, %v566_v47 }
 0x143   : > { %v569_v49 = vpop.xlane.xlu1 %568 }
 0x144   : > { %10872 = vrsqrt.f32 %v616_v46  ;;  %v602_v51 = vmul.f32 0.00390625, %v569_v49  ;;  %v617_v52 = vadd.f32 1e-05, %v601_v50 }
 0x145   : > { %v572_v54 = vpop.xlane.xlu0 %571 }
 0x146   : > { %v618_v53 = vadd.f32 1e-05, %v602_v51  ;;  %10874 = vrsqrt.f32 %v617_v52  ;;  %v603_v62 = vmul.f32 0.00390625, %v572_v54 }
 0x147   : > { %v575_v57 = vpop.xlane.xlu1 %574  ;;  %v10863_v58 = vpop.eup %10862 }
 0x148   : > { %10876 = vrsqrt.f32 %v618_v53  ;;  %v604_v6 = vmul.f32 0.00390625, %v575_v57  ;;  %v644_v10 = vmul.f32 %v10863_v58, %v12325_v1  ;;  %v643_v16 = vmul.f32 %v10863_v58, %v12322_v0 }
 0x149   : > { %v10865_v4 = vpop.eup %10864  ;;  %v619_v21 = vadd.f32 1e-05, %v603_v62 }
 0x14a   : > { %v648_v9 = vmul.f32 %v10865_v4, %v12343_v8  ;;  %v620_v8 = vadd.f32 1e-05, %v604_v6  ;;  %v687_v43 = vmul.f32 %v12497_v15, %v644_v10  ;;  %v686_v45 = vmul.f32 %v12493_v11, %v643_v16  ;;  %v578_v58 = vpop.xlane.xlu0 %577 }
 0x14b   : > { %v10867_v17 = vpop.eup %10866  ;;  %10878 = vrsqrt.f32 %v619_v21  ;;  %v581_v54 = vpop.xlane.xlu1 %580  ;;  %v605_v61 = vmul.f32 0.00390625, %v578_v58 }
 0x14c   : > { %v646_v23 = vmul.f32 %v10867_v17, %v12335_v5  ;;  %v645_v32 = vmul.f32 %v10867_v17, %v12328_v2  ;;  %v691_v42 = vmul.f32 %v12497_v15, %v648_v9  ;;  %v647_v5 = vmul.f32 %v10865_v4, %v12340_v7 }
 0x14d   : > { %v10869_v22 = vpop.eup %10868  ;;  %10880 = vrsqrt.f32 %v620_v8  ;;  %v606_v57 = vmul.f32 0.00390625, %v581_v54  ;;  %v621_v9 = vadd.f32 1e-05, %v605_v61 }
 0x14e   : > { %v650_v1 = vmul.f32 %v10869_v22, %v12355_v13  ;;  %v689_v44 = vmul.f32 %v12497_v15, %v646_v23  ;;  %v688_v0 = vmul.f32 %v12493_v11, %v645_v32  ;;  %v649_v2 = vmul.f32 %v10869_v22, %v12352_v12 }
 0x14f   : > { %v10871_v46 = vpop.eup %10870  ;;  %v690_v7 = vmul.f32 %v12493_v11, %v647_v5 }
 0x150   : > { %v693_v47 = vmul.f32 %v12497_v15, %v650_v1  ;;  %v719_v13 = vpack.c.bf16 %v689_v44, %v687_v43  ;;  %v718_v50 = vpack.c.bf16 %v688_v0, %v686_v45  ;;  %v652_v51 = vmul.f32 %v10871_v46, %v12371_v20 }
 0x151   : > { %v10873_v49 = vpop.eup %10872  ;;  %v692_v12 = vmul.f32 %v12493_v11, %v649_v2  ;;  %v651_v16 = vmul.f32 %v10871_v46, %v12368_v19  ;;  %v587_v46 = vpop.xlane.xlu1 %586 }
 0x152   : > { %v721_v52 = vpack.c.bf16 %v693_v47, %v691_v42  ;;  %v654_v53 = vmul.f32 %v10873_v49, %v12365_v18  ;;  %1150 = vmatprep.mubr.bf16.mxu0 %v719_v13  ;;  %1263 = vmatprep.mubr.bf16.mxu1 %v719_v13  ;;  %v695_v20 = vmul.f32 %v12497_v15, %v652_v51  ;;  %v622_v18 = vadd.f32 1e-05, %v606_v57 }
 0x153   : > { %1151 = vmatmul.mubr.bf16.vlgmr.msra.gmra.mxu0 %v718_v50  ;;  %1264 = vmatmul.mubr.bf16.vlgmr.msra.gmra.mxu1 %v718_v50  ;;  %v10875_v62 = vpop.eup %10874  ;;  %v720_v10 = vpack.c.bf16 %v692_v12, %v690_v7  ;;  %v653_v17 = vmul.f32 %v10873_v49, %v12358_v14  ;;  %v694_v32 = vmul.f32 %v12493_v11, %v651_v16  ;;  %v608_v2 = vmul.f32 0.00390625, %v587_v46 }
 0x154   : > { %1160 = vmatprep.mubr.bf16.mxu0 %v721_v52  ;;  %1273 = vmatprep.mubr.bf16.mxu1 %v721_v52  ;;  %v697_v4 = vmul.f32 %v12497_v15, %v654_v53  ;;  %10882 = vrsqrt.f32 %v622_v18  ;;  %v656_v22 = vmul.f32 %v10875_v62, %v12391_v31  ;;  %v655_v31 = vmul.f32 %v10875_v62, %v12388_v30 }
 0x155   : > { %v10877_v6 = vpop.eup %10876  ;;  %10884 = vrsqrt.f32 %v621_v9  ;;  %v696_v8 = vmul.f32 %v12493_v11, %v653_v17  ;;  %v624_v50 = vadd.f32 1e-05, %v608_v2 }
 0x156   : > { %v723_v21 = vpack.c.bf16 %v697_v4, %v695_v20  ;;  %v658_v23 = vmul.f32 %v10877_v6, %v12381_v26  ;;  %v699_v19 = vmul.f32 %v12497_v15, %v656_v22  ;;  %v657_v26 = vmul.f32 %v10877_v6, %v12378_v25 }
 0x157   : > { %v722_v43 = vpack.c.bf16 %v696_v8, %v694_v32  ;;  %v698_v47 = vmul.f32 %v12493_v11, %v655_v31  ;;  %10886 = vrsqrt.f32 %v624_v50  ;;  %v593_v12 = vpop.xlane.xlu1 %592 }
 0x158   : > { %v10879_v1 = vpop.eup %10878  ;;  %v701_v14 = vmul.f32 %v12497_v15, %v658_v23  ;;  %v700_v5 = vmul.f32 %v12493_v11, %v657_v26  ;;  %v610_v4 = vmul.f32 0.00390625, %v593_v12 }
 0x159   : > { %v660_v45 = vmul.f32 %v10879_v1, %v12397_v34  ;;  %v584_v34 = vpop.xlane.xlu0 %583  ;;  %v659_v52 = vmul.f32 %v10879_v1, %v12394_v33 }
 0x15a   : > { %v10881_v42 = vpop.eup %10880  ;;  %v725_v44 = vpack.c.bf16 %v701_v14, %v699_v19  ;;  %v607_v51 = vmul.f32 0.00390625, %v584_v34 }
 0x15b   : > { %1161 = vmatmul.mubr.bf16.gmra.mxu0 %v720_v10  ;;  %1274 = vmatmul.mubr.bf16.gmra.mxu1 %v720_v10  ;;  %v662_v0 = vmul.f32 %v10881_v42, %v12407_v41  ;;  %v703_v30 = vmul.f32 %v12497_v15, %v660_v45  ;;  %v724_v41 = vpack.c.bf16 %v700_v5, %v698_v47 }
 0x15c   : > { %1170 = vmatprep.mubr.bf16.mxu0 %v723_v21  ;;  %1283 = vmatprep.mubr.bf16.mxu1 %v723_v21  ;;  %v661_v53 = vmul.f32 %v10881_v42, %v12404_v40  ;;  %v623_v57 = vadd.f32 1e-05, %v607_v51  ;;  %v702_v62 = vmul.f32 %v12493_v11, %v659_v52 }
 0x15d   : > { %v705_v25 = vmul.f32 %v12497_v15, %v662_v0  ;;  %v590_v61 = vpop.xlane.xlu0 %589 }
 0x15e   : > { %10888 = vrsqrt.f32 %v623_v57  ;;  %v704_v20 = vmul.f32 %v12493_v11, %v661_v53  ;;  %v609_v33 = vmul.f32 0.00390625, %v590_v61 }
 0x15f   : > { %v727_v54 = vpack.c.bf16 %v705_v25, %v703_v30  ;;  %v12572_v30 = vld [vmem:[#allocation5 + $0x10] sm:$0xff] }
 0x160   : > { %v625_v6 = vadd.f32 1e-05, %v609_v33 }
 0x161   : > { %v10883_v49 = vpop.eup %10882 }
 0x162   : > { %v10885_v13 = vpop.eup %10884  ;;  %v666_v7 = vmul.f32 %v10883_v49, %v12425_v27  ;;  %v726_v27 = vpack.c.bf16 %v704_v20, %v702_v62  ;;  %v665_v10 = vmul.f32 %v10883_v49, %v12422_v24 }
 0x163   : > { %1171 = vmatmul.mubr.bf16.gmra.mxu0 %v722_v43  ;;  %1284 = vmatmul.mubr.bf16.gmra.mxu1 %v722_v43  ;;  %v664_v58 = vmul.f32 %v10885_v13, %v12435_v35  ;;  %v626_v35 = vadd.f32 1e-05, %v610_v4  ;;  %v663_v9 = vmul.f32 %v10885_v13, %v12428_v28 }
 0x164   : > { %1180 = vmatprep.mubr.bf16.mxu0 %v725_v44  ;;  %1293 = vmatprep.mubr.bf16.mxu1 %v725_v44  ;;  %v709_v18 = vmul.f32 %v12497_v15, %v666_v7  ;;  %v708_v21 = vmul.f32 %v12493_v11, %v665_v10  ;;  %v10887_v22 = vpop.eup %10886 }
 0x165   : > { %v707_v40 = vmul.f32 %v12497_v15, %v664_v58  ;;  %10890 = vrsqrt.f32 %v626_v35  ;;  %v706_v17 = vmul.f32 %v12493_v11, %v663_v9  ;;  %v670_v23 = vmul.f32 %v10887_v22, %v12445_v60 }
 0x166   : > { %10892 = vrsqrt.f32 %v625_v6  ;;  %v669_v28 = vmul.f32 %v10887_v22, %v12442_v59 }
 0x167   : > { %v729_v16 = vpack.c.bf16 %v709_v18, %v707_v40  ;;  %v728_v8 = vpack.c.bf16 %v708_v21, %v706_v17  ;;  %v713_v1 = vmul.f32 %v12497_v15, %v670_v23 }
 0x168   : > { %v712_v43 = vmul.f32 %v12493_v11, %v669_v28 }
 0x16b   : > { %1181 = vmatmul.mubr.bf16.gmra.mxu0 %v724_v41  ;;  %1294 = vmatmul.mubr.bf16.gmra.mxu1 %v724_v41  ;;  %v10889_v32 = vpop.eup %10888 }
 0x16c   : > { %1190 = vmatprep.mubr.bf16.mxu0 %v727_v54  ;;  %1303 = vmatprep.mubr.bf16.mxu1 %v727_v54  ;;  %v668_v24 = vmul.f32 %v10889_v32, %v12455_v3  ;;  %v667_v19 = vmul.f32 %v10889_v32, %v12452_v63 }
 0x16e   : > { %v711_v14 = vmul.f32 %v12497_v15, %v668_v24  ;;  %v710_v42 = vmul.f32 %v12493_v11, %v667_v19 }
 0x170   : > { %v731_v60 = vpack.c.bf16 %v713_v1, %v711_v14  ;;  %v730_v3 = vpack.c.bf16 %v712_v43, %v710_v42 }
 0x172   : > { %v10891_v31 = vpop.eup %10890 }
 0x173   : > { %1191 = vmatmul.mubr.bf16.gmra.mxu0 %v726_v27  ;;  %1304 = vmatmul.mubr.bf16.gmra.mxu1 %v726_v27  ;;  %v10893_v26 = vpop.eup %10892  ;;  %v674_v44 = vmul.f32 %v10891_v31, %v12465_v37  ;;  %v673_v0 = vmul.f32 %v10891_v31, %v12462_v29 }
 0x174   : > { %1200 = vmatprep.mubr.bf16.mxu0 %v729_v16  ;;  %1313 = vmatprep.mubr.bf16.mxu1 %v729_v16  ;;  %v672_v59 = vmul.f32 %v10893_v26, %v12471_v39  ;;  %v671_v45 = vmul.f32 %v10893_v26, %v12468_v38  ;;  %v12561_v39 = vld [vmem:[#allocation5] sm:$0xff] }
 0x175   : > { %v717_v63 = vmul.f32 %v12497_v15, %v674_v44  ;;  %v716_v37 = vmul.f32 %v12493_v11, %v673_v0  ;;  %v1376_v44 = vld [vmem:[#allocation7] sm:$0xff] }
 0x176   : > { %v715_v46 = vmul.f32 %v12497_v15, %v672_v59  ;;  %v714_v5 = vmul.f32 %v12493_v11, %v671_v45  ;;  %v1378_v45 = vld [vmem:[#allocation7 + $0x10] sm:$0xff]  ;;  %v1408_v0 = vld [vmem:[#allocation8] sm:$0xff] }
 0x178   : > { %v733_v47 = vpack.c.bf16 %v717_v63, %v715_v46  ;;  %v732_v2 = vpack.c.bf16 %v716_v37, %v714_v5 }
 0x17b   : > { %1201 = vmatmul.mubr.bf16.gmra.mxu0 %v728_v8  ;;  %1314 = vmatmul.mubr.bf16.gmra.mxu1 %v728_v8 }
 0x17c   : > { %1210 = vmatprep.mubr.bf16.mxu0 %v731_v60  ;;  %1323 = vmatprep.mubr.bf16.mxu1 %v731_v60 }
 0x183   : > { %1211 = vmatmul.mubr.bf16.gmra.mxu0 %v730_v3  ;;  %1324 = vmatmul.mubr.bf16.gmra.mxu1 %v730_v3 }
 0x184   : > { %1220 = vmatprep.mubr.bf16.mxu0 %v733_v47  ;;  %1333 = vmatprep.mubr.bf16.mxu1 %v733_v47  ;;  %v12765_v47 = vand.u32 127, %v676_v36 }
 0x186   : > { %vm1506_vm0 = vcmp.lt.s32.totalorder %v12765_v47, 127  ;;  %vm1603_vm1 = vcmp.lt.s32.totalorder %v12765_v47, 1 }
 0x18b   : > { %1221 = vmatmul.mubr.bf16.gmra.mxu0 %v732_v2  ;;  %1334 = vmatmul.mubr.bf16.gmra.mxu1 %v732_v2 }
 0x213   : > { %v12563_v49 = vpop.f32.mrf.mxu0  ;;  %v1265_v38 = vpop.f32.mrf.mxu1 }
 0x214   : > { %v12566_v29 = vmul.f32 %v12561_v39, %v1265_v38  ;;  %1440 = vrot.lane.b32.xlu0 %v12563_v49, %s12032_s29 }
 0x215   : > { %v12570_v15 = vpop.f32.mrf.mxu0  ;;  %v1267_v11 = vpop.f32.mrf.mxu1 }
 0x217   : > { %v12574_v25 = vpop.f32.mrf.mxu0  ;;  %v1269_v13 = vpop.f32.mrf.mxu1 }
 0x218   : > { %v12577_v50 = vmul.f32 %v12572_v30, %v1269_v13  ;;  %1539 = vrot.lane.b32.xlu0 %v12563_v49, %s12033_s11  ;;  %1442 = vrot.lane.b32.xlu1 %v12574_v25, %s12032_s29 }
 0x219   : > { %v12591_v34 = vpop.f32.mrf.mxu0  ;;  %v1271_v51 = vpop.f32.mrf.mxu1 }
 0x21a   : > { %v12603_v52 = vpack.c.bf16 %v1271_v51, %v1267_v11 }
 0x21b   : > { %v12597_v41 = vpop.f32.mrf.mxu0  ;;  %v12611_v54 = vpop.f32.mrf.mxu1 }
 0x21c   : > { %1796 = vrot.lane.b32.xlu0 %v1265_v38, %s12032_s29  ;;  %1541 = vrot.lane.b32.xlu1 %v12574_v25, %s12033_s11  ;;  %17503 = vst [vmem:[#allocation24_spill] sm:$0xff] %v12603_v52 }
 0x21d   : > { %v12605_v53 = vpop.f32.mrf.mxu0  ;;  %v1277_v58 = vpop.f32.mrf.mxu1 }
 0x21f   : > { %v12613_v57 = vpop.f32.mrf.mxu0  ;;  %v12623_v7 = vpop.f32.mrf.mxu1 }
 0x220   : > { %1828 = vrot.lane.b32.xlu0 %v1265_v38, %s12033_s11  ;;  %1798 = vrot.lane.b32.xlu1 %v1269_v13, %s12032_s29 }
 0x221   : > { %v1281_v12 = vpop.f32.mrf.mxu1  ;;  %v12633_v61 = vpop.f32.mrf.mxu0 }
 0x222   : > { %v12659_v18 = vpack.c.bf16 %v1281_v12, %v1277_v58 }
 0x223   : > { %v12635_v62 = vpop.f32.mrf.mxu1  ;;  %v12645_v4 = vpop.f32.mrf.mxu0 }
 0x224   : > { %1472 = vrot.lane.b32.xlu0 %v12570_v15, %s12032_s29  ;;  %1830 = vrot.lane.b32.xlu1 %v1269_v13, %s12033_s11  ;;  %17504 = vst [vmem:[#allocation25_spill] sm:$0xff] %v12659_v18  ;;  %v1410_v13 = vld [vmem:[#allocation8 + $0x10] sm:$0xff] }
 0x225   : > { %v1287_v20 = vpop.f32.mrf.mxu1  ;;  %v12653_v40 = vpop.f32.mrf.mxu0 }
 0x227   : > { %v12647_v33 = vpop.f32.mrf.mxu1  ;;  %v12661_v35 = vpop.f32.mrf.mxu0 }
 0x228   : > { %1571 = vrot.lane.b32.xlu0 %v12570_v15, %s12033_s11  ;;  %1474 = vrot.lane.b32.xlu1 %v12591_v34, %s12032_s29 }
 0x229   : > { %v12671_v6 = vpop.f32.mrf.mxu0  ;;  %v1291_v27 = vpop.f32.mrf.mxu1 }
 0x22a   : > { %v12681_v9 = vpack.c.bf16 %v1291_v27, %v1287_v20 }
 0x22b   : > { %v12683_v10 = vpop.f32.mrf.mxu1  ;;  %v12693_v17 = vpop.f32.mrf.mxu0 }
 0x22c   : > { %1573 = vrot.lane.b32.xlu1 %v12591_v34, %s12033_s11  ;;  %1444 = vrot.lane.b32.xlu0 %v12597_v41, %s12032_s29  ;;  %17505 = vst [vmem:[#allocation26_spill] sm:$0xff] %v12681_v9 }
 0x22d   : > { %v1297_v16 = vpop.f32.mrf.mxu1  ;;  %v12701_v22 = vpop.f32.mrf.mxu0 }
 0x22e   : > { %17506 = vst [vmem:[#allocation27_spill] sm:$0xff] %v12701_v22 }
 0x22f   : > { %v12695_v21 = vpop.f32.mrf.mxu1  ;;  %v12707_v23 = vpop.f32.mrf.mxu0 }
 0x230   : > { %2148 = vrot.lane.b32.xlu1 %v12603_v52, %s12034_s28  ;;  %1543 = vrot.lane.b32.xlu0 %v12597_v41, %s12033_s11  ;;  %v1414_v52 = vld [vmem:[#allocation8 + $0x30] sm:$0xff] }
 0x231   : > { %v1301_v32 = vpop.f32.mrf.mxu1  ;;  %v12717_v8 = vpop.f32.mrf.mxu0 }
 0x232   : > { %17507 = vst [vmem:[#allocation28_spill] sm:$0xff] %v12717_v8  ;;  %v12745_v43 = vpack.c.bf16 %v1301_v32, %v1297_v16 }
 0x233   : > { %v12719_v28 = vpop.f32.mrf.mxu1  ;;  %v12729_v1 = vpop.f32.mrf.mxu0 }
 0x234   : > { %1800 = vrot.lane.b32.xlu0 %v12611_v54, %s12032_s29  ;;  %1446 = vrot.lane.b32.xlu1 %v12613_v57, %s12032_s29  ;;  %17508 = vst [vmem:[#allocation29_spill] sm:$0xff] %v12719_v28  ;;  %17509 = vst [vmem:[#allocation30_spill] sm:$0xff] %v12729_v1 }
 0x235   : > { %v1307_v24 = vpop.f32.mrf.mxu1  ;;  %v12739_v42 = vpop.f32.mrf.mxu0  ;;  %17512 = vst [vmem:[#allocation33_spill] sm:$0xff] %v12745_v43 }
 0x236   : > { %17511 = vst [vmem:[#allocation32_spill] sm:$0xff] %v12739_v42 }
 0x237   : > { %v12731_v19 = vpop.f32.mrf.mxu1  ;;  %v12751_v26 = vpop.f32.mrf.mxu0 }
 0x238   : > { %1832 = vrot.lane.b32.xlu0 %v12611_v54, %s12033_s11  ;;  %1545 = vrot.lane.b32.xlu1 %v12613_v57, %s12033_s11  ;;  %17510 = vst [vmem:[#allocation31_spill] sm:$0xff] %v12731_v19  ;;  %17513 = vst [vmem:[#allocation34_spill] sm:$0xff] %v12751_v26 }
 0x239   : > { %v12767_v2 = vpop.f32.mrf.mxu0  ;;  %v1311_v12 = vpop.f32.mrf.mxu1 }
 0x23a   : > { %17514 = vst [vmem:[#allocation35_spill] sm:$0xff] %v12767_v2  ;;  %v12786_v16 = vpack.c.bf16 %v1311_v12, %v1307_v24 }
 0x23c   : > { %1476 = vrot.lane.b32.xlu0 %v12605_v53, %s12032_s29  ;;  %1802 = vrot.lane.b32.xlu1 %v12623_v7, %s12032_s29  ;;  %17515 = vst [vmem:[#allocation36_spill] sm:$0xff] %v12786_v16 }
 0x240   : > { %1575 = vrot.lane.b32.xlu0 %v12605_v53, %s12033_s11  ;;  %1834 = vrot.lane.b32.xlu1 %v12623_v7, %s12033_s11 }
 0x244   : > { %1478 = vrot.lane.b32.xlu1 %v12633_v61, %s12032_s29  ;;  %1804 = vrot.lane.b32.xlu0 %v12635_v62, %s12032_s29 }
 0x248   : > { %1577 = vrot.lane.b32.xlu1 %v12633_v61, %s12033_s11  ;;  %1836 = vrot.lane.b32.xlu0 %v12635_v62, %s12033_s11 }
 0x24c   : > { %1806 = vrot.lane.b32.xlu1 %v12647_v33, %s12032_s29  ;;  %1448 = vrot.lane.b32.xlu0 %v12645_v4, %s12032_s29 }
 0x250   : > { %1838 = vrot.lane.b32.xlu1 %v12647_v33, %s12033_s11  ;;  %1547 = vrot.lane.b32.xlu0 %v12645_v4, %s12033_s11 }
 0x254   : > { %2150 = vrot.lane.b32.xlu0 %v12659_v18, %s12034_s28  ;;  %1450 = vrot.lane.b32.xlu1 %v12661_v35, %s12032_s29 }
 0x258   : > { %2174 = vrot.lane.b32.xlu0 %v12659_v18, %s12035_s18  ;;  %1549 = vrot.lane.b32.xlu1 %v12661_v35, %s12033_s11 }
 0x25c   : > { %1480 = vrot.lane.b32.xlu0 %v12653_v40, %s12032_s29  ;;  %1482 = vrot.lane.b32.xlu1 %v12671_v6, %s12032_s29 }
 0x260   : > { %1579 = vrot.lane.b32.xlu0 %v12653_v40, %s12033_s11  ;;  %1581 = vrot.lane.b32.xlu1 %v12671_v6, %s12033_s11 }
 0x264   : > { %2152 = vrot.lane.b32.xlu1 %v12681_v9, %s12034_s28  ;;  %1808 = vrot.lane.b32.xlu0 %v12683_v10, %s12032_s29 }
 0x268   : > { %2176 = vrot.lane.b32.xlu1 %v12681_v9, %s12035_s18  ;;  %1840 = vrot.lane.b32.xlu0 %v12683_v10, %s12033_s11 }
 0x26c   : > { %1810 = vrot.lane.b32.xlu1 %v12695_v21, %s12032_s29  ;;  %1452 = vrot.lane.b32.xlu0 %v12693_v17, %s12032_s29 }
 0x270   : > { %1842 = vrot.lane.b32.xlu1 %v12695_v21, %s12033_s11  ;;  %1551 = vrot.lane.b32.xlu0 %v12693_v17, %s12033_s11 }
 0x274   : > { %1484 = vrot.lane.b32.xlu0 %v12701_v22, %s12032_s29  ;;  %1454 = vrot.lane.b32.xlu1 %v12707_v23, %s12032_s29 }
 0x278   : > { %1583 = vrot.lane.b32.xlu0 %v12701_v22, %s12033_s11  ;;  %1553 = vrot.lane.b32.xlu1 %v12707_v23, %s12033_s11 }
 0x27c   : > { %1486 = vrot.lane.b32.xlu1 %v12717_v8, %s12032_s29  ;;  %1812 = vrot.lane.b32.xlu0 %v12719_v28, %s12032_s29 }
 0x280   : > { %1585 = vrot.lane.b32.xlu1 %v12717_v8, %s12033_s11  ;;  %1844 = vrot.lane.b32.xlu0 %v12719_v28, %s12033_s11 }
 0x284   : > { %1814 = vrot.lane.b32.xlu1 %v12731_v19, %s12032_s29  ;;  %1456 = vrot.lane.b32.xlu0 %v12729_v1, %s12032_s29 }
 0x286   : > { %v12737_v14 = vpop.permute.xlu0 %1440 }
 0x288   : > { %1846 = vrot.lane.b32.xlu1 %v12731_v19, %s12033_s11  ;;  %1555 = vrot.lane.b32.xlu0 %v12729_v1, %s12033_s11 }
 0x28a   : > { %v12747_v31 = vpop.permute.xlu1 %1442  ;;  %v12749_v60 = vpop.permute.xlu0 %1539 }
 0x28c   : > { %2154 = vrot.lane.b32.xlu0 %v12745_v43, %s12034_s28  ;;  %1458 = vrot.lane.b32.xlu1 %v12751_v26, %s12032_s29 }
 0x28e   : > { %v12757_v59 = vpop.permute.xlu1 %1541  ;;  %v1797_v3 = vpop.permute.xlu0 %1796 }
 0x28f   : > { %v1876_v63 = vmul.f32 %v1797_v3, %v1376_v44 }
 0x290   : > { %2178 = vrot.lane.b32.xlu0 %v12745_v43, %s12035_s18  ;;  %1557 = vrot.lane.b32.xlu1 %v12751_v26, %s12033_s11 }
 0x291   : > { %v1892_v46 = vadd.f32 %v1876_v63, %v12566_v29  ;;  %v12792_v63 = vpop.f32.mrf.mxu1 }
 0x292   : > { %v1799_v5 = vpop.permute.xlu1 %1798  ;;  %v1829_v37 = vpop.permute.xlu0 %1828  ;;  %17516 = vst [vmem:[#allocation37_spill] sm:$0xff] %v12792_v63 }
 0x293   : > { %v1877_v38 = vmul.f32 %v1799_v5, %v1378_v45  ;;  %v1908_v11 = vmul.f32 %v1829_v37, %v1408_v0 }
 0x294   : > { %1488 = vrot.lane.b32.xlu0 %v12739_v42, %s12032_s29  ;;  %1490 = vrot.lane.b32.xlu1 %v12767_v2, %s12032_s29 }
 0x295   : > { %v1893_v51 = vadd.f32 %v1877_v38, %v12577_v50  ;;  %v1924_v58 = vadd.f32 %v1908_v11, %v1892_v46  ;;  %v1636_v11 = vmul.f32 %v12561_v39, %v12563_v49 }
 0x296   : > { %v1831_v29 = vpop.permute.xlu1 %1830  ;;  %v12775_v36 = vpop.permute.xlu0 %1472 }
 0x297   : > { %v1909_v20 = vmul.f32 %v1831_v29, %v1410_v13  ;;  %v1507_v50 = vsel %vm1506_vm0, %v12737_v14, %v12775_v36  ;;  %v12816_v29 = vpop.f32.mrf.mxu1 }
 0x298   : > { %1587 = vrot.lane.b32.xlu0 %v12739_v42, %s12033_s11  ;;  %1589 = vrot.lane.b32.xlu1 %v12767_v2, %s12033_s11  ;;  %v1668_v37 = vmul.f32 %v1507_v50, %v1376_v44 }
 0x299   : > { %v1925_v27 = vadd.f32 %v1909_v20, %v1893_v51  ;;  %v1638_v51 = vmul.f32 %v12572_v30, %v12574_v25 }
 0x29a   : > { %v12788_v32 = vpop.permute.xlu1 %1474  ;;  %v12790_v3 = vpop.permute.xlu0 %1571  ;;  %v1700_v20 = vadd.f32 %v1668_v37, %v1636_v11 }
 0x29b   : > { %v12794_v46 = vpack.c.bf16 %v1925_v27, %v1924_v58  ;;  %v1508_v5 = vsel %vm1506_vm0, %v12747_v31, %v12788_v32  ;;  %v1620_v24 = vsel %vm1603_vm1, %v12790_v3, %v12749_v60 }
 0x29c   : > { %v1670_v38 = vmul.f32 %v1508_v5, %v1378_v45  ;;  %2156 = vrot.lane.b32.xlu1 %v12786_v16, %s12034_s28  ;;  %1816 = vrot.lane.b32.xlu0 %v12792_v63, %s12032_s29  ;;  %v1732_v58 = vmul.f32 %v1620_v24, %v1408_v0  ;;  %v12830_v0 = vpop.f32.mrf.mxu0  ;;  %v12832_v5 = vpop.f32.mrf.mxu1 }
 0x29d   : > { %17517 = vst [vmem:[#allocation38_spill] sm:$0xff] %v12794_v46  ;;  %17519 = vst [vmem:[#allocation40_spill] sm:$0xff] %v12830_v0 }
 0x29e   : > { %v12812_v44 = vpop.permute.xlu1 %1573  ;;  %v12814_v45 = vpop.permute.xlu0 %1444  ;;  %v1702_v27 = vadd.f32 %v1670_v38, %v1638_v51  ;;  %v1764_v39 = vadd.f32 %v1732_v58, %v1700_v20  ;;  %17520 = vst [vmem:[#allocation41_spill] sm:$0xff] %v12832_v5  ;;  %v1382_v20 = vld [vmem:[#allocation7 + $0x30] sm:$0xff] }
 0x29f   : > { %v1621_v12 = vsel %vm1603_vm1, %v12812_v44, %v12757_v59  ;;  %v12844_v24 = vpop.f32.mrf.mxu0  ;;  %v1321_v43 = vpop.f32.mrf.mxu1 }
 0x2a0   : > { %v1734_v50 = vmul.f32 %v1621_v12, %v1410_v13  ;;  %2180 = vrot.lane.b32.xlu1 %v12786_v16, %s12035_s18  ;;  %1848 = vrot.lane.b32.xlu0 %v12792_v63, %s12033_s11  ;;  %17521 = vst [vmem:[#allocation42_spill] sm:$0xff] %v12844_v24  ;;  %v1380_v12 = vld [vmem:[#allocation7 + $0x20] sm:$0xff] }
 0x2a1   : > { %v12852_v58 = vpop.f32.mrf.mxu0  ;;  %v12870_v28 = vpop.f32.mrf.mxu1 }
 0x2a2   : > { %v1766_v49 = vadd.f32 %v1734_v50, %v1702_v27  ;;  %v12826_v30 = vpop.permute.xlu1 %2148  ;;  %v12828_v25 = vpop.permute.xlu0 %1543  ;;  %17522 = vst [vmem:[#allocation43_spill] sm:$0xff] %v12852_v58  ;;  %v1348_v27 = vld [vmem:[#allocation5 + $0x20] sm:$0xff]  ;;  %v1350_v50 = vld [vmem:[#allocation5 + $0x30] sm:$0xff]  ;;  %17524 = vst [vmem:[#allocation45_spill] sm:$0xff] %v12870_v28 }
 0x2a3   : > { %17518 = vst [vmem:[#allocation39_spill] sm:$0xff] %v12826_v30  ;;  %v1862_v18 = vmul.f32 %v1348_v27, %v12611_v54  ;;  %v1863_v9 = vmul.f32 %v1350_v50, %v12623_v7  ;;  %v12868_v63 = vpop.f32.mrf.mxu0  ;;  %v12903_v19 = vpop.f32.mrf.mxu1 }
 0x2a4   : > { %1818 = vrot.lane.b32.xlu1 %v12832_v5, %s12032_s29  ;;  %v12836_v13 = vpack.c.bf16 %v1766_v49, %v1764_v39  ;;  %1460 = vrot.lane.b32.xlu0 %v12830_v0, %s12032_s29  ;;  %v1412_v39 = vld [vmem:[#allocation8 + $0x20] sm:$0xff]  ;;  %17523 = vst [vmem:[#allocation44_spill] sm:$0xff] %v12868_v63 }
 0x2a5   : > { %v12917_v2 = vpop.f32.mrf.mxu1 }
 0x2a6   : > { %v12840_v37 = vpop.permute.xlu1 %1446  ;;  %9691 = vmatprep.mubr.msk.bf16.mxu0 %vm2269_vm2, %v12836_v13  ;;  %v1801_v38 = vpop.permute.xlu0 %1800  ;;  %17527 = vst [vmem:[#allocation48_spill] sm:$0xff] %v12917_v2 }
 0x2a7   : > { %v1878_v55 = vmul.f32 %v1801_v38, %v1380_v12 }
 0x2a8   : > { %1850 = vrot.lane.b32.xlu1 %v12832_v5, %s12033_s11  ;;  %1559 = vrot.lane.b32.xlu0 %v12830_v0, %s12033_s11 }
 0x2a9   : > { %v1894_v38 = vadd.f32 %v1878_v55, %v1862_v18 }
 0x2aa   : > { %v12850_v11 = vpop.permute.xlu1 %1545  ;;  %v1833_v51 = vpop.permute.xlu0 %1832 }
 0x2ab   : > { %v1910_v16 = vmul.f32 %v1833_v51, %v1412_v39 }
 0x2ac   : > { %1462 = vrot.lane.b32.xlu1 %v12852_v58, %s12032_s29  ;;  %1492 = vrot.lane.b32.xlu0 %v12844_v24, %s12032_s29 }
 0x2ad   : > { %v1926_v54 = vadd.f32 %v1910_v16, %v1894_v38  ;;  %v1642_v38 = vmul.f32 %v1350_v50, %v12613_v57  ;;  %v1354_v50 = vld [vmem:[#allocation5 + $0x50] sm:$0xff] }
 0x2ae   : > { %v1803_v49 = vpop.permute.xlu1 %1802  ;;  %v12858_v56 = vpop.permute.xlu0 %1476 }
 0x2af   : > { %v1879_v30 = vmul.f32 %v1803_v49, %v1382_v20  ;;  %v1509_v7 = vsel %vm1506_vm0, %v12814_v45, %v12858_v56 }
 0x2b0   : > { %1561 = vrot.lane.b32.xlu1 %v12852_v58, %s12033_s11  ;;  %1591 = vrot.lane.b32.xlu0 %v12844_v24, %s12033_s11  ;;  %v1672_v16 = vmul.f32 %v1509_v7, %v1380_v12 }
 0x2b1   : > { %v1895_v49 = vadd.f32 %v1879_v30, %v1863_v9 }
 0x2b2   : > { %v1835_v48 = vpop.permute.xlu1 %1834  ;;  %v12866_v0 = vpop.permute.xlu0 %1575 }
 0x2b3   : > { %v1911_v5 = vmul.f32 %v1835_v48, %v1414_v52  ;;  %v1622_v48 = vsel %vm1603_vm1, %v12866_v0, %v12828_v25 }
 0x2b4   : > { %1494 = vrot.lane.b32.xlu1 %v12868_v63, %s12032_s29  ;;  %1820 = vrot.lane.b32.xlu0 %v12870_v28, %s12032_s29 }
 0x2b5   : > { %v1927_v51 = vadd.f32 %v1911_v5, %v1895_v49  ;;  %v1640_v5 = vmul.f32 %v1348_v27, %v12597_v41  ;;  %v12899_v49 = vpack.c.bf16 %v1321_v43, %v12816_v29  ;;  %v1384_v27 = vld [vmem:[#allocation7 + $0x40] sm:$0xff]  ;;  %v1386_v43 = vld [vmem:[#allocation7 + $0x50] sm:$0xff] }
 0x2b6   : > { %v12880_v24 = vpop.permute.xlu1 %1478  ;;  %v1805_v55 = vpop.permute.xlu0 %1804  ;;  %v1352_v29 = vld [vmem:[#allocation5 + $0x40] sm:$0xff] }
 0x2b7   : > { %v12882_v18 = vpack.c.bf16 %v1927_v51, %v1926_v54  ;;  %v1510_v9 = vsel %vm1506_vm0, %v12840_v37, %v12880_v24  ;;  %17525 = vst [vmem:[#allocation46_spill] sm:$0xff] %v12899_v49  ;;  %v1736_v54 = vmul.f32 %v1622_v48, %v1412_v39  ;;  %v1704_v7 = vadd.f32 %v1672_v16, %v1640_v5 }
 0x2b8   : > { %v1674_v30 = vmul.f32 %v1510_v9, %v1382_v20  ;;  %1593 = vrot.lane.b32.xlu1 %v12868_v63, %s12033_s11  ;;  %1852 = vrot.lane.b32.xlu0 %v12870_v28, %s12033_s11  ;;  %v12909_v20 = vpop.f32.mrf.mxu0  ;;  %v1416_v9 = vld [vmem:[#allocation8 + $0x40] sm:$0xff]  ;;  %v1880_v16 = vmul.f32 %v1805_v55, %v1384_v27 }
 0x2b9   : > { %17526 = vst [vmem:[#allocation47_spill] sm:$0xff] %v12909_v20  ;;  %v1768_v39 = vadd.f32 %v1736_v54, %v1704_v7 }
 0x2ba   : > { %v12901_v51 = vpop.permute.xlu1 %1577  ;;  %v1837_v58 = vpop.permute.xlu0 %1836  ;;  %v1706_v41 = vadd.f32 %v1674_v30, %v1642_v38  ;;  %v1864_v38 = vmul.f32 %v1352_v29, %v12635_v62 }
 0x2bb   : > { %v1623_v12 = vsel %vm1603_vm1, %v12901_v51, %v12850_v11  ;;  %v1912_v54 = vmul.f32 %v1837_v58, %v1416_v9 }
 0x2bc   : > { %v1738_v57 = vmul.f32 %v1623_v12, %v1414_v52  ;;  %2158 = vrot.lane.b32.xlu1 %v12899_v49, %s12034_s28  ;;  %1464 = vrot.lane.b32.xlu0 %v12909_v20, %s12032_s29  ;;  %v1418_v52 = vld [vmem:[#allocation8 + $0x50] sm:$0xff]  ;;  %v1865_v12 = vmul.f32 %v1354_v50, %v12647_v33 }
 0x2be   : > { %v1770_v48 = vadd.f32 %v1738_v57, %v1706_v41  ;;  %v1807_v28 = vpop.permute.xlu1 %1806  ;;  %v12915_v63 = vpop.permute.xlu0 %1448 }
 0x2bf   : > { %v1881_v30 = vmul.f32 %v1807_v28, %v1386_v43  ;;  %v12929_v57 = vpop.f32.mrf.mxu0  ;;  %v1896_v28 = vadd.f32 %v1880_v16, %v1864_v38 }
 0x2c0   : > { %1822 = vrot.lane.b32.xlu1 %v12917_v2, %s12032_s29  ;;  %v12921_v5 = vpack.c.bf16 %v1770_v48, %v1768_v39  ;;  %1563 = vrot.lane.b32.xlu0 %v12909_v20, %s12033_s11  ;;  %17528 = vst [vmem:[#allocation49_spill] sm:$0xff] %v12929_v57 }
 0x2c1   : > { %v1897_v55 = vadd.f32 %v1881_v30, %v1865_v12  ;;  %v1928_v39 = vadd.f32 %v1912_v54, %v1896_v28  ;;  %v12939_v58 = vpop.f32.mrf.mxu0  ;;  %v1331_v30 = vpop.f32.mrf.mxu1 }
 0x2c2   : > { %v1839_v7 = vpop.permute.xlu1 %1838  ;;  %v12927_v41 = vpop.permute.xlu0 %1547  ;;  %17530 = vst [vmem:[#allocation51_spill] sm:$0xff] %v12939_v58 }
 0x2c3   : > { %v1913_v42 = vmul.f32 %v1839_v7, %v1418_v52  ;;  %v12959_v54 = vpop.f32.mrf.mxu0 }
 0x2c4   : > { %1854 = vrot.lane.b32.xlu1 %v12917_v2, %s12033_s11  ;;  %2182 = vrot.lane.b32.xlu0 %v12899_v49, %s12035_s18  ;;  %17532 = vst [vmem:[#allocation53_spill] sm:$0xff] %v12959_v54 }
 0x2c5   : > { %v1929_v48 = vadd.f32 %v1913_v42, %v1897_v55  ;;  %v12969_v55 = vpop.f32.mrf.mxu1 }
 0x2c6   : > { %v12935_v62 = vpop.permute.xlu1 %1450  ;;  %v12937_v33 = vpop.permute.xlu0 %2150  ;;  %17533 = vst [vmem:[#allocation54_spill] sm:$0xff] %v12969_v55 }
 0x2c7   : > { %17529 = vst [vmem:[#allocation50_spill] sm:$0xff] %v12937_v33  ;;  %v12941_v20 = vpack.c.bf16 %v1929_v48, %v1928_v39  ;;  %v1646_v33 = vmul.f32 %v1354_v50, %v12661_v35  ;;  %v1337_v1 = vpop.f32.mrf.mxu1 }
 0x2c8   : > { %1466 = vrot.lane.b32.xlu1 %v12939_v58, %s12032_s29  ;;  %1496 = vrot.lane.b32.xlu0 %v12929_v57, %s12032_s29 }
 0x2ca   : > { %v12947_v16 = vpop.permute.xlu1 %1549  ;;  %v12949_v42 = vpop.permute.xlu0 %2174 }
 0x2cb   : > { %17531 = vst [vmem:[#allocation52_spill] sm:$0xff] %v12949_v42  ;;  %v1644_v42 = vmul.f32 %v1352_v29, %v12645_v4 }
 0x2cc   : > { %1565 = vrot.lane.b32.xlu1 %v12939_v58, %s12033_s11  ;;  %1595 = vrot.lane.b32.xlu0 %v12929_v57, %s12033_s11 }
 0x2ce   : > { %v12955_v38 = vpop.permute.xlu1 %1482  ;;  %v12957_v12 = vpop.permute.xlu0 %1480 }
 0x2cf   : > { %v1512_v7 = vsel %vm1506_vm0, %v12935_v62, %v12955_v38  ;;  %v1511_v28 = vsel %vm1506_vm0, %v12915_v63, %v12957_v12 }
 0x2d0   : > { %v1678_v39 = vmul.f32 %v1512_v7, %v1386_v43  ;;  %v1676_v48 = vmul.f32 %v1511_v28, %v1384_v27  ;;  %1498 = vrot.lane.b32.xlu1 %v12959_v54, %s12032_s29  ;;  %1824 = vrot.lane.b32.xlu0 %v12969_v55, %s12032_s29  ;;  %v12989_v7 = vpop.f32.mrf.mxu0 }
 0x2d1   : > { %17534 = vst [vmem:[#allocation55_spill] sm:$0xff] %v12989_v7 }
 0x2d2   : > { %v12977_v49 = vpop.permute.xlu1 %1581  ;;  %v12979_v57 = vpop.permute.xlu0 %1579  ;;  %v1710_v28 = vadd.f32 %v1678_v39, %v1646_v33  ;;  %v1708_v4 = vadd.f32 %v1676_v48, %v1644_v42  ;;  %v13012_v48 = vld [vmem:[#allocation7 + $0x60] sm:$0xff] }
 0x2d3   : > { %v1625_v43 = vsel %vm1603_vm1, %v12977_v49, %v12947_v16  ;;  %v1624_v27 = vsel %vm1603_vm1, %v12979_v57, %v12927_v41  ;;  %v13008_v42 = vpop.f32.mrf.mxu0  ;;  %v13010_v39 = vpop.f32.mrf.mxu1 }
 0x2d4   : > { %v1742_v29 = vmul.f32 %v1625_v43, %v1418_v52  ;;  %v1740_v35 = vmul.f32 %v1624_v27, %v1416_v9  ;;  %1597 = vrot.lane.b32.xlu1 %v12959_v54, %s12033_s11  ;;  %1468 = vrot.lane.b32.xlu0 %v12989_v7, %s12032_s29  ;;  %v13004_v9 = vpack.c.bf16 %v1331_v30, %v12903_v19  ;;  %v13020_v43 = vld [vmem:[#allocation5 + $0x60] sm:$0xff]  ;;  %v13022_v19 = vld [vmem:[#allocation5 + $0x70] sm:$0xff] }
 0x2d5   : > { %17539 = vst [vmem:[#allocation60_spill] sm:$0xff] %v13008_v42  ;;  %17540 = vst [vmem:[#allocation61_spill] sm:$0xff] %v13010_v39  ;;  %v13024_v30 = vld [vmem:[#allocation8 + $0x60] sm:$0xff] }
 0x2d6   : > { %v1774_v50 = vadd.f32 %v1742_v29, %v1710_v28  ;;  %v1772_v58 = vadd.f32 %v1740_v35, %v1708_v4  ;;  %v12995_v2 = vpop.permute.xlu1 %2152  ;;  %v1809_v26 = vpop.permute.xlu0 %1808  ;;  %17537 = vst [vmem:[#allocation58_spill] sm:$0xff] %v13004_v9  ;;  %17541 = vst [vmem:[#allocation62_spill] sm:$0xff] %v13020_v43 }
 0x2d7   : > { %17535 = vst [vmem:[#allocation56_spill] sm:$0xff] %v12995_v2  ;;  %v1882_v4 = vmul.f32 %v1809_v26, %v13012_v48  ;;  %v1341_v35 = vpop.f32.mrf.mxu1  ;;  %v1867_v2 = vmul.f32 %v13022_v19, %v12695_v21 }
 0x2d8   : > { %1856 = vrot.lane.b32.xlu1 %v12969_v55, %s12033_s11  ;;  %v12999_v22 = vpack.c.bf16 %v1774_v50, %v1772_v58  ;;  %1567 = vrot.lane.b32.xlu0 %v12989_v7, %s12033_s11  ;;  %v13016_v58 = vld [vmem:[#allocation7 + $0x70] sm:$0xff] }
 0x2d9   : > { %v13032_v50 = vld [vmem:[#allocation8 + $0x70] sm:$0xff] }
 0x2da   : > { %17536 = vst [vmem:[#allocation57_spill] sm:$0xff] %v12999_v22  ;;  %v13006_v52 = vpop.permute.xlu1 %2176  ;;  %v1841_v33 = vpop.permute.xlu0 %1840 }
 0x2db   : > { %17538 = vst [vmem:[#allocation59_spill] sm:$0xff] %v13006_v52  ;;  %v1866_v52 = vmul.f32 %v13020_v43, %v12683_v10  ;;  %v1914_v7 = vmul.f32 %v1841_v33, %v13024_v30 }
 0x2dc   : > { %2160 = vrot.lane.b32.xlu1 %v13004_v9, %s12034_s28  ;;  %1500 = vrot.lane.b32.xlu0 %v13008_v42, %s12032_s29 }
 0x2dd   : > { %v1898_v55 = vadd.f32 %v1882_v4, %v1866_v52  ;;  %v1377_v52 = vld [vmem:[#allocation7 + $0x8] sm:$0xff]  ;;  %v1411_v4 = vld [vmem:[#allocation8 + $0x18] sm:$0xff] }
 0x2de   : > { %v1811_v27 = vpop.permute.xlu1 %1810  ;;  %v13026_v28 = vpop.permute.xlu0 %1452 }
 0x2df   : > { %v1883_v29 = vmul.f32 %v1811_v27, %v13016_v58  ;;  %v13043_v27 = vpack.c.bf16 %v1341_v35, %v1337_v1  ;;  %v1930_v10 = vadd.f32 %v1914_v7, %v1898_v55  ;;  %v1379_v1 = vld [vmem:[#allocation7 + $0x18] sm:$0xff]  ;;  %v13068_v7 = vpop.f32.mrf.mxu0  ;;  %v1409_v35 = vld [vmem:[#allocation8 + $0x8] sm:$0xff] }
 0x2e0   : > { %2184 = vrot.lane.b32.xlu1 %v13004_v9, %s12035_s18  ;;  %1599 = vrot.lane.b32.xlu0 %v13008_v42, %s12033_s11 }
 0x2e1   : > { %17542 = vst [vmem:[#allocation63_spill] sm:$0xff] %v13043_v27  ;;  %v1899_v9 = vadd.f32 %v1883_v29, %v1867_v2  ;;  %v1605_v29 = vsel %vm1603_vm1, %v12757_v59, %v12812_v44 }
 0x2e2   : > { %v1843_v26 = vpop.permute.xlu1 %1842  ;;  %v13041_v54 = vpop.permute.xlu0 %1551 }
 0x2e3   : > { %v1915_v8 = vmul.f32 %v1843_v26, %v13032_v50 }
 0x2e4   : > { %1826 = vrot.lane.b32.xlu1 %v13010_v39, %s12032_s29  ;;  %2162 = vrot.lane.b32.xlu0 %v13043_v27, %s12034_s28 }
 0x2e5   : > { %v1931_v43 = vadd.f32 %v1915_v8, %v1899_v9  ;;  %v1524_v8 = vsel %vm1506_vm0, %v12788_v32, %v12747_v31  ;;  %v1347_v9 = vld [vmem:[#allocation5 + $0x18] sm:$0xff]  ;;  %v1345_v32 = vld [vmem:[#allocation5 + $0x8] sm:$0xff] }
 0x2e6   : > { %v13050_v21 = vpop.permute.xlu1 %1454  ;;  %v13052_v33 = vpop.permute.xlu0 %1484  ;;  %v1671_v31 = vmul.f32 %v1524_v8, %v1379_v1  ;;  %v1639_v59 = vmul.f32 %v1347_v9, %v12591_v34  ;;  %v1637_v1 = vmul.f32 %v1345_v32, %v12570_v15  ;;  %v1526_v32 = vsel %vm1506_vm0, %v12880_v24, %v12840_v37  ;;  %v1349_v24 = vld [vmem:[#allocation5 + $0x28] sm:$0xff] }
 0x2e7   : > { %v13054_v42 = vpack.c.bf16 %v1931_v43, %v1930_v10  ;;  %v1523_v43 = vsel %vm1506_vm0, %v12775_v36, %v12737_v14  ;;  %v1604_v14 = vsel %vm1603_vm1, %v12749_v60, %v12790_v3  ;;  %v1735_v10 = vmul.f32 %v1605_v29, %v1411_v4  ;;  %v13100_v34 = vpop.f32.mrf.mxu0 }
 0x2e8   : > { %1858 = vrot.lane.b32.xlu1 %v13010_v39, %s12033_s11  ;;  %2186 = vrot.lane.b32.xlu0 %v13043_v27, %s12035_s18  ;;  %v1669_v44 = vmul.f32 %v1523_v43, %v1377_v52  ;;  %v1703_v8 = vadd.f32 %v1671_v31, %v1639_v59  ;;  %v1733_v27 = vmul.f32 %v1604_v14, %v1409_v35  ;;  %v1383_v31 = vld [vmem:[#allocation7 + $0x38] sm:$0xff]  ;;  %v1381_v59 = vld [vmem:[#allocation7 + $0x28] sm:$0xff] }
 0x2e9   : > { %v1675_v37 = vmul.f32 %v1526_v32, %v1383_v31 }
 0x2ea   : > { %v13064_v2 = vpop.permute.xlu1 %1553  ;;  %v13066_v55 = vpop.permute.xlu0 %1583  ;;  %v1701_v39 = vadd.f32 %v1669_v44, %v1637_v1  ;;  %v1525_v44 = vsel %vm1506_vm0, %v12858_v56, %v12814_v45  ;;  %v1607_v1 = vsel %vm1603_vm1, %v12850_v11, %v12901_v51  ;;  %v1606_v56 = vsel %vm1603_vm1, %v12828_v25, %v12866_v0 }
 0x2eb   : > { %v1673_v51 = vmul.f32 %v1525_v44, %v1381_v59 }
 0x2ec   : > { %1470 = vrot.lane.b32.xlu1 %v13068_v7, %s12032_s29  ;;  %2108 = vrot.lane.b32.xlu0 %v12794_v46, %s12035_s18  ;;  %v1765_v9 = vadd.f32 %v1733_v27, %v1701_v39 }
 0x2ee   : > { %v13086_v36 = vpop.permute.xlu1 %1486  ;;  %v13088_v26 = vpop.permute.xlu0 %1812 }
 0x2ef   : > { %17543 = vst [vmem:[#allocation64_spill] sm:$0xff] %v13088_v26  ;;  %v1767_v26 = vadd.f32 %v1735_v10, %v1703_v8  ;;  %v1415_v10 = vld [vmem:[#allocation8 + $0x38] sm:$0xff]  ;;  %v1413_v8 = vld [vmem:[#allocation8 + $0x28] sm:$0xff] }
 0x2f0   : > { %1569 = vrot.lane.b32.xlu1 %v13068_v7, %s12033_s11  ;;  %2124 = vrot.lane.b32.xlu0 %v12794_v46, %s12036_s22  ;;  %v1737_v31 = vmul.f32 %v1606_v56, %v1413_v8  ;;  %v1355_v56 = vld [vmem:[#allocation5 + $0x58] sm:$0xff] }
 0x2f1   : > { %v13110_v43 = vpack.c.bf16 %v1767_v26, %v1765_v9  ;;  %v1351_v26 = vld [vmem:[#allocation5 + $0x38] sm:$0xff] }
 0x2f2   : > { %v13096_v60 = vpop.permute.xlu1 %1585  ;;  %v13098_v3 = vpop.permute.xlu0 %1844  ;;  %v1643_v11 = vmul.f32 %v1351_v26, %v12633_v61 }
 0x2f3   : > { %17544 = vst [vmem:[#allocation65_spill] sm:$0xff] %v13110_v43 }
 0x2f4   : > { %1502 = vrot.lane.b32.xlu1 %v13100_v34, %s12032_s29  ;;  %1996 = vrot.lane.b32.xlu0 %v12836_v13, %s12035_s18  ;;  %v1707_v32 = vadd.f32 %v1675_v37, %v1643_v11  ;;  %v1527_v37 = vsel %vm1506_vm0, %v12957_v12, %v12915_v63  ;;  %v1419_v11 = vld [vmem:[#allocation8 + $0x58] sm:$0xff]  ;;  %s12038_s29 = smov [#allocation16]  }
 0x2f6   : > { %v13106_v15 = vpop.permute.xlu1 %1814  ;;  %v13108_v52 = vpop.permute.xlu0 %1456 }
 0x2f8   : > { %1601 = vrot.lane.b32.xlu1 %v13100_v34, %s12033_s11  ;;  %2052 = vrot.lane.b32.xlu0 %v13110_v43, %s12035_s18  ;;  %s11940_s11 = sshll.u32 %s12038_s29, 4  ;;  %s11941_s11 = int_to_ptr.vmem [resolvable:$false] %s11940_s11 }
 0x2f9   : > { %p11943_p1 = scmp.lt.s32.totalorder %s17095_s6, %s11941_s11 }
 0x2fa   : > { %v13116_v4 = vpop.permute.xlu1 %1846  ;;  %v13118_v29 = vpop.permute.xlu0 %1555 }
 0x2fc   : > { %2092 = vrot.lane.b32.xlu1 %v12794_v46, %s12034_s28  ;;  %2068 = vrot.lane.b32.xlu0 %v13110_v43, %s12036_s22 }
 0x2fe   : > { %v13124_v39 = vpop.permute.xlu1 %1458  ;;  %v13126_v27 = vpop.permute.xlu0 %2154 }
 0x2ff   : > { %17545 = vst [vmem:[#allocation66_spill] sm:$0xff] %v13126_v27 }
 0x300   : > { %1980 = vrot.lane.b32.xlu1 %v12836_v13, %s12034_s28  ;;  %2094 = vrot.lane.b32.xlu0 %v12882_v18, %s12034_s28 }
 0x302   : > { %v13136_v35 = vpop.permute.xlu1 %1557  ;;  %v13138_v14 = vpop.permute.xlu0 %2178 }
 0x303   : > { %17546 = vst [vmem:[#allocation67_spill] sm:$0xff] %v13138_v14  ;;  %v1739_v14 = vmul.f32 %v1607_v1, %v1415_v10  ;;  %v1387_v10 = vld [vmem:[#allocation7 + $0x58] sm:$0xff]  ;;  %v1385_v1 = vld [vmem:[#allocation7 + $0x48] sm:$0xff] }
 0x304   : > { %2012 = vrot.lane.b32.xlu1 %v12836_v13, %s12036_s22  ;;  %1982 = vrot.lane.b32.xlu0 %v12921_v5, %s12034_s28  ;;  %v1641_v13 = vmul.f32 %v1349_v24, %v12605_v53  ;;  %v1353_v24 = vld [vmem:[#allocation5 + $0x48] sm:$0xff] }
 0x305   : > { %v1771_v46 = vadd.f32 %v1739_v14, %v1707_v32 }
 0x306   : > { %v13156_v45 = vpop.permute.xlu1 %1490  ;;  %v13158_v9 = vpop.permute.xlu0 %1488  ;;  %v1705_v0 = vadd.f32 %v1673_v51, %v1641_v13  ;;  %v1609_v51 = vsel %vm1603_vm1, %v12947_v16, %v12977_v49  ;;  %v1677_v13 = vmul.f32 %v1527_v37, %v1385_v1  ;;  %v1645_v49 = vmul.f32 %v1353_v24, %v12653_v40 }
 0x307   : > { %v1647_v16 = vmul.f32 %v1355_v56, %v12671_v6  ;;  %v1650_v1 = vmul.f32 %v13022_v19, %v12707_v23  ;;  %v1626_v37 = vsel %vm1603_vm1, %v13066_v55, %v13041_v54  ;;  %v17550_v23 = vld [vmem:[#allocation62_spill] sm:$0xff] }
 0x308   : > { %2036 = vrot.lane.b32.xlu1 %v13110_v43, %s12034_s28  ;;  %1998 = vrot.lane.b32.xlu0 %v12921_v5, %s12035_s18  ;;  %v1769_v61 = vadd.f32 %v1737_v31, %v1705_v0  ;;  %v1514_v31 = vsel %vm1506_vm0, %v13050_v21, %v13086_v36  ;;  %v1513_v0 = vsel %vm1506_vm0, %v13026_v28, %v13052_v33 }
 0x309   : > { %v1709_v40 = vadd.f32 %v1677_v13, %v1645_v49  ;;  %v1682_v6 = vmul.f32 %v1514_v31, %v13016_v58  ;;  %v1648_v19 = vmul.f32 %v17550_v23, %v12693_v17  ;;  %v1391_v17 = vld [vmem:[#allocation7 + $0x78] sm:$0xff]  ;;  %v17554_v23 = vld [vmem:[#allocation27_spill] sm:$0xff] }
 0x30a   : > { %v13166_v27 = vpop.permute.xlu1 %1589  ;;  %v13168_v25 = vpop.permute.xlu0 %1587  ;;  %v13178_v59 = vpack.c.bf16 %v1771_v46, %v1769_v61  ;;  %v1528_v46 = vsel %vm1506_vm0, %v12955_v38, %v12935_v62  ;;  %v1417_v62 = vld [vmem:[#allocation8 + $0x48] sm:$0xff]  ;;  %v1608_v38 = vsel %vm1603_vm1, %v12927_v41, %v12979_v57  ;;  %v1743_v41 = vmul.f32 %v1609_v51, %v1419_v11 }
 0x30b   : > { %v1679_v12 = vmul.f32 %v1528_v46, %v1387_v10  ;;  %v1741_v57 = vmul.f32 %v1608_v38, %v1417_v62  ;;  %v1627_v61 = vsel %vm1603_vm1, %v13096_v60, %v13064_v2  ;;  %v1680_v11 = vmul.f32 %v1513_v0, %v13012_v48 }
 0x30c   : > { %2110 = vrot.lane.b32.xlu1 %v12882_v18, %s12035_s18  ;;  %2014 = vrot.lane.b32.xlu0 %v12921_v5, %s12036_s22  ;;  %17548 = vst [vmem:[#allocation69_spill] sm:$0xff] %v13178_v59  ;;  %v1746_v58 = vmul.f32 %v1627_v61, %v13032_v50  ;;  %v1744_v38 = vmul.f32 %v1626_v37, %v13024_v30  ;;  %v1389_v61 = vld [vmem:[#allocation7 + $0x68] sm:$0xff] }
 0x30d   : > { %v1711_v46 = vadd.f32 %v1679_v12, %v1647_v16  ;;  %v1773_v56 = vadd.f32 %v1741_v57, %v1709_v40  ;;  %v1714_v12 = vadd.f32 %v1682_v6, %v1650_v1  ;;  %v1712_v13 = vadd.f32 %v1680_v11, %v1648_v19  ;;  %v1423_v40 = vld [vmem:[#allocation8 + $0x78] sm:$0xff]  ;;  %v1357_v6 = vld [vmem:[#allocation5 + $0x68] sm:$0xff] }
 0x30e   : > { %v13174_v26 = vpop.permute.xlu1 %2156  ;;  %v13176_v53 = vpop.permute.xlu0 %1816  ;;  %v1530_v30 = vsel %vm1506_vm0, %v13086_v36, %v13050_v21  ;;  %v1611_v21 = vsel %vm1603_vm1, %v13064_v2, %v13096_v60  ;;  %v17553_v37 = vld [vmem:[#allocation28_spill] sm:$0xff]  ;;  %v1516_v60 = vsel %vm1506_vm0, %v13124_v39, %v13156_v45  ;;  %v1515_v11 = vsel %vm1506_vm0, %v13108_v52, %v13158_v9 }
 0x30f   : > { %17547 = vst [vmem:[#allocation68_spill] sm:$0xff] %v13174_v26  ;;  %v1775_v24 = vadd.f32 %v1743_v41, %v1711_v46  ;;  %v1778_v48 = vadd.f32 %v1746_v58, %v1714_v12  ;;  %v1776_v16 = vadd.f32 %v1744_v38, %v1712_v13  ;;  %v1359_v41 = vld [vmem:[#allocation5 + $0x78] sm:$0xff]  ;;  %v1529_v46 = vsel %vm1506_vm0, %v13052_v33, %v13026_v28  ;;  %v1362_v38 = vld [vmem:[#allocation5 + $0x90] sm:$0xff] }
 0x310   : > { %2126 = vrot.lane.b32.xlu1 %v12882_v18, %s12036_s22  ;;  %2038 = vrot.lane.b32.xlu0 %v13178_v59, %s12034_s28  ;;  %v1683_v1 = vmul.f32 %v1530_v30, %v1391_v17  ;;  %v1610_v28 = vsel %vm1603_vm1, %v13041_v54, %v13066_v55  ;;  %v1681_v33 = vmul.f32 %v1529_v46, %v1389_v61  ;;  %v1360_v54 = vld [vmem:[#allocation5 + $0x80] sm:$0xff] }
 0x311   : > { %v13260_v50 = vpack.c.bf16 %v1775_v24, %v1773_v56  ;;  %v13274_v0 = vpack.c.bf16 %v1778_v48, %v1776_v16  ;;  %v1651_v24 = vmul.f32 %v1359_v41, %v17553_v37  ;;  %v1421_v56 = vld [vmem:[#allocation8 + $0x68] sm:$0xff]  ;;  %v1747_v2 = vmul.f32 %v1611_v21, %v1423_v40  ;;  %v1392_v48 = vld [vmem:[#allocation7 + $0x80] sm:$0xff]  ;;  %v1394_v16 = vld [vmem:[#allocation7 + $0x90] sm:$0xff] }
 0x312   : > { %v13184_v14 = vpop.permute.xlu1 %2180  ;;  %v13186_v44 = vpop.permute.xlu0 %1848  ;;  %v1649_v19 = vmul.f32 %v1357_v6, %v17554_v23  ;;  %v1745_v12 = vmul.f32 %v1610_v28, %v1421_v56  ;;  %v1629_v17 = vsel %vm1603_vm1, %v13166_v27, %v13136_v35  ;;  %v1628_v30 = vsel %vm1603_vm1, %v13168_v25, %v13118_v29  ;;  %v1424_v41 = vld [vmem:[#allocation8 + $0x80] sm:$0xff]  ;;  %v1426_v6 = vld [vmem:[#allocation8 + $0x90] sm:$0xff]  ;;  %v1361_v23 = vld [vmem:[#allocation5 + $0x88] sm:$0xff] }
 0x313   : > { %17549 = vst [vmem:[#allocation70_spill] sm:$0xff] %v13184_v14  ;;  %17551 = vst [vmem:[#allocation62_spill] sm:$0xff] %v13260_v50  ;;  %v1715_v13 = vadd.f32 %v1683_v1, %v1651_v24  ;;  %v1686_v61 = vmul.f32 %v1516_v60, %v1394_v16  ;;  %v1684_v46 = vmul.f32 %v1515_v11, %v1392_v48  ;;  %v1395_v1 = vld [vmem:[#allocation7 + $0x98] sm:$0xff]  ;;  %v1393_v24 = vld [vmem:[#allocation7 + $0x88] sm:$0xff] }
 0x314   : > { %2054 = vrot.lane.b32.xlu1 %v13178_v59, %s12035_s18  ;;  %2112 = vrot.lane.b32.xlu0 %v12941_v20, %s12035_s18  ;;  %17552 = vst [vmem:[#allocation71_spill] sm:$0xff] %v13274_v0  ;;  %v1713_v40 = vadd.f32 %v1681_v33, %v1649_v19  ;;  %v1532_v37 = vsel %vm1506_vm0, %v13156_v45, %v13124_v39  ;;  %v17556_v60 = vld [vmem:[#allocation30_spill] sm:$0xff] }
 0x315   : > { %v1779_v21 = vadd.f32 %v1747_v2, %v1715_v13  ;;  %v1531_v56 = vsel %vm1506_vm0, %v13158_v9, %v13108_v52  ;;  %v1652_v11 = vmul.f32 %v1360_v54, %v17556_v60  ;;  %v17557_v33 = vld [vmem:[#allocation34_spill] sm:$0xff]  ;;  %v1750_v13 = vmul.f32 %v1629_v17, %v1426_v6  ;;  %v1425_v52 = vld [vmem:[#allocation8 + $0x88] sm:$0xff] }
 0x316   : > { %v13200_v8 = vpop.permute.xlu1 %1818  ;;  %v13210_v63 = vpop.permute.xlu0 %1460  ;;  %v1654_v2 = vmul.f32 %v1362_v38, %v17557_v33  ;;  %v1363_v19 = vld [vmem:[#allocation5 + $0x98] sm:$0xff]  ;;  %v1748_v14 = vmul.f32 %v1628_v30, %v1424_v41  ;;  %v1613_v45 = vsel %vm1603_vm1, %v13136_v35, %v13166_v27  ;;  %v1612_v9 = vsel %vm1603_vm1, %v13118_v29, %v13168_v25 }
 0x317   : > { %v1427_v39 = vld [vmem:[#allocation8 + $0x98] sm:$0xff]  ;;  %v1687_v17 = vmul.f32 %v1532_v37, %v1395_v1  ;;  %v1685_v60 = vmul.f32 %v1531_v56, %v1393_v24  ;;  %v1716_v33 = vadd.f32 %v1684_v46, %v1652_v11  ;;  %v1749_v25 = vmul.f32 %v1612_v9, %v1425_v52  ;;  %v17560_v37 = vld [vmem:[#allocation31_spill] sm:$0xff] }
 0x318   : > { %2070 = vrot.lane.b32.xlu1 %v13178_v59, %s12036_s22  ;;  %2128 = vrot.lane.b32.xlu0 %v12941_v20, %s12036_s22  ;;  %v1718_v30 = vadd.f32 %v1686_v61, %v1654_v2  ;;  %v1751_v43 = vmul.f32 %v1613_v45, %v1427_v39  ;;  %v1885_v61 = vmul.f32 %v13106_v15, %v1394_v16  ;;  %v17563_v16 = vld [vmem:[#allocation29_spill] sm:$0xff]  ;;  %v1396_v45 = vld [vmem:[#allocation7 + $0xa0] sm:$0xff] }
 0x319   : > { %v1869_v24 = vmul.f32 %v1362_v38, %v17560_v37  ;;  %v1917_v56 = vmul.f32 %v13116_v4, %v1426_v6  ;;  %v1868_v2 = vmul.f32 %v1360_v54, %v17563_v16  ;;  %v1366_v39 = vld [vmem:[#allocation5 + $0xb0] sm:$0xff]  ;;  %v1364_v52 = vld [vmem:[#allocation5 + $0xa0] sm:$0xff] }
 0x31a   : > { %v13222_v32 = vpop.permute.xlu1 %1850  ;;  %v13232_v10 = vpop.permute.xlu0 %1559  ;;  %v1782_v29 = vadd.f32 %v1750_v13, %v1718_v30 }
 0x31b   : > { %v1901_v13 = vadd.f32 %v1885_v61, %v1869_v24  ;;  %v1399_v24 = vld [vmem:[#allocation7 + $0xb8] sm:$0xff] }
 0x31c   : > { %2096 = vrot.lane.b32.xlu1 %v12941_v20, %s12034_s28  ;;  %1984 = vrot.lane.b32.xlu0 %v12999_v22, %s12034_s28 }
 0x31d   : > { %v1933_v38 = vadd.f32 %v1917_v56, %v1901_v13  ;;  %v1367_v56 = vld [vmem:[#allocation5 + $0xb8] sm:$0xff] }
 0x31e   : > { %v13247_v51 = vpop.permute.xlu1 %1462  ;;  %v13249_v62 = vpop.permute.xlu0 %1492 }
 0x31f   : > { %v1533_v16 = vsel %vm1506_vm0, %v13249_v62, %v13210_v63 }
 0x320   : > { %2000 = vrot.lane.b32.xlu1 %v12999_v22, %s12035_s18  ;;  %2016 = vrot.lane.b32.xlu0 %v12999_v22, %s12036_s22  ;;  %v1780_v22 = vadd.f32 %v1748_v14, %v1716_v33 }
 0x322   : > { %v13258_v31 = vpop.permute.xlu1 %1561  ;;  %v13262_v49 = vpop.permute.xlu0 %1591  ;;  %v13366_v15 = vpack.c.bf16 %v1782_v29, %v1780_v22 }
 0x324   : > { %2040 = vrot.lane.b32.xlu1 %v13260_v50, %s12034_s28  ;;  %2056 = vrot.lane.b32.xlu0 %v13260_v50, %s12035_s18 }
 0x326   : > { %v13272_v57 = vpop.permute.xlu1 %1494  ;;  %v13284_v36 = vpop.permute.xlu0 %1820 }
 0x328   : > { %1986 = vrot.lane.b32.xlu1 %v13274_v0, %s12034_s28  ;;  %2072 = vrot.lane.b32.xlu0 %v13260_v50, %s12036_s22  ;;  %v1777_v50 = vadd.f32 %v1745_v12, %v1713_v40  ;;  %v17558_v12 = vld [vmem:[#allocation32_spill] sm:$0xff] }
 0x329   : > { %v1653_v40 = vmul.f32 %v1361_v23, %v17558_v12  ;;  %v1886_v12 = vmul.f32 %v13176_v53, %v1396_v45 }
 0x32a   : > { %v13303_v58 = vpop.permute.xlu1 %1593  ;;  %v13306_v55 = vpop.permute.xlu0 %1852  ;;  %v13350_v59 = vpack.c.bf16 %v1779_v21, %v1777_v50  ;;  %v17561_v50 = vld [vmem:[#allocation64_spill] sm:$0xff] }
 0x32b   : > { %v1717_v1 = vadd.f32 %v1685_v60, %v1653_v40  ;;  %v1884_v21 = vmul.f32 %v17561_v50, %v1392_v48  ;;  %v1398_v48 = vld [vmem:[#allocation7 + $0xb0] sm:$0xff]  ;;  %v1518_v50 = vsel %vm1506_vm0, %v13247_v51, %v13272_v57 }
 0x32c   : > { %2002 = vrot.lane.b32.xlu1 %v13274_v0, %s12035_s18  ;;  %2098 = vrot.lane.b32.xlu0 %v13054_v42, %s12034_s28  ;;  %v17564_v60 = vld [vmem:[#allocation41_spill] sm:$0xff] }
 0x32d   : > { %v1781_v11 = vadd.f32 %v1749_v25, %v1717_v1  ;;  %v1900_v4 = vadd.f32 %v1884_v21, %v1868_v2  ;;  %v1871_v33 = vmul.f32 %v1366_v39, %v17564_v60  ;;  %v1431_v2 = vld [vmem:[#allocation8 + $0xb8] sm:$0xff]  ;;  %v1690_v60 = vmul.f32 %v1518_v50, %v1398_v48 }
 0x32e   : > { %v13328_v28 = vpop.permute.xlu1 %2158  ;;  %v13332_v26 = vpop.permute.xlu0 %1464 }
 0x32f   : > { %17555 = vst [vmem:[#allocation28_spill] sm:$0xff] %v13328_v28  ;;  %v17559_v28 = vld [vmem:[#allocation35_spill] sm:$0xff] }
 0x330   : > { %2018 = vrot.lane.b32.xlu1 %v13274_v0, %s12036_s22  ;;  %2114 = vrot.lane.b32.xlu0 %v13054_v42, %s12035_s18  ;;  %v1655_v27 = vmul.f32 %v1363_v19, %v17559_v28  ;;  %v1916_v19 = vmul.f32 %v13098_v3, %v1424_v41  ;;  %v1430_v3 = vld [vmem:[#allocation8 + $0xb0] sm:$0xff]  ;;  %v1887_v41 = vmul.f32 %v13200_v8, %v1398_v48  ;;  %v17568_v48 = vld [vmem:[#allocation42_spill] sm:$0xff] }
 0x331   : > { %v1919_v40 = vmul.f32 %v13222_v32, %v1430_v3  ;;  %v17565_v8 = vld [vmem:[#allocation37_spill] sm:$0xff] }
 0x332   : > { %v13348_v35 = vpop.permute.xlu1 %1822  ;;  %v13352_v0 = vpop.permute.xlu0 %1563  ;;  %v1719_v46 = vadd.f32 %v1687_v17, %v1655_v27  ;;  %v1932_v54 = vadd.f32 %v1916_v19, %v1900_v4  ;;  %v1428_v17 = vld [vmem:[#allocation8 + $0xa0] sm:$0xff]  ;;  %v1870_v29 = vmul.f32 %v1364_v52, %v17565_v8  ;;  %v1903_v61 = vadd.f32 %v1887_v41, %v1871_v33 }
 0x333   : > { %v1918_v25 = vmul.f32 %v13186_v44, %v1428_v17  ;;  %v1534_v44 = vsel %vm1506_vm0, %v13272_v57, %v13247_v51  ;;  %v1615_v19 = vsel %vm1603_vm1, %v13258_v31, %v13303_v58  ;;  %v1517_v51 = vsel %vm1506_vm0, %v13210_v63, %v13249_v62  ;;  %v17566_v63 = vld [vmem:[#allocation44_spill] sm:$0xff] }
 0x334   : > { %2042 = vrot.lane.b32.xlu1 %v13350_v59, %s12034_s28  ;;  %2130 = vrot.lane.b32.xlu0 %v13054_v42, %s12036_s22  ;;  %v1783_v14 = vadd.f32 %v1751_v43, %v1719_v46  ;;  %v13385_v9 = vpack.c.bf16 %v1933_v38, %v1932_v54  ;;  %v1902_v1 = vadd.f32 %v1886_v12, %v1870_v29  ;;  %v1365_v38 = vld [vmem:[#allocation5 + $0xa8] sm:$0xff] }
 0x335   : > { %v1935_v37 = vadd.f32 %v1919_v40, %v1903_v61  ;;  %v1691_v57 = vmul.f32 %v1534_v44, %v1399_v24  ;;  %v1631_v4 = vsel %vm1603_vm1, %v13303_v58, %v13258_v31  ;;  %v1429_v54 = vld [vmem:[#allocation8 + $0xa8] sm:$0xff]  ;;  %v1614_v41 = vsel %vm1603_vm1, %v13232_v10, %v13262_v49  ;;  %v17567_v40 = vld [vmem:[#allocation43_spill] sm:$0xff] }
 0x336   : > { %v13362_v28 = vpop.permute.xlu1 %1854  ;;  %v13364_v23 = vpop.permute.xlu0 %2182  ;;  %v13378_v22 = vpack.c.bf16 %v1783_v14, %v1781_v11  ;;  %v1934_v32 = vadd.f32 %v1918_v25, %v1902_v1  ;;  %v1397_v11 = vld [vmem:[#allocation7 + $0xa8] sm:$0xff]  ;;  %v1659_v62 = vmul.f32 %v1367_v56, %v17566_v63  ;;  %v1630_v31 = vsel %vm1603_vm1, %v13262_v49, %v13232_v10  ;;  %v1402_v49 = vld [vmem:[#allocation7 + $0xd0] sm:$0xff] }
 0x337   : > { %17562 = vst [vmem:[#allocation27_spill] sm:$0xff] %v13364_v23  ;;  %v1689_v33 = vmul.f32 %v1533_v16, %v1397_v11  ;;  %v1755_v58 = vmul.f32 %v1615_v19, %v1431_v2  ;;  %v1658_v8 = vmul.f32 %v1366_v39, %v17567_v40  ;;  %v1688_v29 = vmul.f32 %v1517_v51, %v1396_v45  ;;  %v17569_v24 = vld [vmem:[#allocation40_spill] sm:$0xff]  ;;  %v1370_v56 = vld [vmem:[#allocation5 + $0xd0] sm:$0xff]  ;;  %v1400_v16 = vld [vmem:[#allocation7 + $0xc0] sm:$0xff] }
 0x338   : > { %2058 = vrot.lane.b32.xlu1 %v13350_v59, %s12035_s18  ;;  %2004 = vrot.lane.b32.xlu0 %v13366_v15, %s12035_s18  ;;  %v13418_v14 = vpack.c.bf16 %v1935_v37, %v1934_v32  ;;  %v1754_v25 = vmul.f32 %v1631_v4, %v1430_v3  ;;  %v1657_v1 = vmul.f32 %v1365_v38, %v17568_v48  ;;  %v1434_v19 = vld [vmem:[#allocation8 + $0xd0] sm:$0xff]  ;;  %v1432_v38 = vld [vmem:[#allocation8 + $0xc0] sm:$0xff] }
 0x339   : > { %v1753_v37 = vmul.f32 %v1614_v41, %v1429_v54  ;;  %v1723_v32 = vadd.f32 %v1691_v57, %v1659_v62  ;;  %v1656_v44 = vmul.f32 %v1364_v52, %v17569_v24  ;;  %v1752_v50 = vmul.f32 %v1630_v31, %v1428_v17  ;;  %v1368_v17 = vld [vmem:[#allocation5 + $0xc0] sm:$0xff]  ;;  %v17571_v54 = vld [vmem:[#allocation48_spill] sm:$0xff]  ;;  %v13494_v48 = vld [vmem:[#allocation5 + $0xf0] sm:$0xff] }
 0x33a   : > { %v13374_v43 = vpop.permute.xlu1 %1466  ;;  %v13376_v6 = vpop.permute.xlu0 %1496  ;;  %v1722_v10 = vadd.f32 %v1690_v60, %v1658_v8  ;;  %v1721_v39 = vadd.f32 %v1689_v33, %v1657_v1  ;;  %v1889_v52 = vmul.f32 %v13348_v35, %v1402_v49  ;;  %v1873_v41 = vmul.f32 %v1370_v56, %v17571_v54 }
 0x33b   : > { %v1787_v45 = vadd.f32 %v1755_v58, %v1723_v32  ;;  %v1720_v11 = vadd.f32 %v1688_v29, %v1656_v44  ;;  %v1888_v60 = vmul.f32 %v13284_v36, %v1400_v16  ;;  %v1921_v63 = vmul.f32 %v13362_v28, %v1434_v19  ;;  %v17573_v58 = vld [vmem:[#allocation45_spill] sm:$0xff]  ;;  %v13490_v28 = vld [vmem:[#allocation5 + $0xe0] sm:$0xff] }
 0x33c   : > { %2074 = vrot.lane.b32.xlu1 %v13350_v59, %s12036_s22  ;;  %2044 = vrot.lane.b32.xlu0 %v13378_v22, %s12034_s28  ;;  %v1786_v2 = vadd.f32 %v1754_v25, %v1722_v10  ;;  %v1785_v57 = vadd.f32 %v1753_v37, %v1721_v39  ;;  %v1872_v40 = vmul.f32 %v1368_v17, %v17573_v58  ;;  %v13484_v25 = vld [vmem:[#allocation7 + $0xe0] sm:$0xff]  ;;  %v13488_v36 = vld [vmem:[#allocation7 + $0xf0] sm:$0xff] }
 0x33d   : > { %v1784_v4 = vadd.f32 %v1752_v50, %v1720_v11  ;;  %v1920_v8 = vmul.f32 %v13306_v55, %v1432_v38  ;;  %v1905_v29 = vadd.f32 %v1889_v52, %v1873_v41  ;;  %v13500_v32 = vld [vmem:[#allocation8 + $0xe0] sm:$0xff]  ;;  %v1519_v44 = vsel %vm1506_vm0, %v13332_v26, %v13376_v6  ;;  %v13519_v52 = vld [vmem:[#allocation8 + $0xf0] sm:$0xff] }
 0x33e   : > { %v13387_v30 = vpop.permute.xlu1 %1565  ;;  %v13392_v27 = vpop.permute.xlu0 %1595  ;;  %v13476_v33 = vpack.c.bf16 %v1787_v45, %v1785_v57  ;;  %v1904_v1 = vadd.f32 %v1888_v60, %v1872_v40  ;;  %v17575_v45 = vld [vmem:[#allocation54_spill] sm:$0xff] }
 0x33f   : > { %v13480_v31 = vpack.c.bf16 %v1786_v2, %v1784_v4  ;;  %v1937_v37 = vadd.f32 %v1921_v63, %v1905_v29  ;;  %v1874_v11 = vmul.f32 %v13490_v28, %v17575_v45  ;;  %v17576_v4 = vld [vmem:[#allocation61_spill] sm:$0xff]  ;;  %v1632_v54 = vsel %vm1603_vm1, %v13392_v27, %v13352_v0  ;;  %v17577_v63 = vld [vmem:[#allocation51_spill] sm:$0xff] }
 0x340   : > { %2100 = vrot.lane.b32.xlu1 %v13385_v9, %s12034_s28  ;;  %2060 = vrot.lane.b32.xlu0 %v13378_v22, %s12035_s18  ;;  %v1936_v2 = vadd.f32 %v1920_v8, %v1904_v1  ;;  %v1662_v58 = vmul.f32 %v1370_v56, %v17577_v63  ;;  %v1692_v8 = vmul.f32 %v1519_v44, %v1400_v16 }
 0x342   : > { %v13400_v46 = vpop.permute.xlu1 %1498  ;;  %v13402_v53 = vpop.permute.xlu0 %1824  ;;  %v1962_v40 = vpack.c.bf16 %v1937_v37, %v1936_v2 }
 0x343   : > { %v1520_v55 = vsel %vm1506_vm0, %v13374_v43, %v13400_v46  ;;  %v1890_v50 = vmul.f32 %v13402_v53, %v13484_v25  ;;  %v1875_v53 = vmul.f32 %v13494_v48, %v17576_v4  ;;  %v1536_v56 = vsel %vm1506_vm0, %v13400_v46, %v13374_v43 }
 0x344   : > { %2116 = vrot.lane.b32.xlu1 %v13385_v9, %s12035_s18  ;;  %2076 = vrot.lane.b32.xlu0 %v13378_v22, %s12036_s22  ;;  %v1694_v41 = vmul.f32 %v1520_v55, %v1402_v49  ;;  %v1756_v55 = vmul.f32 %v1632_v54, %v1432_v38  ;;  %v1371_v38 = vld [vmem:[#allocation5 + $0xd8] sm:$0xff] }
 0x345   : > { %v1906_v1 = vadd.f32 %v1890_v50, %v1874_v11 }
 0x346   : > { %v13416_v21 = vpop.permute.xlu1 %1597  ;;  %v13428_v13 = vpop.permute.xlu0 %1468  ;;  %v1726_v16 = vadd.f32 %v1694_v41, %v1662_v58 }
 0x347   : > { %v1633_v57 = vsel %vm1603_vm1, %v13416_v21, %v13387_v30  ;;  %v1617_v43 = vsel %vm1603_vm1, %v13387_v30, %v13416_v21  ;;  %v17580_v21 = vld [vmem:[#allocation53_spill] sm:$0xff] }
 0x348   : > { %2132 = vrot.lane.b32.xlu1 %v13385_v9, %s12036_s22  ;;  %2102 = vrot.lane.b32.xlu0 %v13418_v14, %s12034_s28  ;;  %v1663_v41 = vmul.f32 %v1371_v38, %v17580_v21 }
 0x34a   : > { %v13451_v12 = vpop.permute.xlu1 %1856  ;;  %v13454_v61 = vpop.permute.xlu0 %1567 }
 0x34b   : > { %v1922_v60 = vmul.f32 %v13451_v12, %v13500_v32  ;;  %v1403_v12 = vld [vmem:[#allocation7 + $0xd8] sm:$0xff] }
 0x34c   : > { %1988 = vrot.lane.b32.xlu1 %v13366_v15, %s12034_s28  ;;  %2118 = vrot.lane.b32.xlu0 %v13418_v14, %s12035_s18 }
 0x34d   : > { %v1938_v37 = vadd.f32 %v1922_v60, %v1906_v1 }
 0x34e   : > { %v13462_v3 = vpop.permute.xlu1 %2160  ;;  %v13464_v51 = vpop.permute.xlu0 %1500 }
 0x34f   : > { %17570 = vst [vmem:[#allocation30_spill] sm:$0xff] %v13462_v3 }
 0x350   : > { %2020 = vrot.lane.b32.xlu1 %v13366_v15, %s12036_s22  ;;  %2134 = vrot.lane.b32.xlu0 %v13418_v14, %s12036_s22 }
 0x352   : > { %v13474_v62 = vpop.permute.xlu1 %2184  ;;  %v13478_v35 = vpop.permute.xlu0 %1599 }
 0x353   : > { %17572 = vst [vmem:[#allocation34_spill] sm:$0xff] %v13474_v62  ;;  %v17579_v62 = vld [vmem:[#allocation47_spill] sm:$0xff] }
 0x354   : > { %2062 = vrot.lane.b32.xlu1 %v13476_v33, %s12035_s18  ;;  %1990 = vrot.lane.b32.xlu0 %v13480_v31, %s12034_s28  ;;  %v1660_v49 = vmul.f32 %v1368_v17, %v17579_v62  ;;  %v1401_v62 = vld [vmem:[#allocation7 + $0xc8] sm:$0xff] }
 0x356   : > { %v1827_v24 = vpop.permute.xlu1 %1826  ;;  %v13509_v39 = vpop.permute.xlu0 %2162  ;;  %v1724_v50 = vadd.f32 %v1692_v8, %v1660_v49  ;;  %v17581_v8 = vld [vmem:[#allocation49_spill] sm:$0xff] }
 0x357   : > { %v1891_v10 = vmul.f32 %v1827_v24, %v13488_v36  ;;  %17574 = vst [vmem:[#allocation32_spill] sm:$0xff] %v13509_v39  ;;  %v1758_v24 = vmul.f32 %v1633_v57, %v1434_v19  ;;  %v1535_v19 = vsel %vm1506_vm0, %v13376_v6, %v13332_v26  ;;  %v1695_v57 = vmul.f32 %v1536_v56, %v1403_v12  ;;  %v1369_v26 = vld [vmem:[#allocation5 + $0xc8] sm:$0xff] }
 0x358   : > { %2078 = vrot.lane.b32.xlu1 %v13476_v33, %s12036_s22  ;;  %2006 = vrot.lane.b32.xlu0 %v13480_v31, %s12035_s18  ;;  %v1433_v6 = vld [vmem:[#allocation8 + $0xc8] sm:$0xff]  ;;  %v1788_v54 = vadd.f32 %v1756_v55, %v1724_v50  ;;  %v1693_v60 = vmul.f32 %v1535_v19, %v1401_v62  ;;  %v1634_v19 = vsel %vm1603_vm1, %v13478_v35, %v13454_v61 }
 0x359   : > { %v1907_v45 = vadd.f32 %v1891_v10, %v1875_v53  ;;  %v1435_v10 = vld [vmem:[#allocation8 + $0xd8] sm:$0xff]  ;;  %v1790_v46 = vadd.f32 %v1758_v24, %v1726_v16  ;;  %v1616_v53 = vsel %vm1603_vm1, %v13352_v0, %v13392_v27  ;;  %v1727_v24 = vadd.f32 %v1695_v57, %v1663_v41 }
 0x35a   : > { %v1859_v29 = vpop.permute.xlu1 %1858  ;;  %v13533_v23 = vpop.permute.xlu0 %2186  ;;  %v1759_v63 = vmul.f32 %v1617_v43, %v1435_v10  ;;  %v1757_v1 = vmul.f32 %v1616_v53, %v1433_v6  ;;  %v1521_v16 = vsel %vm1506_vm0, %v13428_v13, %v13464_v51  ;;  %v1666_v50 = vmul.f32 %v13494_v48, %v13068_v7  ;;  %v17582_v7 = vld [vmem:[#allocation55_spill] sm:$0xff] }
 0x35b   : > { %v1923_v4 = vmul.f32 %v1859_v29, %v13519_v52  ;;  %17578 = vst [vmem:[#allocation35_spill] sm:$0xff] %v13533_v23  ;;  %v13574_v27 = vpack.c.bf16 %v1790_v46, %v1788_v54  ;;  %v1661_v29 = vmul.f32 %v1369_v26, %v17581_v8  ;;  %v1696_v10 = vmul.f32 %v1521_v16, %v13484_v25  ;;  %v1439_v8 = vld [vmem:[#allocation8 + $0xf8] sm:$0xff] }
 0x35c   : > { %2104 = vrot.lane.b32.xlu1 %v1962_v40, %s12034_s28  ;;  %2022 = vrot.lane.b32.xlu0 %v13480_v31, %s12036_s22  ;;  %v1664_v25 = vmul.f32 %v13490_v28, %v17582_v7  ;;  %v1760_v48 = vmul.f32 %v1634_v19, %v13500_v32  ;;  %v2310_v28 = vsel %vm2269_vm2, %v13418_v14, 0  ;;  %v1407_v32 = vld [vmem:[#allocation7 + $0xf8] sm:$0xff] }
 0x35d   : > { %v1939_v44 = vadd.f32 %v1923_v4, %v1907_v45  ;;  %v1725_v45 = vadd.f32 %v1693_v60, %v1661_v29  ;;  %v1791_v4 = vadd.f32 %v1759_v63, %v1727_v24  ;;  %v1375_v60 = vld [vmem:[#allocation5 + $0xf8] sm:$0xff]  ;;  %v1405_v63 = vld [vmem:[#allocation7 + $0xe8] sm:$0xff] }
 0x35e   : > { %v13547_v17 = vpop.permute.xlu1 %1470  ;;  %v13555_v2 = vpop.permute.xlu0 %2108  ;;  %v1728_v26 = vadd.f32 %v1696_v10, %v1664_v25  ;;  %v1437_v24 = vld [vmem:[#allocation8 + $0xe8] sm:$0xff]  ;;  %v2304_v10 = vsel %vm2269_vm2, %v13054_v42, 0 }
 0x35f   : > { %v13553_v11 = vpack.c.bf16 %v1939_v44, %v1938_v37  ;;  %v1789_v56 = vadd.f32 %v1757_v1, %v1725_v45  ;;  %v2313_v44 = vsel %vm2269_vm2, %v1962_v40, 0  ;;  %v1373_v1 = vld [vmem:[#allocation5 + $0xe8] sm:$0xff] }
 0x360   : > { %2120 = vrot.lane.b32.xlu1 %v1962_v40, %s12035_s18  ;;  %2046 = vrot.lane.b32.xlu0 %v13476_v33, %s12034_s28  ;;  %v1792_v53 = vadd.f32 %v1760_v48, %v1728_v26 }
 0x361   : > { %10187 = vmatprep.subr.msk.bf16.mxu0 %vm2269_vm2, %v13553_v11  ;;  %v2316_v30 = vsel %vm2269_vm2, %v13553_v11, 0  ;;  %10195 = vmatprep.subr.msk.bf16.mxu1 %vm2269_vm2, %v13553_v11  ;;  %v13600_v62 = vpack.c.bf16 %v1791_v4, %v1789_v56 }
 0x362   : > { %v1570_v58 = vpop.permute.xlu1 %1569  ;;  %9676 = vmatpush3.bf16.xpose.msra.mxu0 %v2316_v30  ;;  %9708 = vmatpush3.bf16.xpose.msra.mxu1 %v2316_v30  ;;  %v13571_v0 = vpop.permute.xlu0 %2124 }
 0x363   : > { %10188 = vmatprep.subr.msk.bf16.mxu0 %vm2269_vm2, %v1962_v40  ;;  %10196 = vmatprep.subr.msk.bf16.mxu1 %vm2269_vm2, %v1962_v40 }
 0x364   : > { %2136 = vrot.lane.b32.xlu1 %v1962_v40, %s12036_s22  ;;  %1992 = vrot.lane.b32.xlu0 %v13574_v27, %s12034_s28 }
 0x366   : > { %v1503_v49 = vpop.permute.xlu1 %1502  ;;  %v13584_v12 = vpop.permute.xlu0 %1996 }
 0x367   : > { %v1522_v55 = vsel %vm1506_vm0, %v13547_v17, %v1503_v49  ;;  %v1538_v54 = vsel %vm1506_vm0, %v1503_v49, %v13547_v17 }
 0x368   : > { %2008 = vrot.lane.b32.xlu1 %v13574_v27, %s12035_s18  ;;  %v1698_v37 = vmul.f32 %v1522_v55, %v13488_v36  ;;  %2024 = vrot.lane.b32.xlu0 %v13574_v27, %s12036_s22  ;;  %v1699_v29 = vmul.f32 %v1538_v54, %v1407_v32  ;;  %v17583_v55 = vld [vmem:[#allocation60_spill] sm:$0xff]  ;;  %v17584_v32 = vld [vmem:[#allocation38_spill] sm:$0xff] }
 0x369   : > { %v1665_v56 = vmul.f32 %v1373_v1, %v17583_v55 }
 0x36a   : > { %v1602_v38 = vpop.permute.xlu1 %1601  ;;  %9678 = vmatpush3.bf16.xpose.msra.mxu0 %v2313_v44  ;;  %9710 = vmatpush3.bf16.xpose.msra.mxu1 %v2313_v44  ;;  %v13607_v43 = vpop.permute.xlu0 %2052  ;;  %v1730_v46 = vadd.f32 %v1698_v37, %v1666_v50 }
 0x36b   : > { %v1635_v36 = vsel %vm1603_vm1, %v1602_v38, %v1570_v58  ;;  %10189 = vmatprep.subr.msk.bf16.mxu0 %vm2269_vm2, %v13418_v14  ;;  %10197 = vmatprep.subr.msk.bf16.mxu1 %vm2269_vm2, %v13418_v14  ;;  %v1537_v14 = vsel %vm1506_vm0, %v13464_v51, %v13428_v13  ;;  %v1619_v17 = vsel %vm1603_vm1, %v1570_v58, %v1602_v38 }
 0x36c   : > { %v1762_v40 = vmul.f32 %v1635_v36, %v13519_v52  ;;  %2048 = vrot.lane.b32.xlu1 %v13600_v62, %s12034_s28  ;;  %2064 = vrot.lane.b32.xlu0 %v13600_v62, %s12035_s18  ;;  %v1618_v13 = vsel %vm1603_vm1, %v13454_v61, %v13478_v35  ;;  %v1667_v58 = vmul.f32 %v1375_v60, %v13100_v34  ;;  %v2307_v61 = vsel %vm2269_vm2, %v13385_v9, 0 }
 0x36d   : > { %v1697_v45 = vmul.f32 %v1537_v14, %v1405_v63  ;;  %v1763_v4 = vmul.f32 %v1619_v17, %v1439_v8  ;;  %v1761_v16 = vmul.f32 %v1618_v13, %v1437_v24  ;;  %v2295_v60 = vsel %vm2269_vm2, %v17584_v32, 0 }
 0x36e   : > { %v13621_v57 = vpop.permute.xlu1 %2092  ;;  %v1794_v6 = vadd.f32 %v1762_v40, %v1730_v46  ;;  %v13623_v52 = vpop.permute.xlu0 %2068  ;;  %v1731_v37 = vadd.f32 %v1699_v29, %v1667_v58  ;;  %v17585_v29 = vld [vmem:[#allocation57_spill] sm:$0xff]  ;;  %v17586_v58 = vld [vmem:[#allocation71_spill] sm:$0xff] }
 0x36f   : > { %v1729_v34 = vadd.f32 %v1697_v45, %v1665_v56 }
 0x370   : > { %2122 = vrot.lane.b32.xlu1 %v13553_v11, %s12035_s18  ;;  %2080 = vrot.lane.b32.xlu0 %v13600_v62, %s12036_s22  ;;  %v13638_v41 = vpack.c.bf16 %v1794_v6, %v1792_v53  ;;  %v1795_v44 = vadd.f32 %v1763_v4, %v1731_v37  ;;  %v2298_v53 = vsel %vm2269_vm2, %v12882_v18, 0 }
 0x372   : > { %v1981_v30 = vpop.permute.xlu1 %1980  ;;  %9680 = vmatpush3.bf16.xpose.msra.mxu0 %v2310_v28  ;;  %9712 = vmatpush3.bf16.xpose.msra.mxu1 %v2310_v28  ;;  %v13634_v21 = vpop.permute.xlu0 %2094 }
 0x373   : > { %10190 = vmatprep.subr.msk.bf16.mxu0 %vm2269_vm2, %v13385_v9  ;;  %10198 = vmatprep.subr.msk.bf16.mxu1 %vm2269_vm2, %v13385_v9 }
 0x374   : > { %9723 = vmatprep.mubr.msk.bf16.mxu1 %vm2269_vm2, %v1981_v30  ;;  %2106 = vrot.lane.b32.xlu0 %v13553_v11, %s12034_s28 }
 0x375   : > { %1994 = vrot.lane.b32.xlu1 %v13638_v41, %s12034_s28 }
 0x376   : > { %v13657_v51 = vpop.permute.xlu1 %2012  ;;  %v1983_v49 = vpop.permute.xlu0 %1982 }
 0x378   : > { %2138 = vrot.lane.b32.xlu0 %v13553_v11, %s12036_s22  ;;  %v1793_v11 = vadd.f32 %v1761_v16, %v1729_v34 }
 0x379   : > { %2010 = vrot.lane.b32.xlu1 %v13638_v41, %s12035_s18 }
 0x37a   : > { %v13667_v35 = vpop.permute.xlu1 %2036  ;;  %9682 = vmatpush3.bf16.xpose.msra.mxu0 %v2307_v61  ;;  %9714 = vmatpush3.bf16.xpose.msra.mxu1 %v2307_v61  ;;  %v13669_v19 = vpop.permute.xlu0 %1998  ;;  %v13681_v50 = vpack.c.bf16 %v1795_v44, %v1793_v11 }
 0x37b   : > { %10191 = vmatprep.subr.msk.bf16.mxu0 %vm2269_vm2, %v13054_v42  ;;  %10199 = vmatprep.subr.msk.bf16.mxu1 %vm2269_vm2, %v13054_v42  ;;  %v2301_v42 = vsel %vm2269_vm2, %v12941_v20, 0 }
 0x37d   : > { %2026 = vrot.lane.b32.xlu1 %v13638_v41, %s12036_s22 }
 0x37e   : > { %v13677_v38 = vpop.permute.xlu1 %2110  ;;  %v13679_v9 = vpop.permute.xlu0 %2014 }
 0x381   : > { %2050 = vrot.lane.b32.xlu1 %v13681_v50, %s12034_s28 }
 0x382   : > { %v13687_v36 = vpop.permute.xlu1 %2126  ;;  %9684 = vmatpush3.bf16.xpose.msra.mxu0 %v2304_v10  ;;  %9716 = vmatpush3.bf16.xpose.msra.mxu1 %v2304_v10  ;;  %v13689_v40 = vpop.permute.xlu0 %2038 }
 0x383   : > { %10192 = vmatprep.subr.msk.bf16.mxu0 %vm2269_vm2, %v12941_v20  ;;  %10200 = vmatprep.subr.msk.bf16.mxu1 %vm2269_vm2, %v12941_v20 }
 0x385   : > { %2066 = vrot.lane.b32.xlu1 %v13681_v50, %s12035_s18 }
 0x386   : > { %v13697_v7 = vpop.permute.xlu1 %2054  ;;  %v13699_v25 = vpop.permute.xlu0 %2112 }
 0x389   : > { %2082 = vrot.lane.b32.xlu1 %v13681_v50, %s12036_s22 }
 0x38a   : > { %v13705_v48 = vpop.permute.xlu1 %2070  ;;  %9686 = vmatpush3.bf16.xpose.msra.mxu0 %v2301_v42  ;;  %9718 = vmatpush3.bf16.xpose.msra.mxu1 %v2301_v42  ;;  %v13707_v46 = vpop.permute.xlu0 %2128 }
 0x38b   : > { %10193 = vmatprep.subr.msk.bf16.mxu0 %vm2269_vm2, %v12882_v18  ;;  %10201 = vmatprep.subr.msk.bf16.mxu1 %vm2269_vm2, %v12882_v18 }
 0x38e   : > { %v13713_v26 = vpop.permute.xlu1 %2096  ;;  %v1985_v6 = vpop.permute.xlu0 %1984 }
 0x392   : > { %v13717_v28 = vpop.permute.xlu1 %2000  ;;  %9688 = vmatpush3.bf16.xpose.msra.mxu0 %v2298_v53  ;;  %9720 = vmatpush3.bf16.xpose.msra.mxu1 %v2298_v53  ;;  %v13719_v20 = vpop.permute.xlu0 %2016 }
 0x393   : > { %10194 = vmatprep.subr.msk.bf16.mxu0 %vm2269_vm2, %v17584_v32  ;;  %10202 = vmatprep.subr.msk.bf16.mxu1 %vm2269_vm2, %v17584_v32 }
 0x396   : > { %v13725_v54 = vpop.permute.xlu1 %2040  ;;  %v13727_v30 = vpop.permute.xlu0 %2056 }
 0x39a   : > { %v1987_v18 = vpop.permute.xlu1 %1986  ;;  %9690 = vmatpush3.bf16.xpose.msra.mxu0 %v2295_v60  ;;  %9722 = vmatpush3.bf16.xpose.msra.mxu1 %v2295_v60  ;;  %v13731_v63 = vpop.permute.xlu0 %2072 }
 0x39e   : > { %v13733_v14 = vpop.permute.xlu1 %2002  ;;  %v13735_v8 = vpop.permute.xlu0 %2098 }
 0x3a1   : > { %9692 = vmatmul.mubr.msk.bf16.vlgmr.msra.gmra.mxu0 %vm2269_vm2, %v12921_v5  ;;  %9724 = vmatmul.mubr.msk.bf16.vlgmr.msra.gmra.mxu1 %vm2269_vm2, %v1983_v49 }
 0x3a2   : > { %v13740_v17 = vpop.permute.xlu1 %2018  ;;  %9695 = vmatprep.mubr.msk.bf16.mxu0 %vm2269_vm2, %v17585_v29  ;;  %9727 = vmatprep.mubr.msk.bf16.mxu1 %vm2269_vm2, %v1985_v6  ;;  %v13745_v1 = vpop.permute.xlu0 %2114 }
 0x3a6   : > { %v13747_v24 = vpop.permute.xlu1 %2042  ;;  %v13749_v13 = vpop.permute.xlu0 %2130 }
 0x3a9   : > { %9696 = vmatmul.mubr.msk.bf16.gmra.mxu0 %vm2269_vm2, %v17586_v58  ;;  %9728 = vmatmul.mubr.msk.bf16.gmra.mxu1 %vm2269_vm2, %v1987_v18 }
 0x3aa   : > { %v13754_v5 = vpop.permute.xlu1 %2058  ;;  %9699 = vmatprep.mubr.msk.bf16.mxu0 %vm2269_vm2, %v13366_v15  ;;  %v13758_v45 = vpop.permute.xlu0 %2004 }
 0x3ae   : > { %v13760_v4 = vpop.permute.xlu1 %2074  ;;  %v13762_v49 = vpop.permute.xlu0 %2044 }
 0x3b1   : > { %9700 = vmatmul.mubr.msk.bf16.gmra.mxu0 %vm2269_vm2, %v13480_v31 }
 0x3b2   : > { %v2101_v55 = vpop.permute.xlu1 %2100  ;;  %9703 = vmatprep.mubr.msk.bf16.mxu0 %vm2269_vm2, %v13574_v27  ;;  %v13768_v56 = vpop.permute.xlu0 %2060 }
 0x3b3   : > { %17587 = vst [vmem:[#allocation31_spill] sm:$0xff] %v13768_v56 }
 0x3b6   : > { %v13770_v16 = vpop.permute.xlu1 %2116  ;;  %v13772_v37 = vpop.permute.xlu0 %2076 }
 0x3b7   : > { %17588 = vst [vmem:[#allocation64_spill] sm:$0xff] %v13772_v37 }
 0x3b9   : > { %9704 = vmatmul.mubr.msk.bf16.gmra.mxu0 %vm2269_vm2, %v13638_v41 }
 0x3ba   : > { %v13776_v15 = vpop.permute.xlu1 %2132  ;;  %9755 = vmatprep.mubr.msk.bf16.mxu0 %vm2269_vm2, %v13584_v12  ;;  %v2103_v61 = vpop.permute.xlu0 %2102 }
 0x3be   : > { %v1989_v31 = vpop.permute.xlu1 %1988  ;;  %v13780_v34 = vpop.permute.xlu0 %2118 }
 0x3bf   : > { %9731 = vmatprep.mubr.msk.bf16.mxu1 %vm2269_vm2, %v1989_v31 }
 0x3c2   : > { %v13783_v27 = vpop.permute.xlu1 %2020  ;;  %v13785_v44 = vpop.permute.xlu0 %2134 }
 0x3c6   : > { %v13787_v11 = vpop.permute.xlu1 %2062  ;;  %v1991_v10 = vpop.permute.xlu0 %1990 }
 0x3c7   : > { %17589 = vst [vmem:[#allocation29_spill] sm:$0xff] %v13787_v11  ;;  %9732 = vmatmul.mubr.msk.bf16.gmra.mxu1 %vm2269_vm2, %v1991_v10 }
 0x3ca   : > { %v13790_v41 = vpop.permute.xlu1 %2078  ;;  %v13792_v42 = vpop.permute.xlu0 %2006 }
 0x3cb   : > { %17590 = vst [vmem:[#allocation41_spill] sm:$0xff] %v13790_v41 }
 0x3ce   : > { %v2105_v12 = vpop.permute.xlu1 %2104  ;;  %v13794_v6 = vpop.permute.xlu0 %2022 }
 0x3d2   : > { %v13796_v53 = vpop.permute.xlu1 %2120  ;;  %v13798_v32 = vpop.permute.xlu0 %2046 }
 0x3d6   : > { %v13800_v60 = vpop.permute.xlu1 %2136  ;;  %v1993_v18 = vpop.permute.xlu0 %1992 }
 0x3d7   : > { %9735 = vmatprep.mubr.msk.bf16.mxu1 %vm2269_vm2, %v1993_v18  ;;  %v2579_v18 = vsel %vm2269_vm2, %v2105_v12, 0 }
 0x3da   : > { %v13803_v29 = vpop.permute.xlu1 %2008  ;;  %v13805_v58 = vpop.permute.xlu0 %2024 }
 0x3de   : > { %v13807_v31 = vpop.permute.xlu1 %2048  ;;  %v13809_v10 = vpop.permute.xlu0 %2064 }
 0x3e2   : > { %v2123_v23 = vpop.permute.xlu1 %2122  ;;  %v13811_v41 = vpop.permute.xlu0 %2080 }
 0x3e6   : > { %v2107_v37 = vpop.permute.xlu0 %2106 }
 0x3e7   : > { %v1995_v11 = vpop.permute.xlu1 %1994  ;;  %10203 = vmatprep.subr.msk.bf16.mxu0 %vm2269_vm2, %v2107_v37  ;;  %v2582_v56 = vsel %vm2269_vm2, %v2107_v37, 0  ;;  %10211 = vmatprep.subr.msk.bf16.mxu1 %vm2269_vm2, %v2107_v37 }
 0x3e8   : > { %9736 = vmatmul.mubr.msk.bf16.gmra.mxu1 %vm2269_vm2, %v1995_v11  ;;  %9740 = vmatpush3.bf16.xpose.msra.mxu0 %v2582_v56  ;;  %v2576_v11 = vsel %vm2269_vm2, %v2103_v61, 0 }
 0x3e9   : > { %9772 = vmatpush3.bf16.xpose.msra.mxu1 %v2582_v56  ;;  %9787 = vmatprep.mubr.msk.bf16.mxu1 %vm2269_vm2, %v13657_v51  ;;  %v2573_v51 = vsel %vm2269_vm2, %v2101_v55, 0  ;;  %v2570_v56 = vsel %vm2269_vm2, %v13735_v8, 0 }
 0x3ea   : > { %10204 = vmatprep.subr.msk.bf16.mxu0 %vm2269_vm2, %v2105_v12  ;;  %10212 = vmatprep.subr.msk.bf16.mxu1 %vm2269_vm2, %v2105_v12 }
 0x3f0   : > { %9742 = vmatpush3.bf16.xpose.msra.mxu0 %v2579_v18 }
 0x3f1   : > { %9774 = vmatpush3.bf16.xpose.msra.mxu1 %v2579_v18  ;;  %10205 = vmatprep.subr.msk.bf16.mxu0 %vm2269_vm2, %v2103_v61 }
 0x3f2   : > { %10213 = vmatprep.subr.msk.bf16.mxu1 %vm2269_vm2, %v2103_v61 }
 0x3f8   : > { %9744 = vmatpush3.bf16.xpose.msra.mxu0 %v2576_v11 }
 0x3f9   : > { %9776 = vmatpush3.bf16.xpose.msra.mxu1 %v2576_v11  ;;  %10206 = vmatprep.subr.msk.bf16.mxu0 %vm2269_vm2, %v2101_v55 }
 0x3fa   : > { %10214 = vmatprep.subr.msk.bf16.mxu1 %vm2269_vm2, %v2101_v55  ;;  %v2567_v55 = vsel %vm2269_vm2, %v13713_v26, 0 }
 0x400   : > { %9746 = vmatpush3.bf16.xpose.msra.mxu0 %v2573_v51 }
 0x401   : > { %9778 = vmatpush3.bf16.xpose.msra.mxu1 %v2573_v51  ;;  %10207 = vmatprep.subr.msk.bf16.mxu0 %vm2269_vm2, %v13735_v8 }
 0x402   : > { %10215 = vmatprep.subr.msk.bf16.mxu1 %vm2269_vm2, %v13735_v8  ;;  %v2564_v8 = vsel %vm2269_vm2, %v13634_v21, 0 }
 0x408   : > { %9748 = vmatpush3.bf16.xpose.msra.mxu0 %v2570_v56 }
 0x409   : > { %9780 = vmatpush3.bf16.xpose.msra.mxu1 %v2570_v56  ;;  %10208 = vmatprep.subr.msk.bf16.mxu0 %vm2269_vm2, %v13713_v26 }
 0x40a   : > { %10216 = vmatprep.subr.msk.bf16.mxu1 %vm2269_vm2, %v13713_v26  ;;  %v2561_v26 = vsel %vm2269_vm2, %v13621_v57, 0 }
 0x410   : > { %9750 = vmatpush3.bf16.xpose.msra.mxu0 %v2567_v55 }
 0x411   : > { %9782 = vmatpush3.bf16.xpose.msra.mxu1 %v2567_v55  ;;  %10209 = vmatprep.subr.msk.bf16.mxu0 %vm2269_vm2, %v13634_v21  ;;  %v17593_v55 = vld [vmem:[#allocation69_spill] sm:$0xff] }
 0x412   : > { %10217 = vmatprep.subr.msk.bf16.mxu1 %vm2269_vm2, %v13634_v21  ;;  %v2848_v21 = vsel %vm2269_vm2, %v2123_v23, 0 }
 0x418   : > { %9752 = vmatpush3.bf16.xpose.msra.mxu0 %v2564_v8 }
 0x419   : > { %9784 = vmatpush3.bf16.xpose.msra.mxu1 %v2564_v8  ;;  %10210 = vmatprep.subr.msk.bf16.mxu0 %vm2269_vm2, %v13621_v57 }
 0x41a   : > { %10218 = vmatprep.subr.msk.bf16.mxu1 %vm2269_vm2, %v13621_v57  ;;  %v2842_v57 = vsel %vm2269_vm2, %v13780_v34, 0 }
 0x420   : > { %9754 = vmatpush3.bf16.xpose.msra.mxu0 %v2561_v26 }
 0x421   : > { %9786 = vmatpush3.bf16.xpose.msra.mxu1 %v2561_v26  ;;  %10219 = vmatprep.subr.msk.bf16.mxu0 %vm2269_vm2, %v2123_v23  ;;  %v17594_v26 = vld [vmem:[#allocation62_spill] sm:$0xff] }
 0x422   : > { %10227 = vmatprep.subr.msk.bf16.mxu1 %vm2269_vm2, %v2123_v23  ;;  %v2845_v23 = vsel %vm2269_vm2, %v13796_v53, 0 }
 0x427   : > { %9756 = vmatmul.mubr.msk.bf16.vlgmr.msra.gmra.mxu0 %vm2269_vm2, %v13669_v19  ;;  %v2011_v19 = vpop.permute.xlu1 %2010 }
 0x428   : > { %9788 = vmatmul.mubr.msk.bf16.vlgmr.msra.gmra.mxu1 %vm2269_vm2, %v13679_v9  ;;  %9759 = vmatprep.mubr.msk.bf16.mxu0 %vm2269_vm2, %v13717_v28  ;;  %v2839_v28 = vsel %vm2269_vm2, %v13770_v16, 0 }
 0x429   : > { %9791 = vmatprep.mubr.msk.bf16.mxu1 %vm2269_vm2, %v13719_v20  ;;  %9804 = vmatpush3.bf16.xpose.msra.mxu0 %v2848_v21  ;;  %v17591_v20 = vld [vmem:[#allocation65_spill] sm:$0xff] }
 0x42a   : > { %9836 = vmatpush3.bf16.xpose.msra.mxu1 %v2848_v21  ;;  %10220 = vmatprep.subr.msk.bf16.mxu0 %vm2269_vm2, %v13796_v53 }
 0x42b   : > { %10228 = vmatprep.subr.msk.bf16.mxu1 %vm2269_vm2, %v13796_v53  ;;  %v2027_v9 = vpop.permute.xlu1 %2026 }
 0x42f   : > { %9760 = vmatmul.mubr.msk.bf16.gmra.mxu0 %vm2269_vm2, %v13733_v14  ;;  %v2836_v14 = vsel %vm2269_vm2, %v13745_v1, 0 }
 0x430   : > { %9792 = vmatmul.mubr.msk.bf16.gmra.mxu1 %vm2269_vm2, %v13740_v17  ;;  %9763 = vmatprep.mubr.msk.bf16.mxu0 %vm2269_vm2, %v13758_v45  ;;  %v17592_v17 = vld [vmem:[#allocation23_spill] sm:$0xff]  ;;  %v2830_v45 = vsel %vm2269_vm2, %v13677_v38, 0 }
 0x431   : > { %9795 = vmatprep.mubr.msk.bf16.mxu1 %vm2269_vm2, %v13783_v27  ;;  %9806 = vmatpush3.bf16.xpose.msra.mxu0 %v2845_v23  ;;  %v2222_v37 = vadd.s32 8, %v17592_v17  ;;  %vm2237_vm4 = vcmp.le.s32.totalorder %v12765_v47, %v17592_v17 }
 0x432   : > { %9838 = vmatpush3.bf16.xpose.msra.mxu1 %v2845_v23  ;;  %10221 = vmatprep.subr.msk.bf16.mxu0 %vm2269_vm2, %v13780_v34  ;;  %v2227_v23 = vadd.s32 48, %v17592_v17 }
 0x433   : > { %10229 = vmatprep.subr.msk.bf16.mxu1 %vm2269_vm2, %v13780_v34  ;;  %v2139_v34 = vpop.permute.xlu0 %2138  ;;  %vm2238_vm5 = vcmp.le.s32.totalorder %v12765_v47, %v2222_v37  ;;  %v2226_v37 = vadd.s32 40, %v17592_v17 }
 0x434   : > { %v3114_v21 = vsel %vm2269_vm2, %v2139_v34, 0  ;;  %vm2243_vm7 = vcmp.le.s32.totalorder %v12765_v47, %v2227_v23 }
 0x435   : > { %vm2242_vm9 = vcmp.le.s32.totalorder %v12765_v47, %v2226_v37  ;;  %v2236_v37 = vadd.s32 120, %v17592_v17 }
 0x437   : > { %9764 = vmatmul.mubr.msk.bf16.gmra.mxu0 %vm2269_vm2, %v13792_v42  ;;  %v2224_v42 = vadd.s32 24, %v17592_v17  ;;  %vm2252_vm15 = vcmp.le.s32.totalorder %v12765_v47, %v2236_v37 }
 0x438   : > { %9796 = vmatmul.mubr.msk.bf16.gmra.mxu1 %vm2269_vm2, %v13794_v6  ;;  %9767 = vmatprep.mubr.msk.bf16.mxu0 %vm2269_vm2, %v13803_v29 }
 0x439   : > { %9799 = vmatprep.mubr.msk.bf16.mxu1 %vm2269_vm2, %v13805_v58  ;;  %9808 = vmatpush3.bf16.xpose.msra.mxu0 %v2842_v57  ;;  %vm2240_vm6 = vcmp.le.s32.totalorder %v12765_v47, %v2224_v42 }
 0x43a   : > { %9840 = vmatpush3.bf16.xpose.msra.mxu1 %v2842_v57  ;;  %10222 = vmatprep.subr.msk.bf16.mxu0 %vm2269_vm2, %v13770_v16  ;;  %v2228_v57 = vadd.s32 56, %v17592_v17 }
 0x43b   : > { %10230 = vmatprep.subr.msk.bf16.mxu1 %vm2269_vm2, %v13770_v16 }
 0x43c   : > { %vm2244_vm8 = vcmp.le.s32.totalorder %v12765_v47, %v2228_v57 }
 0x43f   : > { %9768 = vmatmul.mubr.msk.bf16.gmra.mxu0 %vm2269_vm2, %v2011_v19 }
 0x440   : > { %9800 = vmatmul.mubr.msk.bf16.gmra.mxu1 %vm2269_vm2, %v2027_v9  ;;  %9819 = vmatprep.mubr.msk.bf16.mxu0 %vm2269_vm2, %v17591_v20 }
 0x441   : > { %9810 = vmatpush3.bf16.xpose.msra.mxu0 %v2839_v28  ;;  %9851 = vmatprep.mubr.msk.bf16.mxu1 %vm2269_vm2, %v13667_v35  ;;  %v2833_v35 = vsel %vm2269_vm2, %v13699_v25, 0 }
 0x442   : > { %9842 = vmatpush3.bf16.xpose.msra.mxu1 %v2839_v28  ;;  %10223 = vmatprep.subr.msk.bf16.mxu0 %vm2269_vm2, %v13745_v1 }
 0x443   : > { %10231 = vmatprep.subr.msk.bf16.mxu1 %vm2269_vm2, %v13745_v1  ;;  %v2223_v1 = vadd.s32 16, %v17592_v17 }
 0x445   : > { %vm2239_vm3 = vcmp.le.s32.totalorder %v12765_v47, %v2223_v1 }
 0x449   : > { %9812 = vmatpush3.bf16.xpose.msra.mxu0 %v2836_v14 }
 0x44a   : > { %9844 = vmatpush3.bf16.xpose.msra.mxu1 %v2836_v14  ;;  %10224 = vmatprep.subr.msk.bf16.mxu0 %vm2269_vm2, %v13699_v25 }
 0x44b   : > { %10232 = vmatprep.subr.msk.bf16.mxu1 %vm2269_vm2, %v13699_v25  ;;  %v12037_v25 = vmov -1e+09  }
 0x44c   : > { %v13928_v16 = vsel %vm2239_vm3, 0.0, %v12037_v25  ;;  %v13941_v12 = vsel %vm2237_vm4, 0.0, %v12037_v25  ;;  %v13951_v58 = vsel %vm2238_vm5, 0.0, %v12037_v25  ;;  %v13955_v51 = vsel %vm2240_vm6, 0.0, %v12037_v25 }
 0x44d   : > { %v13992_v1 = vsel %vm2244_vm8, 0.0, %v12037_v25  ;;  %vm5726_vm4 = vcmask 523264   ;;  %vm5743_vm5 = vcmask 785408  }
 0x451   : > { %9814 = vmatpush3.bf16.xpose.msra.mxu0 %v2833_v35 }
 0x452   : > { %9846 = vmatpush3.bf16.xpose.msra.mxu1 %v2833_v35  ;;  %10225 = vmatprep.subr.msk.bf16.mxu0 %vm2269_vm2, %v13677_v38  ;;  %v13989_v35 = vsel %vm2243_vm7, 0.0, %v12037_v25 }
 0x453   : > { %10233 = vmatprep.subr.msk.bf16.mxu1 %vm2269_vm2, %v13677_v38  ;;  %v2827_v38 = vsel %vm2269_vm2, %v13555_v2, 0 }
 0x459   : > { %9816 = vmatpush3.bf16.xpose.msra.mxu0 %v2830_v45 }
 0x45a   : > { %9848 = vmatpush3.bf16.xpose.msra.mxu1 %v2830_v45  ;;  %10226 = vmatprep.subr.msk.bf16.mxu0 %vm2269_vm2, %v13555_v2 }
 0x45b   : > { %10234 = vmatprep.subr.msk.bf16.mxu1 %vm2269_vm2, %v13555_v2 }
 0x461   : > { %v9693_v61 = vpop.f32.mrf.mxu0  ;;  %9818 = vmatpush3.bf16.xpose.msra.mxu0 %v2827_v38  ;;  %v9725_v53 = vpop.f32.mrf.mxu1 }
 0x462   : > { %v13936_v27 = vadd.f32 %v9693_v61, %v13928_v16  ;;  %9850 = vmatpush3.bf16.xpose.msra.mxu1 %v2827_v38  ;;  %10235 = vmatprep.subr.msk.bf16.mxu0 %vm2269_vm2, %v2139_v34  ;;  %v13986_v14 = vadd.f32 %v9725_v53, %v13928_v16  ;;  %v2225_v38 = vadd.s32 32, %v17592_v17  ;;  %v3111_v61 = vsel %vm2269_vm2, %v13800_v60, 0 }
 0x463   : > { %v2352_v6 = vpop.f32.mrf.mxu0  ;;  %10243 = vmatprep.subr.msk.bf16.mxu1 %vm2269_vm2, %v2139_v34  ;;  %v2473_v11 = vpop.f32.mrf.mxu1  ;;  %v14031_v53 = vsel %vm2242_vm9, 0.0, %v12037_v25 }
 0x464   : > { %3338 = vmax.xlane.f32.xlu0 %v13936_v27  ;;  %v13947_v29 = vadd.f32 %v2352_v6, %v13941_v12  ;;  %vm2241_vm10 = vcmp.le.s32.totalorder %v12765_v47, %v2225_v38  ;;  %v14028_v6 = vadd.f32 %v2473_v11, %v13941_v12  ;;  %v2229_v11 = vadd.s32 64, %v17592_v17 }
 0x465   : > { %v9694_v2 = vpop.f32.mrf.mxu0  ;;  %v9726_v28 = vpop.f32.mrf.mxu1  ;;  %v2235_v38 = vadd.s32 112, %v17592_v17 }
 0x466   : > { %v13972_v9 = vadd.f32 %v9694_v2, %v13955_v51  ;;  %vm2245_vm14 = vcmp.le.s32.totalorder %v12765_v47, %v2229_v11  ;;  %v2233_v11 = vadd.s32 96, %v17592_v17 }
 0x467   : > { %v2355_v18 = vpop.f32.mrf.mxu0  ;;  %vm2251_vm0 = vcmp.le.s32.totalorder %v12765_v47, %v2235_v38 }
 0x468   : > { %3334 = vmax.xlane.f32.xlu0 %v13947_v29  ;;  %v13958_v56 = vadd.f32 %v2355_v18, %v13951_v58  ;;  %9820 = vmatmul.mubr.msk.bf16.vlgmr.msra.gmra.mxu0 %vm2269_vm2, %v17593_v55  ;;  %v14036_v18 = vsel %vm2241_vm10, 0.0, %v12037_v25  ;;  %v2230_v55 = vadd.s32 72, %v17592_v17  ;;  %vm2249_vm3 = vcmp.le.s32.totalorder %v12765_v47, %v2233_v11 }
 0x469   : > { %v9697_v8 = vpop.f32.mrf.mxu0  ;;  %9852 = vmatmul.mubr.msk.bf16.vlgmr.msra.gmra.mxu1 %vm2269_vm2, %v13689_v40  ;;  %9823 = vmatprep.mubr.msk.bf16.mxu0 %vm2269_vm2, %v17594_v26 }
 0x46a   : > { %9855 = vmatprep.mubr.msk.bf16.mxu1 %vm2269_vm2, %v13725_v54  ;;  %9868 = vmatpush3.bf16.xpose.msra.mxu0 %v3114_v21  ;;  %v13983_v54 = vadd.f32 %v9726_v28, %v13955_v51  ;;  %vm2246_vm13 = vcmp.le.s32.totalorder %v12765_v47, %v2230_v55 }
 0x46b   : > { %v2368_v19 = vpop.f32.mrf.mxu0  ;;  %9900 = vmatpush3.bf16.xpose.msra.mxu1 %v3114_v21  ;;  %10236 = vmatprep.subr.msk.bf16.mxu0 %vm2269_vm2, %v13800_v60  ;;  %v14079_v28 = vsel %vm2246_vm13, 0.0, %v12037_v25 }
 0x46c   : > { %10244 = vmatprep.subr.msk.bf16.mxu1 %vm2269_vm2, %v13800_v60  ;;  %3336 = vmax.xlane.f32.xlu1 %v13958_v56  ;;  %v2231_v60 = vadd.s32 80, %v17592_v17  ;;  %v14056_v26 = vadd.f32 %v2368_v19, %v14036_v18 }
 0x46d   : > { %v9698_v40 = vpop.f32.mrf.mxu0  ;;  %3340 = vmax.xlane.f32.xlu0 %v13972_v9 }
 0x46e   : > { %v14012_v34 = vadd.f32 %v9698_v40, %v13992_v1  ;;  %vm2247_vm12 = vcmp.le.s32.totalorder %v12765_v47, %v2231_v60  ;;  %v14121_v60 = vsel %vm2251_vm0, 0.0, %v12037_v25 }
 0x46f   : > { %v2371_v20 = vpop.f32.mrf.mxu0 }
 0x470   : > { %3372 = vmax.xlane.f32.xlu1 %v13983_v54  ;;  %9824 = vmatmul.mubr.msk.bf16.gmra.mxu0 %vm2269_vm2, %v13350_v59  ;;  %v14009_v59 = vadd.f32 %v9697_v8, %v13989_v35  ;;  %v14051_v8 = vadd.f32 %v2371_v20, %v14031_v53  ;;  %v14084_v20 = vsel %vm2245_vm14, 0.0, %v12037_v25 }
 0x471   : > { %v9701_v45 = vpop.f32.mrf.mxu0  ;;  %9856 = vmatmul.mubr.msk.bf16.gmra.mxu1 %vm2269_vm2, %v13747_v24  ;;  %3370 = vmax.xlane.f32.xlu0 %v13986_v14  ;;  %v2476_v24 = vpop.f32.mrf.mxu1  ;;  %17596 = vst [vmem:[#allocation44_spill] sm:$0xff] %v14084_v20 }
 0x472   : > { %9827 = vmatprep.mubr.msk.bf16.mxu0 %vm2269_vm2, %v13378_v22  ;;  %9859 = vmatprep.mubr.msk.bf16.mxu1 %vm2269_vm2, %v13762_v49  ;;  %v2232_v49 = vadd.s32 88, %v17592_v17  ;;  %v14025_v42 = vadd.f32 %v2476_v24, %v13951_v58 }
 0x473   : > { %9870 = vmatpush3.bf16.xpose.msra.mxu0 %v3111_v61  ;;  %9902 = vmatpush3.bf16.xpose.msra.mxu1 %v3111_v61  ;;  %v2384_v22 = vpop.f32.mrf.mxu0 }
 0x474   : > { %10237 = vmatprep.subr.msk.bf16.mxu0 %vm2269_vm2, %v13785_v44  ;;  %10245 = vmatprep.subr.msk.bf16.mxu1 %vm2269_vm2, %v13785_v44  ;;  %vm2248_vm11 = vcmp.le.s32.totalorder %v12765_v47, %v2232_v49  ;;  %v14101_v24 = vadd.f32 %v2384_v22, %v14084_v20 }
 0x475   : > { %3348 = vmax.xlane.f32.xlu1 %v14012_v34  ;;  %3346 = vmax.xlane.f32.xlu0 %v14009_v59  ;;  %v9702_v2 = vpop.f32.mrf.mxu0  ;;  %v14059_v21 = vsel %vm2248_vm11, 0.0, %v12037_v25 }
 0x476   : > { %17595 = vst [vmem:[#allocation37_spill] sm:$0xff] %v14059_v21 }
 0x477   : > { %v2387_v23 = vpop.f32.mrf.mxu0 }
 0x478   : > { %9828 = vmatmul.mubr.msk.bf16.gmra.mxu0 %vm2269_vm2, %v13476_v33  ;;  %v3108_v33 = vsel %vm2269_vm2, %v13785_v44, 0  ;;  %v2051_v44 = vpop.permute.xlu1 %2050 }
 0x479   : > { %3368 = vmax.xlane.f32.xlu1 %v14025_v42  ;;  %9860 = vmatmul.mubr.msk.bf16.gmra.mxu1 %vm2269_vm2, %v13798_v32  ;;  %v9729_v32 = vpop.f32.mrf.mxu1  ;;  %v9705_v40 = vpop.f32.mrf.mxu0 }
 0x47a   : > { %3366 = vmax.xlane.f32.xlu0 %v14028_v6  ;;  %9831 = vmatprep.mubr.msk.bf16.mxu0 %vm2269_vm2, %v13600_v62  ;;  %v14064_v62 = vsel %vm2247_vm12, 0.0, %v12037_v25 }
 0x47b   : > { %9863 = vmatprep.mubr.msk.bf16.mxu1 %vm2269_vm2, %v13807_v31  ;;  %9872 = vmatpush3.bf16.xpose.msra.mxu0 %v3108_v33  ;;  %v14073_v31 = vadd.f32 %v9702_v2, %v14059_v21  ;;  %v2489_v57 = vpop.f32.mrf.mxu1  ;;  %v14076_v19 = vadd.f32 %v9701_v45, %v14064_v62  ;;  %v3105_v45 = vsel %vm2269_vm2, %v13776_v15, 0  ;;  %v2400_v49 = vpop.f32.mrf.mxu0  ;;  %v2234_v2 = vadd.s32 104, %v17592_v17  ;;  %v17613_v17 = vld [vmem:[#allocation26_spill] sm:$0xff] }
 0x47c   : > { %9904 = vmatpush3.bf16.xpose.msra.mxu1 %v3108_v33  ;;  %10238 = vmatprep.subr.msk.bf16.mxu0 %vm2269_vm2, %v13776_v15  ;;  %v3102_v33 = vsel %vm2269_vm2, %v13749_v13, 0 }
 0x47d   : > { %10246 = vmatprep.subr.msk.bf16.mxu1 %vm2269_vm2, %v13776_v15  ;;  %3344 = vmax.xlane.f32.xlu1 %v14051_v8  ;;  %v9730_v61 = vpop.f32.mrf.mxu1  ;;  %v14118_v15 = vsel %vm2252_vm15, 0.0, %v12037_v25  ;;  %v9706_v22 = vpop.f32.mrf.mxu0  ;;  %vm2250_vm1 = vcmp.le.s32.totalorder %v12765_v47, %v2234_v2  ;;  %v3099_v47 = vsel %vm2269_vm2, %v13707_v46, 0 }
 0x47e   : > { %3342 = vmax.xlane.f32.xlu0 %v14056_v26  ;;  %v14150_v37 = vsel %vm2250_vm1, 0.0, %v12037_v25 }
 0x47f   : > { %v2492_v55 = vpop.f32.mrf.mxu1  ;;  %v2403_v38 = vpop.f32.mrf.mxu0 }
 0x480   : > { %9832 = vmatmul.mubr.msk.bf16.gmra.mxu0 %vm2269_vm2, %v13681_v50  ;;  %v14096_v50 = vadd.f32 %v2387_v23, %v14079_v28  ;;  %v14133_v23 = vadd.f32 %v9705_v40, %v14121_v60  ;;  %v14147_v40 = vadd.f32 %v2489_v57, %v14036_v18 }
 0x481   : > { %3356 = vmax.xlane.f32.xlu1 %v14073_v31  ;;  %9864 = vmatmul.mubr.msk.bf16.gmra.mxu1 %vm2269_vm2, %v2051_v44 }
 0x482   : > { %3354 = vmax.xlane.f32.xlu0 %v14076_v19  ;;  %9883 = vmatprep.mubr.msk.bf16.mxu0 %vm2269_vm2, %v13607_v43  ;;  %v14112_v43 = vadd.f32 %v9730_v61, %v13992_v1  ;;  %v14153_v61 = vsel %vm2249_vm3, 0.0, %v12037_v25 }
 0x483   : > { %9874 = vmatpush3.bf16.xpose.msra.mxu0 %v3105_v45  ;;  %9915 = vmatprep.mubr.msk.bf16.mxu1 %vm2269_vm2, %v13623_v52  ;;  %v14115_v52 = vadd.f32 %v9729_v32, %v13989_v35  ;;  %v14130_v32 = vadd.f32 %v9706_v22, %v14118_v15  ;;  %v14160_v22 = vadd.f32 %v2403_v38, %v14150_v37 }
 0x484   : > { %9906 = vmatpush3.bf16.xpose.msra.mxu1 %v3105_v45  ;;  %10239 = vmatprep.subr.msk.bf16.mxu0 %vm2269_vm2, %v13749_v13  ;;  %v14163_v57 = vadd.f32 %v2400_v49, %v14153_v61 }
 0x485   : > { %10247 = vmatprep.subr.msk.bf16.mxu1 %vm2269_vm2, %v13749_v13  ;;  %3352 = vmax.xlane.f32.xlu1 %v14096_v50  ;;  %v14144_v13 = vadd.f32 %v2492_v55, %v14031_v53  ;;  %v3096_v55 = vsel %vm2269_vm2, %v13687_v36, 0 }
 0x486   : > { %3350 = vmax.xlane.f32.xlu0 %v14101_v24 }
 0x487   : > { %v9733_v44 = vpop.f32.mrf.mxu1 }
 0x488   : > { %v14175_v25 = vadd.f32 %v9733_v44, %v14064_v62  ;;  %v17597_v44 = vld [vmem:[#allocation63_spill] sm:$0xff] }
 0x489   : > { %3380 = vmax.xlane.f32.xlu1 %v14112_v43  ;;  %v2505_v45 = vpop.f32.mrf.mxu1 }
 0x48a   : > { %3378 = vmax.xlane.f32.xlu0 %v14115_v52 }
 0x48b   : > { %9876 = vmatpush3.bf16.xpose.msra.mxu0 %v3102_v33  ;;  %v9734_v2 = vpop.f32.mrf.mxu1 }
 0x48c   : > { %9908 = vmatpush3.bf16.xpose.msra.mxu1 %v3102_v33  ;;  %10240 = vmatprep.subr.msk.bf16.mxu0 %vm2269_vm2, %v13707_v46  ;;  %v14185_v33 = vadd.f32 %v2505_v45, %v14084_v20 }
 0x48d   : > { %10248 = vmatprep.subr.msk.bf16.mxu1 %vm2269_vm2, %v13707_v46  ;;  %3364 = vmax.xlane.f32.xlu1 %v14130_v32  ;;  %v14172_v46 = vadd.f32 %v9734_v2, %v14059_v21  ;;  %v2508_v49 = vpop.f32.mrf.mxu1 }
 0x48e   : > { %3362 = vmax.xlane.f32.xlu0 %v14133_v23  ;;  %v14182_v11 = vadd.f32 %v2508_v49, %v14079_v28  ;;  %v17601_v49 = vld [vmem:[#allocation58_spill] sm:$0xff] }
 0x491   : > { %3376 = vmax.xlane.f32.xlu1 %v14144_v13 }
 0x492   : > { %3374 = vmax.xlane.f32.xlu0 %v14147_v40 }
 0x493   : > { %9878 = vmatpush3.bf16.xpose.msra.mxu0 %v3099_v47 }
 0x494   : > { %9910 = vmatpush3.bf16.xpose.msra.mxu1 %v3099_v47  ;;  %10241 = vmatprep.subr.msk.bf16.mxu0 %vm2269_vm2, %v13687_v36 }
 0x495   : > { %10249 = vmatprep.subr.msk.bf16.mxu1 %vm2269_vm2, %v13687_v36  ;;  %3360 = vmax.xlane.f32.xlu1 %v14160_v22  ;;  %v3093_v36 = vsel %vm2269_vm2, %v13571_v0, 0 }
 0x496   : > { %3358 = vmax.xlane.f32.xlu0 %v14163_v57 }
 0x499   : > { %3388 = vmax.xlane.f32.xlu1 %v14172_v46 }
 0x49a   : > { %3386 = vmax.xlane.f32.xlu0 %v14175_v25 }
 0x49b   : > { %9880 = vmatpush3.bf16.xpose.msra.mxu0 %v3096_v55 }
 0x49c   : > { %9912 = vmatpush3.bf16.xpose.msra.mxu1 %v3096_v55  ;;  %10242 = vmatprep.subr.msk.bf16.mxu0 %vm2269_vm2, %v13571_v0  ;;  %v17604_v55 = vld [vmem:[#allocation31_spill] sm:$0xff] }
 0x49d   : > { %10250 = vmatprep.subr.msk.bf16.mxu1 %vm2269_vm2, %v13571_v0  ;;  %3384 = vmax.xlane.f32.xlu1 %v14182_v11 }
 0x49e   : > { %3382 = vmax.xlane.f32.xlu0 %v14185_v33 }
 0x4a3   : > { %9882 = vmatpush3.bf16.xpose.msra.mxu0 %v3093_v36 }
 0x4a4   : > { %9914 = vmatpush3.bf16.xpose.msra.mxu1 %v3093_v36  ;;  %9995 = vmatprep.subr.bf16.mxu0 %v13509_v39 }
 0x4a5   : > { %9931 = vmatprep.subr.bf16.mxu1 %v17597_v44 }
 0x4a8   : > { %v9737_v38 = vpop.f32.mrf.mxu1 }
 0x4a9   : > { %v14198_v45 = vadd.f32 %v9737_v38, %v14121_v60  ;;  %v17606_v38 = vld [vmem:[#allocation64_spill] sm:$0xff] }
 0x4aa   : > { %v2521_v47 = vpop.f32.mrf.mxu1  ;;  %9884 = vmatmul.mubr.msk.bf16.vlgmr.msra.gmra.mxu0 %vm2269_vm2, %v13697_v7 }
 0x4ab   : > { %17598 = vst [vmem:[#allocation43_spill] sm:$0xff] %v14198_v45  ;;  %3394 = vmax.xlane.f32.xlu0 %v14198_v45  ;;  %9916 = vmatmul.mubr.msk.bf16.vlgmr.msra.gmra.mxu1 %vm2269_vm2, %v13705_v48  ;;  %v14215_v7 = vadd.f32 %v2521_v47, %v14153_v61  ;;  %v17607_v47 = vld [vmem:[#allocation36_spill] sm:$0xff] }
 0x4ac   : > { %9887 = vmatprep.mubr.msk.bf16.mxu0 %vm2269_vm2, %v13727_v30  ;;  %v9738_v0 = vpop.f32.mrf.mxu1  ;;  %9919 = vmatprep.mubr.msk.bf16.mxu1 %vm2269_vm2, %v13731_v63  ;;  %v17602_v30 = vld [vmem:[#allocation46_spill] sm:$0xff]  ;;  %v17603_v63 = vld [vmem:[#allocation28_spill] sm:$0xff] }
 0x4ad   : > { %9932 = vmatpush3.bf16.msra.mxu1 %v17597_v44  ;;  %v14211_v2 = vadd.f32 %v9738_v0, %v14118_v15  ;;  %9996 = vmatpush3.bf16.msra.mxu0 %v13509_v39  ;;  %17600 = vst [vmem:[#allocation40_spill] sm:$0xff] %v14215_v7  ;;  %v17608_v0 = vld [vmem:[#allocation68_spill] sm:$0xff] }
 0x4ae   : > { %9933 = vmatprep.subr.bf16.mxu1 %v17601_v49  ;;  %9997 = vmatprep.subr.bf16.mxu0 %v13462_v3  ;;  %v2524_v48 = vpop.f32.mrf.mxu1 }
 0x4af   : > { %17599 = vst [vmem:[#allocation42_spill] sm:$0xff] %v14211_v2  ;;  %3396 = vmax.xlane.f32.xlu1 %v14211_v2  ;;  %3390 = vmax.xlane.f32.xlu0 %v14215_v7  ;;  %v14232_v36 = vadd.f32 %v2524_v48, %v14150_v37  ;;  %v17611_v48 = vld [vmem:[#allocation29_spill] sm:$0xff] }
 0x4b1   : > { %9934 = vmatpush3.bf16.msra.mxu1 %v17601_v49  ;;  %9998 = vmatpush3.bf16.msra.mxu0 %v13462_v3  ;;  %17605 = vst [vmem:[#allocation48_spill] sm:$0xff] %v14232_v36 }
 0x4b2   : > { %9935 = vmatprep.subr.bf16.mxu1 %v17602_v30  ;;  %9999 = vmatprep.subr.bf16.mxu0 %v17603_v63 }
 0x4b3   : > { %9888 = vmatmul.mubr.msk.bf16.gmra.mxu0 %vm2269_vm2, %v13754_v5  ;;  %9920 = vmatmul.mubr.msk.bf16.gmra.mxu1 %vm2269_vm2, %v13760_v4  ;;  %v17609_v5 = vld [vmem:[#allocation33_spill] sm:$0xff]  ;;  %v17610_v4 = vld [vmem:[#allocation66_spill] sm:$0xff] }
 0x4b4   : > { %9891 = vmatprep.mubr.msk.bf16.mxu0 %vm2269_vm2, %v17604_v55  ;;  %9923 = vmatprep.mubr.msk.bf16.mxu1 %vm2269_vm2, %v17606_v38  ;;  %v17612_v55 = vld [vmem:[#allocation41_spill] sm:$0xff]  ;;  %v2067_v38 = vpop.permute.xlu1 %2066 }
 0x4b5   : > { %9936 = vmatpush3.bf16.msra.mxu1 %v17602_v30  ;;  %10000 = vmatpush3.bf16.msra.mxu0 %v17603_v63 }
 0x4b6   : > { %9937 = vmatprep.subr.bf16.mxu1 %v17607_v47  ;;  %10001 = vmatprep.subr.bf16.mxu0 %v17608_v0 }
 0x4b7   : > { %3392 = vmax.xlane.f32.xlu1 %v14232_v36 }
 0x4b9   : > { %9938 = vmatpush3.bf16.msra.mxu1 %v17607_v47  ;;  %10002 = vmatpush3.bf16.msra.mxu0 %v17608_v0  ;;  %v17614_v0 = vld [vmem:[#allocation56_spill] sm:$0xff] }
 0x4ba   : > { %9939 = vmatprep.subr.bf16.mxu1 %v17609_v5  ;;  %10003 = vmatprep.subr.bf16.mxu0 %v17610_v4 }
 0x4bb   : > { %9892 = vmatmul.mubr.msk.bf16.gmra.mxu0 %vm2269_vm2, %v17611_v48  ;;  %9924 = vmatmul.mubr.msk.bf16.gmra.mxu1 %vm2269_vm2, %v17612_v55  ;;  %v17615_v48 = vld [vmem:[#allocation25_spill] sm:$0xff]  ;;  %v2083_v55 = vpop.permute.xlu1 %2082 }
 0x4bc   : > { %9895 = vmatprep.mubr.msk.bf16.mxu0 %vm2269_vm2, %v13809_v10  ;;  %9927 = vmatprep.mubr.msk.bf16.mxu1 %vm2269_vm2, %v13811_v41  ;;  %v17616_v10 = vld [vmem:[#allocation50_spill] sm:$0xff]  ;;  %v17617_v41 = vld [vmem:[#allocation24_spill] sm:$0xff] }
 0x4bd   : > { %9940 = vmatpush3.bf16.msra.mxu1 %v17609_v5  ;;  %10004 = vmatpush3.bf16.msra.mxu0 %v17610_v4  ;;  %v17618_v4 = vld [vmem:[#allocation39_spill] sm:$0xff] }
 0x4be   : > { %9941 = vmatprep.subr.bf16.mxu1 %v17613_v17  ;;  %10005 = vmatprep.subr.bf16.mxu0 %v17614_v0 }
 0x4c1   : > { %9942 = vmatpush3.bf16.msra.mxu1 %v17613_v17  ;;  %10006 = vmatpush3.bf16.msra.mxu0 %v17614_v0  ;;  %v17619_v0 = vld [vmem:[#allocation35_spill] sm:$0xff] }
 0x4c2   : > { %9943 = vmatprep.subr.bf16.mxu1 %v17615_v48  ;;  %10007 = vmatprep.subr.bf16.mxu0 %v17616_v10 }
 0x4c3   : > { %9896 = vmatmul.mubr.msk.bf16.gmra.mxu0 %vm2269_vm2, %v2067_v38  ;;  %9928 = vmatmul.mubr.msk.bf16.gmra.mxu1 %vm2269_vm2, %v2083_v55 }
 0x4c5   : > { %9944 = vmatpush3.bf16.msra.mxu1 %v17615_v48  ;;  %10008 = vmatpush3.bf16.msra.mxu0 %v17616_v10 }
 0x4c6   : > { %9945 = vmatprep.subr.bf16.mxu1 %v17617_v41  ;;  %10009 = vmatprep.subr.bf16.mxu0 %v17618_v4 }
 0x4c9   : > { %9946 = vmatpush3.bf16.msra.mxu1 %v17617_v41  ;;  %10010 = vmatpush3.bf16.msra.mxu0 %v17618_v4 }
 0x4ca   : > { %9963 = vmatprep.subr.bf16.mxu1 %v17597_v44  ;;  %10059 = vmatprep.subr.bf16.mxu0 %v17619_v0 }
 0x4e7   : > { %v9757_v63 = vpop.f32.mrf.mxu0 }
 0x4e8   : > { %v14272_v38 = vadd.f32 %v9757_v63, %v13928_v16  ;;  %v9789_v55 = vpop.f32.mrf.mxu1 }
 0x4e9   : > { %v2618_v3 = vpop.f32.mrf.mxu0  ;;  %v14276_v48 = vadd.f32 %v9789_v55, %v13928_v16 }
 0x4ea   : > { %17620 = vst [vmem:[#allocation45_spill] sm:$0xff] %v14272_v38  ;;  %v2739_v39 = vpop.f32.mrf.mxu1  ;;  %3402 = vmax.xlane.f32.xlu0 %v14272_v38  ;;  %v14284_v63 = vadd.f32 %v2618_v3, %v13941_v12 }
 0x4eb   : > { %v9758_v10 = vpop.f32.mrf.mxu0  ;;  %17621 = vst [vmem:[#allocation54_spill] sm:$0xff] %v14276_v48 }
 0x4ec   : > { %v14279_v41 = vadd.f32 %v9758_v10, %v13955_v51  ;;  %v9790_v4 = vpop.f32.mrf.mxu1  ;;  %17623 = vst [vmem:[#allocation51_spill] sm:$0xff] %v14284_v63  ;;  %v14292_v10 = vadd.f32 %v2739_v39, %v13941_v12 }
 0x4ed   : > { %v2621_v17 = vpop.f32.mrf.mxu0  ;;  %v14287_v0 = vadd.f32 %v9790_v4, %v13955_v51  ;;  %v3339_v39 = vpop.xlane.xlu0 %3338 }
 0x4ee   : > { %17622 = vst [vmem:[#allocation61_spill] sm:$0xff] %v14279_v41  ;;  %3434 = vmax.xlane.f32.xlu0 %v14276_v48  ;;  %3404 = vmax.xlane.f32.xlu1 %v14279_v41  ;;  %v2742_v5 = vpop.f32.mrf.mxu1  ;;  %17625 = vst [vmem:[#allocation53_spill] sm:$0xff] %v14292_v10  ;;  %v14295_v55 = vadd.f32 %v2621_v17, %v13951_v58  ;;  %v3592_v7 = vsub.f32 %v13936_v27, %v3339_v39 }
 0x4ef   : > { %17624 = vst [vmem:[#allocation47_spill] sm:$0xff] %v14287_v0  ;;  %v9761_v47 = vpop.f32.mrf.mxu0  ;;  %v14300_v3 = vadd.f32 %v2742_v5, %v13951_v58 }
 0x4f0   : > { %17626 = vst [vmem:[#allocation49_spill] sm:$0xff] %v14295_v55  ;;  %v9793_v30 = vpop.f32.mrf.mxu1  ;;  %v14303_v4 = vadd.f32 %v9761_v47, %v13989_v35  ;;  %v3722_v45 = vmul.f32 1.442695, %v3592_v7 }
 0x4f1   : > { %v2634_v41 = vpop.f32.mrf.mxu0  ;;  %17627 = vst [vmem:[#allocation55_spill] sm:$0xff] %v14300_v3  ;;  %v14308_v17 = vadd.f32 %v9793_v30, %v13989_v35 }
 0x4f2   : > { %3436 = vmax.xlane.f32.xlu1 %v14287_v0  ;;  %3398 = vmax.xlane.f32.xlu0 %v14284_v63  ;;  %17628 = vst [vmem:[#allocation60_spill] sm:$0xff] %v14303_v4  ;;  %v2755_v0 = vpop.f32.mrf.mxu1  ;;  %v14316_v47 = vadd.f32 %v2634_v41, %v14036_v18  ;;  %10894 = vpow2.f32 %v3722_v45 }
 0x4f3   : > { %v9762_v63 = vpop.f32.mrf.mxu0  ;;  %17629 = vst [vmem:[#allocation38_spill] sm:$0xff] %v14308_v17  ;;  %v14324_v30 = vadd.f32 %v2755_v0, %v14036_v18 }
 0x4f4   : > { %17631 = vst [vmem:[#allocation71_spill] sm:$0xff] %v14316_v47 }
 0x4f5   : > { %v2637_v49 = vpop.f32.mrf.mxu0  ;;  %17633 = vst [vmem:[#allocation69_spill] sm:$0xff] %v14324_v30 }
 0x4f6   : > { %3400 = vmax.xlane.f32.xlu1 %v14295_v55  ;;  %3430 = vmax.xlane.f32.xlu0 %v14292_v10  ;;  %v14311_v55 = vadd.f32 %v9762_v63, %v13992_v1  ;;  %v9794_v10 = vpop.f32.mrf.mxu1  ;;  %v14327_v63 = vadd.f32 %v2637_v49, %v14031_v53  ;;  %v3337_v49 = vpop.xlane.xlu1 %3336 }
 0x4f7   : > { %v14319_v5 = vadd.f32 %v9794_v10, %v13992_v1  ;;  %v9765_v44 = vpop.f32.mrf.mxu0 }
 0x4f8   : > { %17630 = vst [vmem:[#allocation57_spill] sm:$0xff] %v14311_v55  ;;  %17634 = vst [vmem:[#allocation62_spill] sm:$0xff] %v14327_v63 }
 0x4f9   : > { %17632 = vst [vmem:[#allocation65_spill] sm:$0xff] %v14319_v5 }
 0x4fa   : > { %3432 = vmax.xlane.f32.xlu1 %v14300_v3  ;;  %3410 = vmax.xlane.f32.xlu0 %v14303_v4  ;;  %v2758_v3 = vpop.f32.mrf.mxu1  ;;  %v3335_v4 = vpop.xlane.xlu0 %3334 }
 0x4fb   : > { %v14332_v10 = vadd.f32 %v2758_v3, %v14031_v53  ;;  %v3373_v36 = vpop.xlane.xlu1 %3372 }
 0x4fd   : > { %17635 = vst [vmem:[#allocation31_spill] sm:$0xff] %v14332_v10 }
 0x4fe   : > { %3412 = vmax.xlane.f32.xlu1 %v14311_v55  ;;  %3442 = vmax.xlane.f32.xlu0 %v14308_v17  ;;  %v9797_v17 = vpop.f32.mrf.mxu1  ;;  %v2650_v55 = vpop.f32.mrf.mxu0 }
 0x4ff   : > { %v3341_v41 = vpop.xlane.xlu0 %3340  ;;  %v14340_v0 = vadd.f32 %v9797_v17, %v14064_v62 }
 0x500   : > { %v9766_v38 = vpop.f32.mrf.mxu0 }
 0x501   : > { %17637 = vst [vmem:[#allocation29_spill] sm:$0xff] %v14340_v0 }
 0x502   : > { %3444 = vmax.xlane.f32.xlu1 %v14319_v5  ;;  %3406 = vmax.xlane.f32.xlu0 %v14316_v47  ;;  %v14335_v5 = vadd.f32 %v9765_v44, %v14064_v62  ;;  %v2771_v47 = vpop.f32.mrf.mxu1  ;;  %v2653_v3 = vpop.f32.mrf.mxu0  ;;  %v14348_v44 = vadd.f32 %v2650_v55, %v14084_v20 }
 0x503   : > { %v3371_v48 = vpop.xlane.xlu0 %3370 }
 0x504   : > { %17636 = vst [vmem:[#allocation64_spill] sm:$0xff] %v14335_v5  ;;  %17639 = vst [vmem:[#allocation72_spill] sm:$0xff] %v14348_v44  ;;  %v9769_v17 = vpop.f32.mrf.mxu0  ;;  %v3608_v7 = vsub.f32 %v13986_v14, %v3371_v48 }
 0x505   : > { %v14370_v39 = vadd.f32 %v9769_v17, %v14121_v60 }
 0x506   : > { %3408 = vmax.xlane.f32.xlu1 %v14327_v63  ;;  %3438 = vmax.xlane.f32.xlu0 %v14324_v30  ;;  %v14343_v63 = vadd.f32 %v9766_v38, %v14059_v21  ;;  %v9798_v30 = vpop.f32.mrf.mxu1  ;;  %v2666_v2 = vpop.f32.mrf.mxu0 }
 0x507   : > { %v3347_v38 = vpop.xlane.xlu0 %3346  ;;  %17644 = vst [vmem:[#allocation77_spill] sm:$0xff] %v14370_v39  ;;  %v14387_v48 = vadd.f32 %v2666_v2, %v14153_v61 }
 0x508   : > { %17638 = vst [vmem:[#allocation41_spill] sm:$0xff] %v14343_v63  ;;  %v3596_v45 = vsub.f32 %v14009_v59, %v3347_v38 }
 0x509   : > { %17647 = vst [vmem:[#allocation80_spill] sm:$0xff] %v14387_v48 }
 0x50a   : > { %3440 = vmax.xlane.f32.xlu1 %v14332_v10  ;;  %3418 = vmax.xlane.f32.xlu0 %v14335_v5  ;;  %v14351_v10 = vadd.f32 %v9798_v30, %v14059_v21  ;;  %v2774_v5 = vpop.f32.mrf.mxu1  ;;  %v3590_v30 = vsub.f32 %v13947_v29, %v3335_v4  ;;  %v3591_v21 = vsub.f32 %v13958_v56, %v3337_v49  ;;  %v3754_v49 = vmul.f32 1.442695, %v3608_v7 }
 0x50b   : > { %v14367_v27 = vadd.f32 %v2774_v5, %v14079_v28  ;;  %v3609_v56 = vsub.f32 %v13983_v54, %v3373_v36 }
 0x50c   : > { %17640 = vst [vmem:[#allocation73_spill] sm:$0xff] %v14351_v10  ;;  %v9801_v55 = vpop.f32.mrf.mxu1  ;;  %v3718_v29 = vmul.f32 1.442695, %v3590_v30 }
 0x50d   : > { %17643 = vst [vmem:[#allocation76_spill] sm:$0xff] %v14367_v27  ;;  %v14377_v4 = vadd.f32 %v9801_v55, %v14121_v60  ;;  %v3730_v55 = vmul.f32 1.442695, %v3596_v45 }
 0x50e   : > { %3420 = vmax.xlane.f32.xlu1 %v14343_v63  ;;  %3450 = vmax.xlane.f32.xlu0 %v14340_v0  ;;  %v14357_v63 = vadd.f32 %v2771_v47, %v14084_v20  ;;  %v14360_v0 = vadd.f32 %v2653_v3, %v14079_v28  ;;  %v2787_v47 = vpop.f32.mrf.mxu1  ;;  %v3367_v3 = vpop.xlane.xlu0 %3366  ;;  %10896 = vpow2.f32 %v3718_v29 }
 0x50f   : > { %v9770_v20 = vpop.f32.mrf.mxu0  ;;  %17645 = vst [vmem:[#allocation78_spill] sm:$0xff] %v14377_v4  ;;  %v14396_v59 = vadd.f32 %v2787_v47, %v14153_v61  ;;  %v3606_v2 = vsub.f32 %v14028_v6, %v3367_v3  ;;  %v14409_v3 = vpop.eup %10894 }
 0x510   : > { %17641 = vst [vmem:[#allocation74_spill] sm:$0xff] %v14357_v63  ;;  %17642 = vst [vmem:[#allocation75_spill] sm:$0xff] %v14360_v0  ;;  %v14380_v5 = vadd.f32 %v9770_v20, %v14118_v15  ;;  %v9802_v17 = vpop.f32.mrf.mxu1 }
 0x511   : > { %v14390_v20 = vadd.f32 %v9802_v17, %v14118_v15  ;;  %17649 = vst [vmem:[#allocation82_spill] sm:$0xff] %v14396_v59 }
 0x512   : > { %3452 = vmax.xlane.f32.xlu1 %v14351_v10  ;;  %3414 = vmax.xlane.f32.xlu0 %v14348_v44  ;;  %v3349_v10 = vpop.xlane.xlu1 %3348  ;;  %v3593_v44 = vsub.f32 %v13972_v9, %v3341_v41  ;;  %17646 = vst [vmem:[#allocation79_spill] sm:$0xff] %v14380_v5  ;;  %v3343_v14 = vpop.xlane.xlu0 %3342 }
 0x513   : > { %17648 = vst [vmem:[#allocation81_spill] sm:$0xff] %v14390_v20  ;;  %v3597_v54 = vsub.f32 %v14012_v34, %v3349_v10  ;;  %v2790_v30 = vpop.f32.mrf.mxu1  ;;  %v3750_v10 = vmul.f32 1.442695, %v3606_v2  ;;  %v3594_v6 = vsub.f32 %v14056_v26, %v3343_v14 }
 0x514   : > { %v3724_v9 = vmul.f32 1.442695, %v3593_v44  ;;  %v2669_v44 = vpop.f32.mrf.mxu0  ;;  %v14406_v47 = vadd.f32 %v2790_v30, %v14150_v37 }
 0x515   : > { %v14400_v38 = vadd.f32 %v2669_v44, %v14150_v37  ;;  %v3732_v29 = vmul.f32 1.442695, %v3597_v54 }
 0x516   : > { %3416 = vmax.xlane.f32.xlu1 %v14360_v0  ;;  %3446 = vmax.xlane.f32.xlu0 %v14357_v63  ;;  %v3369_v41 = vpop.xlane.xlu1 %3368  ;;  %v3720_v0 = vmul.f32 1.442695, %v3591_v21  ;;  %10898 = vpow2.f32 %v3724_v9  ;;  %v3756_v21 = vmul.f32 1.442695, %v3609_v56  ;;  %17651 = vst [vmem:[#allocation84_spill] sm:$0xff] %v14406_v47 }
 0x517   : > { %17650 = vst [vmem:[#allocation83_spill] sm:$0xff] %v14400_v38  ;;  %v3607_v34 = vsub.f32 %v14025_v42, %v3369_v41  ;;  %v3726_v41 = vmul.f32 1.442695, %v3594_v6 }
 0x518   : > { %10900 = vpow2.f32 %v3720_v0  ;;  %v3355_v0 = vpop.xlane.xlu0 %3354 }
 0x519   : > { %10902 = vpow2.f32 %v3754_v49  ;;  %v3752_v9 = vmul.f32 1.442695, %v3607_v34  ;;  %v3600_v49 = vsub.f32 %v14076_v19, %v3355_v0 }
 0x51a   : > { %3448 = vmax.xlane.f32.xlu1 %v14367_v27  ;;  %3426 = vmax.xlane.f32.xlu0 %v14370_v39  ;;  %v3345_v36 = vpop.xlane.xlu1 %3344  ;;  %10904 = vpow2.f32 %v3756_v21 }
 0x51b   : > { %10906 = vpow2.f32 %v3730_v55  ;;  %v3595_v17 = vsub.f32 %v14051_v8, %v3345_v36  ;;  %v14414_v42 = vpop.eup %10896  ;;  %v3738_v54 = vmul.f32 1.442695, %v3600_v49 }
 0x51c   : > { %10908 = vpow2.f32 %v3732_v29  ;;  %v3351_v56 = vpop.xlane.xlu0 %3350 }
 0x51d   : > { %10910 = vpow2.f32 %v3750_v10  ;;  %v3728_v14 = vmul.f32 1.442695, %v3595_v17  ;;  %v3598_v36 = vsub.f32 %v14101_v24, %v3351_v56 }
 0x51e   : > { %3428 = vmax.xlane.f32.xlu1 %v14380_v5  ;;  %3458 = vmax.xlane.f32.xlu0 %v14377_v4  ;;  %v3357_v7 = vpop.xlane.xlu1 %3356  ;;  %10912 = vpow2.f32 %v3752_v9 }
 0x51f   : > { %v3601_v44 = vsub.f32 %v14073_v31, %v3357_v7  ;;  %10914 = vpow2.f32 %v3726_v41  ;;  %v3734_v31 = vmul.f32 1.442695, %v3598_v36 }
 0x520   : > { %v3379_v19 = vpop.xlane.xlu0 %3378  ;;  %10916 = vpow2.f32 %v3728_v14 }
 0x521   : > { %v3740_v55 = vmul.f32 1.442695, %v3601_v44  ;;  %10918 = vpow2.f32 %v3738_v54  ;;  %v3612_v0 = vsub.f32 %v14115_v52, %v3379_v19 }
 0x522   : > { %3460 = vmax.xlane.f32.xlu1 %v14390_v20  ;;  %3422 = vmax.xlane.f32.xlu0 %v14387_v48  ;;  %v3353_v8 = vpop.xlane.xlu1 %3352  ;;  %v17691_v20 = vld [vmem:[#allocation43_spill] sm:$0xff] }
 0x523   : > { %v14417_v45 = vpop.eup %10898  ;;  %v3599_v2 = vsub.f32 %v14096_v50, %v3353_v8  ;;  %10920 = vpow2.f32 %v3740_v55  ;;  %v3762_v6 = vmul.f32 1.442695, %v3612_v0 }
 0x524   : > { %10922 = vpow2.f32 %v3734_v31  ;;  %v3363_v52 = vpop.xlane.xlu0 %3362 }
 0x525   : > { %v14421_v26 = vpop.eup %10900  ;;  %v3736_v24 = vmul.f32 1.442695, %v3599_v2  ;;  %v3604_v49 = vsub.f32 %v14133_v23, %v3363_v52 }
 0x526   : > { %3424 = vmax.xlane.f32.xlu1 %v14400_v38  ;;  %3454 = vmax.xlane.f32.xlu0 %v14396_v59  ;;  %v14424_v21 = vpop.eup %10902  ;;  %v3381_v34 = vpop.xlane.xlu1 %3380 }
 0x527   : > { %17652 = vst [vmem:[#allocation85_spill] sm:$0xff] %v14424_v21  ;;  %v14430_v30 = vpop.eup %10904  ;;  %v3613_v50 = vsub.f32 %v14112_v43, %v3381_v34  ;;  %10924 = vpow2.f32 %v3736_v24  ;;  %v3746_v36 = vmul.f32 1.442695, %v3604_v49 }
 0x528   : > { %17653 = vst [vmem:[#allocation86_spill] sm:$0xff] %v14430_v30  ;;  %v14433_v29 = vpop.eup %10906  ;;  %10926 = vpow2.f32 %v3762_v6  ;;  %v3375_v44 = vpop.xlane.xlu0 %3374 }
 0x529   : > { %v14437_v10 = vpop.eup %10908  ;;  %v3764_v17 = vmul.f32 1.442695, %v3613_v50  ;;  %v3610_v19 = vsub.f32 %v14147_v40, %v3375_v44  ;;  %v9821_v31 = vpop.f32.mrf.mxu0 }
 0x52a   : > { %3456 = vmax.xlane.f32.xlu1 %v14406_v47  ;;  %3978 = vadd.xlane.f32.xlu0 %v14409_v3  ;;  %v14440_v7 = vpop.eup %10910  ;;  %v3365_v43 = vpop.xlane.xlu1 %3364 }
 0x52b   : > { %17654 = vst [vmem:[#allocation87_spill] sm:$0xff] %v14440_v7  ;;  %v14444_v9 = vpop.eup %10912  ;;  %10928 = vpow2.f32 %v3764_v17  ;;  %v3605_v8 = vsub.f32 %v14130_v32, %v3365_v43  ;;  %v3758_v32 = vmul.f32 1.442695, %v3610_v19  ;;  %v9853_v50 = vpop.f32.mrf.mxu1  ;;  %v14473_v17 = vadd.f32 %v9821_v31, %v13928_v16 }
 0x52c   : > { %17655 = vst [vmem:[#allocation88_spill] sm:$0xff] %v14444_v9  ;;  %v14446_v56 = vpop.eup %10914  ;;  %10930 = vpow2.f32 %v3746_v36  ;;  %v2884_v6 = vpop.f32.mrf.mxu0 }
 0x52d   : > { %v14450_v41 = vpop.eup %10916  ;;  %v3748_v23 = vmul.f32 1.442695, %v3605_v8  ;;  %v3359_v52 = vpop.xlane.xlu0 %3358  ;;  %17657 = vst [vmem:[#allocation90_spill] sm:$0xff] %v14473_v17  ;;  %v14481_v8 = vadd.f32 %v9853_v50, %v13928_v16 }
 0x52e   : > { %3974 = vadd.xlane.f32.xlu0 %v14414_v42  ;;  %3980 = vadd.xlane.f32.xlu1 %v14417_v45  ;;  %v14453_v14 = vpop.eup %10918  ;;  %v3377_v2 = vpop.xlane.xlu1 %3376  ;;  %v3602_v44 = vsub.f32 %v14163_v57, %v3359_v52 }
 0x52f   : > { %v3611_v34 = vsub.f32 %v14144_v13, %v3377_v2  ;;  %10932 = vpow2.f32 %v3748_v23  ;;  %v3005_v49 = vpop.f32.mrf.mxu1  ;;  %v9822_v13 = vpop.f32.mrf.mxu0  ;;  %17659 = vst [vmem:[#allocation92_spill] sm:$0xff] %v14481_v8 }
 0x530   : > { %v14458_v54 = vpop.eup %10920  ;;  %10934 = vpow2.f32 %v3758_v32  ;;  %v14484_v36 = vadd.f32 %v9822_v13, %v13955_v51  ;;  %v3742_v23 = vmul.f32 1.442695, %v3602_v44 }
 0x531   : > { %v14461_v55 = vpop.eup %10922  ;;  %v3760_v40 = vmul.f32 1.442695, %v3611_v34  ;;  %v9854_v2 = vpop.f32.mrf.mxu1 }
 0x532   : > { %3976 = vadd.xlane.f32.xlu1 %v14421_v26  ;;  %4010 = vadd.xlane.f32.xlu0 %v14424_v21  ;;  %17660 = vst [vmem:[#allocation93_spill] sm:$0xff] %v14484_v36  ;;  %v3361_v19 = vpop.xlane.xlu1 %3360  ;;  %v14490_v34 = vadd.f32 %v9854_v2, %v13955_v51  ;;  %v2887_v13 = vpop.f32.mrf.mxu0 }
 0x533   : > { %10936 = vpow2.f32 %v3760_v40  ;;  %v3603_v31 = vsub.f32 %v14160_v22, %v3361_v19  ;;  %v14503_v22 = vadd.f32 %v2884_v6, %v13941_v12  ;;  %v3387_v44 = vpop.xlane.xlu0 %3386  ;;  %v14510_v19 = vadd.f32 %v3005_v49, %v13941_v12 }
 0x534   : > { %v14465_v0 = vpop.eup %10924  ;;  %17661 = vst [vmem:[#allocation94_spill] sm:$0xff] %v14490_v34  ;;  %10938 = vpow2.f32 %v3742_v23  ;;  %v14513_v2 = vadd.f32 %v2887_v13, %v13951_v58  ;;  %v9825_v23 = vpop.f32.mrf.mxu0  ;;  %v3616_v6 = vsub.f32 %v14175_v25, %v3387_v44 }
 0x535   : > { %v14468_v24 = vpop.eup %10926  ;;  %v3744_v50 = vmul.f32 1.442695, %v3603_v31  ;;  %17665 = vst [vmem:[#allocation98_spill] sm:$0xff] %v14503_v22  ;;  %17667 = vst [vmem:[#allocation100_spill] sm:$0xff] %v14510_v19  ;;  %v3008_v31 = vpop.f32.mrf.mxu1 }
 0x536   : > { %4012 = vadd.xlane.f32.xlu1 %v14430_v30  ;;  %3986 = vadd.xlane.f32.xlu0 %v14433_v29  ;;  %17656 = vst [vmem:[#allocation89_spill] sm:$0xff] %v14468_v24  ;;  %17668 = vst [vmem:[#allocation101_spill] sm:$0xff] %v14513_v2  ;;  %v3770_v47 = vmul.f32 1.442695, %v3616_v6 }
 0x537   : > { %10940 = vpow2.f32 %v3744_v50  ;;  %v3389_v50 = vpop.xlane.xlu1 %3388  ;;  %v3383_v49 = vpop.xlane.xlu0 %3382 }
 0x538   : > { %v14475_v43 = vpop.eup %10928  ;;  %v3617_v13 = vsub.f32 %v14172_v46, %v3389_v50  ;;  %10942 = vpow2.f32 %v3770_v47 }
 0x539   : > { %17658 = vst [vmem:[#allocation91_spill] sm:$0xff] %v14475_v43  ;;  %v14492_v32 = vpop.eup %10930 }
 0x53a   : > { %3988 = vadd.xlane.f32.xlu1 %v14437_v10  ;;  %4006 = vadd.xlane.f32.xlu0 %v14440_v7  ;;  %17662 = vst [vmem:[#allocation95_spill] sm:$0xff] %v14492_v32 }
 0x53c   : > { %v14496_v57 = vpop.eup %10932 }
 0x53d   : > { %17663 = vst [vmem:[#allocation96_spill] sm:$0xff] %v14496_v57  ;;  %v14498_v40 = vpop.eup %10934 }
 0x53e   : > { %4008 = vadd.xlane.f32.xlu1 %v14444_v9  ;;  %3982 = vadd.xlane.f32.xlu0 %v14446_v56  ;;  %17664 = vst [vmem:[#allocation97_spill] sm:$0xff] %v14498_v40 }
 0x540   : > { %v14505_v52 = vpop.eup %10936 }
 0x541   : > { %17666 = vst [vmem:[#allocation99_spill] sm:$0xff] %v14505_v52 }
 0x542   : > { %3984 = vadd.xlane.f32.xlu1 %v14450_v41  ;;  %3994 = vadd.xlane.f32.xlu0 %v14453_v14 }
 0x546   : > { %3996 = vadd.xlane.f32.xlu1 %v14458_v54  ;;  %3990 = vadd.xlane.f32.xlu0 %v14461_v55 }
 0x54a   : > { %3992 = vadd.xlane.f32.xlu1 %v14465_v0  ;;  %4018 = vadd.xlane.f32.xlu0 %v14468_v24  ;;  %v14531_v24 = vpop.xlane.xlu0 %3394 }
 0x54e   : > { %4020 = vadd.xlane.f32.xlu1 %v14475_v43  ;;  %3466 = vmax.xlane.f32.xlu0 %v14473_v17  ;;  %v14545_v6 = vpop.xlane.xlu0 %3390 }
 0x552   : > { %3468 = vmax.xlane.f32.xlu1 %v14484_v36  ;;  %3498 = vmax.xlane.f32.xlu0 %v14481_v8  ;;  %v14521_v36 = vpop.eup %10938  ;;  %v2900_v8 = vpop.f32.mrf.mxu0 }
 0x553   : > { %17670 = vst [vmem:[#allocation103_spill] sm:$0xff] %v14521_v36  ;;  %v14529_v44 = vpop.eup %10940  ;;  %v14549_v47 = vadd.f32 %v2900_v8, %v14036_v18 }
 0x554   : > { %17672 = vst [vmem:[#allocation105_spill] sm:$0xff] %v14529_v44 }
 0x555   : > { %17675 = vst [vmem:[#allocation108_spill] sm:$0xff] %v14549_v47 }
 0x556   : > { %3500 = vmax.xlane.f32.xlu1 %v14490_v34  ;;  %4002 = vadd.xlane.f32.xlu0 %v14492_v32  ;;  %v14519_v34 = vadd.f32 %v3008_v31, %v13951_v58  ;;  %v9826_v31 = vpop.f32.mrf.mxu0 }
 0x557   : > { %v14539_v46 = vadd.f32 %v9826_v31, %v13992_v1 }
 0x558   : > { %17669 = vst [vmem:[#allocation102_spill] sm:$0xff] %v14519_v34 }
 0x559   : > { %17674 = vst [vmem:[#allocation107_spill] sm:$0xff] %v14539_v46 }
 0x55a   : > { %4004 = vadd.xlane.f32.xlu1 %v14496_v57  ;;  %4014 = vadd.xlane.f32.xlu0 %v14498_v40 }
 0x55e   : > { %4016 = vadd.xlane.f32.xlu1 %v14505_v52  ;;  %3462 = vmax.xlane.f32.xlu0 %v14503_v22  ;;  %v9857_v22 = vpop.f32.mrf.mxu1  ;;  %v17688_v52 = vld [vmem:[#allocation44_spill] sm:$0xff] }
 0x55f   : > { %v14536_v17 = vadd.f32 %v9857_v22, %v13989_v35 }
 0x560   : > { %v3021_v25 = vpop.f32.mrf.mxu1 }
 0x561   : > { %17673 = vst [vmem:[#allocation106_spill] sm:$0xff] %v14536_v17 }
 0x562   : > { %3464 = vmax.xlane.f32.xlu1 %v14513_v2  ;;  %3494 = vmax.xlane.f32.xlu0 %v14510_v19  ;;  %v3385_v2 = vpop.xlane.xlu1 %3384  ;;  %v14527_v19 = vadd.f32 %v9825_v23, %v13989_v35  ;;  %v9858_v23 = vpop.f32.mrf.mxu1 }
 0x563   : > { %v14552_v22 = vadd.f32 %v9858_v23, %v13992_v1 }
 0x564   : > { %17671 = vst [vmem:[#allocation104_spill] sm:$0xff] %v14527_v19 }
 0x565   : > { %17676 = vst [vmem:[#allocation109_spill] sm:$0xff] %v14552_v22 }
 0x566   : > { %3496 = vmax.xlane.f32.xlu1 %v14519_v34  ;;  %3998 = vadd.xlane.f32.xlu0 %v14521_v36  ;;  %v3772_v34 = vmul.f32 1.442695, %v3617_v13  ;;  %v14541_v50 = vpop.xlane.xlu1 %3396  ;;  %v2903_v13 = vpop.f32.mrf.mxu0 }
 0x567   : > { %v14565_v8 = vadd.f32 %v2903_v13, %v14031_v53 }
 0x568   : > { %10944 = vpow2.f32 %v3772_v34  ;;  %v9829_v23 = vpop.f32.mrf.mxu0 }
 0x569   : > { %17678 = vst [vmem:[#allocation111_spill] sm:$0xff] %v14565_v8 }
 0x56a   : > { %4000 = vadd.xlane.f32.xlu1 %v14529_v44  ;;  %3474 = vmax.xlane.f32.xlu0 %v14527_v19  ;;  %v3614_v19 = vsub.f32 %v14185_v33, %v3383_v49  ;;  %v14556_v31 = vpop.xlane.xlu1 %3392  ;;  %v14562_v33 = vadd.f32 %v3021_v25, %v14036_v18  ;;  %v3024_v49 = vpop.f32.mrf.mxu1 }
 0x56b   : > { %v14572_v43 = vadd.f32 %v3024_v49, %v14031_v53  ;;  %v2916_v25 = vpop.f32.mrf.mxu0 }
 0x56c   : > { %v3766_v34 = vmul.f32 1.442695, %v3614_v19  ;;  %17677 = vst [vmem:[#allocation110_spill] sm:$0xff] %v14562_v33  ;;  %v14576_v19 = vpop.eup %10942 }
 0x56d   : > { %17679 = vst [vmem:[#allocation112_spill] sm:$0xff] %v14572_v43  ;;  %17680 = vst [vmem:[#allocation113_spill] sm:$0xff] %v14576_v19 }
 0x56e   : > { %3476 = vmax.xlane.f32.xlu1 %v14539_v46  ;;  %3506 = vmax.xlane.f32.xlu0 %v14536_v17  ;;  %v3615_v17 = vsub.f32 %v14182_v11, %v3385_v2  ;;  %10946 = vpow2.f32 %v3766_v34  ;;  %v9861_v2 = vpop.f32.mrf.mxu1 }
 0x570   : > { %v3037_v49 = vpop.f32.mrf.mxu1 }
 0x572   : > { %3508 = vmax.xlane.f32.xlu1 %v14552_v22  ;;  %3470 = vmax.xlane.f32.xlu0 %v14549_v47  ;;  %v3768_v47 = vmul.f32 1.442695, %v3615_v17  ;;  %v9862_v59 = vpop.f32.mrf.mxu1 }
 0x573   : > { %v14558_v46 = vpop.xlane.xlu0 %3402 }
 0x574   : > { %10948 = vpow2.f32 %v3768_v47 }
 0x575   : > { %v14587_v34 = vpop.eup %10944 }
 0x576   : > { %3472 = vmax.xlane.f32.xlu1 %v14565_v8  ;;  %3502 = vmax.xlane.f32.xlu0 %v14562_v33  ;;  %v14583_v8 = vadd.f32 %v9829_v23, %v14064_v62  ;;  %17682 = vst [vmem:[#allocation115_spill] sm:$0xff] %v14587_v34  ;;  %v9830_v33 = vpop.f32.mrf.mxu0 }
 0x577   : > { %v14569_v22 = vpop.xlane.xlu1 %3404  ;;  %v14574_v11 = vpop.xlane.xlu0 %3434 }
 0x578   : > { %17681 = vst [vmem:[#allocation114_spill] sm:$0xff] %v14583_v8 }
 0x57a   : > { %3504 = vmax.xlane.f32.xlu1 %v14572_v43  ;;  %4026 = vadd.xlane.f32.xlu0 %v14576_v19  ;;  %v14594_v43 = vadd.f32 %v9861_v2, %v14064_v62  ;;  %v17684_v19 = vld [vmem:[#allocation37_spill] sm:$0xff]  ;;  %v2919_v2 = vpop.f32.mrf.mxu0 }
 0x57b   : > { %v14580_v13 = vpop.xlane.xlu1 %3436  ;;  %v14585_v17 = vpop.xlane.xlu0 %3398  ;;  %v14597_v47 = vadd.f32 %v9830_v33, %v17684_v19 }
 0x57c   : > { %17683 = vst [vmem:[#allocation116_spill] sm:$0xff] %v14594_v43  ;;  %v14610_v21 = vpop.eup %10946  ;;  %v9833_v48 = vpop.f32.mrf.mxu0 }
 0x57d   : > { %17685 = vst [vmem:[#allocation37_spill] sm:$0xff] %v14597_v47  ;;  %17687 = vst [vmem:[#allocation118_spill] sm:$0xff] %v14610_v21  ;;  %v14649_v39 = vadd.f32 %v9833_v48, %v14121_v60 }
 0x57e   : > { %4028 = vadd.xlane.f32.xlu1 %v14587_v34  ;;  %3482 = vmax.xlane.f32.xlu0 %v14583_v8  ;;  %v14606_v34 = vadd.f32 %v9862_v59, %v17684_v19  ;;  %v3040_v59 = vpop.f32.mrf.mxu1  ;;  %v2932_v27 = vpop.f32.mrf.mxu0 }
 0x57f   : > { %v14591_v38 = vpop.xlane.xlu1 %3400  ;;  %v14599_v23 = vpop.xlane.xlu0 %3430 }
 0x580   : > { %17686 = vst [vmem:[#allocation117_spill] sm:$0xff] %v14606_v34  ;;  %v9865_v7 = vpop.f32.mrf.mxu1  ;;  %v9834_v44 = vpop.f32.mrf.mxu0 }
 0x581   : > { %v14621_v30 = vpop.eup %10948  ;;  %v14663_v48 = vadd.f32 %v9834_v44, %v14118_v15 }
 0x582   : > { %3484 = vmax.xlane.f32.xlu1 %v14597_v47  ;;  %3514 = vmax.xlane.f32.xlu0 %v14594_v43  ;;  %v14617_v47 = vadd.f32 %v2916_v25, %v17688_v52  ;;  %17690 = vst [vmem:[#allocation119_spill] sm:$0xff] %v14621_v30  ;;  %v14633_v25 = vadd.f32 %v2919_v2, %v14079_v28 }
 0x583   : > { %v14603_v40 = vpop.xlane.xlu1 %3432  ;;  %v14608_v8 = vpop.xlane.xlu0 %3410  ;;  %v14646_v2 = vadd.f32 %v3040_v59, %v14079_v28  ;;  %17700 = vst [vmem:[#allocation121_spill] sm:$0xff] %v14663_v48 }
 0x584   : > { %17689 = vst [vmem:[#allocation44_spill] sm:$0xff] %v14617_v47  ;;  %17693 = vst [vmem:[#allocation120_spill] sm:$0xff] %v14633_v25 }
 0x586   : > { %3516 = vmax.xlane.f32.xlu1 %v14606_v34  ;;  %4022 = vadd.xlane.f32.xlu0 %v14610_v21  ;;  %v3620_v34 = vsub.f32 %v17691_v20, %v14531_v24  ;;  %v14630_v21 = vadd.f32 %v3037_v49, %v17688_v52  ;;  %v17695_v49 = vld [vmem:[#allocation40_spill] sm:$0xff] }
 0x587   : > { %v14614_v33 = vpop.xlane.xlu1 %3412  ;;  %v14619_v43 = vpop.xlane.xlu0 %3442  ;;  %v3618_v32 = vsub.f32 %v17695_v49, %v14545_v6  ;;  %17697 = vst [vmem:[#allocation40_spill] sm:$0xff] %v14649_v39  ;;  %v17698_v6 = vld [vmem:[#allocation48_spill] sm:$0xff]  ;;  %v14660_v49 = vadd.f32 %v9865_v7, %v14121_v60 }
 0x588   : > { %17692 = vst [vmem:[#allocation43_spill] sm:$0xff] %v14630_v21  ;;  %v3619_v59 = vsub.f32 %v17698_v6, %v14556_v31  ;;  %v14672_v31 = vadd.f32 %v2932_v27, %v14153_v61 }
 0x589   : > { %17699 = vst [vmem:[#allocation48_spill] sm:$0xff] %v14660_v49 }
 0x58a   : > { %4024 = vadd.xlane.f32.xlu1 %v14621_v30  ;;  %3478 = vmax.xlane.f32.xlu0 %v14617_v47  ;;  %v3778_v47 = vmul.f32 1.442695, %v3620_v34  ;;  %v17694_v30 = vld [vmem:[#allocation42_spill] sm:$0xff]  ;;  %v3774_v34 = vmul.f32 1.442695, %v3618_v32  ;;  %17701 = vst [vmem:[#allocation122_spill] sm:$0xff] %v14672_v31 }
 0x58b   : > { %v14627_v4 = vpop.xlane.xlu1 %3444  ;;  %v14635_v5 = vpop.xlane.xlu0 %3406  ;;  %v3621_v20 = vsub.f32 %v17694_v30, %v14541_v50  ;;  %17696 = vst [vmem:[#allocation42_spill] sm:$0xff] %v14646_v2  ;;  %v3776_v32 = vmul.f32 1.442695, %v3619_v59 }
 0x58c   : > { %10950 = vpow2.f32 %v3778_v47 }
 0x58d   : > { %v3780_v30 = vmul.f32 1.442695, %v3621_v20  ;;  %v2935_v20 = vpop.f32.mrf.mxu0 }
 0x58e   : > { %3480 = vmax.xlane.f32.xlu1 %v14633_v25  ;;  %3510 = vmax.xlane.f32.xlu0 %v14630_v21  ;;  %v3053_v25 = vpop.f32.mrf.mxu1 }
 0x58f   : > { %v14641_v24 = vpop.xlane.xlu1 %3408  ;;  %v14651_v9 = vpop.xlane.xlu0 %3438  ;;  %10952 = vpow2.f32 %v3780_v30  ;;  %v14684_v30 = vadd.f32 %v3053_v25, %v14153_v61 }
 0x590   : > { %v9866_v36 = vpop.f32.mrf.mxu1  ;;  %10954 = vpow2.f32 %v3774_v34  ;;  %v14687_v34 = vadd.f32 %v2935_v20, %v14150_v37  ;;  %v9885_v25 = vpop.f32.mrf.mxu0 }
 0x591   : > { %v14675_v7 = vadd.f32 %v9866_v36, %v14118_v15  ;;  %10956 = vpow2.f32 %v3776_v32  ;;  %17703 = vst [vmem:[#allocation124_spill] sm:$0xff] %v14684_v30 }
 0x592   : > { %3512 = vmax.xlane.f32.xlu1 %v14646_v2  ;;  %3490 = vmax.xlane.f32.xlu0 %v14649_v39  ;;  %17704 = vst [vmem:[#allocation125_spill] sm:$0xff] %v14687_v34  ;;  %v3056_v36 = vpop.f32.mrf.mxu1  ;;  %v3150_v2 = vpop.f32.mrf.mxu0 }
 0x593   : > { %v14655_v50 = vpop.xlane.xlu1 %3440  ;;  %v14665_v21 = vpop.xlane.xlu0 %3418  ;;  %17702 = vst [vmem:[#allocation123_spill] sm:$0xff] %v14675_v7 }
 0x594   : > { %v9917_v39 = vpop.f32.mrf.mxu1  ;;  %v9886_v57 = vpop.f32.mrf.mxu0 }
 0x596   : > { %3492 = vmax.xlane.f32.xlu1 %v14663_v48  ;;  %3522 = vmax.xlane.f32.xlu0 %v14660_v49  ;;  %v14698_v49 = vadd.f32 %v3056_v36, %v14150_v37 }
 0x597   : > { %v14669_v47 = vpop.xlane.xlu1 %3420  ;;  %v14677_v44 = vpop.xlane.xlu0 %3450 }
 0x598   : > { %17707 = vst [vmem:[#allocation128_spill] sm:$0xff] %v14698_v49 }
 0x59a   : > { %3524 = vmax.xlane.f32.xlu1 %v14675_v7  ;;  %3486 = vmax.xlane.f32.xlu0 %v14672_v31  ;;  %v14695_v7 = vpop.eup %10950 }
 0x59b   : > { %v14681_v6 = vpop.xlane.xlu1 %3452  ;;  %v14689_v27 = vpop.xlane.xlu0 %3414  ;;  %17706 = vst [vmem:[#allocation127_spill] sm:$0xff] %v14695_v7 }
 0x59c   : > { %v14706_v48 = vpop.eup %10952 }
 0x59d   : > { %17710 = vst [vmem:[#allocation131_spill] sm:$0xff] %v14706_v48 }
 0x59e   : > { %3488 = vmax.xlane.f32.xlu1 %v14687_v34  ;;  %3518 = vmax.xlane.f32.xlu0 %v14684_v30  ;;  %v14710_v30 = vpop.eup %10954 }
 0x59f   : > { %v14693_v59 = vpop.xlane.xlu1 %3416  ;;  %v14700_v32 = vpop.xlane.xlu0 %3446  ;;  %17712 = vst [vmem:[#allocation133_spill] sm:$0xff] %v14710_v30 }
 0x5a0   : > { %17705 = vst [vmem:[#allocation126_spill] sm:$0xff] %v14693_v59  ;;  %17708 = vst [vmem:[#allocation129_spill] sm:$0xff] %v14700_v32 }
 0x5a2   : > { %3520 = vmax.xlane.f32.xlu1 %v14698_v49  ;;  %4034 = vadd.xlane.f32.xlu0 %v14695_v7  ;;  %v14717_v49 = vadd.f32 %v9885_v25, %v13928_v16  ;;  %v14721_v7 = vpop.eup %10956 }
 0x5a3   : > { %v14704_v20 = vpop.xlane.xlu1 %3448  ;;  %v14708_v34 = vpop.xlane.xlu0 %3426  ;;  %17716 = vst [vmem:[#allocation137_spill] sm:$0xff] %v14721_v7 }
 0x5a4   : > { %17709 = vst [vmem:[#allocation130_spill] sm:$0xff] %v14704_v20  ;;  %17711 = vst [vmem:[#allocation132_spill] sm:$0xff] %v14708_v34  ;;  %v3271_v20 = vpop.f32.mrf.mxu1 }
 0x5a5   : > { %17714 = vst [vmem:[#allocation135_spill] sm:$0xff] %v14717_v49 }
 0x5a6   : > { %4036 = vadd.xlane.f32.xlu1 %v14706_v48  ;;  %4030 = vadd.xlane.f32.xlu0 %v14710_v30  ;;  %v14728_v48 = vadd.f32 %v9917_v39, %v13928_v16  ;;  %v14731_v30 = vadd.f32 %v9886_v57, %v13955_v51 }
 0x5a7   : > { %v14714_v36 = vpop.xlane.xlu1 %3428  ;;  %v14719_v31 = vpop.xlane.xlu0 %3458 }
 0x5a8   : > { %17713 = vst [vmem:[#allocation134_spill] sm:$0xff] %v14714_v36  ;;  %17715 = vst [vmem:[#allocation136_spill] sm:$0xff] %v14719_v31  ;;  %v9918_v36 = vpop.f32.mrf.mxu1  ;;  %v3153_v31 = vpop.f32.mrf.mxu0 }
 0x5a9   : > { %17718 = vst [vmem:[#allocation139_spill] sm:$0xff] %v14728_v48  ;;  %17719 = vst [vmem:[#allocation140_spill] sm:$0xff] %v14731_v30 }
 0x5aa   : > { %4032 = vadd.xlane.f32.xlu1 %v14721_v7  ;;  %3530 = vmax.xlane.f32.xlu0 %v14717_v49  ;;  %v14740_v49 = vadd.f32 %v3150_v2, %v13941_v12  ;;  %v14743_v7 = vadd.f32 %v9918_v36, %v13955_v51  ;;  %v3274_v39 = vpop.f32.mrf.mxu1  ;;  %v9889_v57 = vpop.f32.mrf.mxu0 }
 0x5ab   : > { %v14725_v34 = vpop.xlane.xlu1 %3460  ;;  %v14733_v25 = vpop.xlane.xlu0 %3422 }
 0x5ac   : > { %17717 = vst [vmem:[#allocation138_spill] sm:$0xff] %v14725_v34  ;;  %17720 = vst [vmem:[#allocation141_spill] sm:$0xff] %v14733_v25  ;;  %v3166_v51 = vpop.f32.mrf.mxu0 }
 0x5ad   : > { %17722 = vst [vmem:[#allocation143_spill] sm:$0xff] %v14740_v49  ;;  %17723 = vst [vmem:[#allocation144_spill] sm:$0xff] %v14743_v7 }
 0x5ae   : > { %3532 = vmax.xlane.f32.xlu1 %v14731_v30  ;;  %3562 = vmax.xlane.f32.xlu0 %v14728_v48  ;;  %v14752_v48 = vadd.f32 %v3271_v20, %v13941_v12  ;;  %v14755_v30 = vadd.f32 %v3153_v31, %v13951_v58  ;;  %v9890_v20 = vpop.f32.mrf.mxu0 }
 0x5af   : > { %v14737_v59 = vpop.xlane.xlu1 %3424  ;;  %v14745_v16 = vpop.xlane.xlu0 %3454 }
 0x5b0   : > { %17721 = vst [vmem:[#allocation142_spill] sm:$0xff] %v14737_v59  ;;  %17724 = vst [vmem:[#allocation145_spill] sm:$0xff] %v14745_v16  ;;  %v9921_v59 = vpop.f32.mrf.mxu1 }
 0x5b1   : > { %17726 = vst [vmem:[#allocation147_spill] sm:$0xff] %v14752_v48  ;;  %17727 = vst [vmem:[#allocation148_spill] sm:$0xff] %v14755_v30 }
 0x5b2   : > { %3564 = vmax.xlane.f32.xlu1 %v14743_v7  ;;  %3526 = vmax.xlane.f32.xlu0 %v14740_v49  ;;  %v14760_v7 = vadd.f32 %v3274_v39, %v13951_v58  ;;  %v14763_v49 = vadd.f32 %v9889_v57, %v13989_v35  ;;  %v3287_v12 = vpop.f32.mrf.mxu1  ;;  %v14771_v58 = vadd.f32 %v9890_v20, %v13992_v1 }
 0x5b3   : > { %v14749_v25 = vpop.xlane.xlu1 %3456  ;;  %v3979_v2 = vpop.xlane.xlu0 %3978 }
 0x5b4   : > { %17725 = vst [vmem:[#allocation146_spill] sm:$0xff] %v14749_v25  ;;  %17728 = vst [vmem:[#allocation149_spill] sm:$0xff] %v14760_v7  ;;  %v9922_v57 = vpop.f32.mrf.mxu1 }
 0x5b5   : > { %17729 = vst [vmem:[#allocation150_spill] sm:$0xff] %v14763_v49  ;;  %17731 = vst [vmem:[#allocation152_spill] sm:$0xff] %v14771_v58 }
 0x5b6   : > { %3528 = vmax.xlane.f32.xlu1 %v14755_v30  ;;  %3558 = vmax.xlane.f32.xlu0 %v14752_v48  ;;  %v14768_v48 = vadd.f32 %v9921_v59, %v13989_v35  ;;  %v3169_v30 = vpop.f32.mrf.mxu0  ;;  %v14783_v35 = vadd.f32 %v9922_v57, %v13992_v1 }
 0x5b7   : > { %v3981_v36 = vpop.xlane.xlu1 %3980  ;;  %v3975_v25 = vpop.xlane.xlu0 %3974 }
 0x5b8   : > { %10958 = vrcp.f32 %v3981_v36  ;;  %17730 = vst [vmem:[#allocation151_spill] sm:$0xff] %v14768_v48  ;;  %17733 = vst [vmem:[#allocation154_spill] sm:$0xff] %v14783_v35  ;;  %v3290_v36 = vpop.f32.mrf.mxu1  ;;  %v9893_v20 = vpop.f32.mrf.mxu0 }
 0x5b9   : > { %10960 = vrcp.f32 %v3975_v25  ;;  %v14800_v16 = vadd.f32 %v3290_v36, %v14031_v53 }
 0x5ba   : > { %3560 = vmax.xlane.f32.xlu1 %v14760_v7  ;;  %3538 = vmax.xlane.f32.xlu0 %v14763_v49  ;;  %10962 = vrcp.f32 %v3979_v2  ;;  %v14780_v2 = vadd.f32 %v3166_v51, %v14036_v18  ;;  %v9925_v51 = vpop.f32.mrf.mxu1  ;;  %v3182_v7 = vpop.f32.mrf.mxu0 }
 0x5bb   : > { %v3977_v31 = vpop.xlane.xlu1 %3976  ;;  %v14773_v39 = vpop.xlane.xlu0 %4010  ;;  %17736 = vst [vmem:[#allocation157_spill] sm:$0xff] %v14800_v16  ;;  %v14811_v36 = vadd.f32 %v9925_v51, %v14064_v62  ;;  %v14824_v51 = vadd.f32 %v3182_v7, %v17688_v52 }
 0x5bc   : > { %10964 = vrcp.f32 %v3977_v31  ;;  %17732 = vst [vmem:[#allocation153_spill] sm:$0xff] %v14780_v2  ;;  %v3303_v34 = vpop.f32.mrf.mxu1  ;;  %v9894_v63 = vpop.f32.mrf.mxu0 }
 0x5bd   : > { %17738 = vst [vmem:[#allocation159_spill] sm:$0xff] %v14811_v36  ;;  %v14814_v32 = vadd.f32 %v3303_v34, %v17688_v52  ;;  %v17741_v34 = vld [vmem:[#allocation45_spill] sm:$0xff] }
 0x5be   : > { %3540 = vmax.xlane.f32.xlu1 %v14771_v58  ;;  %3570 = vmax.xlane.f32.xlu0 %v14768_v48  ;;  %v14788_v58 = vadd.f32 %v3287_v12, %v14036_v18  ;;  %v14791_v48 = vadd.f32 %v3169_v30, %v14031_v53  ;;  %v14803_v18 = vadd.f32 %v9893_v20, %v14064_v62 }
 0x5bf   : > { %v14777_v25 = vpop.xlane.xlu1 %4012  ;;  %v3987_v59 = vpop.xlane.xlu0 %3986  ;;  %17739 = vst [vmem:[#allocation160_spill] sm:$0xff] %v14814_v32 }
 0x5c0   : > { %17734 = vst [vmem:[#allocation155_spill] sm:$0xff] %v14788_v58  ;;  %17735 = vst [vmem:[#allocation156_spill] sm:$0xff] %v14791_v48 }
 0x5c1   : > { %17737 = vst [vmem:[#allocation158_spill] sm:$0xff] %v14803_v18 }
 0x5c2   : > { %3572 = vmax.xlane.f32.xlu1 %v14783_v35  ;;  %3534 = vmax.xlane.f32.xlu0 %v14780_v2 }
 0x5c3   : > { %v3989_v31 = vpop.xlane.xlu1 %3988  ;;  %v14793_v49 = vpop.xlane.xlu0 %4006 }
 0x5c4   : > { %10966 = vrcp.f32 %v3989_v31 }
 0x5c5   : > { %v10959_v1 = vpop.eup %10958 }
 0x5c6   : > { %3536 = vmax.xlane.f32.xlu1 %v14791_v48  ;;  %3566 = vmax.xlane.f32.xlu0 %v14788_v58  ;;  %v10961_v57 = vpop.eup %10960  ;;  %v4361_v53 = vmul.f32 %v10959_v1, %v14417_v45  ;;  %v17744_v1 = vld [vmem:[#allocation63_spill] sm:$0xff] }
 0x5c7   : > { %v14797_v35 = vpop.xlane.xlu1 %4008  ;;  %v10963_v2 = vpop.eup %10962  ;;  %v4358_v58 = vmul.f32 %v10961_v57, %v14414_v42 }
 0x5c8   : > { %v3983_v30 = vpop.xlane.xlu0 %3982  ;;  %v9926_v57 = vpop.f32.mrf.mxu1 }
 0x5c9   : > { %v10965_v12 = vpop.eup %10964  ;;  %10968 = vrcp.f32 %v3983_v30 }
 0x5ca   : > { %3568 = vmax.xlane.f32.xlu1 %v14800_v16  ;;  %3546 = vmax.xlane.f32.xlu0 %v14803_v18  ;;  %v4359_v48 = vmul.f32 %v10965_v12, %v14421_v26  ;;  %10970 = vrcp.f32 %v3987_v59  ;;  %v4360_v16 = vmul.f32 %v10963_v2, %v14409_v3  ;;  %v17740_v18 = vld [vmem:[#allocation54_spill] sm:$0xff]  ;;  %v3185_v26 = vpop.f32.mrf.mxu0  ;;  %v3624_v59 = vsub.f32 %v17741_v34, %v14558_v46  ;;  %v17746_v46 = vld [vmem:[#allocation51_spill] sm:$0xff] }
 0x5cb   : > { %v3985_v20 = vpop.xlane.xlu1 %3984  ;;  %v3640_v42 = vsub.f32 %v17740_v18, %v14574_v11  ;;  %17742 = vst [vmem:[#allocation54_spill] sm:$0xff] %v14824_v51  ;;  %v14827_v11 = vadd.f32 %v9894_v63, %v17684_v19  ;;  %v3622_v52 = vsub.f32 %v17746_v46, %v14585_v17  ;;  %v17749_v17 = vld [vmem:[#allocation46_spill] sm:$0xff]  ;;  %v17753_v46 = vld [vmem:[#allocation36_spill] sm:$0xff] }
 0x5cc   : > { %10972 = vrcp.f32 %v3985_v20  ;;  %v3995_v31 = vpop.xlane.xlu0 %3994  ;;  %v4486_v30 = vpack.c.bf16 %v4359_v48, %v4358_v58  ;;  %v4487_v62 = vpack.c.bf16 %v4361_v53, %v4360_v16  ;;  %v3306_v58 = vpop.f32.mrf.mxu1  ;;  %v17745_v16 = vld [vmem:[#allocation58_spill] sm:$0xff]  ;;  %v3786_v18 = vmul.f32 1.442695, %v3624_v59 }
 0x5cd   : > { %v3818_v48 = vmul.f32 1.442695, %v3640_v42  ;;  %17743 = vst [vmem:[#allocation45_spill] sm:$0xff] %v14827_v11  ;;  %v9897_v2 = vpop.f32.mrf.mxu0  ;;  %v14841_v53 = vadd.f32 %v9926_v57, %v17684_v19  ;;  %v3782_v42 = vmul.f32 1.442695, %v3622_v52  ;;  %v17751_v19 = vld [vmem:[#allocation53_spill] sm:$0xff] }
 0x5ce   : > { %3578 = vmax.xlane.f32.xlu1 %v14811_v36  ;;  %3574 = vmax.xlane.f32.xlu0 %v14814_v32  ;;  %v14836_v63 = vadd.f32 %v9897_v2, %v14121_v60  ;;  %v9929_v20 = vpop.f32.mrf.mxu1  ;;  %v3638_v57 = vsub.f32 %v17751_v19, %v14599_v23  ;;  %v17754_v23 = vld [vmem:[#allocation61_spill] sm:$0xff]  ;;  %v17791_v32 = vld [vmem:[#allocation132_spill] sm:$0xff] }
 0x5cf   : > { %9947 = vmatprep.mubr.bf16.mxu1 %v4486_v30  ;;  %v3997_v45 = vpop.xlane.xlu1 %3996  ;;  %17748 = vst [vmem:[#allocation51_spill] sm:$0xff] %v14841_v53  ;;  %v14850_v34 = vadd.f32 %v9929_v20, %v14121_v60  ;;  %v3198_v2 = vpop.f32.mrf.mxu0 }
 0x5d0   : > { %9948 = vmatmul.mubr.bf16.vlgmr.msra.gmra.mxu1 %v4487_v62  ;;  %v3991_v3 = vpop.xlane.xlu0 %3990  ;;  %10974 = vrcp.f32 %v3997_v45  ;;  %17747 = vst [vmem:[#allocation63_spill] sm:$0xff] %v14836_v63  ;;  %v3814_v20 = vmul.f32 1.442695, %v3638_v57  ;;  %v14871_v19 = vadd.f32 %v3198_v2, %v14153_v61 }
 0x5d1   : > { %9964 = vmatpush3.bf16.msra.mxu1 %v17744_v1  ;;  %10976 = vrcp.f32 %v3991_v3  ;;  %v10967_v30 = vpop.eup %10966  ;;  %17750 = vst [vmem:[#allocation161_spill] sm:$0xff] %v14850_v34 }
 0x5d2   : > { %9965 = vmatprep.subr.bf16.mxu1 %v17745_v16  ;;  %3542 = vmax.xlane.f32.xlu1 %v14824_v51  ;;  %10978 = vrcp.f32 %v3995_v31  ;;  %17755 = vst [vmem:[#allocation61_spill] sm:$0xff] %v14871_v19 }
 0x5d3   : > { %3548 = vmax.xlane.f32.xlu0 %v14827_v11  ;;  %v3993_v7 = vpop.xlane.xlu1 %3992 }
 0x5d4   : > { %10980 = vrcp.f32 %v3993_v7  ;;  %v14838_v12 = vpop.xlane.xlu0 %4018  ;;  %v4365_v7 = vmul.f32 %v10967_v30, %v14437_v10  ;;  %v3319_v10 = vpop.f32.mrf.mxu1  ;;  %v17757_v30 = vld [vmem:[#allocation33_spill] sm:$0xff] }
 0x5d5   : > { %10982 = vpow2.f32 %v3818_v48  ;;  %9966 = vmatpush3.bf16.msra.mxu1 %v17745_v16  ;;  %v14857_v48 = vadd.f32 %v3185_v26, %v14079_v28  ;;  %v17836_v16 = vld [vmem:[#allocation66_spill] sm:$0xff] }
 0x5d6   : > { %9967 = vmatprep.subr.bf16.mxu1 %v17749_v17  ;;  %3554 = vmax.xlane.f32.xlu1 %v14836_v63  ;;  %v10969_v31 = vpop.eup %10968  ;;  %10984 = vpow2.f32 %v3786_v18  ;;  %v3625_v18 = vsub.f32 %v17754_v23, %v14569_v22  ;;  %v17761_v23 = vld [vmem:[#allocation60_spill] sm:$0xff] }
 0x5d7   : > { %3580 = vmax.xlane.f32.xlu0 %v14841_v53  ;;  %v14847_v62 = vpop.xlane.xlu1 %4020  ;;  %v10971_v45 = vpop.eup %10970  ;;  %17752 = vst [vmem:[#allocation53_spill] sm:$0xff] %v14857_v48  ;;  %v4362_v52 = vmul.f32 %v10969_v31, %v14446_v56  ;;  %10986 = vpow2.f32 %v3782_v42  ;;  %v17790_v53 = vld [vmem:[#allocation88_spill] sm:$0xff] }
 0x5d8   : > { %v14854_v59 = vpop.xlane.xlu0 %3466  ;;  %v4364_v56 = vmul.f32 %v10971_v45, %v14433_v29  ;;  %v3788_v57 = vmul.f32 1.442695, %v3625_v18  ;;  %10988 = vpow2.f32 %v3814_v20  ;;  %v14888_v45 = vadd.f32 %v3319_v10, %v14153_v61 }
 0x5d9   : > { %v10973_v3 = vpop.eup %10972  ;;  %9968 = vmatpush3.bf16.msra.mxu1 %v17749_v17  ;;  %v17800_v17 = vld [vmem:[#allocation136_spill] sm:$0xff] }
 0x5da   : > { %9969 = vmatprep.subr.bf16.mxu1 %v17753_v46  ;;  %3586 = vmax.xlane.f32.xlu1 %v14850_v34  ;;  %v4363_v60 = vmul.f32 %v10973_v3, %v14450_v41  ;;  %v14877_v41 = vadd.f32 %v3306_v58, %v14079_v28  ;;  %v4489_v31 = vpack.c.bf16 %v4365_v7, %v4364_v56  ;;  %v17758_v28 = vld [vmem:[#allocation47_spill] sm:$0xff]  ;;  %v9898_v56 = vpop.f32.mrf.mxu0  ;;  %10990 = vpow2.f32 %v3788_v57 }
 0x5db   : > { %3544 = vmax.xlane.f32.xlu0 %v14857_v48  ;;  %v14868_v26 = vpop.xlane.xlu1 %3468  ;;  %v3641_v58 = vsub.f32 %v17758_v28, %v14580_v13  ;;  %17759 = vst [vmem:[#allocation47_spill] sm:$0xff] %v14888_v45  ;;  %v17762_v13 = vld [vmem:[#allocation26_spill] sm:$0xff] }
 0x5dc   : > { %v14873_v63 = vpop.xlane.xlu0 %3498  ;;  %v4488_v34 = vpack.c.bf16 %v4363_v60, %v4362_v52  ;;  %17756 = vst [vmem:[#allocation162_spill] sm:$0xff] %v14877_v41  ;;  %v17760_v60 = vld [vmem:[#allocation49_spill] sm:$0xff] }
 0x5dd   : > { %9970 = vmatpush3.bf16.msra.mxu1 %v17753_v46  ;;  %v10975_v22 = vpop.eup %10974  ;;  %v3623_v7 = vsub.f32 %v17760_v60, %v14591_v38  ;;  %v17763_v38 = vld [vmem:[#allocation55_spill] sm:$0xff]  ;;  %v3820_v28 = vmul.f32 1.442695, %v3641_v58  ;;  %v17764_v60 = vld [vmem:[#allocation57_spill] sm:$0xff]  ;;  %v9930_v58 = vpop.f32.mrf.mxu1  ;;  %v17806_v46 = vld [vmem:[#allocation86_spill] sm:$0xff] }
 0x5de   : > { %9971 = vmatprep.subr.bf16.mxu1 %v17757_v30  ;;  %3550 = vmax.xlane.f32.xlu1 %v14871_v19  ;;  %v10977_v42 = vpop.eup %10976  ;;  %v4369_v10 = vmul.f32 %v10975_v22, %v14458_v54  ;;  %v14915_v54 = vadd.f32 %v9898_v56, %v14118_v15  ;;  %v17769_v56 = vld [vmem:[#allocation65_spill] sm:$0xff] }
 0x5df   : > { %3576 = vmax.xlane.f32.xlu0 %v14877_v41  ;;  %9951 = vmatprep.mubr.bf16.mxu1 %v4488_v34  ;;  %v14883_v3 = vpop.xlane.xlu1 %3500  ;;  %v10979_v29 = vpop.eup %10978  ;;  %v3628_v34 = vsub.f32 %v17761_v23, %v14608_v8  ;;  %v4366_v61 = vmul.f32 %v10977_v42, %v14461_v55  ;;  %v3629_v23 = vsub.f32 %v17764_v60, %v14614_v33  ;;  %v3784_v57 = vmul.f32 1.442695, %v3623_v7  ;;  %v17767_v33 = vld [vmem:[#allocation38_spill] sm:$0xff]  ;;  %v17792_v41 = vld [vmem:[#allocation77_spill] sm:$0xff] }
 0x5e0   : > { %9952 = vmatmul.mubr.bf16.gmra.mxu1 %v4489_v31  ;;  %v14890_v2 = vpop.xlane.xlu0 %4002  ;;  %v3639_v31 = vsub.f32 %v17763_v38, %v14603_v40  ;;  %v4368_v55 = vmul.f32 %v10979_v29, %v14453_v14  ;;  %17765 = vst [vmem:[#allocation49_spill] sm:$0xff] %v14915_v54  ;;  %v17766_v40 = vld [vmem:[#allocation71_spill] sm:$0xff]  ;;  %v17768_v38 = vld [vmem:[#allocation25_spill] sm:$0xff]  ;;  %10992 = vpow2.f32 %v3820_v28  ;;  %v3636_v11 = vsub.f32 %v17792_v41, %v17791_v32 }
 0x5e1   : > { %v10981_v52 = vpop.eup %10980  ;;  %9972 = vmatpush3.bf16.msra.mxu1 %v17757_v30  ;;  %v3626_v22 = vsub.f32 %v17766_v40, %v14635_v5  ;;  %v3796_v7 = vmul.f32 1.442695, %v3629_v23  ;;  %v17773_v40 = vld [vmem:[#allocation62_spill] sm:$0xff]  ;;  %v17805_v30 = vld [vmem:[#allocation80_spill] sm:$0xff] }
 0x5e2   : > { %v14897_v18 = vpop.eup %10982  ;;  %9973 = vmatprep.subr.bf16.mxu1 %v17762_v13  ;;  %3582 = vmax.xlane.f32.xlu1 %v14888_v45  ;;  %v4367_v20 = vmul.f32 %v10981_v52, %v14465_v0  ;;  %v3794_v0 = vmul.f32 1.442695, %v3628_v34  ;;  %v3644_v52 = vsub.f32 %v17767_v33, %v14619_v43  ;;  %v4491_v14 = vpack.c.bf16 %v4369_v10, %v4368_v55 }
 0x5e3   : > { %4074 = vadd.xlane.f32.xlu0 %v14897_v18  ;;  %v4005_v8 = vpop.xlane.xlu1 %4004  ;;  %v14912_v42 = vpop.eup %10984  ;;  %v3816_v29 = vmul.f32 1.442695, %v3639_v31  ;;  %v3790_v10 = vmul.f32 1.442695, %v3626_v22  ;;  %v3627_v22 = vsub.f32 %v17773_v40, %v14641_v24 }
 0x5e4   : > { %v14909_v19 = vpop.xlane.xlu0 %4014  ;;  %v4490_v45 = vpack.c.bf16 %v4367_v20, %v4366_v61  ;;  %v3645_v61 = vsub.f32 %v17769_v56, %v14627_v4  ;;  %v14929_v34 = vpop.eup %10986  ;;  %v14934_v20 = vadd.f32 %v9930_v58, %v14118_v15  ;;  %10994 = vpow2.f32 %v3794_v0  ;;  %v17775_v58 = vld [vmem:[#allocation69_spill] sm:$0xff] }
 0x5e5   : > { %9974 = vmatpush3.bf16.msra.mxu1 %v17762_v13  ;;  %10996 = vpow2.f32 %v3784_v57  ;;  %v3201_v4 = vpop.f32.mrf.mxu0  ;;  %v3826_v31 = vmul.f32 1.442695, %v3644_v52  ;;  %v14944_v23 = vpop.eup %10988  ;;  %v17774_v57 = vld [vmem:[#allocation32_spill] sm:$0xff]  ;;  %v3642_v33 = vsub.f32 %v17775_v58, %v14651_v9  ;;  %v3792_v9 = vmul.f32 1.442695, %v3627_v22  ;;  %v17780_v22 = vld [vmem:[#allocation29_spill] sm:$0xff] }
 0x5e6   : > { %9975 = vmatprep.subr.bf16.mxu1 %v17768_v38  ;;  %4042 = vadd.xlane.f32.xlu1 %v14912_v42  ;;  %17770 = vst [vmem:[#allocation60_spill] sm:$0xff] %v14934_v20  ;;  %10998 = vpow2.f32 %v3816_v29  ;;  %v3828_v28 = vmul.f32 1.442695, %v3645_v61  ;;  %v14947_v55 = vadd.f32 %v3201_v4, %v14150_v37  ;;  %v3322_v0 = vpop.f32.mrf.mxu1  ;;  %v17776_v29 = vld [vmem:[#allocation31_spill] sm:$0xff]  ;;  %v3648_v58 = vsub.f32 %v17780_v22, %v14677_v44 }
 0x5e7   : > { %3556 = vmax.xlane.f32.xlu0 %v14915_v54  ;;  %9955 = vmatprep.mubr.bf16.mxu1 %v4490_v45  ;;  %v14927_v5 = vpop.xlane.xlu1 %4016  ;;  %v17771_v45 = vld [vmem:[#allocation24_spill] sm:$0xff]  ;;  %11000 = vpow2.f32 %v3796_v7  ;;  %v3643_v56 = vsub.f32 %v17776_v29, %v14655_v50  ;;  %v14965_v61 = vadd.f32 %v3322_v0, %v14150_v37  ;;  %v3822_v4 = vmul.f32 1.442695, %v3642_v33  ;;  %v17799_v13 = vld [vmem:[#allocation79_spill] sm:$0xff] }
 0x5e8   : > { %9956 = vmatmul.mubr.bf16.gmra.mxu1 %v4491_v14  ;;  %v14931_v43 = vpop.xlane.xlu0 %3462  ;;  %17772 = vst [vmem:[#allocation55_spill] sm:$0xff] %v14947_v55  ;;  %11002 = vpow2.f32 %v3790_v10  ;;  %v14959_v14 = vpop.eup %10990  ;;  %v17778_v7 = vld [vmem:[#allocation64_spill] sm:$0xff] }
 0x5e9   : > { %9976 = vmatpush3.bf16.msra.mxu1 %v17768_v38  ;;  %11004 = vpow2.f32 %v3826_v31  ;;  %17777 = vst [vmem:[#allocation57_spill] sm:$0xff] %v14965_v61  ;;  %v3632_v10 = vsub.f32 %v17778_v7, %v14665_v21  ;;  %v3824_v31 = vmul.f32 1.442695, %v3643_v56  ;;  %v17781_v56 = vld [vmem:[#allocation73_spill] sm:$0xff] }
 0x5ea   : > { %9977 = vmatprep.subr.bf16.mxu1 %v17771_v45  ;;  %4038 = vadd.xlane.f32.xlu1 %v14929_v34  ;;  %11006 = vpow2.f32 %v3828_v28 }
 0x5eb   : > { %3588 = vmax.xlane.f32.xlu0 %v14934_v20  ;;  %v14940_v60 = vpop.xlane.xlu1 %3464  ;;  %11008 = vrcp.f32 %v14793_v49  ;;  %v3802_v28 = vmul.f32 1.442695, %v3632_v10  ;;  %v17786_v20 = vld [vmem:[#allocation75_spill] sm:$0xff] }
 0x5ec   : > { %v14942_v15 = vpop.xlane.xlu0 %3494  ;;  %11010 = vrcp.f32 %v14797_v35 }
 0x5ed   : > { %9978 = vmatpush3.bf16.msra.mxu1 %v17771_v45  ;;  %11012 = vrcp.f32 %v4005_v8  ;;  %v14975_v37 = vpop.eup %10992  ;;  %v17779_v8 = vld [vmem:[#allocation41_spill] sm:$0xff] }
 0x5ee   : > { %10027 = vmatprep.subr.bf16.mxu1 %v17774_v57  ;;  %4070 = vadd.xlane.f32.xlu1 %v14944_v23  ;;  %v3633_v0 = vsub.f32 %v17779_v8, %v14669_v47 }
 0x5ef   : > { %3552 = vmax.xlane.f32.xlu0 %v14947_v55  ;;  %v14957_v52 = vpop.xlane.xlu1 %3496 }
 0x5f0   : > { %v3999_v24 = vpop.xlane.xlu0 %3998  ;;  %v3804_v10 = vmul.f32 1.442695, %v3633_v0 }
 0x5f1   : > { %11014 = vrcp.f32 %v3999_v24  ;;  %v14977_v21 = vpop.eup %10994  ;;  %v3649_v24 = vsub.f32 %v17781_v56, %v14681_v6  ;;  %v3834_v6 = vmul.f32 1.442695, %v3648_v58  ;;  %v17783_v58 = vld [vmem:[#allocation129_spill] sm:$0xff] }
 0x5f2   : > { %4044 = vadd.xlane.f32.xlu1 %v14959_v14  ;;  %11016 = vrcp.f32 %v14890_v2  ;;  %v14980_v35 = vpop.eup %10996 }
 0x5f3   : > { %3584 = vmax.xlane.f32.xlu0 %v14965_v61  ;;  %v4001_v50 = vpop.xlane.xlu1 %4000  ;;  %v14987_v40 = vpop.eup %10998 }
 0x5f4   : > { %v14973_v49 = vpop.xlane.xlu0 %3474  ;;  %11018 = vrcp.f32 %v4001_v50  ;;  %v14993_v29 = vpop.eup %11000 }
 0x5f5   : > { %11020 = vpow2.f32 %v3792_v9  ;;  %v14997_v7 = vpop.eup %11002  ;;  %v17782_v9 = vld [vmem:[#allocation72_spill] sm:$0xff] }
 0x5f6   : > { %4076 = vadd.xlane.f32.xlu1 %v14975_v37  ;;  %11022 = vpow2.f32 %v3822_v4  ;;  %v15001_v47 = vpop.eup %11004  ;;  %v3630_v44 = vsub.f32 %v17782_v9, %v14689_v27 }
 0x5f7   : > { %4050 = vadd.xlane.f32.xlu0 %v14977_v21  ;;  %v14985_v2 = vpop.xlane.xlu1 %3476  ;;  %11024 = vpow2.f32 %v3824_v31  ;;  %v15009_v50 = vpop.eup %11006 }
 0x5f8   : > { %v14991_v33 = vpop.xlane.xlu0 %3506  ;;  %11026 = vpow2.f32 %v3802_v28  ;;  %v11009_v31 = vpop.eup %11008  ;;  %v3836_v28 = vmul.f32 1.442695, %v3649_v24 }
 0x5f9   : > { %11028 = vrcp.f32 %v14777_v25  ;;  %v11011_v8 = vpop.eup %11010 }
 0x5fa   : > { %4040 = vadd.xlane.f32.xlu1 %v14980_v35  ;;  %11030 = vrcp.f32 %v14927_v5  ;;  %v11013_v27 = vpop.eup %11012  ;;  %v3798_v5 = vmul.f32 1.442695, %v3630_v44 }
 0x5fb   : > { %4046 = vadd.xlane.f32.xlu0 %v14997_v7  ;;  %v15007_v4 = vpop.xlane.xlu1 %3508  ;;  %11032 = vrcp.f32 %v14773_v39  ;;  %v17784_v39 = vld [vmem:[#allocation74_spill] sm:$0xff] }
 0x5fc   : > { %v15012_v25 = vpop.xlane.xlu0 %3470  ;;  %11034 = vrcp.f32 %v14909_v19  ;;  %v3646_v56 = vsub.f32 %v17784_v39, %v17783_v58  ;;  %v17785_v19 = vld [vmem:[#allocation126_spill] sm:$0xff]  ;;  %v17788_v58 = vld [vmem:[#allocation103_spill] sm:$0xff] }
 0x5fd   : > { %11036 = vpow2.f32 %v3804_v10  ;;  %v3631_v61 = vsub.f32 %v17786_v20, %v17785_v19  ;;  %v17787_v10 = vld [vmem:[#allocation96_spill] sm:$0xff]  ;;  %v4375_v20 = vmul.f32 %v11011_v8, %v17790_v53  ;;  %v17796_v53 = vld [vmem:[#allocation87_spill] sm:$0xff] }
 0x5fe   : > { %4072 = vadd.xlane.f32.xlu1 %v14987_v40  ;;  %v11015_v22 = vpop.eup %11014  ;;  %11038 = vpow2.f32 %v3834_v6  ;;  %v4373_v44 = vmul.f32 %v11013_v27, %v17787_v10  ;;  %v4374_v8 = vmul.f32 %v11009_v31, %v17796_v53  ;;  %v3810_v31 = vmul.f32 1.442695, %v3636_v11 }
 0x5ff   : > { %4052 = vadd.xlane.f32.xlu0 %v14993_v29  ;;  %v15017_v0 = vpop.xlane.xlu1 %3472  ;;  %v11017_v24 = vpop.eup %11016  ;;  %11040 = vpow2.f32 %v3836_v28  ;;  %v4370_v39 = vmul.f32 %v11015_v22, %v17788_v58  ;;  %v17789_v28 = vld [vmem:[#allocation105_spill] sm:$0xff]  ;;  %v3800_v51 = vmul.f32 1.442695, %v3631_v61  ;;  %v17794_v22 = vld [vmem:[#allocation130_spill] sm:$0xff]  ;;  %v17795_v58 = vld [vmem:[#allocation76_spill] sm:$0xff] }
 0x600   : > { %v15021_v9 = vpop.xlane.xlu0 %3502  ;;  %11042 = vrcp.f32 %v14847_v62  ;;  %v3830_v62 = vmul.f32 1.442695, %v3646_v56  ;;  %v17798_v56 = vld [vmem:[#allocation134_spill] sm:$0xff] }
 0x601   : > { %v11019_v54 = vpop.eup %11018  ;;  %11044 = vpow2.f32 %v3798_v5  ;;  %v17793_v5 = vld [vmem:[#allocation95_spill] sm:$0xff]  ;;  %v3637_v32 = vsub.f32 %v17799_v13, %v17798_v56 }
 0x602   : > { %4082 = vadd.xlane.f32.xlu1 %v15001_v47  ;;  %v15028_v55 = vpop.eup %11020  ;;  %v4371_v36 = vmul.f32 %v11019_v54, %v17789_v28  ;;  %11046 = vrcp.f32 %v14838_v12  ;;  %v4372_v10 = vmul.f32 %v11017_v24, %v17793_v5  ;;  %v3647_v54 = vsub.f32 %v17795_v58, %v17794_v22  ;;  %v17801_v24 = vld [vmem:[#allocation78_spill] sm:$0xff]  ;;  %v17803_v58 = vld [vmem:[#allocation81_spill] sm:$0xff] }
 0x603   : > { %4084 = vadd.xlane.f32.xlu0 %v15009_v50  ;;  %v15031_v6 = vpop.xlane.xlu1 %3504  ;;  %v15036_v19 = vpop.eup %11022  ;;  %v3652_v5 = vsub.f32 %v17801_v24, %v17800_v17  ;;  %v4494_v22 = vpack.c.bf16 %v4375_v20, %v4374_v8  ;;  %11048 = vpow2.f32 %v3830_v62  ;;  %v17807_v8 = vld [vmem:[#allocation99_spill] sm:$0xff] }
 0x604   : > { %v15041_v27 = vpop.xlane.xlu0 %4026  ;;  %v15044_v48 = vpop.eup %11024  ;;  %v4492_v28 = vpack.c.bf16 %v4371_v36, %v4370_v39  ;;  %v4493_v12 = vpack.c.bf16 %v4373_v44, %v4372_v10  ;;  %v17802_v39 = vld [vmem:[#allocation138_spill] sm:$0xff]  ;;  %11050 = vpow2.f32 %v3800_v51  ;;  %v3832_v44 = vmul.f32 1.442695, %v3647_v54  ;;  %v17804_v10 = vld [vmem:[#allocation141_spill] sm:$0xff] }
 0x605   : > { %v15049_v38 = vpop.eup %11026  ;;  %v3653_v53 = vsub.f32 %v17803_v58, %v17802_v39  ;;  %v3634_v17 = vsub.f32 %v17805_v30, %v17804_v10  ;;  %v3842_v11 = vmul.f32 1.442695, %v3652_v5  ;;  %11052 = vpow2.f32 %v3810_v31  ;;  %v17808_v54 = vld [vmem:[#allocation85_spill] sm:$0xff] }
 0x606   : > { %17797 = vst [vmem:[#allocation71_spill] sm:$0xff] %v15049_v38  ;;  %4078 = vadd.xlane.f32.xlu1 %v15036_v19  ;;  %v11029_v41 = vpop.eup %11028  ;;  %9959 = vmatprep.mubr.bf16.mxu1 %v4492_v28  ;;  %v3812_v28 = vmul.f32 1.442695, %v3637_v32  ;;  %11054 = vpow2.f32 %v3832_v44  ;;  %v17812_v44 = vld [vmem:[#allocation145_spill] sm:$0xff] }
 0x607   : > { %4048 = vadd.xlane.f32.xlu0 %v15028_v55  ;;  %v4029_v61 = vpop.xlane.xlu1 %4028  ;;  %v11031_v36 = vpop.eup %11030  ;;  %9960 = vmatmul.mubr.bf16.gmra.mxu1 %v4493_v12  ;;  %v4377_v20 = vmul.f32 %v11029_v41, %v17806_v46  ;;  %v3844_v51 = vmul.f32 1.442695, %v3653_v53  ;;  %v3806_v46 = vmul.f32 1.442695, %v3634_v17  ;;  %v17810_v41 = vld [vmem:[#allocation97_spill] sm:$0xff]  ;;  %v17813_v17 = vld [vmem:[#allocation82_spill] sm:$0xff] }
 0x608   : > { %v15059_v13 = vpop.xlane.xlu0 %3482  ;;  %v11033_v56 = vpop.eup %11032  ;;  %9979 = vmatprep.mubr.bf16.mxu1 %v4494_v22  ;;  %v4379_v12 = vmul.f32 %v11031_v36, %v17807_v8  ;;  %11056 = vpow2.f32 %v3812_v28  ;;  %v3650_v8 = vsub.f32 %v17813_v17, %v17812_v44  ;;  %v17814_v28 = vld [vmem:[#allocation142_spill] sm:$0xff] }
 0x609   : > { %v11035_v24 = vpop.eup %11034  ;;  %v4376_v30 = vmul.f32 %v11033_v56, %v17808_v54  ;;  %11058 = vpow2.f32 %v3842_v11  ;;  %v17816_v11 = vld [vmem:[#allocation30_spill] sm:$0xff] }
 0x60a   : > { %4058 = vadd.xlane.f32.xlu1 %v15049_v38  ;;  %v15069_v39 = vpop.eup %11036  ;;  %v4378_v5 = vmul.f32 %v11035_v24, %v17810_v41  ;;  %11060 = vpow2.f32 %v3844_v51  ;;  %v17815_v41 = vld [vmem:[#allocation83_spill] sm:$0xff]  ;;  %v17844_v38 = vld [vmem:[#allocation113_spill] sm:$0xff] }
 0x60b   : > { %4080 = vadd.xlane.f32.xlu0 %v15044_v48  ;;  %v15066_v62 = vpop.xlane.xlu1 %3484  ;;  %v15074_v32 = vpop.eup %11038  ;;  %v4495_v36 = vpack.c.bf16 %v4377_v20, %v4376_v30  ;;  %11062 = vpow2.f32 %v3806_v46  ;;  %v3635_v20 = vsub.f32 %v17815_v41, %v17814_v28  ;;  %v17818_v46 = vld [vmem:[#allocation90_spill] sm:$0xff]  ;;  %v17822_v41 = vld [vmem:[#allocation84_spill] sm:$0xff] }
 0x60c   : > { %v15072_v22 = vpop.xlane.xlu0 %3514  ;;  %17809 = vst [vmem:[#allocation38_spill] sm:$0xff] %v15074_v32  ;;  %v15077_v58 = vpop.eup %11040  ;;  %v4496_v53 = vpack.c.bf16 %v4379_v12, %v4378_v5  ;;  %11064 = vrcp.f32 %v4029_v61  ;;  %v17817_v12 = vld [vmem:[#allocation91_spill] sm:$0xff]  ;;  %v3838_v5 = vmul.f32 1.442695, %v3650_v8  ;;  %v17821_v28 = vld [vmem:[#allocation146_spill] sm:$0xff]  ;;  %v17824_v8 = vld [vmem:[#allocation28_spill] sm:$0xff] }
 0x60d   : > { %17811 = vst [vmem:[#allocation65_spill] sm:$0xff] %v15077_v58  ;;  %v11043_v10 = vpop.eup %11042  ;;  %v3808_v17 = vmul.f32 1.442695, %v3635_v20  ;;  %v17825_v20 = vld [vmem:[#allocation92_spill] sm:$0xff] }
 0x60e   : > { %4090 = vadd.xlane.f32.xlu1 %v15074_v32  ;;  %v15083_v56 = vpop.eup %11044  ;;  %v4381_v51 = vmul.f32 %v11043_v10, %v17817_v12  ;;  %v3651_v10 = vsub.f32 %v17822_v41, %v17821_v28  ;;  %v3672_v12 = vsub.f32 %v17825_v20, %v14873_v63  ;;  %v17834_v20 = vld [vmem:[#allocation94_spill] sm:$0xff]  ;;  %v17838_v32 = vld [vmem:[#allocation101_spill] sm:$0xff] }
 0x60f   : > { %4060 = vadd.xlane.f32.xlu0 %v15069_v39  ;;  %v15081_v31 = vpop.xlane.xlu1 %3516  ;;  %9980 = vmatmul.mubr.bf16.vlgmr.msra.gmra.mxu1 %v4495_v36  ;;  %v11047_v54 = vpop.eup %11046  ;;  %v3656_v36 = vsub.f32 %v17818_v46, %v14854_v59 }
 0x610   : > { %v4023_v24 = vpop.xlane.xlu0 %4022  ;;  %10028 = vmatpush3.bf16.msra.mxu1 %v17774_v57  ;;  %9983 = vmatprep.mubr.bf16.mxu1 %v4496_v53  ;;  %v17819_v57 = vld [vmem:[#allocation89_spill] sm:$0xff]  ;;  %v15100_v53 = vpop.eup %11048  ;;  %v3840_v46 = vmul.f32 1.442695, %v3651_v10 }
 0x611   : > { %10029 = vmatprep.subr.bf16.mxu1 %v17816_v11  ;;  %11066 = vrcp.f32 %v4023_v24  ;;  %v4380_v61 = vmul.f32 %v11047_v54, %v17819_v57  ;;  %17820 = vst [vmem:[#allocation62_spill] sm:$0xff] %v15100_v53  ;;  %v15105_v24 = vpop.eup %11050  ;;  %v3850_v54 = vmul.f32 1.442695, %v3656_v36  ;;  %v17827_v57 = vld [vmem:[#allocation93_spill] sm:$0xff] }
 0x612   : > { %4054 = vadd.xlane.f32.xlu1 %v15083_v56  ;;  %11068 = vrcp.f32 %v15041_v27  ;;  %17823 = vst [vmem:[#allocation32_spill] sm:$0xff] %v15105_v24  ;;  %v3657_v28 = vsub.f32 %v17827_v57, %v14868_v26  ;;  %v17832_v26 = vld [vmem:[#allocation98_spill] sm:$0xff]  ;;  %v3673_v57 = vsub.f32 %v17834_v20, %v14883_v3 }
 0x613   : > { %4092 = vadd.xlane.f32.xlu0 %v15077_v58  ;;  %v4025_v30 = vpop.xlane.xlu1 %4024  ;;  %v4497_v59 = vpack.c.bf16 %v4381_v51, %v4380_v61  ;;  %v17829_v61 = vld [vmem:[#allocation68_spill] sm:$0xff]  ;;  %v3654_v41 = vsub.f32 %v17832_v26, %v14931_v43 }
 0x614   : > { %v15097_v44 = vpop.xlane.xlu0 %3478  ;;  %11070 = vrcp.f32 %v4025_v30  ;;  %10030 = vmatpush3.bf16.msra.mxu1 %v17816_v11  ;;  %v15116_v11 = vpop.eup %11052  ;;  %v3884_v20 = vmul.f32 1.442695, %v3673_v57 }
 0x615   : > { %10031 = vmatprep.subr.bf16.mxu1 %v17824_v8  ;;  %11072 = vpow2.f32 %v3838_v5  ;;  %17826 = vst [vmem:[#allocation69_spill] sm:$0xff] %v15116_v11  ;;  %v15121_v51 = vpop.eup %11054 }
 0x616   : > { %4086 = vadd.xlane.f32.xlu1 %v15100_v53  ;;  %11074 = vpow2.f32 %v3808_v17  ;;  %17828 = vst [vmem:[#allocation31_spill] sm:$0xff] %v15121_v51  ;;  %v15125_v5 = vpop.eup %11056  ;;  %v3882_v17 = vmul.f32 1.442695, %v3672_v12 }
 0x617   : > { %4056 = vadd.xlane.f32.xlu0 %v15105_v24  ;;  %v15110_v27 = vpop.xlane.xlu1 %3480  ;;  %9984 = vmatmul.mubr.bf16.gmra.mxu1 %v4497_v59  ;;  %17830 = vst [vmem:[#allocation64_spill] sm:$0xff] %v15125_v5  ;;  %v15130_v36 = vpop.eup %11058  ;;  %11076 = vpow2.f32 %v3850_v54  ;;  %v3852_v59 = vmul.f32 1.442695, %v3657_v28  ;;  %v17837_v28 = vld [vmem:[#allocation100_spill] sm:$0xff] }
 0x618   : > { %v15114_v30 = vpop.xlane.xlu0 %3510  ;;  %10032 = vmatpush3.bf16.msra.mxu1 %v17824_v8  ;;  %17831 = vst [vmem:[#allocation41_spill] sm:$0xff] %v15130_v36  ;;  %v15136_v8 = vpop.eup %11060  ;;  %11078 = vpow2.f32 %v3840_v46  ;;  %v3846_v46 = vmul.f32 1.442695, %v3654_v41  ;;  %v3670_v26 = vsub.f32 %v17837_v28, %v14942_v15  ;;  %v17841_v28 = vld [vmem:[#allocation118_spill] sm:$0xff] }
 0x619   : > { %10033 = vmatprep.subr.bf16.mxu1 %v17829_v61  ;;  %17833 = vst [vmem:[#allocation29_spill] sm:$0xff] %v15136_v8  ;;  %11080 = vpow2.f32 %v3882_v17  ;;  %v17840_v17 = vld [vmem:[#allocation115_spill] sm:$0xff] }
 0x61a   : > { %4066 = vadd.xlane.f32.xlu1 %v15116_v11  ;;  %v15141_v11 = vpop.eup %11062  ;;  %11082 = vpow2.f32 %v3852_v59  ;;  %v17842_v59 = vld [vmem:[#allocation119_spill] sm:$0xff]  ;;  %v3878_v58 = vmul.f32 1.442695, %v3670_v26 }
 0x61b   : > { %4088 = vadd.xlane.f32.xlu0 %v15121_v51  ;;  %v15128_v63 = vpop.xlane.xlu1 %3512  ;;  %17835 = vst [vmem:[#allocation73_spill] sm:$0xff] %v15141_v11  ;;  %v11065_v54 = vpop.eup %11064  ;;  %v3655_v51 = vsub.f32 %v17838_v32, %v14940_v60  ;;  %11084 = vpow2.f32 %v3846_v46  ;;  %v17843_v60 = vld [vmem:[#allocation104_spill] sm:$0xff]  ;;  %v17846_v46 = vld [vmem:[#allocation107_spill] sm:$0xff] }
 0x61c   : > { %v15134_v10 = vpop.xlane.xlu0 %3490  ;;  %10034 = vmatpush3.bf16.msra.mxu1 %v17829_v61  ;;  %v4385_v41 = vmul.f32 %v11065_v54, %v17840_v17  ;;  %11086 = vpow2.f32 %v3884_v20  ;;  %v17845_v17 = vld [vmem:[#allocation102_spill] sm:$0xff]  ;;  %v3661_v26 = vsub.f32 %v17846_v46, %v14985_v2 }
 0x61d   : > { %10035 = vmatprep.subr.bf16.mxu1 %v17836_v16  ;;  %v3848_v54 = vmul.f32 1.442695, %v3655_v51  ;;  %11088 = vpow2.f32 %v3878_v58  ;;  %v17849_v51 = vld [vmem:[#allocation108_spill] sm:$0xff] }
 0x61e   : > { %4098 = vadd.xlane.f32.xlu1 %v15130_v36  ;;  %v11067_v12 = vpop.eup %11066 }
 0x61f   : > { %4068 = vadd.xlane.f32.xlu0 %v15125_v5  ;;  %v15146_v43 = vpop.xlane.xlu1 %3492  ;;  %v11069_v61 = vpop.eup %11068  ;;  %v17839_v5 = vld [vmem:[#allocation56_spill] sm:$0xff]  ;;  %v4382_v53 = vmul.f32 %v11067_v12, %v17841_v28  ;;  %11090 = vpow2.f32 %v3848_v54 }
 0x620   : > { %v15150_v3 = vpop.xlane.xlu0 %3522  ;;  %10036 = vmatpush3.bf16.msra.mxu1 %v17836_v16  ;;  %v3660_v16 = vsub.f32 %v17843_v60, %v14973_v49  ;;  %v4384_v24 = vmul.f32 %v11069_v61, %v17844_v38  ;;  %v17847_v49 = vld [vmem:[#allocation50_spill] sm:$0xff] }
 0x621   : > { %v11071_v36 = vpop.eup %11070  ;;  %10037 = vmatprep.subr.bf16.mxu1 %v17839_v5  ;;  %v17848_v61 = vld [vmem:[#allocation106_spill] sm:$0xff] }
 0x622   : > { %4062 = vadd.xlane.f32.xlu1 %v15141_v11  ;;  %v4383_v57 = vmul.f32 %v11071_v36, %v17842_v59  ;;  %v15168_v11 = vpop.eup %11072  ;;  %v4499_v38 = vpack.c.bf16 %v4385_v41, %v4384_v24  ;;  %v3676_v20 = vsub.f32 %v17848_v61, %v14991_v33  ;;  %v3860_v41 = vmul.f32 1.442695, %v3661_v26  ;;  %v17851_v59 = vld [vmem:[#allocation39_spill] sm:$0xff]  ;;  %v17856_v26 = vld [vmem:[#allocation110_spill] sm:$0xff] }
 0x623   : > { %4100 = vadd.xlane.f32.xlu0 %v15136_v8  ;;  %v15159_v15 = vpop.xlane.xlu1 %3524  ;;  %v3671_v8 = vsub.f32 %v17845_v17, %v14957_v52  ;;  %v15173_v36 = vpop.eup %11074 }
 0x624   : > { %v15165_v32 = vpop.xlane.xlu0 %3486  ;;  %10038 = vmatpush3.bf16.msra.mxu1 %v17839_v5  ;;  %v4498_v12 = vpack.c.bf16 %v4383_v57, %v4382_v53  ;;  %v3858_v53 = vmul.f32 1.442695, %v3660_v16  ;;  %v3658_v5 = vsub.f32 %v17849_v51, %v15012_v25  ;;  %v15188_v28 = vpop.eup %11076  ;;  %v3890_v58 = vmul.f32 1.442695, %v3676_v20  ;;  %v17857_v20 = vld [vmem:[#allocation111_spill] sm:$0xff] }
 0x625   : > { %10039 = vmatprep.subr.bf16.mxu1 %v17847_v49  ;;  %17850 = vst [vmem:[#allocation72_spill] sm:$0xff] %v15188_v28  ;;  %v3880_v24 = vmul.f32 1.442695, %v3671_v8  ;;  %v15191_v33 = vpop.eup %11078  ;;  %v17853_v8 = vld [vmem:[#allocation109_spill] sm:$0xff] }
 0x626   : > { %4094 = vadd.xlane.f32.xlu1 %v15168_v11  ;;  %9987 = vmatprep.mubr.bf16.mxu1 %v4498_v12  ;;  %11092 = vpow2.f32 %v3858_v53  ;;  %v3854_v57 = vmul.f32 1.442695, %v3658_v5  ;;  %v15198_v16 = vpop.eup %11080  ;;  %v3677_v54 = vsub.f32 %v17853_v8, %v15007_v4  ;;  %v17855_v12 = vld [vmem:[#allocation35_spill] sm:$0xff]  ;;  %v3659_v53 = vsub.f32 %v17857_v20, %v15017_v0 }
 0x627   : > { %4064 = vadd.xlane.f32.xlu0 %v15173_v36  ;;  %v15182_v52 = vpop.xlane.xlu1 %3488  ;;  %9988 = vmatmul.mubr.bf16.gmra.mxu1 %v4499_v38  ;;  %17852 = vst [vmem:[#allocation129_spill] sm:$0xff] %v15198_v16  ;;  %11094 = vpow2.f32 %v3880_v24  ;;  %v15203_v17 = vpop.eup %11082 }
 0x628   : > { %v15186_v2 = vpop.xlane.xlu0 %3518  ;;  %10040 = vmatpush3.bf16.msra.mxu1 %v17847_v49  ;;  %17854 = vst [vmem:[#allocation74_spill] sm:$0xff] %v15203_v17  ;;  %11096 = vpow2.f32 %v3860_v41  ;;  %v3674_v49 = vsub.f32 %v17856_v26, %v15021_v9  ;;  %v15210_v61 = vpop.eup %11084  ;;  %v3892_v4 = vmul.f32 1.442695, %v3677_v54  ;;  %v17859_v9 = vld [vmem:[#allocation114_spill] sm:$0xff]  ;;  %v3856_v0 = vmul.f32 1.442695, %v3659_v53 }
 0x629   : > { %10041 = vmatprep.subr.bf16.mxu1 %v17851_v59  ;;  %11098 = vpow2.f32 %v3890_v58  ;;  %v15214_v51 = vpop.eup %11086  ;;  %v3664_v41 = vsub.f32 %v17859_v9, %v15059_v13 }
 0x62a   : > { %4106 = vadd.xlane.f32.xlu1 %v15188_v28  ;;  %11100 = vpow2.f32 %v3854_v57  ;;  %17858 = vst [vmem:[#allocation126_spill] sm:$0xff] %v15214_v51  ;;  %v3886_v24 = vmul.f32 1.442695, %v3674_v49  ;;  %v15222_v58 = vpop.eup %11088  ;;  %v17861_v57 = vld [vmem:[#allocation112_spill] sm:$0xff] }
 0x62b   : > { %4096 = vadd.xlane.f32.xlu0 %v15191_v33  ;;  %v15196_v25 = vpop.xlane.xlu1 %3520  ;;  %17860 = vst [vmem:[#allocation75_spill] sm:$0xff] %v15222_v58  ;;  %v3675_v8 = vsub.f32 %v17861_v57, %v15031_v6  ;;  %v3866_v13 = vmul.f32 1.442695, %v3664_v41  ;;  %v17865_v6 = vld [vmem:[#allocation37_spill] sm:$0xff]  ;;  %v17869_v41 = vld [vmem:[#allocation44_spill] sm:$0xff] }
 0x62c   : > { %v4035_v60 = vpop.xlane.xlu0 %4034  ;;  %10042 = vmatpush3.bf16.msra.mxu1 %v17851_v59  ;;  %v15226_v54 = vpop.eup %11090  ;;  %v3665_v20 = vsub.f32 %v17865_v6, %v15066_v62 }
 0x62d   : > { %10091 = vmatprep.subr.bf16.mxu1 %v17855_v12  ;;  %17862 = vst [vmem:[#allocation96_spill] sm:$0xff] %v15226_v54 }
 0x62e   : > { %4138 = vadd.xlane.f32.xlu1 %v15198_v16 }
 0x62f   : > { %4108 = vadd.xlane.f32.xlu0 %v15203_v17  ;;  %v4037_v46 = vpop.xlane.xlu1 %4036 }
 0x630   : > { %v4031_v38 = vpop.xlane.xlu0 %4030  ;;  %11102 = vrcp.f32 %v4037_v46  ;;  %v17863_v46 = vld [vmem:[#allocation116_spill] sm:$0xff] }
 0x631   : > { %11104 = vrcp.f32 %v4031_v38  ;;  %v3680_v26 = vsub.f32 %v17863_v46, %v15072_v22  ;;  %v17870_v46 = vld [vmem:[#allocation117_spill] sm:$0xff] }
 0x632   : > { %4102 = vadd.xlane.f32.xlu1 %v15210_v61  ;;  %11106 = vrcp.f32 %v4035_v60  ;;  %v3681_v6 = vsub.f32 %v17870_v46, %v15081_v31  ;;  %v17872_v31 = vld [vmem:[#allocation120_spill] sm:$0xff] }
 0x633   : > { %4140 = vadd.xlane.f32.xlu0 %v15214_v51  ;;  %v4033_v5 = vpop.xlane.xlu1 %4032  ;;  %v15236_v38 = vpop.eup %11092  ;;  %v3898_v9 = vmul.f32 1.442695, %v3680_v26  ;;  %v3663_v46 = vsub.f32 %v17872_v31, %v15110_v27  ;;  %v17878_v27 = vld [vmem:[#allocation122_spill] sm:$0xff] }
 0x634   : > { %11108 = vrcp.f32 %v4033_v5  ;;  %v15220_v59 = vpop.xlane.xlu0 %3530  ;;  %17864 = vst [vmem:[#allocation103_spill] sm:$0xff] %v15236_v38  ;;  %v15240_v53 = vpop.eup %11094  ;;  %v3666_v31 = vsub.f32 %v17878_v27, %v15165_v32  ;;  %v17880_v32 = vld [vmem:[#allocation40_spill] sm:$0xff] }
 0x635   : > { %11110 = vpow2.f32 %v3892_v4  ;;  %v3888_v4 = vmul.f32 1.442695, %v3675_v8  ;;  %17866 = vst [vmem:[#allocation105_spill] sm:$0xff] %v15240_v53  ;;  %v15243_v5 = vpop.eup %11096  ;;  %v3868_v8 = vmul.f32 1.442695, %v3665_v20 }
 0x636   : > { %4134 = vadd.xlane.f32.xlu1 %v15222_v58  ;;  %11112 = vpow2.f32 %v3886_v24  ;;  %17867 = vst [vmem:[#allocation88_spill] sm:$0xff] %v15243_v5  ;;  %v15248_v22 = vpop.eup %11098  ;;  %v3900_v20 = vmul.f32 1.442695, %v3681_v6 }
 0x637   : > { %4104 = vadd.xlane.f32.xlu0 %v15226_v54  ;;  %v15230_v60 = vpop.xlane.xlu1 %3532  ;;  %11114 = vpow2.f32 %v3856_v0  ;;  %17868 = vst [vmem:[#allocation132_spill] sm:$0xff] %v15248_v22  ;;  %v3662_v0 = vsub.f32 %v17869_v41, %v15097_v44  ;;  %v15254_v62 = vpop.eup %11100  ;;  %v17871_v41 = vld [vmem:[#allocation43_spill] sm:$0xff] }
 0x638   : > { %v15234_v49 = vpop.xlane.xlu0 %3562  ;;  %11116 = vpow2.f32 %v3866_v13  ;;  %v3678_v28 = vsub.f32 %v17871_v41, %v15114_v30  ;;  %v17877_v41 = vld [vmem:[#allocation127_spill] sm:$0xff] }
 0x639   : > { %11118 = vpow2.f32 %v3888_v4  ;;  %v3862_v44 = vmul.f32 1.442695, %v3662_v0  ;;  %v17876_v0 = vld [vmem:[#allocation137_spill] sm:$0xff] }
 0x63a   : > { %4114 = vadd.xlane.f32.xlu1 %v15236_v38  ;;  %11120 = vpow2.f32 %v3898_v9  ;;  %v3894_v6 = vmul.f32 1.442695, %v3678_v28 }
 0x63b   : > { %4136 = vadd.xlane.f32.xlu0 %v15240_v53  ;;  %v15246_v24 = vpop.xlane.xlu1 %3564  ;;  %11122 = vpow2.f32 %v3868_v8 }
 0x63c   : > { %v15252_v57 = vpop.xlane.xlu0 %3526  ;;  %11124 = vpow2.f32 %v3862_v44 }
 0x63d   : > { %v11103_v38 = vpop.eup %11102  ;;  %11126 = vpow2.f32 %v3900_v20 }
 0x63e   : > { %4146 = vadd.xlane.f32.xlu1 %v15248_v22  ;;  %v11105_v16 = vpop.eup %11104  ;;  %v17873_v22 = vld [vmem:[#allocation131_spill] sm:$0xff]  ;;  %11128 = vpow2.f32 %v3894_v6 }
 0x63f   : > { %4116 = vadd.xlane.f32.xlu0 %v15243_v5  ;;  %v15260_v13 = vpop.xlane.xlu1 %3528  ;;  %v11107_v26 = vpop.eup %11106  ;;  %v4389_v17 = vmul.f32 %v11103_v38, %v17873_v22  ;;  %v17875_v5 = vld [vmem:[#allocation133_spill] sm:$0xff] }
 0x640   : > { %v15264_v51 = vpop.xlane.xlu0 %3558  ;;  %v4386_v9 = vmul.f32 %v11105_v16, %v17875_v5  ;;  %v4388_v8 = vmul.f32 %v11107_v26, %v17877_v41  ;;  %v3864_v16 = vmul.f32 1.442695, %v3663_v46  ;;  %v17879_v5 = vld [vmem:[#allocation42_spill] sm:$0xff]  ;;  %v3870_v26 = vmul.f32 1.442695, %v3666_v31 }
 0x641   : > { %v11109_v4 = vpop.eup %11108 }
 0x642   : > { %v15269_v53 = vpop.eup %11110  ;;  %4110 = vadd.xlane.f32.xlu1 %v15254_v62  ;;  %v4387_v58 = vmul.f32 %v11109_v4, %v17876_v0  ;;  %v3679_v4 = vsub.f32 %v17879_v5, %v15128_v63  ;;  %v4501_v0 = vpack.c.bf16 %v4389_v17, %v4388_v8  ;;  %11130 = vpow2.f32 %v3864_v16  ;;  %v17882_v17 = vld [vmem:[#allocation125_spill] sm:$0xff] }
 0x643   : > { %17874 = vst [vmem:[#allocation77_spill] sm:$0xff] %v15269_v53  ;;  %4148 = vadd.xlane.f32.xlu0 %v15269_v53  ;;  %v15275_v30 = vpop.xlane.xlu1 %3560  ;;  %v15282_v54 = vpop.eup %11112  ;;  %v3667_v46 = vsub.f32 %v17882_v17, %v15182_v52  ;;  %11132 = vpow2.f32 %v3870_v26  ;;  %v17885_v52 = vld [vmem:[#allocation121_spill] sm:$0xff] }
 0x644   : > { %v15280_v38 = vpop.xlane.xlu0 %3538  ;;  %v4500_v22 = vpack.c.bf16 %v4387_v58, %v4386_v9  ;;  %v15286_v53 = vpop.eup %11114  ;;  %v3668_v58 = vsub.f32 %v17880_v32, %v15134_v10  ;;  %v3896_v63 = vmul.f32 1.442695, %v3679_v4  ;;  %v17883_v10 = vld [vmem:[#allocation124_spill] sm:$0xff] }
 0x645   : > { %v15296_v20 = vpop.eup %11116  ;;  %v3682_v6 = vsub.f32 %v17883_v10, %v15186_v2  ;;  %v3872_v16 = vmul.f32 1.442695, %v3667_v46  ;;  %v17887_v2 = vld [vmem:[#allocation48_spill] sm:$0xff] }
 0x646   : > { %4142 = vadd.xlane.f32.xlu1 %v15282_v54  ;;  %9991 = vmatprep.mubr.bf16.mxu1 %v4500_v22  ;;  %17881 = vst [vmem:[#allocation95_spill] sm:$0xff] %v15296_v20  ;;  %v15300_v9 = vpop.eup %11118  ;;  %v3874_v8 = vmul.f32 1.442695, %v3668_v58  ;;  %11134 = vpow2.f32 %v3896_v63  ;;  %v3669_v22 = vsub.f32 %v17885_v52, %v15146_v43  ;;  %v17888_v43 = vld [vmem:[#allocation128_spill] sm:$0xff]  ;;  %v17892_v52 = vld [vmem:[#allocation123_spill] sm:$0xff] }
 0x647   : > { %4112 = vadd.xlane.f32.xlu0 %v15286_v53  ;;  %v15290_v28 = vpop.xlane.xlu1 %3540  ;;  %9992 = vmatmul.mubr.bf16.gmra.mxu1 %v4501_v0  ;;  %v15310_v31 = vpop.eup %11120  ;;  %v3684_v0 = vsub.f32 %v17887_v2, %v15150_v3  ;;  %v3902_v32 = vmul.f32 1.442695, %v3682_v6  ;;  %v3683_v17 = vsub.f32 %v17888_v43, %v15196_v25 }
 0x648   : > { %v15294_v44 = vpop.xlane.xlu0 %3570  ;;  %17884 = vst [vmem:[#allocation130_spill] sm:$0xff] %v15310_v31  ;;  %v15314_v5 = vpop.eup %11122  ;;  %11136 = vpow2.f32 %v3874_v8  ;;  %v3876_v63 = vmul.f32 1.442695, %v3669_v22  ;;  %v3685_v22 = vsub.f32 %v17892_v52, %v15159_v15 }
 0x649   : > { %17886 = vst [vmem:[#allocation76_spill] sm:$0xff] %v15314_v5  ;;  %v15324_v26 = vpop.eup %11124  ;;  %11138 = vpow2.f32 %v3872_v16  ;;  %v3906_v10 = vmul.f32 1.442695, %v3684_v0  ;;  %v3904_v16 = vmul.f32 1.442695, %v3683_v17 }
 0x64a   : > { %4122 = vadd.xlane.f32.xlu1 %v15296_v20  ;;  %v15328_v46 = vpop.eup %11126  ;;  %11140 = vpow2.f32 %v3902_v32  ;;  %v3908_v43 = vmul.f32 1.442695, %v3685_v22 }
 0x64b   : > { %4144 = vadd.xlane.f32.xlu0 %v15300_v9  ;;  %v15304_v41 = vpop.xlane.xlu1 %3572  ;;  %17889 = vst [vmem:[#allocation87_spill] sm:$0xff] %v15328_v46  ;;  %v15336_v6 = vpop.eup %11128  ;;  %11142 = vpow2.f32 %v3876_v63 }
 0x64c   : > { %v15308_v27 = vpop.xlane.xlu0 %3534  ;;  %17891 = vst [vmem:[#allocation79_spill] sm:$0xff] %v15336_v6  ;;  %11144 = vpow2.f32 %v3906_v10 }
 0x64d   : > { %11146 = vpow2.f32 %v3904_v16 }
 0x64e   : > { %4154 = vadd.xlane.f32.xlu1 %v15310_v31  ;;  %11148 = vpow2.f32 %v3908_v43 }
 0x64f   : > { %4124 = vadd.xlane.f32.xlu0 %v15314_v5  ;;  %v15318_v4 = vpop.xlane.xlu1 %3536  ;;  %v15340_v25 = vpop.eup %11130 }
 0x650   : > { %v15322_v58 = vpop.xlane.xlu0 %3566  ;;  %v15348_v32 = vpop.eup %11132 }
 0x651   : > { %17895 = vst [vmem:[#allocation138_spill] sm:$0xff] %v15348_v32 }
 0x652   : > { %4118 = vadd.xlane.f32.xlu1 %v15324_v26 }
 0x653   : > { %4156 = vadd.xlane.f32.xlu0 %v15328_v46  ;;  %v15332_v8 = vpop.xlane.xlu1 %3568  ;;  %v15350_v63 = vpop.eup %11134 }
 0x654   : > { %v15334_v3 = vpop.xlane.xlu0 %3546 }
 0x655   : > { %17890 = vst [vmem:[#allocation134_spill] sm:$0xff] %v15334_v3  ;;  %v15358_v52 = vpop.eup %11136 }
 0x656   : > { %4150 = vadd.xlane.f32.xlu1 %v15336_v6  ;;  %17898 = vst [vmem:[#allocation80_spill] sm:$0xff] %v15358_v52  ;;  %v15360_v10 = vpop.eup %11138 }
 0x657   : > { %4120 = vadd.xlane.f32.xlu0 %v15340_v25  ;;  %v15344_v2 = vpop.xlane.xlu1 %3578  ;;  %17899 = vst [vmem:[#allocation86_spill] sm:$0xff] %v15360_v10 }
 0x658   : > { %17893 = vst [vmem:[#allocation136_spill] sm:$0xff] %v15344_v2  ;;  %v15346_v0 = vpop.xlane.xlu0 %3574  ;;  %v15368_v2 = vpop.eup %11140 }
 0x659   : > { %17894 = vst [vmem:[#allocation78_spill] sm:$0xff] %v15346_v0  ;;  %17902 = vst [vmem:[#allocation97_spill] sm:$0xff] %v15368_v2  ;;  %v15370_v0 = vpop.eup %11142 }
 0x65a   : > { %4126 = vadd.xlane.f32.xlu1 %v15348_v32  ;;  %17903 = vst [vmem:[#allocation145_spill] sm:$0xff] %v15370_v0 }
 0x65b   : > { %4152 = vadd.xlane.f32.xlu0 %v15350_v63  ;;  %v15354_v15 = vpop.xlane.xlu1 %3542 }
 0x65c   : > { %17896 = vst [vmem:[#allocation81_spill] sm:$0xff] %v15354_v15  ;;  %v15356_v17 = vpop.xlane.xlu0 %3548 }
 0x65d   : > { %17897 = vst [vmem:[#allocation141_spill] sm:$0xff] %v15356_v17  ;;  %v15378_v17 = vpop.eup %11144 }
 0x65e   : > { %4130 = vadd.xlane.f32.xlu1 %v15358_v52  ;;  %17906 = vst [vmem:[#allocation83_spill] sm:$0xff] %v15378_v17  ;;  %v15380_v15 = vpop.eup %11146 }
 0x65f   : > { %4128 = vadd.xlane.f32.xlu0 %v15360_v10  ;;  %v15364_v22 = vpop.xlane.xlu1 %3554  ;;  %17907 = vst [vmem:[#allocation30_spill] sm:$0xff] %v15380_v15  ;;  %v15388_v52 = vpop.eup %11148 }
 0x660   : > { %17900 = vst [vmem:[#allocation99_spill] sm:$0xff] %v15364_v22  ;;  %v15366_v16 = vpop.xlane.xlu0 %3580  ;;  %17910 = vst [vmem:[#allocation89_spill] sm:$0xff] %v15388_v52 }
 0x661   : > { %17901 = vst [vmem:[#allocation85_spill] sm:$0xff] %v15366_v16 }
 0x662   : > { %4158 = vadd.xlane.f32.xlu1 %v15368_v2 }
 0x663   : > { %4132 = vadd.xlane.f32.xlu0 %v15370_v0  ;;  %v15374_v3 = vpop.xlane.xlu1 %3586 }
 0x664   : > { %17904 = vst [vmem:[#allocation82_spill] sm:$0xff] %v15374_v3  ;;  %v15376_v43 = vpop.xlane.xlu0 %3544 }
 0x665   : > { %17905 = vst [vmem:[#allocation142_spill] sm:$0xff] %v15376_v43 }
 0x666   : > { %4162 = vadd.xlane.f32.xlu1 %v15378_v17 }
 0x667   : > { %4160 = vadd.xlane.f32.xlu0 %v15380_v15  ;;  %v15384_v22 = vpop.xlane.xlu1 %3550 }
 0x668   : > { %17908 = vst [vmem:[#allocation91_spill] sm:$0xff] %v15384_v22  ;;  %v15386_v16 = vpop.xlane.xlu0 %3576 }
 0x669   : > { %17909 = vst [vmem:[#allocation90_spill] sm:$0xff] %v15386_v16 }
 0x66b   : > { %4164 = vadd.xlane.f32.xlu0 %v15388_v52  ;;  %v15391_v0 = vpop.xlane.xlu1 %3582 }
 0x66c   : > { %17911 = vst [vmem:[#allocation146_spill] sm:$0xff] %v15391_v0  ;;  %v4075_v3 = vpop.xlane.xlu0 %4074  ;;  %v17916_v0 = vld [vmem:[#allocation135_spill] sm:$0xff] }
 0x66f   : > { %v4043_v43 = vpop.xlane.xlu1 %4042 }
 0x670   : > { %v15393_v2 = vpop.xlane.xlu0 %3556 }
 0x671   : > { %17912 = vst [vmem:[#allocation84_spill] sm:$0xff] %v15393_v2  ;;  %v3688_v2 = vsub.f32 %v17916_v0, %v15220_v59 }
 0x673   : > { %v4039_v32 = vpop.xlane.xlu1 %4038 }
 0x674   : > { %v15395_v31 = vpop.xlane.xlu0 %3588 }
 0x675   : > { %17913 = vst [vmem:[#allocation28_spill] sm:$0xff] %v15395_v31  ;;  %v17917_v31 = vld [vmem:[#allocation143_spill] sm:$0xff] }
 0x676   : > { %v3686_v10 = vsub.f32 %v17917_v31, %v15252_v57  ;;  %v17919_v57 = vld [vmem:[#allocation147_spill] sm:$0xff] }
 0x677   : > { %v4071_v17 = vpop.xlane.xlu1 %4070  ;;  %2172 = vrot.lane.b32.xlu1 %v17771_v45, %s12035_s18  ;;  %v3914_v45 = vmul.f32 1.442695, %v3688_v2  ;;  %v3702_v31 = vsub.f32 %v17919_v57, %v15264_v51 }
 0x678   : > { %v15399_v22 = vpop.xlane.xlu0 %3552 }
 0x679   : > { %17914 = vst [vmem:[#allocation92_spill] sm:$0xff] %v15399_v22  ;;  %v17918_v22 = vld [vmem:[#allocation148_spill] sm:$0xff] }
 0x67a   : > { %v3687_v5 = vsub.f32 %v17918_v22, %v15260_v13  ;;  %v17920_v13 = vld [vmem:[#allocation140_spill] sm:$0xff] }
 0x67b   : > { %v4045_v16 = vpop.xlane.xlu1 %4044 }
 0x67c   : > { %v15401_v20 = vpop.xlane.xlu0 %3584  ;;  %11150 = vrcp.f32 %v4045_v16  ;;  %v3910_v16 = vmul.f32 1.442695, %v3686_v10  ;;  %v3912_v6 = vmul.f32 1.442695, %v3687_v5  ;;  %v3942_v10 = vmul.f32 1.442695, %v3702_v31 }
 0x67d   : > { %17915 = vst [vmem:[#allocation93_spill] sm:$0xff] %v15401_v20  ;;  %11152 = vrcp.f32 %v4039_v32 }
 0x67e   : > { %11154 = vrcp.f32 %v4043_v43 }
 0x67f   : > { %v4077_v15 = vpop.xlane.xlu1 %4076 }
 0x680   : > { %v4051_v52 = vpop.xlane.xlu0 %4050 }
 0x681   : > { %2210 = vrot.lane.b32.xlu0 %v17744_v1, %s12036_s22 }
 0x683   : > { %v4041_v46 = vpop.xlane.xlu1 %4040 }
 0x684   : > { %11156 = vrcp.f32 %v4041_v46  ;;  %v4047_v20 = vpop.xlane.xlu0 %4046  ;;  %v3689_v46 = vsub.f32 %v17920_v13, %v15230_v60  ;;  %v17922_v60 = vld [vmem:[#allocation149_spill] sm:$0xff] }
 0x685   : > { %11158 = vrcp.f32 %v4077_v15 }
 0x686   : > { %11160 = vrcp.f32 %v4071_v17  ;;  %v17921_v17 = vld [vmem:[#allocation139_spill] sm:$0xff]  ;;  %v3916_v43 = vmul.f32 1.442695, %v3689_v46 }
 0x687   : > { %11162 = vrcp.f32 %v4075_v3  ;;  %v4073_v1 = vpop.xlane.xlu1 %4072 }
 0x688   : > { %11164 = vrcp.f32 %v4073_v1  ;;  %v4053_v59 = vpop.xlane.xlu0 %4052 }
 0x689   : > { %11166 = vpow2.f32 %v3914_v45  ;;  %v11151_v2 = vpop.eup %11150  ;;  %v3704_v45 = vsub.f32 %v17921_v17, %v15234_v49 }
 0x68a   : > { %11168 = vpow2.f32 %v3910_v16  ;;  %v11153_v15 = vpop.eup %11152  ;;  %v4393_v51 = vmul.f32 %v11151_v2, %v14959_v14  ;;  %v17923_v2 = vld [vmem:[#allocation144_spill] sm:$0xff] }
 0x68b   : > { %v4083_v0 = vpop.xlane.xlu1 %4082  ;;  %11170 = vpow2.f32 %v3912_v6  ;;  %v11155_v5 = vpop.eup %11154  ;;  %v3946_v31 = vmul.f32 1.442695, %v3704_v45  ;;  %v3705_v17 = vsub.f32 %v17923_v2, %v15246_v24 }
 0x68c   : > { %v4085_v32 = vpop.xlane.xlu0 %4084  ;;  %11172 = vrcp.f32 %v4051_v52  ;;  %v3703_v52 = vsub.f32 %v17922_v60, %v15275_v30 }
 0x68d   : > { %11174 = vrcp.f32 %v4053_v59 }
 0x68e   : > { %11176 = vrcp.f32 %v4047_v20  ;;  %v4390_v20 = vmul.f32 %v11153_v15, %v14929_v34 }
 0x68f   : > { %v4079_v3 = vpop.xlane.xlu1 %4078  ;;  %11178 = vrcp.f32 %v4083_v0  ;;  %v4392_v0 = vmul.f32 %v11155_v5, %v14912_v42 }
 0x690   : > { %v4049_v6 = vpop.xlane.xlu0 %4048 }
 0x691   : > { %v11157_v22 = vpop.eup %11156  ;;  %11180 = vrcp.f32 %v4049_v6  ;;  %v4503_v34 = vpack.c.bf16 %v4393_v51, %v4392_v0  ;;  %v3948_v6 = vmul.f32 1.442695, %v3705_v17  ;;  %v17928_v17 = vld [vmem:[#allocation70_spill] sm:$0xff] }
 0x692   : > { %v11159_v16 = vpop.eup %11158  ;;  %11182 = vrcp.f32 %v4085_v32  ;;  %v4391_v1 = vmul.f32 %v11157_v22, %v14980_v35  ;;  %v3944_v35 = vmul.f32 1.442695, %v3703_v52  ;;  %v17924_v22 = vld [vmem:[#allocation34_spill] sm:$0xff] }
 0x693   : > { %v11161_v59 = vpop.eup %11160  ;;  %11184 = vrcp.f32 %v4079_v3  ;;  %v4059_v49 = vpop.xlane.xlu1 %4058  ;;  %v4409_v30 = vmul.f32 %v11159_v16, %v14975_v37 }
 0x694   : > { %v11163_v57 = vpop.eup %11162  ;;  %11186 = vpow2.f32 %v3942_v10  ;;  %v4081_v13 = vpop.xlane.xlu0 %4080  ;;  %v4502_v46 = vpack.c.bf16 %v4391_v1, %v4390_v20  ;;  %v4406_v32 = vmul.f32 %v11161_v59, %v14944_v23  ;;  %v17926_v20 = vld [vmem:[#allocation27_spill] sm:$0xff] }
 0x695   : > { %v11165_v14 = vpop.eup %11164  ;;  %11188 = vrcp.f32 %v4081_v13  ;;  %v4408_v3 = vmul.f32 %v11163_v57, %v14897_v18  ;;  %v15438_v16 = vpop.f32.mrf.mxu1 }
 0x696   : > { %11190 = vpow2.f32 %v3916_v43  ;;  %10011 = vmatprep.mubr.bf16.mxu0 %v4502_v46  ;;  %v4407_v42 = vmul.f32 %v11165_v14, %v14987_v40  ;;  %v15428_v15 = vpop.eup %11166  ;;  %17925 = vst [vmem:[#allocation68_spill] sm:$0xff] %v15438_v16  ;;  %v17975_v16 = vld [vmem:[#allocation129_spill] sm:$0xff] }
 0x697   : > { %10012 = vmatmul.mubr.bf16.vlgmr.msra.gmra.mxu0 %v4503_v34  ;;  %v4091_v5 = vpop.xlane.xlu1 %4090  ;;  %v15431_v45 = vpop.eup %11168  ;;  %11192 = vpow2.f32 %v3946_v31  ;;  %v4511_v23 = vpack.c.bf16 %v4409_v30, %v4408_v3 }
 0x698   : > { %10060 = vmatpush3.bf16.msra.mxu0 %v17855_v12  ;;  %v4061_v37 = vpop.xlane.xlu0 %4060  ;;  %v4510_v24 = vpack.c.bf16 %v4407_v42, %v4406_v32  ;;  %v15434_v10 = vpop.eup %11170  ;;  %11194 = vpow2.f32 %v3944_v35 }
 0x699   : > { %10061 = vmatprep.subr.bf16.mxu0 %v17924_v22  ;;  %v11173_v40 = vpop.eup %11172  ;;  %11196 = vpow2.f32 %v3948_v6  ;;  %v15448_v46 = vpop.f32.mrf.mxu1 }
 0x69a   : > { %10043 = vmatprep.mubr.bf16.mxu1 %v4510_v24  ;;  %v11175_v43 = vpop.eup %11174  ;;  %11198 = vrcp.f32 %v4061_v37  ;;  %17927 = vst [vmem:[#allocation98_spill] sm:$0xff] %v15448_v46 }
 0x69b   : > { %v4055_v18 = vpop.xlane.xlu1 %4054  ;;  %4166 = vadd.xlane.f32.xlu1 %v15431_v45  ;;  %10044 = vmatmul.mubr.bf16.vlgmr.msra.gmra.mxu1 %v4511_v23  ;;  %v11177_v51 = vpop.eup %11176  ;;  %v4397_v59 = vmul.f32 %v11175_v43, %v14993_v29  ;;  %v4396_v29 = vmul.f32 %v11173_v40, %v14977_v21  ;;  %v17932_v23 = vld [vmem:[#allocation59_spill] sm:$0xff] }
 0x69c   : > { %10062 = vmatpush3.bf16.msra.mxu0 %v17924_v22  ;;  %10092 = vmatpush3.bf16.msra.mxu1 %v17855_v12  ;;  %v4093_v60 = vpop.xlane.xlu0 %4092  ;;  %v11179_v52 = vpop.eup %11178  ;;  %11200 = vrcp.f32 %v4055_v18  ;;  %v4394_v31 = vmul.f32 %v11177_v51, %v14997_v7 }
 0x69d   : > { %10063 = vmatprep.subr.bf16.mxu0 %v17926_v20  ;;  %10093 = vmatprep.subr.bf16.mxu1 %v17924_v22  ;;  %11202 = vrcp.f32 %v4059_v49  ;;  %v4505_v49 = vpack.c.bf16 %v4397_v59, %v4396_v29  ;;  %v4412_v30 = vmul.f32 %v11179_v52, %v15001_v47  ;;  %v15465_v3 = vpop.f32.mrf.mxu1 }
 0x69e   : > { %v11181_v1 = vpop.eup %11180  ;;  %17929 = vst [vmem:[#allocation94_spill] sm:$0xff] %v15465_v3 }
 0x69f   : > { %v11183_v0 = vpop.eup %11182  ;;  %v4087_v57 = vpop.xlane.xlu1 %4086  ;;  %4170 = vadd.xlane.f32.xlu1 %v15428_v15  ;;  %v4395_v12 = vmul.f32 %v11181_v1, %v15028_v55  ;;  %v17934_v1 = vld [vmem:[#allocation52_spill] sm:$0xff] }
 0x6a0   : > { %v11185_v13 = vpop.eup %11184  ;;  %10064 = vmatpush3.bf16.msra.mxu0 %v17926_v20  ;;  %4168 = vadd.xlane.f32.xlu0 %v15434_v10  ;;  %v4057_v14 = vpop.xlane.xlu0 %4056  ;;  %v4413_v42 = vmul.f32 %v11183_v0, %v15009_v50 }
 0x6a1   : > { %v15453_v2 = vpop.eup %11186  ;;  %10094 = vmatpush3.bf16.msra.mxu1 %v17924_v22  ;;  %11204 = vrcp.f32 %v4057_v14  ;;  %10065 = vmatprep.subr.bf16.mxu0 %v17928_v17  ;;  %v4504_v7 = vpack.c.bf16 %v4395_v12, %v4394_v31  ;;  %v4410_v35 = vmul.f32 %v11185_v13, %v15036_v19  ;;  %v17930_v19 = vld [vmem:[#allocation67_spill] sm:$0xff]  ;;  %v15477_v6 = vpop.f32.mrf.mxu1  ;;  %v17936_v14 = vld [vmem:[#allocation32_spill] sm:$0xff] }
 0x6a2   : > { %v11189_v55 = vpop.eup %11188  ;;  %11206 = vrcp.f32 %v4093_v60  ;;  %10095 = vmatprep.subr.bf16.mxu1 %v17926_v20  ;;  %17931 = vst [vmem:[#allocation66_spill] sm:$0xff] %v15477_v6 }
 0x6a3   : > { %v15459_v34 = vpop.eup %11190  ;;  %11208 = vrcp.f32 %v4087_v57  ;;  %10015 = vmatprep.mubr.bf16.mxu0 %v4504_v7  ;;  %v4067_v21 = vpop.xlane.xlu1 %4066  ;;  %4198 = vadd.xlane.f32.xlu1 %v15453_v2  ;;  %v4411_v32 = vmul.f32 %v11189_v55, %v15044_v48  ;;  %v17937_v55 = vld [vmem:[#allocation71_spill] sm:$0xff] }
 0x6a4   : > { %11210 = vrcp.f32 %v4091_v5  ;;  %10066 = vmatpush3.bf16.msra.mxu0 %v17928_v17  ;;  %4172 = vadd.xlane.f32.xlu0 %v15459_v34  ;;  %v4089_v47 = vpop.xlane.xlu0 %4088  ;;  %v15470_v24 = vpop.eup %11192  ;;  %v4513_v5 = vpack.c.bf16 %v4413_v42, %v4412_v30 }
 0x6a5   : > { %10016 = vmatmul.mubr.bf16.gmra.mxu0 %v4505_v49  ;;  %10096 = vmatpush3.bf16.msra.mxu1 %v17926_v20  ;;  %11212 = vrcp.f32 %v4089_v47  ;;  %v4512_v37 = vpack.c.bf16 %v4411_v32, %v4410_v35  ;;  %v15474_v48 = vpop.eup %11194  ;;  %v15484_v43 = vpop.f32.mrf.mxu1 }
 0x6a6   : > { %10067 = vmatprep.subr.bf16.mxu0 %v17930_v19  ;;  %10097 = vmatprep.subr.bf16.mxu1 %v17928_v17  ;;  %v15482_v40 = vpop.eup %11196  ;;  %17933 = vst [vmem:[#allocation100_spill] sm:$0xff] %v15484_v43 }
 0x6a7   : > { %10047 = vmatprep.mubr.bf16.mxu1 %v4512_v37  ;;  %v4099_v50 = vpop.xlane.xlu1 %4098  ;;  %4202 = vadd.xlane.f32.xlu1 %v15470_v24  ;;  %v11199_v18 = vpop.eup %11198  ;;  %v17940_v37 = vld [vmem:[#allocation62_spill] sm:$0xff] }
 0x6a8   : > { %10068 = vmatpush3.bf16.msra.mxu0 %v17930_v19  ;;  %4200 = vadd.xlane.f32.xlu0 %v15474_v48  ;;  %v4069_v22 = vpop.xlane.xlu0 %4068  ;;  %v15491_v0 = vpop.f32.mrf.mxu1  ;;  %v4401_v57 = vmul.f32 %v11199_v18, %v15069_v39 }
 0x6a9   : > { %10048 = vmatmul.mubr.bf16.gmra.mxu1 %v4513_v5  ;;  %10069 = vmatprep.subr.bf16.mxu0 %v17932_v23  ;;  %v11201_v60 = vpop.eup %11200  ;;  %17935 = vst [vmem:[#allocation101_spill] sm:$0xff] %v15491_v0  ;;  %11214 = vrcp.f32 %v4069_v22  ;;  %v17941_v5 = vld [vmem:[#allocation31_spill] sm:$0xff] }
 0x6aa   : > { %10098 = vmatpush3.bf16.msra.mxu1 %v17928_v17  ;;  %v11203_v20 = vpop.eup %11202  ;;  %v4398_v13 = vmul.f32 %v11201_v60, %v15083_v56  ;;  %v15500_v32 = vpop.f32.mrf.mxu1  ;;  %v17939_v56 = vld [vmem:[#allocation65_spill] sm:$0xff] }
 0x6ab   : > { %10099 = vmatprep.subr.bf16.mxu1 %v17930_v19  ;;  %v4063_v51 = vpop.xlane.xlu1 %4062  ;;  %v4400_v49 = vmul.f32 %v11203_v20, %v17937_v55  ;;  %17938 = vst [vmem:[#allocation56_spill] sm:$0xff] %v15500_v32 }
 0x6ac   : > { %10070 = vmatpush3.bf16.msra.mxu0 %v17932_v23  ;;  %4204 = vadd.xlane.f32.xlu0 %v15482_v40  ;;  %v4101_v52 = vpop.xlane.xlu0 %4100  ;;  %11216 = vrcp.f32 %v4063_v51  ;;  %v17942_v51 = vld [vmem:[#allocation38_spill] sm:$0xff] }
 0x6ad   : > { %10071 = vmatprep.subr.bf16.mxu0 %v17934_v1  ;;  %11218 = vrcp.f32 %v4067_v21  ;;  %v4507_v42 = vpack.c.bf16 %v4401_v57, %v4400_v49  ;;  %v17948_v49 = vld [vmem:[#allocation64_spill] sm:$0xff] }
 0x6ae   : > { %v11205_v59 = vpop.eup %11204  ;;  %10100 = vmatpush3.bf16.msra.mxu1 %v17930_v19 }
 0x6af   : > { %v11207_v31 = vpop.eup %11206  ;;  %10101 = vmatprep.subr.bf16.mxu1 %v17932_v23  ;;  %v4095_v12 = vpop.xlane.xlu1 %4094  ;;  %v4399_v29 = vmul.f32 %v11205_v59, %v17936_v14 }
 0x6b0   : > { %v11209_v17 = vpop.eup %11208  ;;  %10072 = vmatpush3.bf16.msra.mxu0 %v17934_v1  ;;  %v4065_v7 = vpop.xlane.xlu0 %4064  ;;  %v4417_v47 = vmul.f32 %v11207_v31, %v17939_v56  ;;  %v17944_v31 = vld [vmem:[#allocation58_spill] sm:$0xff] }
 0x6b1   : > { %v11211_v30 = vpop.eup %11210  ;;  %11220 = vrcp.f32 %v4065_v7  ;;  %v4506_v35 = vpack.c.bf16 %v4399_v29, %v4398_v13  ;;  %v4414_v19 = vmul.f32 %v11209_v17, %v17940_v37  ;;  %v17946_v17 = vld [vmem:[#allocation36_spill] sm:$0xff] }
 0x6b2   : > { %v11213_v39 = vpop.eup %11212  ;;  %11222 = vrcp.f32 %v4101_v52  ;;  %10102 = vmatpush3.bf16.msra.mxu1 %v17932_v23  ;;  %v4416_v60 = vmul.f32 %v11211_v30, %v17942_v51  ;;  %v15510_v52 = vpop.f32.mrf.mxu1 }
 0x6b3   : > { %11224 = vrcp.f32 %v4095_v12  ;;  %10103 = vmatprep.subr.bf16.mxu1 %v17934_v1  ;;  %10019 = vmatprep.mubr.bf16.mxu0 %v4506_v35  ;;  %v15505_v21 = vpop.xlane.xlu1 %4106  ;;  %v4415_v22 = vmul.f32 %v11213_v39, %v17941_v5  ;;  %17943 = vst [vmem:[#allocation115_spill] sm:$0xff] %v15510_v52  ;;  %v17950_v5 = vld [vmem:[#allocation33_spill] sm:$0xff] }
 0x6b4   : > { %11226 = vrcp.f32 %v4099_v50  ;;  %10020 = vmatmul.mubr.bf16.gmra.mxu0 %v4507_v42  ;;  %v4097_v18 = vpop.xlane.xlu0 %4096  ;;  %v4515_v20 = vpack.c.bf16 %v4417_v47, %v4416_v60  ;;  %v15519_v50 = vpop.f32.mrf.mxu1  ;;  %v17949_v42 = vld [vmem:[#allocation73_spill] sm:$0xff] }
 0x6b5   : > { %11228 = vrcp.f32 %v4097_v18  ;;  %v4514_v23 = vpack.c.bf16 %v4415_v22, %v4414_v19  ;;  %17945 = vst [vmem:[#allocation118_spill] sm:$0xff] %v15519_v50  ;;  %v17951_v22 = vld [vmem:[#allocation69_spill] sm:$0xff] }
 0x6b6   : > { %10104 = vmatpush3.bf16.msra.mxu1 %v17934_v1  ;;  %v11215_v12 = vpop.eup %11214  ;;  %v15525_v55 = vpop.f32.mrf.mxu1  ;;  %v17969_v50 = vld [vmem:[#allocation105_spill] sm:$0xff] }
 0x6b7   : > { %10051 = vmatprep.mubr.bf16.mxu1 %v4514_v23  ;;  %v15513_v59 = vpop.xlane.xlu1 %4138  ;;  %17947 = vst [vmem:[#allocation119_spill] sm:$0xff] %v15525_v55  ;;  %v4405_v30 = vmul.f32 %v11215_v12, %v17948_v49  ;;  %v17955_v49 = vld [vmem:[#allocation41_spill] sm:$0xff]  ;;  %v17972_v55 = vld [vmem:[#allocation74_spill] sm:$0xff] }
 0x6b8   : > { %10052 = vmatmul.mubr.bf16.gmra.mxu1 %v4515_v20  ;;  %v15515_v57 = vpop.xlane.xlu0 %4108  ;;  %2208 = vrot.lane.b32.xlu1 %v17944_v31, %s12036_s22  ;;  %v15533_v20 = vpop.f32.mrf.mxu1  ;;  %v17953_v31 = vld [vmem:[#allocation46_spill] sm:$0xff] }
 0x6b9   : > { %v11217_v14 = vpop.eup %11216  ;;  %17952 = vst [vmem:[#allocation104_spill] sm:$0xff] %v15533_v20 }
 0x6ba   : > { %v11219_v1 = vpop.eup %11218  ;;  %v4402_v56 = vmul.f32 %v11217_v14, %v17949_v42 }
 0x6bb   : > { %v4103_v13 = vpop.xlane.xlu1 %4102  ;;  %v4404_v18 = vmul.f32 %v11219_v1, %v17951_v22 }
 0x6bc   : > { %v15521_v29 = vpop.xlane.xlu0 %4140  ;;  %2204 = vrot.lane.b32.xlu1 %v17946_v17, %s12036_s22  ;;  %11230 = vrcp.f32 %v4103_v13  ;;  %v17954_v13 = vld [vmem:[#allocation29_spill] sm:$0xff] }
 0x6bd   : > { %v4509_v12 = vpack.c.bf16 %v4405_v30, %v4404_v18 }
 0x6be   : > { %v11221_v7 = vpop.eup %11220 }
 0x6bf   : > { %v11223_v35 = vpop.eup %11222  ;;  %v4135_v39 = vpop.xlane.xlu1 %4134  ;;  %v4403_v47 = vmul.f32 %v11221_v7, %v15173_v36 }
 0x6c0   : > { %v11225_v37 = vpop.eup %11224  ;;  %v4105_v19 = vpop.xlane.xlu0 %4104  ;;  %2202 = vrot.lane.b32.xlu1 %v17950_v5, %s12036_s22  ;;  %v4421_v14 = vmul.f32 %v11223_v35, %v17954_v13 }
 0x6c1   : > { %v11227_v51 = vpop.eup %11226  ;;  %11232 = vrcp.f32 %v4105_v19  ;;  %v4508_v60 = vpack.c.bf16 %v4403_v47, %v4402_v56  ;;  %v4418_v17 = vmul.f32 %v11225_v37, %v15168_v11  ;;  %v15543_v47 = vpop.f32.mrf.mxu1 }
 0x6c2   : > { %v11229_v23 = vpop.eup %11228  ;;  %2206 = vrot.lane.b32.xlu0 %v17953_v31, %s12036_s22  ;;  %11234 = vrcp.f32 %v4135_v39  ;;  %v4420_v42 = vmul.f32 %v11227_v51, %v17955_v49  ;;  %17956 = vst [vmem:[#allocation113_spill] sm:$0xff] %v15543_v47 }
 0x6c3   : > { %10023 = vmatprep.mubr.bf16.mxu0 %v4508_v60  ;;  %v15538_v36 = vpop.xlane.xlu1 %4114  ;;  %v4419_v1 = vmul.f32 %v11229_v23, %v15191_v33  ;;  %v17959_v33 = vld [vmem:[#allocation156_spill] sm:$0xff]  ;;  %v17961_v23 = vld [vmem:[#allocation150_spill] sm:$0xff] }
 0x6c4   : > { %10024 = vmatmul.mubr.bf16.gmra.mxu0 %v4509_v12  ;;  %v4137_v7 = vpop.xlane.xlu0 %4136  ;;  %v4517_v19 = vpack.c.bf16 %v4421_v14, %v4420_v42  ;;  %v3691_v37 = vsub.f32 %v17959_v33, %v15318_v4  ;;  %v3692_v31 = vsub.f32 %v17961_v23, %v15280_v38  ;;  %v17962_v12 = vld [vmem:[#allocation153_spill] sm:$0xff]  ;;  %v17965_v33 = vld [vmem:[#allocation152_spill] sm:$0xff] }
 0x6c5   : > { %11236 = vrcp.f32 %v4137_v7  ;;  %v4516_v56 = vpack.c.bf16 %v4419_v1, %v4418_v17  ;;  %v3690_v13 = vsub.f32 %v17962_v12, %v15308_v27  ;;  %v17964_v7 = vld [vmem:[#allocation96_spill] sm:$0xff]  ;;  %v17966_v12 = vld [vmem:[#allocation155_spill] sm:$0xff] }
 0x6c6   : > { %v3920_v17 = vmul.f32 1.442695, %v3691_v37  ;;  %v3706_v37 = vsub.f32 %v17966_v12, %v15322_v58  ;;  %v17971_v58 = vld [vmem:[#allocation157_spill] sm:$0xff] }
 0x6c7   : > { %10055 = vmatprep.mubr.bf16.mxu1 %v4516_v56  ;;  %v15545_v30 = vpop.xlane.xlu1 %4146  ;;  %v15547_v35 = vpop.f32.mrf.mxu1  ;;  %v3918_v27 = vmul.f32 1.442695, %v3690_v13 }
 0x6c8   : > { %17957 = vst [vmem:[#allocation102_spill] sm:$0xff] %v15547_v35  ;;  %10056 = vmatmul.mubr.bf16.gmra.mxu1 %v4517_v19  ;;  %v15549_v39 = vpop.xlane.xlu0 %4116  ;;  %v3693_v35 = vsub.f32 %v17965_v33, %v15290_v28  ;;  %11238 = vpow2.f32 %v3920_v17  ;;  %v17970_v28 = vld [vmem:[#allocation154_spill] sm:$0xff]  ;;  %v3707_v33 = vsub.f32 %v17971_v58, %v15332_v8 }
 0x6c9   : > { %v15551_v11 = vpop.f32.mrf.mxu1  ;;  %v11231_v22 = vpop.eup %11230  ;;  %11240 = vpow2.f32 %v3918_v27 }
 0x6ca   : > { %17958 = vst [vmem:[#allocation107_spill] sm:$0xff] %v15551_v11  ;;  %v4422_v4 = vmul.f32 %v11231_v22, %v15210_v61  ;;  %v17967_v61 = vld [vmem:[#allocation151_spill] sm:$0xff] }
 0x6cb   : > { %v15555_v5 = vpop.xlane.xlu1 %4110  ;;  %v15557_v18 = vpop.f32.mrf.mxu1  ;;  %v3708_v22 = vsub.f32 %v17967_v61, %v15294_v44  ;;  %v3950_v44 = vmul.f32 1.442695, %v3706_v37 }
 0x6cc   : > { %17960 = vst [vmem:[#allocation50_spill] sm:$0xff] %v15557_v18  ;;  %v15559_v51 = vpop.xlane.xlu0 %4148  ;;  %v3922_v18 = vmul.f32 1.442695, %v3692_v31 }
 0x6cd   : > { %v15565_v14 = vpop.f32.mrf.mxu1 }
 0x6ce   : > { %v11233_v60 = vpop.eup %11232  ;;  %17963 = vst [vmem:[#allocation106_spill] sm:$0xff] %v15565_v14  ;;  %11242 = vpow2.f32 %v3922_v18 }
 0x6cf   : > { %v15567_v1 = vpop.xlane.xlu1 %4142  ;;  %v4423_v49 = vmul.f32 %v11233_v60, %v17964_v7  ;;  %v11235_v42 = vpop.eup %11234  ;;  %v17968_v7 = vld [vmem:[#allocation75_spill] sm:$0xff] }
 0x6d0   : > { %v15571_v56 = vpop.f32.mrf.mxu1  ;;  %v4113_v19 = vpop.xlane.xlu0 %4112  ;;  %v4438_v14 = vmul.f32 %v11235_v42, %v17968_v7 }
 0x6d1   : > { %v4518_v38 = vpack.c.bf16 %v4423_v49, %v4422_v4  ;;  %v3709_v4 = vsub.f32 %v17970_v28, %v15304_v41  ;;  %v3924_v49 = vmul.f32 1.442695, %v3693_v35  ;;  %v3952_v35 = vmul.f32 1.442695, %v3707_v33 }
 0x6d2   : > { %v11237_v23 = vpop.eup %11236  ;;  %v15577_v11 = vpop.f32.mrf.mxu1 }
 0x6d3   : > { %10075 = vmatprep.mubr.bf16.mxu0 %v4518_v38  ;;  %v4123_v60 = vpop.xlane.xlu1 %4122  ;;  %v4439_v20 = vmul.f32 %v11237_v23, %v17969_v50  ;;  %v3954_v38 = vmul.f32 1.442695, %v3708_v22  ;;  %v3956_v50 = vmul.f32 1.442695, %v3709_v4  ;;  %11244 = vpow2.f32 %v3924_v49 }
 0x6d4   : > { %v15585_v31 = vpop.f32.mrf.mxu1  ;;  %v4145_v13 = vpop.xlane.xlu0 %4144  ;;  %11246 = vpow2.f32 %v3950_v44 }
 0x6d5   : > { %v4526_v12 = vpack.c.bf16 %v4439_v20, %v4438_v14  ;;  %11248 = vpow2.f32 %v3954_v38  ;;  %v15605_v37 = vpop.eup %11238 }
 0x6d6   : > { %v15589_v17 = vpop.f32.mrf.mxu1  ;;  %11250 = vpow2.f32 %v3956_v50  ;;  %v15611_v7 = vpop.eup %11240 }
 0x6d7   : > { %10107 = vmatprep.mubr.bf16.mxu1 %v4526_v12  ;;  %v15591_v42 = vpop.xlane.xlu1 %4154  ;;  %11252 = vpow2.f32 %v3952_v35 }
 0x6d8   : > { %v15593_v23 = vpop.f32.mrf.mxu1  ;;  %v15595_v41 = vpop.xlane.xlu0 %4124  ;;  %11254 = vrcp.f32 %v15505_v21 }
 0x6d9   : > { %11256 = vrcp.f32 %v15513_v59 }
 0x6da   : > { %v15597_v61 = vpop.f32.mrf.mxu1  ;;  %11258 = vrcp.f32 %v15515_v57 }
 0x6db   : > { %v4119_v8 = vpop.xlane.xlu1 %4118  ;;  %11260 = vrcp.f32 %v15521_v29  ;;  %v15613_v4 = vpop.eup %11242 }
 0x6dc   : > { %v15599_v20 = vpop.f32.mrf.mxu1  ;;  %v4157_v18 = vpop.xlane.xlu0 %4156  ;;  %11262 = vrcp.f32 %v15538_v36 }
 0x6dd   : > { %11264 = vrcp.f32 %v4113_v19 }
 0x6de   : > { %11266 = vrcp.f32 %v4145_v13  ;;  %v15621_v57 = vpop.f32.mrf.mxu1 }
 0x6df   : > { %v4151_v27 = vpop.xlane.xlu1 %4150  ;;  %11268 = vrcp.f32 %v15555_v5 }
 0x6e0   : > { %v4121_v22 = vpop.xlane.xlu0 %4120  ;;  %v15618_v59 = vpop.eup %11244  ;;  %11270 = vrcp.f32 %v15567_v1 }
 0x6e1   : > { %4176 = vadd.xlane.f32.xlu0 %v15605_v37  ;;  %v15623_v29 = vpop.eup %11246  ;;  %11272 = vrcp.f32 %v15545_v30 }
 0x6e2   : > { %v15628_v19 = vpop.eup %11248  ;;  %11274 = vrcp.f32 %v15549_v39 }
 0x6e3   : > { %v4127_v28 = vpop.xlane.xlu1 %4126  ;;  %v15634_v49 = vpop.eup %11250  ;;  %11276 = vrcp.f32 %v15559_v51  ;;  %v17973_v51 = vld [vmem:[#allocation126_spill] sm:$0xff] }
 0x6e4   : > { %v4153_v21 = vpop.xlane.xlu0 %4152  ;;  %4174 = vadd.xlane.f32.xlu1 %v15611_v7  ;;  %v15638_v1 = vpop.eup %11252  ;;  %11278 = vrcp.f32 %v4123_v60 }
 0x6e5   : > { %4178 = vadd.xlane.f32.xlu0 %v15613_v4  ;;  %v11255_v58 = vpop.eup %11254  ;;  %11280 = vrcp.f32 %v4121_v22 }
 0x6e6   : > { %v11257_v39 = vpop.eup %11256  ;;  %11282 = vrcp.f32 %v4153_v21 }
 0x6e7   : > { %v15626_v36 = vpop.xlane.xlu1 %4130  ;;  %v15631_v13 = vpop.f32.mrf.mxu1  ;;  %11284 = vrcp.f32 %v4119_v8  ;;  %v4440_v3 = vmul.f32 %v11257_v39, %v17975_v16 }
 0x6e8   : > { %v4129_v5 = vpop.xlane.xlu0 %4128  ;;  %4206 = vadd.xlane.f32.xlu1 %v15623_v29  ;;  %v11259_v38 = vpop.eup %11258  ;;  %11286 = vrcp.f32 %v4151_v27  ;;  %v17974_v27 = vld [vmem:[#allocation72_spill] sm:$0xff] }
 0x6e9   : > { %4180 = vadd.xlane.f32.xlu0 %v15618_v59  ;;  %v15640_v30 = vpop.f32.mrf.mxu1  ;;  %v11261_v60 = vpop.eup %11260  ;;  %11288 = vrcp.f32 %v15591_v42  ;;  %v4425_v47 = vmul.f32 %v11259_v38, %v17972_v55  ;;  %v4424_v0 = vmul.f32 %v11255_v58, %v17974_v27 }
 0x6ea   : > { %v11263_v50 = vpop.eup %11262  ;;  %11290 = vrcp.f32 %v15595_v41  ;;  %v4441_v43 = vmul.f32 %v11261_v60, %v17973_v51 }
 0x6eb   : > { %v4159_v33 = vpop.xlane.xlu1 %4158  ;;  %v15642_v12 = vpop.f32.mrf.mxu1  ;;  %11292 = vrcp.f32 %v4157_v18  ;;  %v4519_v38 = vpack.c.bf16 %v4425_v47, %v4424_v0  ;;  %v17978_v47 = vld [vmem:[#allocation103_spill] sm:$0xff] }
 0x6ec   : > { %v4133_v44 = vpop.xlane.xlu0 %4132  ;;  %4210 = vadd.xlane.f32.xlu1 %v15628_v19  ;;  %v11265_v22 = vpop.eup %11264  ;;  %11294 = vrcp.f32 %v4129_v5  ;;  %v4527_v58 = vpack.c.bf16 %v4441_v43, %v4440_v3  ;;  %v17976_v3 = vld [vmem:[#allocation88_spill] sm:$0xff] }
 0x6ed   : > { %4208 = vadd.xlane.f32.xlu0 %v15638_v1  ;;  %v11267_v14 = vpop.eup %11266  ;;  %v4427_v18 = vmul.f32 %v11265_v22, %v15286_v53 }
 0x6ee   : > { %v11269_v8 = vpop.eup %11268  ;;  %v4443_v46 = vmul.f32 %v11267_v14, %v15300_v9  ;;  %v4428_v14 = vmul.f32 %v11263_v50, %v17978_v47 }
 0x6ef   : > { %v4163_v35 = vpop.xlane.xlu1 %4162  ;;  %v11271_v32 = vpop.eup %11270  ;;  %v4426_v51 = vmul.f32 %v11269_v8, %v15254_v62  ;;  %v17977_v62 = vld [vmem:[#allocation77_spill] sm:$0xff] }
 0x6f0   : > { %v4161_v21 = vpop.xlane.xlu0 %4160  ;;  %v11273_v52 = vpop.eup %11272  ;;  %v4442_v60 = vmul.f32 %v11271_v32, %v15282_v54 }
 0x6f1   : > { %4212 = vadd.xlane.f32.xlu0 %v15634_v49  ;;  %11296 = vrcp.f32 %v4161_v21  ;;  %v11275_v55 = vpop.eup %11274  ;;  %v4520_v21 = vpack.c.bf16 %v4427_v18, %v4426_v51 }
 0x6f2   : > { %11298 = vrcp.f32 %v4127_v28  ;;  %v11277_v5 = vpop.eup %11276  ;;  %v4528_v53 = vpack.c.bf16 %v4443_v46, %v4442_v60  ;;  %v4429_v43 = vmul.f32 %v11275_v55, %v17976_v3  ;;  %v17983_v60 = vld [vmem:[#allocation76_spill] sm:$0xff]  ;;  %v17987_v3 = vld [vmem:[#allocation95_spill] sm:$0xff] }
 0x6f3   : > { %v2173_v42 = vpop.permute.xlu1 %2172  ;;  %11300 = vrcp.f32 %v4159_v33  ;;  %v11279_v16 = vpop.eup %11278  ;;  %v4445_v0 = vmul.f32 %v11277_v5, %v17977_v62  ;;  %v17979_v33 = vld [vmem:[#allocation132_spill] sm:$0xff]  ;;  %v17981_v5 = vld [vmem:[#allocation79_spill] sm:$0xff]  ;;  %v17988_v62 = vld [vmem:[#allocation130_spill] sm:$0xff] }
 0x6f4   : > { %v4165_v41 = vpop.xlane.xlu0 %4164  ;;  %10073 = vmatprep.subr.bf16.mxu0 %v2173_v42  ;;  %10105 = vmatprep.subr.bf16.mxu1 %v2173_v42  ;;  %v11281_v28 = vpop.eup %11280  ;;  %11302 = vrcp.f32 %v4133_v44  ;;  %v4444_v44 = vmul.f32 %v11273_v52, %v17979_v33 }
 0x6f5   : > { %10074 = vmatpush3.bf16.msra.mxu0 %v2173_v42  ;;  %10106 = vmatpush3.bf16.msra.mxu1 %v2173_v42  ;;  %v11283_v22 = vpop.eup %11282  ;;  %11304 = vrcp.f32 %v4165_v41  ;;  %v4431_v32 = vmul.f32 %v11281_v28, %v15340_v25  ;;  %v17980_v42 = vld [vmem:[#allocation26_spill] sm:$0xff]  ;;  %v17984_v28 = vld [vmem:[#allocation87_spill] sm:$0xff] }
 0x6f6   : > { %v11285_v9 = vpop.eup %11284  ;;  %11306 = vrcp.f32 %v15626_v36  ;;  %v4447_v8 = vmul.f32 %v11283_v22, %v15350_v63  ;;  %v4521_v36 = vpack.c.bf16 %v4429_v43, %v4428_v14  ;;  %v4529_v55 = vpack.c.bf16 %v4445_v0, %v4444_v44  ;;  %v17982_v63 = vld [vmem:[#allocation24_spill] sm:$0xff]  ;;  %v17986_v22 = vld [vmem:[#allocation30_spill] sm:$0xff]  ;;  %v17990_v14 = vld [vmem:[#allocation97_spill] sm:$0xff] }
 0x6f7   : > { %v11287_v54 = vpop.eup %11286  ;;  %11308 = vrcp.f32 %v4163_v35  ;;  %v4430_v41 = vmul.f32 %v11285_v9, %v15324_v26  ;;  %v4432_v43 = vmul.f32 %v11279_v16, %v17987_v3  ;;  %v18001_v3 = vld [vmem:[#allocation53_spill] sm:$0xff] }
 0x6f8   : > { %v2211_v39 = vpop.permute.xlu0 %2210  ;;  %10076 = vmatmul.mubr.bf16.vlgmr.msra.gmra.mxu0 %v4519_v38  ;;  %10108 = vmatmul.mubr.bf16.vlgmr.msra.gmra.mxu1 %v4527_v58  ;;  %v11289_v46 = vpop.eup %11288  ;;  %v4446_v38 = vmul.f32 %v11287_v54, %v17981_v5 }
 0x6f9   : > { %10123 = vmatprep.subr.bf16.mxu0 %v2211_v39  ;;  %10155 = vmatprep.subr.bf16.mxu1 %v2211_v39  ;;  %v11291_v27 = vpop.eup %11290  ;;  %v4522_v58 = vpack.c.bf16 %v4431_v32, %v4430_v41  ;;  %v4448_v0 = vmul.f32 %v11289_v46, %v17988_v62  ;;  %v15678_v54 = vpop.f32.mrf.mxu1  ;;  %v17989_v32 = vld [vmem:[#allocation138_spill] sm:$0xff]  ;;  %v17991_v41 = vld [vmem:[#allocation25_spill] sm:$0xff] }
 0x6fa   : > { %10079 = vmatprep.mubr.bf16.mxu0 %v4520_v21  ;;  %10111 = vmatprep.mubr.bf16.mxu1 %v4528_v53  ;;  %v11293_v18 = vpop.eup %11292  ;;  %v4530_v50 = vpack.c.bf16 %v4447_v8, %v4446_v38  ;;  %v4433_v26 = vmul.f32 %v11291_v27, %v17983_v60  ;;  %v17985_v21 = vld [vmem:[#allocation86_spill] sm:$0xff]  ;;  %v17993_v38 = vld [vmem:[#allocation145_spill] sm:$0xff]  ;;  %v17997_v60 = vld [vmem:[#allocation83_spill] sm:$0xff] }
 0x6fb   : > { %10124 = vmatpush3.bf16.msra.mxu0 %v2211_v39  ;;  %10156 = vmatpush3.bf16.msra.mxu1 %v2211_v39  ;;  %v11295_v25 = vpop.eup %11294  ;;  %v4449_v39 = vmul.f32 %v11293_v18, %v17984_v28 }
 0x6fc   : > { %v4435_v53 = vmul.f32 %v11295_v25, %v17985_v21  ;;  %v4523_v8 = vpack.c.bf16 %v4433_v26, %v4432_v43  ;;  %v17998_v21 = vld [vmem:[#allocation81_spill] sm:$0xff] }
 0x6fd   : > { %2200 = vrot.lane.b32.xlu1 %v17980_v42, %s12036_s22  ;;  %v4531_v42 = vpack.c.bf16 %v4449_v39, %v4448_v0  ;;  %v18002_v0 = vld [vmem:[#allocation141_spill] sm:$0xff] }
 0x6fe   : > { %v11297_v35 = vpop.eup %11296 }
 0x6ff   : > { %v11299_v52 = vpop.eup %11298  ;;  %v4451_v9 = vmul.f32 %v11297_v35, %v17986_v22 }
 0x700   : > { %10080 = vmatmul.mubr.bf16.gmra.mxu0 %v4521_v36  ;;  %10112 = vmatmul.mubr.bf16.gmra.mxu1 %v4529_v55  ;;  %v11301_v51 = vpop.eup %11300  ;;  %v4434_v47 = vmul.f32 %v11299_v52, %v17989_v32  ;;  %v18003_v32 = vld [vmem:[#allocation45_spill] sm:$0xff] }
 0x701   : > { %2196 = vrot.lane.b32.xlu1 %v17982_v63, %s12036_s22  ;;  %10083 = vmatprep.mubr.bf16.mxu0 %v4522_v58  ;;  %v4450_v33 = vmul.f32 %v11301_v51, %v17990_v14  ;;  %v11303_v44 = vpop.eup %11302  ;;  %v17994_v58 = vld [vmem:[#allocation89_spill] sm:$0xff]  ;;  %v17996_v63 = vld [vmem:[#allocation80_spill] sm:$0xff]  ;;  %v18004_v14 = vld [vmem:[#allocation134_spill] sm:$0xff] }
 0x702   : > { %10115 = vmatprep.mubr.bf16.mxu1 %v4530_v50  ;;  %v11305_v27 = vpop.eup %11304  ;;  %v4524_v36 = vpack.c.bf16 %v4435_v53, %v4434_v47  ;;  %v4437_v25 = vmul.f32 %v11303_v44, %v17993_v38  ;;  %v17999_v53 = vld [vmem:[#allocation54_spill] sm:$0xff]  ;;  %v3697_v47 = vsub.f32 %v18003_v32, %v18002_v0  ;;  %v18018_v32 = vld [vmem:[#allocation84_spill] sm:$0xff] }
 0x703   : > { %v4532_v55 = vpack.c.bf16 %v4451_v9, %v4450_v33  ;;  %v11307_v16 = vpop.eup %11306  ;;  %v4453_v35 = vmul.f32 %v11305_v27, %v17994_v58  ;;  %v3694_v22 = vsub.f32 %v17999_v53, %v17998_v21  ;;  %v18000_v9 = vld [vmem:[#allocation142_spill] sm:$0xff]  ;;  %v18011_v58 = vld [vmem:[#allocation51_spill] sm:$0xff]  ;;  %v18015_v21 = vld [vmem:[#allocation61_spill] sm:$0xff] }
 0x704   : > { %v11309_v46 = vpop.eup %11308  ;;  %v4436_v51 = vmul.f32 %v11307_v16, %v17996_v63  ;;  %v3695_v43 = vsub.f32 %v18001_v3, %v18000_v9  ;;  %v18005_v33 = vld [vmem:[#allocation158_spill] sm:$0xff]  ;;  %v18016_v9 = vld [vmem:[#allocation92_spill] sm:$0xff]  ;;  %v18017_v3 = vld [vmem:[#allocation55_spill] sm:$0xff] }
 0x705   : > { %v4452_v26 = vmul.f32 %v11309_v46, %v17997_v60  ;;  %v3926_v62 = vmul.f32 1.442695, %v3694_v22  ;;  %v3696_v44 = vsub.f32 %v18005_v33, %v18004_v14  ;;  %v18006_v27 = vld [vmem:[#allocation90_spill] sm:$0xff]  ;;  %v18009_v46 = vld [vmem:[#allocation160_spill] sm:$0xff]  ;;  %v18013_v60 = vld [vmem:[#allocation159_spill] sm:$0xff] }
 0x706   : > { %v4525_v28 = vpack.c.bf16 %v4437_v25, %v4436_v51  ;;  %v18008_v16 = vld [vmem:[#allocation78_spill] sm:$0xff]  ;;  %v18010_v25 = vld [vmem:[#allocation85_spill] sm:$0xff]  ;;  %v18012_v51 = vld [vmem:[#allocation136_spill] sm:$0xff] }
 0x707   : > { %2198 = vrot.lane.b32.xlu0 %v17991_v41, %s12036_s22  ;;  %v15684_v18 = vpop.f32.mrf.mxu1  ;;  %v4533_v39 = vpack.c.bf16 %v4453_v35, %v4452_v26  ;;  %11310 = vpow2.f32 %v3926_v62  ;;  %v18007_v41 = vld [vmem:[#allocation162_spill] sm:$0xff]  ;;  %v3710_v38 = vsub.f32 %v18009_v46, %v18008_v16  ;;  %v3713_v35 = vsub.f32 %v18011_v58, %v18010_v25  ;;  %v18023_v16 = vld [vmem:[#allocation47_spill] sm:$0xff]  ;;  %v18024_v25 = vld [vmem:[#allocation93_spill] sm:$0xff] }
 0x708   : > { %17992 = vst [vmem:[#allocation108_spill] sm:$0xff] %v15684_v18  ;;  %10084 = vmatmul.mubr.bf16.gmra.mxu0 %v4523_v8  ;;  %10116 = vmatmul.mubr.bf16.gmra.mxu1 %v4531_v42  ;;  %v3928_v8 = vmul.f32 1.442695, %v3695_v43  ;;  %v3932_v42 = vmul.f32 1.442695, %v3697_v47  ;;  %v3712_v26 = vsub.f32 %v18013_v60, %v18012_v51  ;;  %v3699_v43 = vsub.f32 %v18017_v3, %v18016_v9  ;;  %v18019_v47 = vld [vmem:[#allocation49_spill] sm:$0xff] }
 0x709   : > { %v15686_v5 = vpop.f32.mrf.mxu1  ;;  %10087 = vmatprep.mubr.bf16.mxu0 %v4524_v36  ;;  %10119 = vmatprep.mubr.bf16.mxu1 %v4532_v55  ;;  %v3711_v36 = vsub.f32 %v18007_v41, %v18006_v27  ;;  %v3930_v55 = vmul.f32 1.442695, %v3696_v44  ;;  %v3964_v22 = vmul.f32 1.442695, %v3713_v35  ;;  %v3701_v14 = vsub.f32 %v18019_v47, %v18018_v32  ;;  %v18025_v58 = vld [vmem:[#allocation57_spill] sm:$0xff]  ;;  %v18028_v9 = vld [vmem:[#allocation28_spill] sm:$0xff] }
 0x70a   : > { %11312 = vpow2.f32 %v3928_v8  ;;  %v3962_v62 = vmul.f32 1.442695, %v3712_v26  ;;  %v3936_v33 = vmul.f32 1.442695, %v3699_v43  ;;  %v18020_v8 = vld [vmem:[#allocation99_spill] sm:$0xff]  ;;  %v3715_v35 = vsub.f32 %v18025_v58, %v18024_v25  ;;  %v18029_v3 = vld [vmem:[#allocation60_spill] sm:$0xff] }
 0x70b   : > { %v15690_v50 = vpop.f32.mrf.mxu1  ;;  %11314 = vpow2.f32 %v3932_v42  ;;  %v3960_v63 = vmul.f32 1.442695, %v3711_v36  ;;  %v18021_v42 = vld [vmem:[#allocation63_spill] sm:$0xff]  ;;  %v3717_v43 = vsub.f32 %v18029_v3, %v18028_v9 }
 0x70c   : > { %17995 = vst [vmem:[#allocation39_spill] sm:$0xff] %v15690_v50  ;;  %11316 = vpow2.f32 %v3930_v55  ;;  %v3700_v27 = vsub.f32 %v18021_v42, %v18020_v8  ;;  %v18022_v55 = vld [vmem:[#allocation146_spill] sm:$0xff] }
 0x70d   : > { %11318 = vpow2.f32 %v3960_v63  ;;  %v3714_v46 = vsub.f32 %v18023_v16, %v18022_v55  ;;  %v3972_v8 = vmul.f32 1.442695, %v3717_v43 }
 0x70e   : > { %v3938_v51 = vmul.f32 1.442695, %v3700_v27 }
 0x710   : > { %10088 = vmatmul.mubr.bf16.gmra.mxu0 %v4525_v28  ;;  %10120 = vmatmul.mubr.bf16.gmra.mxu1 %v4533_v39  ;;  %v3958_v28 = vmul.f32 1.442695, %v3710_v38  ;;  %v18014_v39 = vld [vmem:[#allocation91_spill] sm:$0xff]  ;;  %v3940_v38 = vmul.f32 1.442695, %v3701_v14 }
 0x711   : > { %v3698_v53 = vsub.f32 %v18015_v21, %v18014_v39  ;;  %v18027_v39 = vld [vmem:[#allocation161_spill] sm:$0xff] }
 0x712   : > { %11320 = vpow2.f32 %v3958_v28  ;;  %v18026_v28 = vld [vmem:[#allocation82_spill] sm:$0xff] }
 0x713   : > { %v3934_v0 = vmul.f32 1.442695, %v3698_v53  ;;  %11322 = vpow2.f32 %v3964_v22  ;;  %v3716_v21 = vsub.f32 %v18027_v39, %v18026_v28  ;;  %v3966_v22 = vmul.f32 1.442695, %v3714_v46 }
 0x714   : > { %v15718_v44 = vpop.eup %11310  ;;  %11324 = vpow2.f32 %v3962_v62  ;;  %v3968_v62 = vmul.f32 1.442695, %v3715_v35 }
 0x715   : > { %11326 = vpow2.f32 %v3934_v0  ;;  %v3970_v14 = vmul.f32 1.442695, %v3716_v21 }
 0x716   : > { %11328 = vpow2.f32 %v3936_v33 }
 0x717   : > { %v15722_v36 = vpop.eup %11312 }
 0x718   : > { %v15730_v63 = vpop.eup %11314 }
 0x719   : > { %v15734_v26 = vpop.eup %11316 }
 0x71a   : > { %v15742_v0 = vpop.eup %11318 }
 0x71f   : > { %v15744_v47 = vpop.eup %11320 }
 0x720   : > { %v15750_v42 = vpop.eup %11322 }
 0x724   : > { %v4167_v41 = vpop.xlane.xlu1 %4166 }
 0x725   : > { %4182 = vadd.xlane.f32.xlu1 %v15718_v44  ;;  %11330 = vrcp.f32 %v4167_v41  ;;  %v15752_v41 = vpop.eup %11324 }
 0x726   : > { %4184 = vadd.xlane.f32.xlu0 %v15722_v36  ;;  %v15756_v16 = vpop.eup %11326 }
 0x727   : > { %v15758_v46 = vpop.eup %11328 }
 0x728   : > { %v15732_v60 = vpop.xlane.xlu1 %4170 }
 0x729   : > { %v4169_v53 = vpop.xlane.xlu0 %4168  ;;  %4188 = vadd.xlane.f32.xlu1 %v15730_v63 }
 0x72a   : > { %11332 = vrcp.f32 %v4169_v53  ;;  %4186 = vadd.xlane.f32.xlu0 %v15734_v26 }
 0x72b   : > { %11334 = vpow2.f32 %v3940_v38 }
 0x72c   : > { %11336 = vpow2.f32 %v3938_v51  ;;  %v4199_v32 = vpop.xlane.xlu1 %4198 }
 0x72d   : > { %v15746_v33 = vpop.xlane.xlu0 %4172  ;;  %4216 = vadd.xlane.f32.xlu1 %v15742_v0  ;;  %11338 = vpow2.f32 %v3966_v22 }
 0x72e   : > { %4214 = vadd.xlane.f32.xlu0 %v15744_v47  ;;  %11340 = vpow2.f32 %v3968_v62 }
 0x72f   : > { %11342 = vrcp.f32 %v4199_v32 }
 0x730   : > { %v4203_v27 = vpop.xlane.xlu1 %4202  ;;  %11344 = vpow2.f32 %v3970_v14 }
 0x731   : > { %v4201_v55 = vpop.xlane.xlu0 %4200  ;;  %4220 = vadd.xlane.f32.xlu1 %v15750_v42 }
 0x732   : > { %11346 = vrcp.f32 %v4201_v55  ;;  %4218 = vadd.xlane.f32.xlu0 %v15752_v41  ;;  %v11331_v25 = vpop.eup %11330 }
 0x733   : > { %11348 = vpow2.f32 %v3972_v8  ;;  %v4454_v28 = vmul.f32 %v11331_v25, %v15431_v45 }
 0x734   : > { %11350 = vrcp.f32 %v4203_v27  ;;  %v2209_v38 = vpop.permute.xlu1 %2208 }
 0x735   : > { %v4205_v58 = vpop.xlane.xlu0 %4204  ;;  %4192 = vadd.xlane.f32.xlu1 %v15758_v46  ;;  %10125 = vmatprep.subr.bf16.mxu0 %v2209_v38 }
 0x736   : > { %11352 = vrcp.f32 %v4205_v58  ;;  %4190 = vadd.xlane.f32.xlu0 %v15756_v16  ;;  %10157 = vmatprep.subr.bf16.mxu1 %v2209_v38 }
 0x737   : > { %v11333_v35 = vpop.eup %11332  ;;  %10126 = vmatpush3.bf16.msra.mxu0 %v2209_v38  ;;  %10158 = vmatpush3.bf16.msra.mxu1 %v2209_v38  ;;  %11354 = vrcp.f32 %v15732_v60 }
 0x738   : > { %v15762_v51 = vpop.eup %11334  ;;  %v4455_v39 = vmul.f32 %v11333_v35, %v15434_v10  ;;  %v2205_v53 = vpop.permute.xlu1 %2204  ;;  %11356 = vrcp.f32 %v15746_v33 }
 0x739   : > { %v15766_v21 = vpop.eup %11336  ;;  %v2207_v22 = vpop.permute.xlu0 %2206  ;;  %4196 = vadd.xlane.f32.xlu1 %v15762_v51 }
 0x73a   : > { %4194 = vadd.xlane.f32.xlu0 %v15766_v21  ;;  %10127 = vmatprep.subr.bf16.mxu0 %v2207_v22  ;;  %v4534_v9 = vpack.c.bf16 %v4455_v39, %v4454_v28  ;;  %v15770_v3 = vpop.eup %11338  ;;  %v15795_v39 = vpop.f32.mrf.mxu1 }
 0x73b   : > { %10159 = vmatprep.subr.bf16.mxu1 %v2207_v22  ;;  %10128 = vmatpush3.bf16.msra.mxu0 %v2207_v22  ;;  %v15772_v43 = vpop.eup %11340 }
 0x73c   : > { %10160 = vmatpush3.bf16.msra.mxu1 %v2207_v22  ;;  %10129 = vmatprep.subr.bf16.mxu0 %v2205_v53  ;;  %v11343_v45 = vpop.eup %11342  ;;  %v2203_v32 = vpop.permute.xlu1 %2202 }
 0x73d   : > { %10139 = vmatprep.mubr.bf16.mxu0 %v4534_v9  ;;  %10161 = vmatprep.subr.bf16.mxu1 %v2205_v53  ;;  %v15774_v10 = vpop.eup %11344  ;;  %v4470_v8 = vmul.f32 %v11343_v45, %v15453_v2 }
 0x73e   : > { %4224 = vadd.xlane.f32.xlu1 %v15772_v43  ;;  %4222 = vadd.xlane.f32.xlu0 %v15770_v3 }
 0x73f   : > { %v11347_v62 = vpop.eup %11346  ;;  %10130 = vmatpush3.bf16.msra.mxu0 %v2205_v53 }
 0x740   : > { %v15778_v14 = vpop.eup %11348  ;;  %10162 = vmatpush3.bf16.msra.mxu1 %v2205_v53  ;;  %10131 = vmatprep.subr.bf16.mxu0 %v2203_v32  ;;  %v4471_v27 = vmul.f32 %v11347_v62, %v15474_v48  ;;  %v10382_v48 = vpack.i.bf16 %v15589_v17, %v15577_v11  ;;  %v10397_v11 = vpack.i.bf16 %v15585_v31, %v15571_v56 }
 0x741   : > { %v11351_v55 = vpop.eup %11350  ;;  %10163 = vmatprep.subr.bf16.mxu1 %v2203_v32 }
 0x742   : > { %4228 = vadd.xlane.f32.xlu1 %v15778_v14  ;;  %4226 = vadd.xlane.f32.xlu0 %v15774_v10  ;;  %v4542_v38 = vpack.c.bf16 %v4471_v27, %v4470_v8  ;;  %v15785_v58 = vmul.f32 %v11351_v55, %v15470_v24 }
 0x743   : > { %v11353_v25 = vpop.eup %11352  ;;  %10132 = vmatpush3.bf16.msra.mxu0 %v2203_v32 }
 0x744   : > { %v15788_v35 = vmul.f32 %v11353_v25, %v15482_v40  ;;  %10164 = vmatpush3.bf16.msra.mxu1 %v2203_v32  ;;  %10171 = vmatprep.mubr.bf16.mxu1 %v4542_v38 }
 0x753   : > { %10383 = vrot.lane.b32.xlu1 %v10382_v48, %s12036_s22 }
 0x757   : > { %v10013_v28 = vpop.f32.mrf.mxu0 }
 0x759   : > { %v4778_v53 = vpop.f32.mrf.mxu0 }
 0x75b   : > { %v10014_v22 = vpop.f32.mrf.mxu0  ;;  %v10045_v24 = vpop.f32.mrf.mxu1 }
 0x75c   : > { %v10402_v25 = vpack.i.bf16 %v10014_v22, %v10013_v28  ;;  %v10412_v22 = vpack.i.bf16 %v15621_v57, %v15597_v61 }
 0x75d   : > { %v4781_v9 = vpop.f32.mrf.mxu0  ;;  %v4875_v45 = vpop.f32.mrf.mxu1 }
 0x75e   : > { %v10387_v40 = vpack.i.bf16 %v4781_v9, %v4778_v53 }
 0x75f   : > { %v10046_v62 = vpop.f32.mrf.mxu1 }
 0x760   : > { %10388 = vrot.lane.b32.xlu1 %v10387_v40, %s12035_s18 }
 0x761   : > { %v4878_v32 = vpop.f32.mrf.mxu1 }
 0x762   : > { %v10392_v8 = vpack.i.bf16 %v4878_v32, %v4875_v45  ;;  %v10407_v32 = vpack.i.bf16 %v10046_v62, %v10045_v24 }
 0x764   : > { %10393 = vrot.lane.b32.xlu1 %v10392_v8, %s12034_s28 }
 0x765   : > { %v15799_v27 = vpop.f32.mrf.mxu0 }
 0x767   : > { %v4794_v17 = vpop.f32.mrf.mxu0 }
 0x768   : > { %10398 = vrot.lane.b32.xlu1 %v10397_v11, %s12036_s22 }
 0x769   : > { %v15804_v55 = vpop.f32.mrf.mxu0  ;;  %v15806_v38 = vpop.f32.mrf.mxu1 }
 0x76a   : > { %v4177_v53 = vpop.xlane.xlu0 %4176 }
 0x76b   : > { %v4891_v9 = vpop.f32.mrf.mxu1  ;;  %v4797_v8 = vpop.f32.mrf.mxu0 }
 0x76c   : > { %10403 = vrot.lane.b32.xlu1 %v10402_v25, %s12035_s18 }
 0x76d   : > { %v15811_v45 = vpop.f32.mrf.mxu1  ;;  %v4175_v40 = vpop.xlane.xlu1 %4174 }
 0x76e   : > { %v4179_v31 = vpop.xlane.xlu0 %4178  ;;  %11358 = vrcp.f32 %v4175_v40 }
 0x76f   : > { %11360 = vrcp.f32 %v4177_v53  ;;  %v4894_v24 = vpop.f32.mrf.mxu1 }
 0x770   : > { %10408 = vrot.lane.b32.xlu1 %v10407_v32, %s12034_s28  ;;  %v10417_v32 = vpack.i.bf16 %v4797_v8, %v4794_v17  ;;  %v10422_v53 = vpack.i.bf16 %v4894_v24, %v4891_v9 }
 0x771   : > { %v4207_v28 = vpop.xlane.xlu1 %4206 }
 0x772   : > { %v4181_v11 = vpop.xlane.xlu0 %4180  ;;  %11362 = vrcp.f32 %v4207_v28 }
 0x774   : > { %v15820_v25 = vpop.f32.mrf.mxu0  ;;  %10413 = vrot.lane.b32.xlu1 %v10412_v22, %s12036_s22  ;;  %v11355_v22 = vpop.eup %11354 }
 0x775   : > { %v4211_v62 = vpop.xlane.xlu1 %4210  ;;  %v11357_v8 = vpop.eup %11356 }
 0x776   : > { %v15823_v52 = vpop.f32.mrf.mxu0  ;;  %v4209_v60 = vpop.xlane.xlu0 %4208 }
 0x777   : > { %11364 = vrcp.f32 %v4209_v60  ;;  %v4457_v60 = vmul.f32 %v11357_v8, %v15459_v34 }
 0x778   : > { %v15825_v56 = vpop.f32.mrf.mxu0  ;;  %v15827_v61 = vpop.f32.mrf.mxu1  ;;  %10418 = vrot.lane.b32.xlu1 %v10417_v32, %s12035_s18  ;;  %11366 = vrcp.f32 %v4179_v31  ;;  %v4456_v31 = vmul.f32 %v11355_v22, %v15428_v15  ;;  %v18030_v22 = vpack.c.bf16 %v15788_v35, %v15785_v58 }
 0x779   : > { %v2201_v33 = vpop.permute.xlu1 %2200  ;;  %11368 = vrcp.f32 %v4181_v11 }
 0x77a   : > { %v15832_v40 = vpop.f32.mrf.mxu1  ;;  %10133 = vmatprep.subr.bf16.mxu0 %v2201_v33  ;;  %10165 = vmatprep.subr.bf16.mxu1 %v2201_v33  ;;  %11370 = vrcp.f32 %v4211_v62  ;;  %v4213_v17 = vpop.xlane.xlu0 %4212  ;;  %v4535_v18 = vpack.c.bf16 %v4457_v60, %v4456_v31 }
 0x77b   : > { %10134 = vmatpush3.bf16.msra.mxu0 %v2201_v33  ;;  %10166 = vmatpush3.bf16.msra.mxu1 %v2201_v33  ;;  %11372 = vrcp.f32 %v4213_v17  ;;  %v11359_v11 = vpop.eup %11358  ;;  %v15840_v33 = vpop.f32.mrf.mxu0 }
 0x77c   : > { %v15834_v28 = vpop.f32.mrf.mxu1  ;;  %10423 = vrot.lane.b32.xlu1 %v10422_v53, %s12034_s28  ;;  %v11361_v24 = vpop.eup %11360  ;;  %v4458_v53 = vmul.f32 %v11359_v11, %v15611_v7 }
 0x77d   : > { %v2197_v32 = vpop.permute.xlu1 %2196  ;;  %v4459_v48 = vmul.f32 %v11361_v24, %v15605_v37  ;;  %v10759_v24 = vld [vmem:[#allocation11 + $0xa4] ss:$8 sps:$4 sm:$0xff]  }
 0x77e   : > { %v2199_v9 = vpop.permute.xlu0 %2198  ;;  %v15849_v8 = vpop.f32.mrf.mxu1 }
 0x77f   : > { %10135 = vmatprep.subr.bf16.mxu0 %v2199_v9  ;;  %10167 = vmatprep.subr.bf16.mxu1 %v2199_v9  ;;  %v11363_v62 = vpop.eup %11362  ;;  %v4536_v11 = vpack.c.bf16 %v4459_v48, %v4458_v53 }
 0x780   : > { %10136 = vmatpush3.bf16.msra.mxu0 %v2199_v9  ;;  %10168 = vmatpush3.bf16.msra.mxu1 %v2199_v9  ;;  %v4474_v9 = vmul.f32 %v11363_v62, %v15623_v29 }
 0x781   : > { %10137 = vmatprep.subr.bf16.mxu0 %v2197_v32  ;;  %10169 = vmatprep.subr.bf16.mxu1 %v2197_v32 }
 0x784   : > { %v11365_v17 = vpop.eup %11364  ;;  %v15844_v57 = vpop.f32.mrf.mxu0  ;;  %10138 = vmatpush3.bf16.msra.mxu0 %v2197_v32  ;;  %10170 = vmatpush3.bf16.msra.mxu1 %v2197_v32  ;;  %v10754_v32 = vld [vmem:[#allocation11 + $0xb0] ss:$8 sps:$4 sm:$0xff]  }
 0x785   : > { %v4475_v2 = vmul.f32 %v11365_v17, %v15638_v1  ;;  %v11367_v34 = vpop.eup %11366 }
 0x786   : > { %v15851_v6 = vpop.f32.mrf.mxu0  ;;  %v11369_v7 = vpop.eup %11368  ;;  %v4460_v58 = vmul.f32 %v11367_v34, %v15613_v4 }
 0x787   : > { %v4544_v50 = vpack.c.bf16 %v4475_v2, %v4474_v9  ;;  %v11371_v15 = vpop.eup %11370  ;;  %10140 = vmatmul.mubr.bf16.vlgmr.msra.gmra.mxu0 %v4535_v18  ;;  %10172 = vmatmul.mubr.bf16.vlgmr.msra.gmra.mxu1 %v18030_v22  ;;  %v4461_v2 = vmul.f32 %v11369_v7, %v15618_v59 }
 0x788   : > { %v15856_v37 = vpop.f32.mrf.mxu0  ;;  %v15858_v29 = vpop.f32.mrf.mxu1  ;;  %10143 = vmatprep.mubr.bf16.mxu0 %v4536_v11  ;;  %v4476_v35 = vmul.f32 %v11371_v15, %v15628_v19 }
 0x789   : > { %v11373_v1 = vpop.eup %11372  ;;  %10175 = vmatprep.mubr.bf16.mxu1 %v4544_v50  ;;  %v4537_v62 = vpack.c.bf16 %v4461_v2, %v4460_v58 }
 0x78a   : > { %v15862_v31 = vpop.f32.mrf.mxu1  ;;  %v4477_v18 = vmul.f32 %v11373_v1, %v15634_v49 }
 0x78c   : > { %v15866_v48 = vpop.f32.mrf.mxu1  ;;  %v4545_v60 = vpack.c.bf16 %v4477_v18, %v4476_v35 }
 0x78e   : > { %v15872_v17 = vpop.f32.mrf.mxu1 }
 0x78f   : > { %10144 = vmatmul.mubr.bf16.gmra.mxu0 %v4537_v62  ;;  %10176 = vmatmul.mubr.bf16.gmra.mxu1 %v4545_v60 }
 0x7ae   : > { %v4183_v50 = vpop.xlane.xlu1 %4182 }
 0x7af   : > { %11374 = vrcp.f32 %v4183_v50  ;;  %v4185_v53 = vpop.xlane.xlu0 %4184 }
 0x7b0   : > { %11376 = vrcp.f32 %v4185_v53 }
 0x7b2   : > { %v4189_v59 = vpop.xlane.xlu1 %4188 }
 0x7b3   : > { %11378 = vrcp.f32 %v4189_v59  ;;  %v4187_v49 = vpop.xlane.xlu0 %4186 }
 0x7b4   : > { %11380 = vrcp.f32 %v4187_v49 }
 0x7b6   : > { %v4217_v4 = vpop.xlane.xlu1 %4216 }
 0x7b7   : > { %11382 = vrcp.f32 %v4217_v4  ;;  %v4215_v19 = vpop.xlane.xlu0 %4214 }
 0x7b8   : > { %11384 = vrcp.f32 %v4215_v19  ;;  %v10109_v9 = vpop.f32.mrf.mxu1 }
 0x7ba   : > { %v4221_v34 = vpop.xlane.xlu1 %4220  ;;  %v5069_v7 = vpop.f32.mrf.mxu1 }
 0x7bb   : > { %11386 = vrcp.f32 %v4221_v34  ;;  %v4219_v11 = vpop.xlane.xlu0 %4218 }
 0x7bc   : > { %v11375_v15 = vpop.eup %11374  ;;  %11388 = vrcp.f32 %v4219_v11  ;;  %v10110_v1 = vpop.f32.mrf.mxu1 }
 0x7bd   : > { %v11377_v22 = vpop.eup %11376  ;;  %v4462_v2 = vmul.f32 %v11375_v15, %v15718_v44  ;;  %v10427_v18 = vpack.i.bf16 %v10110_v1, %v10109_v9 }
 0x7be   : > { %v4193_v58 = vpop.xlane.xlu1 %4192  ;;  %v4463_v35 = vmul.f32 %v11377_v22, %v15722_v36  ;;  %v5072_v62 = vpop.f32.mrf.mxu1 }
 0x7bf   : > { %11390 = vrcp.f32 %v4193_v58  ;;  %v4191_v60 = vpop.xlane.xlu0 %4190  ;;  %10428 = vrot.lane.b32.xlu0 %v10427_v18, %s12036_s22  ;;  %v10432_v19 = vpack.i.bf16 %v5072_v62, %v5069_v7 }
 0x7c0   : > { %v11379_v50 = vpop.eup %11378  ;;  %11392 = vrcp.f32 %v4191_v60  ;;  %v4538_v53 = vpack.c.bf16 %v4463_v35, %v4462_v2  ;;  %v10113_v49 = vpop.f32.mrf.mxu1 }
 0x7c1   : > { %v11381_v59 = vpop.eup %11380  ;;  %v4465_v4 = vmul.f32 %v11379_v50, %v15730_v63 }
 0x7c2   : > { %10147 = vmatprep.mubr.bf16.mxu0 %v4538_v53  ;;  %v4197_v34 = vpop.xlane.xlu1 %4196  ;;  %v4464_v44 = vmul.f32 %v11381_v59, %v15734_v26  ;;  %v5085_v9 = vpop.f32.mrf.mxu1 }
 0x7c3   : > { %11394 = vrcp.f32 %v4197_v34  ;;  %v4195_v36 = vpop.xlane.xlu0 %4194  ;;  %10433 = vrot.lane.b32.xlu0 %v10432_v19, %s12036_s22 }
 0x7c4   : > { %v11383_v11 = vpop.eup %11382  ;;  %11396 = vrcp.f32 %v4195_v36  ;;  %v4539_v15 = vpack.c.bf16 %v4465_v4, %v4464_v44  ;;  %v10114_v1 = vpop.f32.mrf.mxu1 }
 0x7c5   : > { %v11385_v22 = vpop.eup %11384  ;;  %v4479_v2 = vmul.f32 %v11383_v11, %v15742_v0  ;;  %v10437_v18 = vpack.i.bf16 %v10114_v1, %v10113_v49 }
 0x7c6   : > { %10148 = vmatmul.mubr.bf16.gmra.mxu0 %v4539_v15  ;;  %v4478_v63 = vmul.f32 %v11385_v22, %v15744_v47  ;;  %v5088_v58 = vpop.f32.mrf.mxu1 }
 0x7c7   : > { %v4225_v7 = vpop.xlane.xlu1 %4224  ;;  %v4223_v26 = vpop.xlane.xlu0 %4222  ;;  %10438 = vrot.lane.b32.xlu0 %v10437_v18, %s12036_s22  ;;  %v10442_v59 = vpack.i.bf16 %v5088_v58, %v5085_v9 }
 0x7c8   : > { %v11387_v35 = vpop.eup %11386  ;;  %11398 = vrcp.f32 %v4225_v7  ;;  %v4546_v62 = vpack.c.bf16 %v4479_v2, %v4478_v63  ;;  %v15883_v50 = vpop.f32.mrf.mxu1 }
 0x7c9   : > { %v11389_v60 = vpop.eup %11388  ;;  %11400 = vrcp.f32 %v4223_v26  ;;  %v4481_v53 = vmul.f32 %v11387_v35, %v15750_v42 }
 0x7ca   : > { %10179 = vmatprep.mubr.bf16.mxu1 %v4546_v62  ;;  %v4480_v0 = vmul.f32 %v11389_v60, %v15752_v41  ;;  %v15887_v47 = vpop.f32.mrf.mxu1 }
 0x7cb   : > { %v4229_v49 = vpop.xlane.xlu1 %4228  ;;  %v4227_v19 = vpop.xlane.xlu0 %4226  ;;  %10443 = vrot.lane.b32.xlu0 %v10442_v59, %s12036_s22 }
 0x7cc   : > { %v11391_v4 = vpop.eup %11390  ;;  %11402 = vrcp.f32 %v4229_v49  ;;  %v4547_v34 = vpack.c.bf16 %v4481_v53, %v4480_v0  ;;  %v15890_v36 = vpop.f32.mrf.mxu1 }
 0x7cd   : > { %v11393_v44 = vpop.eup %11392  ;;  %11404 = vrcp.f32 %v4227_v19  ;;  %v4467_v11 = vmul.f32 %v11391_v4, %v15758_v46  ;;  %v15910_v49 = vpop.f32.mrf.mxu0 }
 0x7ce   : > { %10180 = vmatmul.mubr.bf16.gmra.mxu1 %v4547_v34  ;;  %v4466_v42 = vmul.f32 %v11393_v44, %v15756_v16  ;;  %v15894_v9 = vpop.f32.mrf.mxu1  ;;  %v10720_v44 = vld [vmem:[#allocation11 + $0x74] ss:$8 sps:$4 sm:$0xff]  }
 0x7cf   : > { %v15912_v4 = vpop.f32.mrf.mxu0  ;;  %6016 = vmatprep.subr.bf16.mxu0 %v10720_v44  ;;  %v10744_v44 = vld [vmem:[#allocation11 + $0xf4] ss:$8 sps:$4 sm:$0xff]  }
 0x7d0   : > { %v11395_v41 = vpop.eup %11394  ;;  %v4540_v15 = vpack.c.bf16 %v4467_v11, %v4466_v42  ;;  %v15896_v1 = vpop.f32.mrf.mxu1  ;;  %v10721_v11 = vld [vmem:[#allocation11 + $0x60] ss:$8 sps:$4 sm:$0xff]  }
 0x7d1   : > { %v11397_v22 = vpop.eup %11396  ;;  %v4469_v2 = vmul.f32 %v11395_v41, %v15762_v51  ;;  %v15914_v19 = vpop.f32.mrf.mxu0  ;;  %v10724_v41 = vld [vmem:[#allocation11 + $0x50] ss:$8 sps:$4 sm:$0xff]  }
 0x7d2   : > { %10151 = vmatprep.mubr.bf16.mxu0 %v4540_v15  ;;  %v4468_v18 = vmul.f32 %v11397_v22, %v15766_v21  ;;  %v15900_v63 = vpop.f32.mrf.mxu1  ;;  %v10726_v15 = vld [vmem:[#allocation11 + $0x54] ss:$8 sps:$4 sm:$0xff]  }
 0x7d3   : > { %v15916_v34 = vpop.f32.mrf.mxu0 }
 0x7d4   : > { %v4541_v7 = vpack.c.bf16 %v4469_v2, %v4468_v18  ;;  %v15902_v46 = vpop.f32.mrf.mxu1  ;;  %v10727_v2 = vld [vmem:[#allocation11 + $0x40] ss:$8 sps:$4 sm:$0xff]   ;;  %v10729_v18 = vld [vmem:[#allocation11 + $0x44] ss:$8 sps:$4 sm:$0xff]  }
 0x7d5   : > { %v11399_v58 = vpop.eup %11398 }
 0x7d6   : > { %v11401_v35 = vpop.eup %11400  ;;  %10152 = vmatmul.mubr.bf16.gmra.mxu0 %v4541_v7  ;;  %v4483_v26 = vmul.f32 %v11399_v58, %v15772_v43  ;;  %v15918_v43 = vpop.f32.mrf.mxu0  ;;  %v10732_v58 = vld [vmem:[#allocation11 + $0x34] ss:$8 sps:$4 sm:$0xff]  }
 0x7d7   : > { %v4482_v62 = vmul.f32 %v11401_v35, %v15770_v3  ;;  %v10718_v3 = vld [vmem:[#allocation11 + $0x70] ss:$8 sps:$4 sm:$0xff]  }
 0x7d8   : > { %6017 = vmatpush1.bf16.msra.mxu0 %v10718_v3  ;;  %v10730_v35 = vld [vmem:[#allocation11 + $0x30] ss:$8 sps:$4 sm:$0xff]   ;;  %v10739_v3 = vld [vmem:[#allocation11] ss:$8 sps:$4 sm:$0xff]  }
 0x7d9   : > { %v11403_v60 = vpop.eup %11402  ;;  %v4548_v51 = vpack.c.bf16 %v4483_v26, %v4482_v62  ;;  %v10735_v26 = vld [vmem:[#allocation11 + $0x24] ss:$8 sps:$4 sm:$0xff]  }
 0x7da   : > { %v11405_v53 = vpop.eup %11404  ;;  %v4485_v21 = vmul.f32 %v11403_v60, %v15778_v14  ;;  %v15920_v14 = vpop.f32.mrf.mxu0  ;;  %v10733_v60 = vld [vmem:[#allocation11 + $0x20] ss:$8 sps:$4 sm:$0xff]  }
 0x7db   : > { %10183 = vmatprep.mubr.bf16.mxu1 %v4548_v51  ;;  %v4484_v59 = vmul.f32 %v11405_v53, %v15774_v10  ;;  %v10723_v10 = vld [vmem:[#allocation11 + $0x64] ss:$8 sps:$4 sm:$0xff]   ;;  %v10738_v51 = vld [vmem:[#allocation11 + $0x14] ss:$8 sps:$4 sm:$0xff]  }
 0x7dc   : > { %6018 = vmatprep.subr.bf16.mxu0 %v10723_v10  ;;  %v15922_v42 = vpop.f32.mrf.mxu0  ;;  %v10742_v10 = vld [vmem:[#allocation11 + $0xf0] ss:$8 sps:$4 sm:$0xff]  }
 0x7dd   : > { %v4549_v0 = vpack.c.bf16 %v4485_v21, %v4484_v59  ;;  %6019 = vmatpush1.bf16.msra.mxu0 %v10721_v11  ;;  %v10736_v21 = vld [vmem:[#allocation11 + $0x10] ss:$8 sps:$4 sm:$0xff]   ;;  %v10741_v59 = vld [vmem:[#allocation11 + $0x4] ss:$8 sps:$4 sm:$0xff]  }
 0x7de   : > { %6020 = vmatprep.subr.bf16.mxu0 %v10726_v15  ;;  %v15924_v22 = vpop.f32.mrf.mxu0 }
 0x7df   : > { %10184 = vmatmul.mubr.bf16.gmra.mxu1 %v4549_v0 }
 0x7e0   : > { %v15926_v7 = vpop.f32.mrf.mxu0 }
 0x7e1   : > { %6021 = vmatpush1.bf16.msra.mxu0 %v10724_v41  ;;  %v10747_v41 = vld [vmem:[#allocation11 + $0xe4] ss:$8 sps:$4 sm:$0xff]  }
 0x7e2   : > { %6022 = vmatprep.subr.bf16.mxu0 %v10729_v18  ;;  %v15928_v62 = vpop.f32.mrf.mxu0  ;;  %v10750_v18 = vld [vmem:[#allocation11 + $0xd4] ss:$8 sps:$4 sm:$0xff]  }
 0x7e4   : > { %v15930_v53 = vpop.f32.mrf.mxu0 }
 0x7e5   : > { %6023 = vmatpush1.bf16.msra.mxu0 %v10727_v2  ;;  %v10745_v2 = vld [vmem:[#allocation11 + $0xe0] ss:$8 sps:$4 sm:$0xff]  }
 0x7e6   : > { %6024 = vmatprep.subr.bf16.mxu0 %v10732_v58  ;;  %v15932_v0 = vpop.f32.mrf.mxu0 }
 0x7e8   : > { %v15934_v11 = vpop.f32.mrf.mxu0 }
 0x7e9   : > { %6025 = vmatpush1.bf16.msra.mxu0 %v10730_v35  ;;  %v10748_v35 = vld [vmem:[#allocation11 + $0xd0] ss:$8 sps:$4 sm:$0xff]  }
 0x7ea   : > { %6026 = vmatprep.subr.bf16.mxu0 %v10735_v26  ;;  %v15936_v15 = vpop.f32.mrf.mxu0 }
 0x7eb   : > { %18031 = vst [vmem:[#allocation109_spill] sm:$0xff] %v15936_v15 }
 0x7ec   : > { %v15938_v58 = vpop.f32.mrf.mxu0 }
 0x7ed   : > { %6027 = vmatpush1.bf16.msra.mxu0 %v10733_v60  ;;  %18032 = vst [vmem:[#allocation35_spill] sm:$0xff] %v15938_v58  ;;  %v10753_v60 = vld [vmem:[#allocation11 + $0xc4] ss:$8 sps:$4 sm:$0xff]  }
 0x7ee   : > { %6028 = vmatprep.subr.bf16.mxu0 %v10738_v51  ;;  %v15940_v26 = vpop.f32.mrf.mxu0 }
 0x7ef   : > { %18033 = vst [vmem:[#allocation110_spill] sm:$0xff] %v15940_v26  ;;  %v10757_v26 = vld [vmem:[#allocation11 + $0xa0] ss:$8 sps:$4 sm:$0xff]  }
 0x7f0   : > { %v15942_v51 = vpop.f32.mrf.mxu0 }
 0x7f1   : > { %6029 = vmatpush1.bf16.msra.mxu0 %v10736_v21  ;;  %18034 = vst [vmem:[#allocation111_spill] sm:$0xff] %v15942_v51  ;;  %v15944_v21 = vpop.f32.mrf.mxu1  ;;  %v10760_v51 = vld [vmem:[#allocation11 + $0x90] ss:$8 sps:$4 sm:$0xff]  }
 0x7f2   : > { %6030 = vmatprep.subr.bf16.mxu0 %v10741_v59  ;;  %v10751_v59 = vld [vmem:[#allocation11 + $0xc0] ss:$8 sps:$4 sm:$0xff]  }
 0x7f5   : > { %6031 = vmatpush1.bf16.msra.mxu0 %v10739_v3 }
 0x7f6   : > { %6032 = vmatprep.subr.bf16.mxu0 %v10744_v44 }
 0x7f9   : > { %6033 = vmatpush2.bf16.msra.mxu0 %v10742_v10  ;;  %v10756_v10 = vld [vmem:[#allocation11 + $0xb4] ss:$8 sps:$4 sm:$0xff]  }
 0x7fa   : > { %6034 = vmatprep.subr.bf16.mxu0 %v10747_v41 }
 0x7fd   : > { %6035 = vmatpush2.bf16.msra.mxu0 %v10745_v2 }
 0x7fe   : > { %6036 = vmatprep.subr.bf16.mxu0 %v10750_v18 }
 0x801   : > { %6037 = vmatpush2.bf16.msra.mxu0 %v10748_v35 }
 0x802   : > { %6038 = vmatprep.subr.bf16.mxu0 %v10753_v60 }
 0x805   : > { %6039 = vmatpush2.bf16.msra.mxu0 %v10751_v59  ;;  %v10762_v59 = vld [vmem:[#allocation11 + $0x94] ss:$8 sps:$4 sm:$0xff]  }
 0x806   : > { %6040 = vmatprep.subr.bf16.mxu0 %v10756_v10 }
 0x809   : > { %6041 = vmatpush2.bf16.msra.mxu0 %v10754_v32  ;;  %v10477_v32 = vpack.i.bf16 %v15894_v9, %v15887_v47  ;;  %v18036_v47 = vpack.i.bf16 %v15804_v55, %v15799_v27  ;;  %v10487_v55 = vpack.i.bf16 %v15840_v33, %v15823_v52  ;;  %v18038_v52 = vpack.i.bf16 %v15642_v12, %v15631_v13 }
 0x80a   : > { %6042 = vmatprep.subr.bf16.mxu0 %v10759_v24  ;;  %v18040_v33 = vpack.i.bf16 %v15834_v28, %v15827_v61  ;;  %v10572_v13 = vpack.i.bf16 %v15910_v49, %v15851_v6  ;;  %v10577_v12 = vpack.i.bf16 %v15872_v17, %v15862_v31  ;;  %v18045_v31 = vpack.i.bf16 %v15866_v48, %v15858_v29 }
 0x80b   : > { %v10562_v29 = vpack.i.bf16 %v15944_v21, %v15900_v63 }
 0x80d   : > { %6043 = vmatpush2.bf16.msra.mxu0 %v10757_v26 }
 0x80e   : > { %6044 = vmatprep.subr.bf16.mxu0 %v10762_v59  ;;  %v10384_v59 = vpop.permute.xlu1 %10383 }
 0x811   : > { %6045 = vmatpush2.bf16.msra.mxu0 %v10760_v51 }
 0x831   : > { %v10429_v63 = vpop.permute.xlu0 %10428 }
 0x847   : > { %v10141_v3 = vpop.f32.mrf.mxu0  ;;  %v10173_v44 = vpop.f32.mrf.mxu1 }
 0x849   : > { %v5166_v41 = vpop.f32.mrf.mxu0  ;;  %v5263_v16 = vpop.f32.mrf.mxu1 }
 0x84b   : > { %v10142_v2 = vpop.f32.mrf.mxu0  ;;  %v10174_v35 = vpop.f32.mrf.mxu1 }
 0x84c   : > { %v10447_v18 = vpack.i.bf16 %v10142_v2, %v10141_v3  ;;  %v10452_v60 = vpack.i.bf16 %v10174_v35, %v10173_v44  ;;  %v10765_v3 = vld [vmem:[#allocation11 + $0x84] ss:$8 sps:$4 sm:$0xff]   ;;  %v10763_v44 = vld [vmem:[#allocation11 + $0x80] ss:$8 sps:$4 sm:$0xff]  }
 0x84d   : > { %v5169_v15 = vpop.f32.mrf.mxu0  ;;  %v5266_v24 = vpop.f32.mrf.mxu1  ;;  %6046 = vmatprep.subr.bf16.mxu0 %v10765_v3 }
 0x84e   : > { %v10457_v58 = vpack.i.bf16 %v5169_v15, %v5166_v41  ;;  %10448 = vrot.lane.b32.xlu0 %v10447_v18, %s12035_s18  ;;  %v18035_v15 = vpack.i.bf16 %v15599_v20, %v15593_v23  ;;  %6047 = vmatpush2.bf16.msra.mxu0 %v10763_v44  ;;  %v10517_v23 = vpack.i.bf16 %v5266_v24, %v5263_v16  ;;  %v10389_v3 = vpop.permute.xlu1 %10388 }
 0x84f   : > { %v10145_v26 = vpop.f32.mrf.mxu0  ;;  %v10177_v9 = vpop.f32.mrf.mxu1  ;;  %v18037_v20 = vpack.i.bf16 %v15811_v45, %v15806_v38  ;;  %v10492_v45 = vpack.i.bf16 %v15849_v8, %v15832_v40  ;;  %v18039_v40 = vpack.i.bf16 %v15825_v56, %v15820_v25  ;;  %v10567_v8 = vpack.i.bf16 %v15795_v39, %v15686_v5  ;;  %v18041_v56 = vld [vmem:[#allocation39_spill] sm:$0xff]  ;;  %v18042_v25 = vld [vmem:[#allocation108_spill] sm:$0xff] }
 0x850   : > { %10458 = vrot.lane.b32.xlu1 %v10457_v58, %s12035_s18  ;;  %v10497_v58 = vpack.i.bf16 %v15890_v36, %v15883_v50  ;;  %v10482_v50 = vpack.i.bf16 %v15678_v54, %v15640_v30  ;;  %v18043_v61 = vpack.i.bf16 %v18041_v56, %v18042_v25  ;;  %v18044_v5 = vpack.i.bf16 %v15856_v37, %v15844_v57 }
 0x851   : > { %v5182_v51 = vpop.f32.mrf.mxu0  ;;  %v5279_v10 = vpop.f32.mrf.mxu1 }
 0x852   : > { %10453 = vrot.lane.b32.xlu0 %v10452_v60, %s12034_s28  ;;  %v10394_v44 = vpop.permute.xlu1 %10393 }
 0x853   : > { %v10146_v41 = vpop.f32.mrf.mxu0  ;;  %v10178_v27 = vpop.f32.mrf.mxu1  ;;  %v10396_v56 = vunpack.i.h.bf16 %v10394_v44  ;;  %v10395_v25 = vunpack.i.l.bf16 %v10394_v44 }
 0x854   : > { %10463 = vrot.lane.b32.xlu1 %v18035_v15, %s12036_s22  ;;  %v10522_v36 = vpack.i.bf16 %v10146_v41, %v10145_v26  ;;  %v10527_v16 = vpack.i.bf16 %v10178_v27, %v10177_v9  ;;  %v10434_v27 = vpop.permute.xlu0 %10433 }
 0x855   : > { %v5185_v38 = vpop.f32.mrf.mxu0  ;;  %v5282_v54 = vpop.f32.mrf.mxu1 }
 0x856   : > { %10478 = vrot.lane.b32.xlu0 %v10477_v32, %s12036_s22  ;;  %v10532_v30 = vpack.i.bf16 %v5185_v38, %v5182_v51  ;;  %v10537_v2 = vpack.i.bf16 %v5282_v54, %v5279_v10 }
 0x858   : > { %10468 = vrot.lane.b32.xlu1 %v18036_v47, %s12035_s18 }
 0x85a   : > { %10498 = vrot.lane.b32.xlu0 %v10497_v58, %s12036_s22 }
 0x85c   : > { %10473 = vrot.lane.b32.xlu1 %v18037_v20, %s12034_s28  ;;  %v16025_v20 = vpop.permute.xlu1 %10398 }
 0x85e   : > { %10518 = vrot.lane.b32.xlu0 %v10517_v23, %s12034_s28  ;;  %v18046_v23 = vpack.i.bf16 %v15902_v46, %v15896_v1  ;;  %v16035_v46 = vpop.permute.xlu0 %10438 }
 0x860   : > { %10483 = vrot.lane.b32.xlu1 %v10482_v50, %s12036_s22  ;;  %v16028_v50 = vpop.permute.xlu1 %10403 }
 0x862   : > { %10523 = vrot.lane.b32.xlu0 %v10522_v36, %s12035_s18  ;;  %v16039_v38 = vpop.permute.xlu0 %10443 }
 0x864   : > { %10488 = vrot.lane.b32.xlu1 %v10487_v55, %s12035_s18  ;;  %v16032_v55 = vpop.permute.xlu1 %10408 }
 0x866   : > { %10528 = vrot.lane.b32.xlu0 %v10527_v16, %s12034_s28 }
 0x868   : > { %10493 = vrot.lane.b32.xlu1 %v10492_v45, %s12034_s28  ;;  %v16037_v16 = vpop.permute.xlu1 %10413 }
 0x86a   : > { %10533 = vrot.lane.b32.xlu0 %v10532_v30, %s12035_s18 }
 0x86c   : > { %10503 = vrot.lane.b32.xlu1 %v18038_v52, %s12036_s22  ;;  %v16041_v45 = vpop.permute.xlu1 %10418  ;;  %v10386_v52 = vunpack.i.h.bf16 %v10384_v59 }
 0x86e   : > { %10538 = vrot.lane.b32.xlu0 %v10537_v2, %s12034_s28 }
 0x870   : > { %10508 = vrot.lane.b32.xlu1 %v18039_v40, %s12035_s18  ;;  %v16043_v54 = vpop.permute.xlu1 %10423  ;;  %v10385_v40 = vunpack.i.l.bf16 %v10384_v59  ;;  %v10436_v59 = vunpack.i.h.bf16 %v10434_v27 }
 0x874   : > { %10513 = vrot.lane.b32.xlu1 %v18040_v33, %s12034_s28 }
 0x878   : > { %10568 = vrot.lane.b32.xlu1 %v10567_v8, %s12036_s22  ;;  %v10391_v8 = vunpack.i.h.bf16 %v10389_v3 }
 0x87c   : > { %10573 = vrot.lane.b32.xlu1 %v10572_v13, %s12035_s18  ;;  %v10390_v13 = vunpack.i.l.bf16 %v10389_v3 }
 0x880   : > { %10578 = vrot.lane.b32.xlu1 %v10577_v12, %s12034_s28 }
 0x884   : > { %10588 = vrot.lane.b32.xlu1 %v18043_v61, %s12036_s22  ;;  %v18047_v61 = vld [vmem:[#allocation66_spill] sm:$0xff] }
 0x886   : > { %v10149_v28 = vpop.f32.mrf.mxu0 }
 0x888   : > { %v5198_v18 = vpop.f32.mrf.mxu0  ;;  %10608 = vrot.lane.b32.xlu1 %v18044_v5, %s12035_s18 }
 0x88a   : > { %v10150_v6 = vpop.f32.mrf.mxu0 }
 0x88b   : > { %v10542_v39 = vpack.i.bf16 %v10150_v6, %v10149_v28  ;;  %v5711_v28 = vsel %vm2269_vm2, %v18047_v61, %v10386_v52 }
 0x88c   : > { %10618 = vrot.lane.b32.xlu1 %v18045_v31, %s12034_s28  ;;  %v5201_v32 = vpop.f32.mrf.mxu0  ;;  %v10431_v31 = vunpack.i.h.bf16 %v10429_v63 }
 0x88d   : > { %10543 = vrot.lane.b32.xlu0 %v10542_v39, %s12035_s18  ;;  %v10552_v15 = vpack.i.bf16 %v5201_v32, %v5198_v18  ;;  %v18048_v18 = vld [vmem:[#allocation98_spill] sm:$0xff]  ;;  %v5728_v39 = vsel %vm5726_vm4, %v5711_v28, %v10391_v8  ;;  %v10435_v32 = vunpack.i.l.bf16 %v10434_v27 }
 0x88e   : > { %v10181_v17 = vpop.f32.mrf.mxu1  ;;  %v5710_v5 = vsel %vm2269_vm2, %v18048_v18, %v10385_v40  ;;  %v18049_v8 = vld [vmem:[#allocation94_spill] sm:$0xff] }
 0x88f   : > { %v5727_v6 = vsel %vm5726_vm4, %v5710_v5, %v10390_v13 }
 0x890   : > { %v5295_v49 = vpop.f32.mrf.mxu1 }
 0x892   : > { %v10182_v35 = vpop.f32.mrf.mxu1 }
 0x893   : > { %v10547_v60 = vpack.i.bf16 %v10182_v35, %v10181_v17  ;;  %v10430_v17 = vunpack.i.l.bf16 %v10429_v63  ;;  %v5744_v35 = vsel %vm5743_vm5, %v5727_v6, %v10395_v25 }
 0x894   : > { %v5298_v57 = vpop.f32.mrf.mxu1 }
 0x895   : > { %10548 = vrot.lane.b32.xlu0 %v10547_v60, %s12034_s28  ;;  %v10557_v24 = vpack.i.bf16 %v5298_v57, %v5295_v49  ;;  %v5745_v60 = vsel %vm5743_vm5, %v5728_v39, %v10396_v56  ;;  %v18050_v56 = vld [vmem:[#allocation68_spill] sm:$0xff]  ;;  %v10416_v39 = vunpack.i.h.bf16 %v16037_v16 }
 0x896   : > { %v10153_v37 = vpop.f32.mrf.mxu0 }
 0x898   : > { %v5214_v26 = vpop.f32.mrf.mxu0 }
 0x899   : > { %10553 = vrot.lane.b32.xlu0 %v10552_v15, %s12035_s18 }
 0x89a   : > { %v10154_v58 = vpop.f32.mrf.mxu0 }
 0x89b   : > { %v10602_v36 = vpack.i.bf16 %v10154_v58, %v10153_v37  ;;  %v10406_v58 = vunpack.i.h.bf16 %v16028_v50 }
 0x89c   : > { %v5217_v9 = vpop.f32.mrf.mxu0 }
 0x89d   : > { %10558 = vrot.lane.b32.xlu0 %v10557_v24, %s12034_s28  ;;  %v10592_v10 = vpack.i.bf16 %v5217_v9, %v5214_v26  ;;  %v10401_v26 = vunpack.i.h.bf16 %v16025_v20  ;;  %v5763_v9 = vsel %vm2269_vm2, %v15916_v34, %v10431_v31  ;;  %v10415_v31 = vunpack.i.l.bf16 %v16037_v16 }
 0x89f   : > { %v10185_v48 = vpop.f32.mrf.mxu1  ;;  %v5713_v13 = vsel %vm2269_vm2, %v18049_v8, %v10401_v26  ;;  %v18051_v26 = vld [vmem:[#allocation115_spill] sm:$0xff] }
 0x8a0   : > { %v5730_v18 = vsel %vm5726_vm4, %v5713_v13, %v10406_v58  ;;  %v10445_v58 = vunpack.i.l.bf16 %v16039_v38 }
 0x8a1   : > { %v5311_v47 = vpop.f32.mrf.mxu1  ;;  %10563 = vrot.lane.b32.xlu0 %v10562_v29, %s12036_s22  ;;  %v10400_v29 = vunpack.i.l.bf16 %v16025_v20 }
 0x8a3   : > { %v10186_v51 = vpop.f32.mrf.mxu1  ;;  %v5712_v25 = vsel %vm2269_vm2, %v18050_v56, %v10400_v29  ;;  %v5715_v29 = vsel %vm2269_vm2, %v18051_v26, %v10416_v39 }
 0x8a4   : > { %v10612_v1 = vpack.i.bf16 %v10186_v51, %v10185_v48  ;;  %v5762_v51 = vsel %vm2269_vm2, %v15912_v4, %v10430_v17 }
 0x8a5   : > { %10583 = vrot.lane.b32.xlu0 %v18046_v23, %s12036_s22  ;;  %v5314_v41 = vpop.f32.mrf.mxu1 }
 0x8a6   : > { %v10597_v21 = vpack.i.bf16 %v5314_v41, %v5311_v47  ;;  %v10405_v47 = vunpack.i.l.bf16 %v16028_v50  ;;  %v5760_v41 = vsel %vm2269_vm2, %v15914_v19, %v10435_v32  ;;  %v10426_v32 = vunpack.i.h.bf16 %v16043_v54 }
 0x8a8   : > { %v5729_v28 = vsel %vm5726_vm4, %v5712_v25, %v10405_v47 }
 0x8a9   : > { %10593 = vrot.lane.b32.xlu0 %v10592_v10, %s12035_s18  ;;  %v5761_v10 = vsel %vm2269_vm2, %v15918_v43, %v10436_v59  ;;  %v10420_v59 = vunpack.i.l.bf16 %v16041_v45 }
 0x8ad   : > { %10598 = vrot.lane.b32.xlu0 %v10597_v21, %s12034_s28 }
 0x8b1   : > { %10603 = vrot.lane.b32.xlu0 %v10602_v36, %s12035_s18 }
 0x8b5   : > { %10613 = vrot.lane.b32.xlu0 %v10612_v1, %s12034_s28  ;;  %s11942_s28 = scalar_lea.vmem %s11941_s11, 8192 }
 0x8b6   : > { %p11944_p3 = scmp.lt.s32.totalorder %s11942_s28, %s11936_s20 }
 0x8b8   : > { %p11945_p4 = por %p11944_p3, %p11943_p1 }
 0x8ba   : > { %p11946_p8 = pnand %p11945_p4, %p11939_p13 }
 0x8c0   : > { %v10449_v30 = vpop.permute.xlu0 %10448 }
 0x8c1   : > { %v10451_v57 = vunpack.i.h.bf16 %v10449_v30  ;;  %v10450_v37 = vunpack.i.l.bf16 %v10449_v30  ;;  %v10411_v30 = vunpack.i.h.bf16 %v16032_v55 }
 0x8c2   : > { %v10459_v33 = vpop.permute.xlu1 %10458 }
 0x8c3   : > { %v10461_v3 = vunpack.i.h.bf16 %v10459_v33  ;;  %v10460_v24 = vunpack.i.l.bf16 %v10459_v33  ;;  %v5778_v21 = vsel %vm5726_vm4, %v5762_v51, %v10450_v37  ;;  %v5779_v36 = vsel %vm5726_vm4, %v5763_v9, %v10451_v57 }
 0x8c4   : > { %v10454_v2 = vpop.permute.xlu0 %10453  ;;  %v5808_v33 = vpack.c.bf16 %v5745_v60, %v5744_v35  ;;  %v10421_v60 = vunpack.i.h.bf16 %v16041_v45  ;;  %v10425_v57 = vunpack.i.l.bf16 %v16043_v54  ;;  %v10441_v37 = vunpack.i.h.bf16 %v16035_v46 }
 0x8c5   : > { %v10456_v48 = vunpack.i.h.bf16 %v10454_v2  ;;  %v10455_v44 = vunpack.i.l.bf16 %v10454_v2  ;;  %v5776_v50 = vsel %vm5726_vm4, %v5760_v41, %v10460_v24  ;;  %v5777_v34 = vsel %vm5726_vm4, %v5761_v10, %v10461_v3 }
 0x8c6   : > { %v16057_v15 = vpop.permute.xlu1 %10463  ;;  %v10410_v2 = vunpack.i.l.bf16 %v16032_v55  ;;  %v5747_v55 = vsel %vm5743_vm5, %v5730_v18, %v10411_v30  ;;  %v10440_v3 = vunpack.i.l.bf16 %v16035_v46  ;;  %v5732_v54 = vsel %vm5726_vm4, %v5715_v29, %v10421_v60 }
 0x8c7   : > { %v5794_v43 = vsel %vm5743_vm5, %v5778_v21, %v10455_v44  ;;  %v5795_v19 = vsel %vm5743_vm5, %v5779_v36, %v10456_v48  ;;  %v18052_v48 = vld [vmem:[#allocation101_spill] sm:$0xff]  ;;  %v10446_v44 = vunpack.i.h.bf16 %v16039_v38  ;;  %v5767_v38 = vsel %vm2269_vm2, %v15924_v22, %v10441_v37 }
 0x8c8   : > { %v16045_v12 = vpop.permute.xlu0 %10478  ;;  %v5811_v61 = vpack.c.bf16 %v5795_v19, %v5794_v43  ;;  %v5746_v5 = vsel %vm5743_vm5, %v5729_v28, %v10410_v2  ;;  %v5714_v16 = vsel %vm2269_vm2, %v18052_v48, %v10415_v31  ;;  %v5766_v21 = vsel %vm2269_vm2, %v15920_v14, %v10440_v3 }
 0x8c9   : > { %v5810_v35 = vpack.c.bf16 %v5747_v55, %v5746_v5  ;;  %v18053_v5 = vld [vmem:[#allocation56_spill] sm:$0xff]  ;;  %v10481_v26 = vunpack.i.h.bf16 %v16045_v12  ;;  %v10480_v29 = vunpack.i.l.bf16 %v16045_v12 }
 0x8ca   : > { %v16075_v27 = vpop.permute.xlu1 %10468 }
 0x8cb   : > { %v10471_v13 = vunpack.i.h.bf16 %v16075_v27  ;;  %v10470_v56 = vunpack.i.l.bf16 %v16075_v27 }
 0x8cc   : > { %v16053_v49 = vpop.permute.xlu0 %10498 }
 0x8ce   : > { %v10474_v17 = vpop.permute.xlu1 %10473 }
 0x8cf   : > { %v10475_v28 = vunpack.i.l.bf16 %v10474_v17 }
 0x8d0   : > { %v10519_v23 = vpop.permute.xlu0 %10518 }
 0x8d1   : > { %v10521_v20 = vunpack.i.h.bf16 %v10519_v23  ;;  %v10520_v63 = vunpack.i.l.bf16 %v10519_v23  ;;  %v5731_v23 = vsel %vm5726_vm4, %v5714_v16, %v10420_v59 }
 0x8d2   : > { %v16107_v46 = vpop.permute.xlu1 %10483 }
 0x8d3   : > { %v5792_v4 = vsel %vm5743_vm5, %v5776_v50, %v10520_v63  ;;  %v5793_v1 = vsel %vm5743_vm5, %v5777_v34, %v10521_v20  ;;  %v5749_v20 = vsel %vm5743_vm5, %v5732_v54, %v10426_v32  ;;  %v5748_v63 = vsel %vm5743_vm5, %v5731_v23, %v10425_v57 }
 0x8d4   : > { %v10524_v52 = vpop.permute.xlu0 %10523  ;;  %v5809_v40 = vpack.c.bf16 %v5793_v1, %v5792_v4  ;;  %v5765_v50 = vsel %vm2269_vm2, %v15926_v7, %v10446_v44  ;;  %v5764_v34 = vsel %vm2269_vm2, %v15922_v42, %v10445_v58  ;;  %v10466_v42 = vunpack.i.h.bf16 %v16057_v15 }
 0x8d5   : > { %v10526_v45 = vunpack.i.h.bf16 %v10524_v52  ;;  %v10525_v47 = vunpack.i.l.bf16 %v10524_v52  ;;  %v5812_v8 = vpack.c.bf16 %v5749_v20, %v5748_v63  ;;  %v10486_v48 = vunpack.i.h.bf16 %v16107_v46 }
 0x8d6   : > { %6048 = vmatprep.mubr.bf16.mxu0 %v5809_v40  ;;  %v10465_v40 = vunpack.i.l.bf16 %v16057_v15  ;;  %v10489_v25 = vpop.permute.xlu1 %10488  ;;  %v5717_v55 = vsel %vm2269_vm2, %v18053_v5, %v10466_v42  ;;  %v10485_v16 = vunpack.i.l.bf16 %v16107_v46  ;;  %v10501_v58 = vunpack.i.h.bf16 %v16053_v49 }
 0x8d7   : > { %6049 = vmatmul.mubr.bf16.vlgmr.msra.gmra.mxu0 %v5808_v33  ;;  %v5782_v43 = vsel %vm5726_vm4, %v5766_v21, %v10525_v47  ;;  %v5783_v19 = vsel %vm5726_vm4, %v5767_v38, %v10526_v45  ;;  %v5734_v31 = vsel %vm5726_vm4, %v5717_v55, %v10471_v13  ;;  %v10500_v45 = vunpack.i.l.bf16 %v16053_v49  ;;  %v18055_v38 = vld [vmem:[#allocation113_spill] sm:$0xff] }
 0x8d8   : > { %v10529_v6 = vpop.permute.xlu0 %10528  ;;  %6058 = vmatprep.mubr.bf16.mxu0 %v5811_v61  ;;  %v10476_v61 = vunpack.i.h.bf16 %v10474_v17  ;;  %v10491_v47 = vunpack.i.h.bf16 %v10489_v25  ;;  %v5769_v54 = vsel %vm2269_vm2, %v15934_v11, %v10481_v26  ;;  %v5768_v23 = vsel %vm2269_vm2, %v15930_v53, %v10480_v29 }
 0x8d9   : > { %v10531_v10 = vunpack.i.h.bf16 %v10529_v6  ;;  %v10530_v41 = vunpack.i.l.bf16 %v10529_v6  ;;  %v18054_v6 = vld [vmem:[#allocation100_spill] sm:$0xff]  ;;  %v5719_v21 = vsel %vm2269_vm2, %v18055_v38, %v10486_v48  ;;  %v5771_v11 = vsel %vm2269_vm2, %v15932_v0, %v10501_v58  ;;  %v18061_v38 = vld [vmem:[#allocation111_spill] sm:$0xff] }
 0x8da   : > { %v5716_v39 = vsel %vm2269_vm2, %v18054_v6, %v10465_v40  ;;  %v5751_v27 = vsel %vm5743_vm5, %v5734_v31, %v10476_v61  ;;  %v10494_v60 = vpop.permute.xlu1 %10493  ;;  %v5770_v53 = vsel %vm2269_vm2, %v15928_v62, %v10500_v45  ;;  %v18057_v31 = vld [vmem:[#allocation104_spill] sm:$0xff] }
 0x8db   : > { %v5798_v52 = vsel %vm5743_vm5, %v5782_v43, %v10530_v41  ;;  %v5799_v7 = vsel %vm5743_vm5, %v5783_v19, %v10531_v10  ;;  %v5733_v15 = vsel %vm5726_vm4, %v5716_v39, %v10470_v56  ;;  %v10496_v12 = vunpack.i.h.bf16 %v10494_v60 }
 0x8dc   : > { %v10534_v24 = vpop.permute.xlu0 %10533  ;;  %v5815_v18 = vpack.c.bf16 %v5799_v7, %v5798_v52  ;;  %v10495_v10 = vunpack.i.l.bf16 %v10494_v60 }
 0x8dd   : > { %v10536_v9 = vunpack.i.h.bf16 %v10534_v24  ;;  %v10535_v51 = vunpack.i.l.bf16 %v10534_v24 }
 0x8de   : > { %v10504_v59 = vpop.permute.xlu1 %10503 }
 0x8df   : > { %6059 = vmatmul.mubr.bf16.gmra.mxu0 %v5810_v35  ;;  %v5780_v30 = vsel %vm5726_vm4, %v5764_v34, %v10535_v51  ;;  %v5781_v22 = vsel %vm5726_vm4, %v5765_v50, %v10536_v9  ;;  %v5750_v35 = vsel %vm5743_vm5, %v5733_v15, %v10475_v28  ;;  %v10490_v9 = vunpack.i.l.bf16 %v10489_v25 }
 0x8e0   : > { %v10539_v36 = vpop.permute.xlu0 %10538  ;;  %v5814_v17 = vpack.c.bf16 %v5751_v27, %v5750_v35  ;;  %v10506_v13 = vunpack.i.h.bf16 %v10504_v59  ;;  %v10505_v56 = vunpack.i.l.bf16 %v10504_v59  ;;  %v18058_v27 = vld [vmem:[#allocation118_spill] sm:$0xff] }
 0x8e1   : > { %v10541_v4 = vunpack.i.h.bf16 %v10539_v36  ;;  %v10540_v1 = vunpack.i.l.bf16 %v10539_v36  ;;  %v18056_v36 = vld [vmem:[#allocation119_spill] sm:$0xff] }
 0x8e2   : > { %v16139_v32 = vpop.permute.xlu1 %10508  ;;  %v5718_v49 = vsel %vm2269_vm2, %v18056_v36, %v10485_v16  ;;  %v5721_v35 = vsel %vm2269_vm2, %v18057_v31, %v10506_v13  ;;  %v5720_v60 = vsel %vm2269_vm2, %v18058_v27, %v10505_v56  ;;  %v18062_v36 = vld [vmem:[#allocation35_spill] sm:$0xff]  ;;  %v18066_v31 = vld [vmem:[#allocation109_spill] sm:$0xff] }
 0x8e3   : > { %v5796_v2 = vsel %vm5743_vm5, %v5780_v30, %v10540_v1  ;;  %v5797_v14 = vsel %vm5743_vm5, %v5781_v22, %v10541_v4  ;;  %v5735_v4 = vsel %vm5726_vm4, %v5718_v49, %v10490_v9  ;;  %v5736_v1 = vsel %vm5726_vm4, %v5719_v21, %v10491_v47 }
 0x8e4   : > { %v5813_v33 = vpack.c.bf16 %v5797_v14, %v5796_v2  ;;  %v5752_v19 = vsel %vm5743_vm5, %v5735_v4, %v10495_v10  ;;  %v5753_v30 = vsel %vm5743_vm5, %v5736_v1, %v10496_v12  ;;  %v10510_v5 = vunpack.i.l.bf16 %v16139_v32  ;;  %v18059_v10 = vld [vmem:[#allocation106_spill] sm:$0xff] }
 0x8e5   : > { %v5816_v28 = vpack.c.bf16 %v5753_v30, %v5752_v19 }
 0x8e6   : > { %6068 = vmatprep.mubr.bf16.mxu0 %v5813_v33  ;;  %v16141_v57 = vpop.permute.xlu1 %10513  ;;  %v5737_v59 = vsel %vm5726_vm4, %v5720_v60, %v10510_v5 }
 0x8e7   : > { %6069 = vmatmul.mubr.bf16.gmra.mxu0 %v5812_v8  ;;  %v10516_v55 = vunpack.i.h.bf16 %v16141_v57  ;;  %v10515_v6 = vunpack.i.l.bf16 %v16141_v57 }
 0x8e8   : > { %6078 = vmatprep.mubr.bf16.mxu0 %v5815_v18  ;;  %v10511_v18 = vunpack.i.h.bf16 %v16139_v32 }
 0x8ea   : > { %v16143_v3 = vpop.permute.xlu1 %10568  ;;  %v5738_v32 = vsel %vm5726_vm4, %v5721_v35, %v10511_v18 }
 0x8eb   : > { %v5755_v57 = vsel %vm5743_vm5, %v5738_v32, %v10516_v55  ;;  %v10570_v26 = vunpack.i.l.bf16 %v16143_v3 }
 0x8ee   : > { %v16149_v44 = vpop.permute.xlu1 %10573 }
 0x8ef   : > { %6079 = vmatmul.mubr.bf16.gmra.mxu0 %v5814_v17  ;;  %v10576_v29 = vunpack.i.h.bf16 %v16149_v44  ;;  %v10575_v48 = vunpack.i.l.bf16 %v16149_v44 }
 0x8f2   : > { %v10579_v22 = vpop.permute.xlu1 %10578 }
 0x8f6   : > { %v10589_v15 = vpop.permute.xlu1 %10588 }
 0x8f7   : > { %v10590_v19 = vunpack.i.l.bf16 %v10589_v15 }
 0x8fa   : > { %v10609_v45 = vpop.permute.xlu1 %10608 }
 0x8fe   : > { %v10619_v30 = vpop.permute.xlu1 %10618 }
 0x8ff   : > { %v10544_v37 = vpop.permute.xlu0 %10543 }
 0x900   : > { %v10546_v41 = vunpack.i.h.bf16 %v10544_v37  ;;  %v10545_v20 = vunpack.i.l.bf16 %v10544_v37  ;;  %v5754_v37 = vsel %vm5743_vm5, %v5737_v59, %v10515_v6 }
 0x901   : > { %v5818_v58 = vpack.c.bf16 %v5755_v57, %v5754_v37 }
 0x902   : > { %v5786_v52 = vsel %vm5726_vm4, %v5770_v53, %v10545_v20  ;;  %v5787_v7 = vsel %vm5726_vm4, %v5771_v11, %v10546_v41  ;;  %v18060_v20 = vld [vmem:[#allocation107_spill] sm:$0xff] }
 0x907   : > { %v10549_v24 = vpop.permute.xlu0 %10548 }
 0x908   : > { %v10551_v50 = vunpack.i.h.bf16 %v10549_v24  ;;  %v10550_v34 = vunpack.i.l.bf16 %v10549_v24  ;;  %v10571_v24 = vunpack.i.h.bf16 %v16143_v3 }
 0x90a   : > { %v5802_v33 = vsel %vm5743_vm5, %v5786_v52, %v10550_v34  ;;  %v5803_v8 = vsel %vm5743_vm5, %v5787_v7, %v10551_v50  ;;  %v5723_v41 = vsel %vm2269_vm2, %v18059_v10, %v10571_v24  ;;  %v10610_v52 = vunpack.i.l.bf16 %v10609_v45 }
 0x90b   : > { %v10554_v51 = vpop.permute.xlu0 %10553  ;;  %v5819_v39 = vpack.c.bf16 %v5803_v8, %v5802_v33  ;;  %v5740_v44 = vsel %vm5726_vm4, %v5723_v41, %v10576_v29  ;;  %v10621_v33 = vunpack.i.h.bf16 %v10619_v30  ;;  %v10620_v8 = vunpack.i.l.bf16 %v10619_v30  ;;  %v6430_v41 = vld [vmem:[#allocation13 + $0x188] sm:$0xff] }
 0x90c   : > { %v10556_v46 = vunpack.i.h.bf16 %v10554_v51  ;;  %v10555_v63 = vunpack.i.l.bf16 %v10554_v51  ;;  %v10581_v51 = vunpack.i.h.bf16 %v10579_v22 }
 0x90e   : > { %v5784_v0 = vsel %vm5726_vm4, %v5768_v23, %v10555_v63  ;;  %v5785_v62 = vsel %vm5726_vm4, %v5769_v54, %v10556_v46  ;;  %v10580_v54 = vunpack.i.l.bf16 %v10579_v22  ;;  %v5722_v46 = vsel %vm2269_vm2, %v18060_v20, %v10570_v26  ;;  %v6434_v20 = vld [vmem:[#allocation13 + $0x1a8] sm:$0xff] }
 0x90f   : > { %v10559_v43 = vpop.permute.xlu0 %10558  ;;  %v5739_v3 = vsel %vm5726_vm4, %v5722_v46, %v10575_v48  ;;  %v5757_v53 = vsel %vm5743_vm5, %v5740_v44, %v10581_v51  ;;  %v6437_v48 = vld [vmem:[#allocation13 + $0x1c0] sm:$0xff] }
 0x910   : > { %v10561_v2 = vunpack.i.h.bf16 %v10559_v43  ;;  %v10560_v14 = vunpack.i.l.bf16 %v10559_v43  ;;  %v5756_v11 = vsel %vm5743_vm5, %v5739_v3, %v10580_v54  ;;  %v10591_v43 = vunpack.i.h.bf16 %v10589_v15  ;;  %v6429_v51 = vld [vmem:[#allocation13 + $0x180] sm:$0xff] }
 0x911   : > { %v6433_v54 = vld [vmem:[#allocation13 + $0x1a0] sm:$0xff]  ;;  %v9207_v3 = vcombine.high %v6430_v41, %v6434_v20 }
 0x912   : > { %v5800_v42 = vsel %vm5743_vm5, %v5784_v0, %v10560_v14  ;;  %v5801_v40 = vsel %vm5743_vm5, %v5785_v62, %v10561_v2  ;;  %v10611_v14 = vunpack.i.h.bf16 %v10609_v45  ;;  %v5820_v62 = vpack.c.bf16 %v5757_v53, %v5756_v11  ;;  %v6421_v46 = vld [vmem:[#allocation13 + $0x140] sm:$0xff]  ;;  %v6414_v53 = vld [vmem:[#allocation13 + $0x108] sm:$0xff] }
 0x913   : > { %v10564_v25 = vpop.permute.xlu0 %10563  ;;  %v5817_v61 = vpack.c.bf16 %v5801_v40, %v5800_v42  ;;  %v9205_v10 = vcombine.high %v6429_v51, %v6433_v54  ;;  %v6425_v44 = vld [vmem:[#allocation13 + $0x160] sm:$0xff] }
 0x914   : > { %v10566_v47 = vunpack.i.h.bf16 %v10564_v25  ;;  %v10565_v9 = vunpack.i.l.bf16 %v10564_v25  ;;  %v18063_v25 = vld [vmem:[#allocation50_spill] sm:$0xff]  ;;  %v6417_v11 = vld [vmem:[#allocation13 + $0x120] sm:$0xff] }
 0x915   : > { %6088 = vmatprep.mubr.bf16.mxu0 %v5817_v61  ;;  %v5725_v61 = vsel %vm2269_vm2, %v18063_v25, %v10591_v43 }
 0x916   : > { %6089 = vmatmul.mubr.bf16.gmra.mxu0 %v5816_v28  ;;  %v5773_v21 = vsel %vm2269_vm2, %v18061_v38, %v10566_v47  ;;  %v5772_v49 = vsel %vm2269_vm2, %v18062_v36, %v10565_v9  ;;  %v18064_v28 = vld [vmem:[#allocation102_spill] sm:$0xff]  ;;  %v5742_v55 = vsel %vm5726_vm4, %v5725_v61, %v10611_v14  ;;  %v6442_v9 = vld [vmem:[#allocation13 + $0x1e8] sm:$0xff]  ;;  %v9206_v36 = vcombine.low %v6430_v41, %v6434_v20 }
 0x917   : > { %v10584_v17 = vpop.permute.xlu0 %10583  ;;  %6098 = vmatprep.mubr.bf16.mxu0 %v5819_v39  ;;  %v5724_v18 = vsel %vm2269_vm2, %v18064_v28, %v10590_v19  ;;  %v18065_v39 = vld [vmem:[#allocation110_spill] sm:$0xff]  ;;  %v5759_v59 = vsel %vm5743_vm5, %v5742_v55, %v10621_v33  ;;  %v6426_v38 = vld [vmem:[#allocation13 + $0x168] sm:$0xff]  ;;  %v6401_v33 = vld [vmem:[#allocation13 + $0xa0] sm:$0xff] }
 0x918   : > { %v10586_v42 = vunpack.i.h.bf16 %v10584_v17  ;;  %v10585_v40 = vunpack.i.l.bf16 %v10584_v17  ;;  %v5741_v5 = vsel %vm5726_vm4, %v5724_v18, %v10610_v52  ;;  %v6406_v14 = vld [vmem:[#allocation13 + $0xc8] sm:$0xff]  ;;  %v6389_v18 = vld [vmem:[#allocation13 + $0x40] sm:$0xff] }
 0x919   : > { %v5758_v17 = vsel %vm5743_vm5, %v5741_v5, %v10620_v8  ;;  %v6410_v52 = vld [vmem:[#allocation13 + $0xe8] sm:$0xff]  ;;  %v6393_v5 = vld [vmem:[#allocation13 + $0x60] sm:$0xff] }
 0x91a   : > { %v5775_v15 = vsel %vm2269_vm2, %v18065_v39, %v10586_v42  ;;  %v5774_v35 = vsel %vm2269_vm2, %v18066_v31, %v10585_v40  ;;  %v5822_v29 = vpack.c.bf16 %v5759_v59, %v5758_v17  ;;  %v9183_v42 = vcombine.high %v6406_v14, %v6410_v52  ;;  %v6397_v40 = vld [vmem:[#allocation13 + $0x80] sm:$0xff]  ;;  %v6398_v8 = vld [vmem:[#allocation13 + $0x88] sm:$0xff] }
 0x91b   : > { %v10594_v16 = vpop.permute.xlu0 %10593  ;;  %v9182_v25 = vcombine.low %v6406_v14, %v6410_v52  ;;  %v9173_v61 = vcombine.high %v6397_v40, %v6401_v33  ;;  %v6390_v55 = vld [vmem:[#allocation13 + $0x48] sm:$0xff]  ;;  %v9172_v39 = vcombine.low %v6397_v40, %v6401_v33  ;;  %v9165_v31 = vcombine.high %v6389_v18, %v6393_v5  ;;  %v11701_v40 = vld [vmem:[%s12299_s23 + $0x38] sm:$0xff] }
 0x91c   : > { %v10596_v23 = vunpack.i.h.bf16 %v10594_v16  ;;  %v10595_v12 = vunpack.i.l.bf16 %v10594_v16  ;;  %v6441_v16 = vld [vmem:[#allocation13 + $0x1e0] sm:$0xff]  ;;  %v6382_v17 = vld [vmem:[#allocation13 + $0x8] sm:$0xff] }
 0x91d   : > { %v9212_v45 = vcombine.low %v6437_v48, %v6441_v16  ;;  %v9213_v47 = vcombine.high %v6437_v48, %v6441_v16  ;;  %v6386_v59 = vld [vmem:[#allocation13 + $0x28] sm:$0xff] }
 0x91e   : > { %6099 = vmatmul.mubr.bf16.gmra.mxu0 %v5818_v58  ;;  %v5788_v4 = vsel %vm5726_vm4, %v5772_v49, %v10595_v12  ;;  %v5789_v1 = vsel %vm5726_vm4, %v5773_v21, %v10596_v23  ;;  %v6438_v58 = vld [vmem:[#allocation13 + $0x1c8] sm:$0xff]  ;;  %v9204_v21 = vcombine.low %v6429_v51, %v6433_v54  ;;  %v9197_v49 = vcombine.high %v6421_v46, %v6425_v44  ;;  %v11694_v51 = vld [vmem:[%s12299_s23] sm:$0xff] }
 0x91f   : > { %v10599_v63 = vpop.permute.xlu0 %10598  ;;  %v9214_v23 = vcombine.low %v6438_v58, %v6442_v9  ;;  %v9215_v12 = vcombine.high %v6438_v58, %v6442_v9  ;;  %7149 = vmatprep.subr.bf16.mxu1 %v9213_v47  ;;  %v6502_v48 = vld [vmem:[#allocation13 + $0x3c8] sm:$0xff]  ;;  %v9158_v47 = vcombine.low %v6382_v17, %v6386_v59 }
 0x920   : > { %v10601_v50 = vunpack.i.h.bf16 %v10599_v63  ;;  %v10600_v34 = vunpack.i.l.bf16 %v10599_v63  ;;  %v6422_v63 = vld [vmem:[#allocation13 + $0x148] sm:$0xff]  ;;  %7150 = vmatpush1.bf16.msra.mxu1 %v9212_v45 }
 0x921   : > { %7262 = vmatprep.subr.bf16.mxu0 %v9215_v12  ;;  %7151 = vmatprep.subr.bf16.mxu1 %v9205_v10  ;;  %v9198_v43 = vcombine.low %v6422_v63, %v6426_v38  ;;  %v6506_v16 = vld [vmem:[#allocation13 + $0x3e8] sm:$0xff] }
 0x922   : > { %v5804_v22 = vsel %vm5743_vm5, %v5788_v4, %v10600_v34  ;;  %v5805_v2 = vsel %vm5743_vm5, %v5789_v1, %v10601_v50  ;;  %7263 = vmatpush1.bf16.msra.mxu0 %v9214_v23  ;;  %v9199_v50 = vcombine.high %v6422_v63, %v6426_v38  ;;  %v6413_v34 = vld [vmem:[#allocation13 + $0x100] sm:$0xff]  ;;  %v6418_v4 = vld [vmem:[#allocation13 + $0x128] sm:$0xff]  ;;  %v9196_v1 = vcombine.low %v6421_v46, %v6425_v44  ;;  %v11696_v38 = vld [vmem:[%s12299_s23 + $0x10] sm:$0xff] }
 0x923   : > { %v10604_v7 = vpop.permute.xlu0 %10603  ;;  %v5821_v0 = vpack.c.bf16 %v5805_v2, %v5804_v22  ;;  %7264 = vmatprep.subr.bf16.mxu0 %v9207_v3  ;;  %v9189_v19 = vcombine.high %v6413_v34, %v6417_v11  ;;  %v9191_v30 = vcombine.high %v6414_v53, %v6418_v4  ;;  %v6405_v22 = vld [vmem:[#allocation13 + $0xc0] sm:$0xff]  ;;  %v9279_v23 = vcombine.high %v6502_v48, %v6506_v16  ;;  %v11695_v10 = vld [vmem:[%s12299_s23 + $0x8] sm:$0xff] }
 0x924   : > { %v10606_v13 = vunpack.i.h.bf16 %v10604_v7  ;;  %v10605_v56 = vunpack.i.l.bf16 %v10604_v7  ;;  %7152 = vmatpush1.bf16.msra.mxu1 %v9204_v21  ;;  %v6409_v2 = vld [vmem:[#allocation13 + $0xe0] sm:$0xff]  ;;  %v9188_v7 = vcombine.low %v6413_v34, %v6417_v11  ;;  %v9278_v3 = vcombine.low %v6502_v48, %v6506_v16  ;;  %v11705_v48 = vld [vmem:[%s12299_s23 + $0x58] sm:$0xff] }
 0x925   : > { %6108 = vmatprep.mubr.bf16.mxu0 %v5821_v0  ;;  %7153 = vmatprep.subr.bf16.mxu1 %v9197_v49  ;;  %v9190_v0 = vcombine.low %v6414_v53, %v6418_v4  ;;  %v11697_v49 = vld [vmem:[%s12299_s23 + $0x18] sm:$0xff]  ;;  %v11698_v4 = vld [vmem:[%s12299_s23 + $0x20] sm:$0xff] }
 0x926   : > { %6109 = vmatmul.mubr.bf16.gmra.mxu0 %v5820_v62  ;;  %v5790_v32 = vsel %vm5726_vm4, %v5774_v35, %v10605_v56  ;;  %v5791_v37 = vsel %vm5726_vm4, %v5775_v15, %v10606_v13  ;;  %v9181_v62 = vcombine.high %v6405_v22, %v6409_v2  ;;  %v6402_v13 = vld [vmem:[#allocation13 + $0xa8] sm:$0xff]  ;;  %v9180_v56 = vcombine.low %v6405_v22, %v6409_v2 }
 0x927   : > { %v10614_v6 = vpop.permute.xlu0 %10613  ;;  %7265 = vmatpush1.bf16.msra.mxu0 %v9206_v36  ;;  %v9175_v28 = vcombine.high %v6398_v8, %v6402_v13  ;;  %v9174_v15 = vcombine.low %v6398_v8, %v6402_v13 }
 0x928   : > { %v10616_v27 = vunpack.i.h.bf16 %v10614_v6  ;;  %v10615_v60 = vunpack.i.l.bf16 %v10614_v6  ;;  %7266 = vmatprep.subr.bf16.mxu0 %v9199_v50  ;;  %7154 = vmatpush1.bf16.msra.mxu1 %v9196_v1  ;;  %v6394_v6 = vld [vmem:[#allocation13 + $0x68] sm:$0xff] }
 0x929   : > { %7155 = vmatprep.subr.bf16.mxu1 %v9189_v19  ;;  %v9167_v35 = vcombine.high %v6390_v55, %v6394_v6 }
 0x92a   : > { %v5806_v57 = vsel %vm5743_vm5, %v5790_v32, %v10615_v60  ;;  %v5807_v24 = vsel %vm5743_vm5, %v5791_v37, %v10616_v27  ;;  %v6381_v27 = vld [vmem:[#allocation13] sm:$0xff]  ;;  %v9164_v32 = vcombine.low %v6389_v18, %v6393_v5  ;;  %v9166_v37 = vcombine.low %v6390_v55, %v6394_v6  ;;  %v11703_v5 = vld [vmem:[%s12299_s23 + $0x48] sm:$0xff] }
 0x92b   : > { %v5823_v26 = vpack.c.bf16 %v5807_v24, %v5806_v57  ;;  %7267 = vmatpush1.bf16.msra.mxu0 %v9198_v43  ;;  %v6385_v60 = vld [vmem:[#allocation13 + $0x20] sm:$0xff]  ;;  %v9159_v24 = vcombine.high %v6382_v17, %v6386_v59  ;;  %v11704_v17 = vld [vmem:[%s12299_s23 + $0x50] sm:$0xff] }
 0x92c   : > { %7268 = vmatprep.subr.bf16.mxu0 %v9191_v30  ;;  %7156 = vmatpush1.bf16.msra.mxu1 %v9188_v7  ;;  %v9157_v57 = vcombine.high %v6381_v27, %v6385_v60  ;;  %v9156_v58 = vcombine.low %v6381_v27, %v6385_v60  ;;  %v11699_v30 = vld [vmem:[%s12299_s23 + $0x28] sm:$0xff] }
 0x92d   : > { %6118 = vmatprep.mubr.bf16.mxu0 %v5823_v26  ;;  %7157 = vmatprep.subr.bf16.mxu1 %v9181_v62  ;;  %v6501_v26 = vld [vmem:[#allocation13 + $0x3c0] sm:$0xff] }
 0x92e   : > { %6119 = vmatmul.mubr.bf16.gmra.mxu0 %v5822_v29  ;;  %v6505_v29 = vld [vmem:[#allocation13 + $0x3e0] sm:$0xff] }
 0x92f   : > { %7269 = vmatpush1.bf16.msra.mxu0 %v9190_v0  ;;  %v9277_v9 = vcombine.high %v6501_v26, %v6505_v29  ;;  %v9276_v20 = vcombine.low %v6501_v26, %v6505_v29  ;;  %v11700_v0 = vld [vmem:[%s12299_s23 + $0x30] sm:$0xff] }
 0x930   : > { %7270 = vmatprep.subr.bf16.mxu0 %v9183_v42  ;;  %7158 = vmatpush1.bf16.msra.mxu1 %v9180_v56 }
 0x931   : > { %7159 = vmatprep.subr.bf16.mxu1 %v9173_v61 }
 0x933   : > { %7271 = vmatpush1.bf16.msra.mxu0 %v9182_v25  ;;  %v11702_v25 = vld [vmem:[%s12299_s23 + $0x40] sm:$0xff] }
 0x934   : > { %7272 = vmatprep.subr.bf16.mxu0 %v9175_v28  ;;  %7160 = vmatpush1.bf16.msra.mxu1 %v9172_v39 }
 0x935   : > { %7161 = vmatprep.subr.bf16.mxu1 %v9165_v31  ;;  %v6497_v31 = vld [vmem:[#allocation13 + $0x3a0] sm:$0xff] }
 0x937   : > { %7273 = vmatpush1.bf16.msra.mxu0 %v9174_v15  ;;  %v6493_v15 = vld [vmem:[#allocation13 + $0x380] sm:$0xff] }
 0x938   : > { %7274 = vmatprep.subr.bf16.mxu0 %v9167_v35  ;;  %7162 = vmatpush1.bf16.msra.mxu1 %v9164_v32  ;;  %v6494_v35 = vld [vmem:[#allocation13 + $0x388] sm:$0xff]  ;;  %v9269_v32 = vcombine.high %v6493_v15, %v6497_v31 }
 0x939   : > { %7163 = vmatprep.subr.bf16.mxu1 %v9157_v57 }
 0x93b   : > { %7275 = vmatpush1.bf16.msra.mxu0 %v9166_v37  ;;  %v6498_v37 = vld [vmem:[#allocation13 + $0x3a8] sm:$0xff] }
 0x93c   : > { %7276 = vmatprep.subr.bf16.mxu0 %v9159_v24  ;;  %7164 = vmatpush1.bf16.msra.mxu1 %v9156_v58  ;;  %v9268_v24 = vcombine.low %v6493_v15, %v6497_v31  ;;  %v9270_v26 = vcombine.low %v6494_v35, %v6498_v37  ;;  %v9271_v29 = vcombine.high %v6494_v35, %v6498_v37  ;;  %v6474_v35 = vld [vmem:[#allocation13 + $0x2e8] sm:$0xff]  ;;  %v6461_v37 = vld [vmem:[#allocation13 + $0x280] sm:$0xff] }
 0x93d   : > { %7165 = vmatprep.subr.bf16.mxu1 %v9277_v9  ;;  %v6485_v9 = vld [vmem:[#allocation13 + $0x340] sm:$0xff] }
 0x93f   : > { %7277 = vmatpush1.bf16.msra.mxu0 %v9158_v47 }
 0x940   : > { %7278 = vmatprep.subr.bf16.mxu0 %v9279_v23  ;;  %7166 = vmatpush2.bf16.msra.mxu1 %v9276_v20  ;;  %v6486_v23 = vld [vmem:[#allocation13 + $0x348] sm:$0xff] }
 0x941   : > { %7167 = vmatprep.subr.bf16.mxu1 %v9269_v32 }
 0x943   : > { %7279 = vmatpush2.bf16.msra.mxu0 %v9278_v3  ;;  %v6490_v3 = vld [vmem:[#allocation13 + $0x368] sm:$0xff] }
 0x944   : > { %7280 = vmatprep.subr.bf16.mxu0 %v9271_v29  ;;  %7168 = vmatpush2.bf16.msra.mxu1 %v9268_v24  ;;  %v6462_v24 = vld [vmem:[#allocation13 + $0x288] sm:$0xff] }
 0x945   : > { %v6466_v29 = vld [vmem:[#allocation13 + $0x2a8] sm:$0xff] }
 0x947   : > { %7281 = vmatpush2.bf16.msra.mxu0 %v9270_v26 }
 0x997   : > { %v6050_v45 = vpop.f32.mrf.mxu0 }
 0x998   : > { %v16226_v54 = vadd.f32 %v11694_v51, %v6050_v45  ;;  %v6489_v51 = vld [vmem:[#allocation13 + $0x360] sm:$0xff] }
 0x999   : > { %v6052_v12 = vpop.f32.mrf.mxu0 }
 0x99a   : > { %18067 = vst [vmem:[#allocation114_spill] sm:$0xff] %v16226_v54  ;;  %v16229_v41 = vadd.f32 %v11695_v10, %v6052_v12  ;;  %v6162_v44 = vmul.f32 %v16226_v54, %v16226_v54  ;;  %v11706_v12 = vld [vmem:[%s12299_s23 + $0x60] sm:$0xff] }
 0x99b   : > { %v6054_v46 = vpop.f32.mrf.mxu0 }
 0x99c   : > { %18068 = vst [vmem:[#allocation112_spill] sm:$0xff] %v16229_v41  ;;  %v6163_v63 = vmul.f32 %v16229_v41, %v16229_v41  ;;  %v16236_v21 = vadd.f32 %v11696_v38, %v6054_v46  ;;  %v9261_v46 = vcombine.high %v6485_v9, %v6489_v51  ;;  %v9262_v38 = vcombine.low %v6486_v23, %v6490_v3 }
 0x99d   : > { %v6056_v36 = vpop.f32.mrf.mxu0 }
 0x99e   : > { %18069 = vst [vmem:[#allocation116_spill] sm:$0xff] %v16236_v21  ;;  %v16239_v50 = vadd.f32 %v11697_v49, %v6056_v36  ;;  %v6194_v34 = vadd.f32 %v6163_v63, %v6162_v44  ;;  %v6164_v53 = vmul.f32 %v16236_v21, %v16236_v21  ;;  %v9260_v63 = vcombine.low %v6485_v9, %v6489_v51  ;;  %v11707_v49 = vld [vmem:[%s12299_s23 + $0x68] sm:$0xff]  ;;  %v6457_v9 = vld [vmem:[#allocation13 + $0x260] sm:$0xff] }
 0x99f   : > { %v6060_v11 = vpop.f32.mrf.mxu0  ;;  %v9263_v36 = vcombine.high %v6486_v23, %v6490_v3  ;;  %7169 = vmatprep.subr.bf16.mxu1 %v9261_v46  ;;  %v6454_v51 = vld [vmem:[#allocation13 + $0x248] sm:$0xff] }
 0x9a0   : > { %18070 = vst [vmem:[#allocation37_spill] sm:$0xff] %v16239_v50  ;;  %v16244_v1 = vadd.f32 %v11698_v4, %v6060_v11  ;;  %6195 = vadd.xlane.f32.xlu0 %v6194_v34  ;;  %v6165_v43 = vmul.f32 %v16239_v50, %v16239_v50  ;;  %7170 = vmatpush2.bf16.msra.mxu1 %v9260_v63  ;;  %v6449_v63 = vld [vmem:[#allocation13 + $0x220] sm:$0xff] }
 0x9a1   : > { %v6062_v19 = vpop.f32.mrf.mxu0  ;;  %7282 = vmatprep.subr.bf16.mxu0 %v9263_v36 }
 0x9a2   : > { %18071 = vst [vmem:[#allocation44_spill] sm:$0xff] %v16244_v1  ;;  %v16249_v22 = vadd.f32 %v11699_v30, %v6062_v19  ;;  %v6197_v2 = vadd.f32 %v6165_v43, %v6164_v53  ;;  %v6166_v52 = vmul.f32 %v16244_v1, %v16244_v1  ;;  %v6477_v43 = vld [vmem:[#allocation13 + $0x300] sm:$0xff]  ;;  %v6478_v30 = vld [vmem:[#allocation13 + $0x308] sm:$0xff]  ;;  %7283 = vmatpush2.bf16.msra.mxu0 %v9262_v38 }
 0x9a3   : > { %v6064_v14 = vpop.f32.mrf.mxu0  ;;  %v6481_v19 = vld [vmem:[#allocation13 + $0x320] sm:$0xff]  ;;  %v6446_v38 = vld [vmem:[#allocation13 + $0x208] sm:$0xff] }
 0x9a4   : > { %18072 = vst [vmem:[#allocation117_spill] sm:$0xff] %v16249_v22  ;;  %v6167_v7 = vmul.f32 %v16249_v22, %v16249_v22  ;;  %v16256_v62 = vadd.f32 %v11700_v0, %v6064_v14  ;;  %6198 = vadd.xlane.f32.xlu1 %v6197_v2  ;;  %v11708_v14 = vld [vmem:[%s12299_s23 + $0x70] sm:$0xff]  ;;  %v6482_v0 = vld [vmem:[#allocation13 + $0x328] sm:$0xff] }
 0x9a5   : > { %v6066_v42 = vpop.f32.mrf.mxu0 }
 0x9a6   : > { %18073 = vst [vmem:[#allocation43_spill] sm:$0xff] %v16256_v62  ;;  %v16259_v33 = vadd.f32 %v11701_v40, %v6066_v42  ;;  %v6200_v8 = vadd.f32 %v6167_v7, %v6166_v52  ;;  %v6168_v56 = vmul.f32 %v16256_v62, %v16256_v62  ;;  %v9253_v7 = vcombine.high %v6477_v43, %v6481_v19 }
 0x9a7   : > { %v6070_v13 = vpop.f32.mrf.mxu0  ;;  %v9252_v40 = vcombine.low %v6477_v43, %v6481_v19  ;;  %v11710_v19 = vld [vmem:[%s12299_s23 + $0x80] sm:$0xff] }
 0x9a8   : > { %18074 = vst [vmem:[#allocation120_spill] sm:$0xff] %v16259_v33  ;;  %v16264_v61 = vadd.f32 %v11702_v25, %v6070_v13  ;;  %6201 = vadd.xlane.f32.xlu0 %v6200_v8  ;;  %v6169_v28 = vmul.f32 %v16259_v33, %v16259_v33  ;;  %v9254_v8 = vcombine.low %v6478_v30, %v6482_v0 }
 0x9a9   : > { %v6072_v18 = vpop.f32.mrf.mxu0  ;;  %v9255_v13 = vcombine.high %v6478_v30, %v6482_v0  ;;  %7171 = vmatprep.subr.bf16.mxu1 %v9253_v7 }
 0x9aa   : > { %18075 = vst [vmem:[#allocation131_spill] sm:$0xff] %v16264_v61  ;;  %v16269_v55 = vadd.f32 %v11703_v5, %v6072_v18  ;;  %v6203_v6 = vadd.f32 %v6169_v28, %v6168_v56  ;;  %v6170_v27 = vmul.f32 %v16264_v61, %v16264_v61  ;;  %v11709_v56 = vld [vmem:[%s12299_s23 + $0x78] sm:$0xff]  ;;  %7172 = vmatpush2.bf16.msra.mxu1 %v9252_v40  ;;  %v6469_v18 = vld [vmem:[#allocation13 + $0x2c0] sm:$0xff] }
 0x9ab   : > { %v6074_v39 = vpop.f32.mrf.mxu0  ;;  %7284 = vmatprep.subr.bf16.mxu0 %v9255_v13  ;;  %v6473_v5 = vld [vmem:[#allocation13 + $0x2e0] sm:$0xff] }
 0x9ac   : > { %18076 = vst [vmem:[#allocation133_spill] sm:$0xff] %v16269_v55  ;;  %v6171_v60 = vmul.f32 %v16269_v55, %v16269_v55  ;;  %v16276_v59 = vadd.f32 %v11704_v17, %v6074_v39  ;;  %6204 = vadd.xlane.f32.xlu0 %v6203_v6  ;;  %v6470_v6 = vld [vmem:[#allocation13 + $0x2c8] sm:$0xff]  ;;  %7285 = vmatpush2.bf16.msra.mxu0 %v9254_v8  ;;  %v11712_v8 = vld [vmem:[%s12299_s23 + $0x90] sm:$0xff] }
 0x9ad   : > { %v6076_v57 = vpop.f32.mrf.mxu0  ;;  %v9245_v31 = vcombine.high %v6469_v18, %v6473_v5  ;;  %v9247_v17 = vcombine.high %v6470_v6, %v6474_v35 }
 0x9ae   : > { %18077 = vst [vmem:[#allocation137_spill] sm:$0xff] %v16276_v59  ;;  %v16279_v16 = vadd.f32 %v11705_v48, %v6076_v57  ;;  %v6206_v58 = vadd.f32 %v6171_v60, %v6170_v27  ;;  %v6172_v45 = vmul.f32 %v16276_v59, %v16276_v59  ;;  %v9244_v27 = vcombine.low %v6469_v18, %v6473_v5  ;;  %v6465_v57 = vld [vmem:[#allocation13 + $0x2a0] sm:$0xff] }
 0x9af   : > { %v6080_v47 = vpop.f32.mrf.mxu0  ;;  %v9246_v60 = vcombine.low %v6470_v6, %v6474_v35  ;;  %7173 = vmatprep.subr.bf16.mxu1 %v9245_v31  ;;  %7286 = vmatprep.subr.bf16.mxu0 %v9247_v17  ;;  %v9237_v26 = vcombine.high %v6461_v37, %v6465_v57  ;;  %v9236_v48 = vcombine.low %v6461_v37, %v6465_v57  ;;  %v11714_v31 = vld [vmem:[%s12299_s23 + $0xa0] sm:$0xff]  ;;  %v16330_v17 = vld [vmem:[#allocation13 + $0x1f0] sm:$0xff]  ;;  %v11715_v37 = vld [vmem:[%s12299_s23 + $0xa8] sm:$0xff] }
 0x9b0   : > { %18078 = vst [vmem:[#allocation127_spill] sm:$0xff] %v16279_v16  ;;  %v16284_v10 = vadd.f32 %v11706_v12, %v6080_v47  ;;  %6207 = vadd.xlane.f32.xlu0 %v6206_v58  ;;  %v6173_v20 = vmul.f32 %v16279_v16, %v16279_v16  ;;  %7174 = vmatpush2.bf16.msra.mxu1 %v9244_v27  ;;  %v6453_v47 = vld [vmem:[#allocation13 + $0x240] sm:$0xff]  ;;  %v6458_v12 = vld [vmem:[#allocation13 + $0x268] sm:$0xff] }
 0x9b1   : > { %v6082_v44 = vpop.f32.mrf.mxu0  ;;  %7287 = vmatpush2.bf16.msra.mxu0 %v9246_v60  ;;  %v9238_v58 = vcombine.low %v6462_v24, %v6466_v29  ;;  %7175 = vmatprep.subr.bf16.mxu1 %v9237_v26  ;;  %v9229_v23 = vcombine.high %v6453_v47, %v6457_v9  ;;  %v9230_v46 = vcombine.low %v6454_v51, %v6458_v12  ;;  %v16328_v60 = vld [vmem:[#allocation13 + $0x1d0] sm:$0xff] }
 0x9b2   : > { %18079 = vst [vmem:[#allocation122_spill] sm:$0xff] %v16284_v10  ;;  %v16289_v34 = vadd.f32 %v11707_v49, %v6082_v44  ;;  %v6209_v11 = vadd.f32 %v6173_v20, %v6172_v45  ;;  %v6174_v53 = vmul.f32 %v16284_v10, %v16284_v10  ;;  %v9239_v45 = vcombine.high %v6462_v24, %v6466_v29  ;;  %v6445_v44 = vld [vmem:[#allocation13 + $0x200] sm:$0xff]  ;;  %v6450_v49 = vld [vmem:[#allocation13 + $0x228] sm:$0xff]  ;;  %v16339_v29 = vld [vmem:[#allocation13 + $0x1f8] sm:$0xff] }
 0x9b3   : > { %v6084_v4 = vpop.f32.mrf.mxu0  ;;  %v9228_v20 = vcombine.low %v6453_v47, %v6457_v9  ;;  %v9231_v3 = vcombine.high %v6454_v51, %v6458_v12  ;;  %v9221_v36 = vcombine.high %v6445_v44, %v6449_v63  ;;  %v9216_v26 = vcombine.low %v16328_v60, %v16330_v17 }
 0x9b4   : > { %18080 = vst [vmem:[#allocation42_spill] sm:$0xff] %v16289_v34  ;;  %v6175_v2 = vmul.f32 %v16289_v34, %v16289_v34  ;;  %v16296_v52 = vadd.f32 %v11708_v14, %v6084_v4  ;;  %6210 = vadd.xlane.f32.xlu1 %v6209_v11  ;;  %7288 = vmatprep.subr.bf16.mxu0 %v9239_v45  ;;  %v11711_v14 = vld [vmem:[%s12299_s23 + $0x88] sm:$0xff] }
 0x9b5   : > { %v6086_v42 = vpop.f32.mrf.mxu0  ;;  %7176 = vmatpush2.bf16.msra.mxu1 %v9236_v48  ;;  %7289 = vmatpush2.bf16.msra.mxu0 %v9238_v58  ;;  %v9220_v11 = vcombine.low %v6445_v44, %v6449_v63  ;;  %v9223_v4 = vcombine.high %v6446_v38, %v6450_v49  ;;  %v9217_v58 = vcombine.high %v16328_v60, %v16330_v17  ;;  %v6415_v17 = vld [vmem:[#allocation13 + $0x110] sm:$0xff] }
 0x9b6   : > { %18081 = vst [vmem:[#allocation40_spill] sm:$0xff] %v16296_v52  ;;  %v16299_v25 = vadd.f32 %v11709_v56, %v6086_v42  ;;  %v6212_v28 = vadd.f32 %v6175_v2, %v6174_v53  ;;  %v6176_v39 = vmul.f32 %v16296_v52, %v16296_v52  ;;  %7177 = vmatprep.subr.bf16.mxu1 %v9229_v23  ;;  %v11716_v23 = vld [vmem:[%s12299_s23 + $0xb0] sm:$0xff] }
 0x9b7   : > { %7290 = vmatprep.subr.bf16.mxu0 %v9231_v3  ;;  %v9222_v53 = vcombine.low %v6446_v38, %v6450_v49  ;;  %v11718_v49 = vld [vmem:[%s12299_s23 + $0xc0] sm:$0xff] }
 0x9b8   : > { %18082 = vst [vmem:[#allocation125_spill] sm:$0xff] %v16299_v25  ;;  %6213 = vadd.xlane.f32.xlu0 %v6212_v28  ;;  %v6177_v15 = vmul.f32 %v16299_v25, %v16299_v25  ;;  %v11713_v28 = vld [vmem:[%s12299_s23 + $0x98] sm:$0xff] }
 0x9b9   : > { %7178 = vmatpush2.bf16.msra.mxu1 %v9228_v20  ;;  %7291 = vmatpush2.bf16.msra.mxu0 %v9230_v46  ;;  %v11717_v46 = vld [vmem:[%s12299_s23 + $0xb8] sm:$0xff] }
 0x9ba   : > { %v6215_v32 = vadd.f32 %v6177_v15, %v6176_v39  ;;  %7179 = vmatprep.subr.bf16.mxu1 %v9221_v36  ;;  %7292 = vmatprep.subr.bf16.mxu0 %v9223_v4  ;;  %v11719_v4 = vld [vmem:[%s12299_s23 + $0xc8] sm:$0xff] }
 0x9bc   : > { %6216 = vadd.xlane.f32.xlu1 %v6215_v32  ;;  %v16332_v32 = vld [vmem:[#allocation13 + $0x1d8] sm:$0xff] }
 0x9bd   : > { %7180 = vmatpush2.bf16.msra.mxu1 %v9220_v11  ;;  %7293 = vmatpush2.bf16.msra.mxu0 %v9222_v53  ;;  %v9218_v45 = vcombine.low %v16332_v32, %v16339_v29  ;;  %v9219_v47 = vcombine.high %v16332_v32, %v16339_v29  ;;  %v6416_v29 = vld [vmem:[#allocation13 + $0x118] sm:$0xff] }
 0x9be   : > { %7375 = vmatprep.subr.bf16.mxu1 %v9217_v58 }
 0x9bf   : > { %7488 = vmatprep.subr.bf16.mxu0 %v9219_v47 }
 0x9d6   : > { %v6090_v43 = vpop.f32.mrf.mxu0 }
 0x9d7   : > { %v16306_v30 = vadd.f32 %v11710_v19, %v6090_v43 }
 0x9d8   : > { %v6092_v2 = vpop.f32.mrf.mxu0 }
 0x9d9   : > { %18083 = vst [vmem:[#allocation124_spill] sm:$0xff] %v16306_v30  ;;  %v16309_v7 = vadd.f32 %v11711_v14, %v6092_v2  ;;  %v6178_v42 = vmul.f32 %v16306_v30, %v16306_v30 }
 0x9da   : > { %v6094_v0 = vpop.f32.mrf.mxu0 }
 0x9db   : > { %18084 = vst [vmem:[#allocation121_spill] sm:$0xff] %v16309_v7  ;;  %v6179_v40 = vmul.f32 %v16309_v7, %v16309_v7  ;;  %v16316_v13 = vadd.f32 %v11712_v8, %v6094_v0 }
 0x9dc   : > { %v6096_v56 = vpop.f32.mrf.mxu0 }
 0x9dd   : > { %18085 = vst [vmem:[#allocation48_spill] sm:$0xff] %v16316_v13  ;;  %v16319_v18 = vadd.f32 %v11713_v28, %v6096_v56  ;;  %v6218_v5 = vadd.f32 %v6179_v40, %v6178_v42  ;;  %v6180_v39 = vmul.f32 %v16316_v13, %v16316_v13  ;;  %v11720_v42 = vld [vmem:[%s12299_s23 + $0xd0] sm:$0xff]  ;;  %v11721_v56 = vld [vmem:[%s12299_s23 + $0xd8] sm:$0xff] }
 0x9de   : > { %v6100_v6 = vpop.f32.mrf.mxu0 }
 0x9df   : > { %18086 = vst [vmem:[#allocation128_spill] sm:$0xff] %v16319_v18  ;;  %v6181_v15 = vmul.f32 %v16319_v18, %v16319_v18  ;;  %v16326_v35 = vadd.f32 %v11714_v31, %v6100_v6  ;;  %6219 = vadd.xlane.f32.xlu0 %v6218_v5  ;;  %v11722_v31 = vld [vmem:[%s12299_s23 + $0xe0] sm:$0xff] }
 0x9e0   : > { %v6102_v27 = vpop.f32.mrf.mxu0 }
 0x9e1   : > { %18087 = vst [vmem:[#allocation123_spill] sm:$0xff] %v16326_v35  ;;  %v16335_v57 = vadd.f32 %v11715_v37, %v6102_v27  ;;  %v6221_v24 = vadd.f32 %v6181_v15, %v6180_v39  ;;  %v6182_v9 = vmul.f32 %v16326_v35, %v16326_v35 }
 0x9e2   : > { %v6104_v48 = vpop.f32.mrf.mxu0 }
 0x9e3   : > { %18088 = vst [vmem:[#allocation135_spill] sm:$0xff] %v16335_v57  ;;  %v6183_v51 = vmul.f32 %v16335_v57, %v16335_v57  ;;  %v16352_v12 = vadd.f32 %v11716_v23, %v6104_v48  ;;  %6222 = vadd.xlane.f32.xlu1 %v6221_v24  ;;  %v11723_v24 = vld [vmem:[%s12299_s23 + $0xe8] sm:$0xff]  ;;  %v11724_v23 = vld [vmem:[%s12299_s23 + $0xf0] sm:$0xff] }
 0x9e4   : > { %v6106_v20 = vpop.f32.mrf.mxu0 }
 0x9e5   : > { %18089 = vst [vmem:[#allocation143_spill] sm:$0xff] %v16352_v12  ;;  %v16355_v3 = vadd.f32 %v11717_v46, %v6106_v20  ;;  %v6224_v44 = vadd.f32 %v6183_v51, %v6182_v9  ;;  %v6184_v38 = vmul.f32 %v16352_v12, %v16352_v12 }
 0x9e6   : > { %v6110_v63 = vpop.f32.mrf.mxu0 }
 0x9e7   : > { %18090 = vst [vmem:[#allocation148_spill] sm:$0xff] %v16355_v3  ;;  %v6185_v36 = vmul.f32 %v16355_v3, %v16355_v3  ;;  %v16362_v11 = vadd.f32 %v11718_v49, %v6110_v63  ;;  %6225 = vadd.xlane.f32.xlu0 %v6224_v44  ;;  %v11725_v44 = vld [vmem:[%s12299_s23 + $0xf8] sm:$0xff] }
 0x9e8   : > { %v6112_v53 = vpop.f32.mrf.mxu0 }
 0x9e9   : > { %18091 = vst [vmem:[#allocation147_spill] sm:$0xff] %v16362_v11  ;;  %v16365_v43 = vadd.f32 %v11719_v4, %v6112_v53  ;;  %v6227_v19 = vadd.f32 %v6185_v36, %v6184_v38  ;;  %v6186_v14 = vmul.f32 %v16362_v11, %v16362_v11 }
 0x9ea   : > { %v6114_v2 = vpop.f32.mrf.mxu0 }
 0x9eb   : > { %18092 = vst [vmem:[#allocation140_spill] sm:$0xff] %v16365_v43  ;;  %v6187_v0 = vmul.f32 %v16365_v43, %v16365_v43  ;;  %v16372_v40 = vadd.f32 %v11720_v42, %v6114_v2  ;;  %6228 = vadd.xlane.f32.xlu1 %v6227_v19 }
 0x9ec   : > { %v6116_v8 = vpop.f32.mrf.mxu0 }
 0x9ed   : > { %18093 = vst [vmem:[#allocation139_spill] sm:$0xff] %v16372_v40  ;;  %v16375_v28 = vadd.f32 %v11721_v56, %v6116_v8  ;;  %v6230_v5 = vadd.f32 %v6187_v0, %v6186_v14  ;;  %v6188_v39 = vmul.f32 %v16372_v40, %v16372_v40 }
 0x9ee   : > { %v6120_v6 = vpop.f32.mrf.mxu0 }
 0x9ef   : > { %18094 = vst [vmem:[#allocation149_spill] sm:$0xff] %v16375_v28  ;;  %v6189_v15 = vmul.f32 %v16375_v28, %v16375_v28  ;;  %v16382_v27 = vadd.f32 %v11722_v31, %v6120_v6  ;;  %6231 = vadd.xlane.f32.xlu0 %v6230_v5 }
 0x9f0   : > { %v6122_v37 = vpop.f32.mrf.mxu0 }
 0x9f1   : > { %18095 = vst [vmem:[#allocation144_spill] sm:$0xff] %v16382_v27  ;;  %v16385_v48 = vadd.f32 %v11723_v24, %v6122_v37  ;;  %v6233_v58 = vadd.f32 %v6189_v15, %v6188_v39  ;;  %v6190_v9 = vmul.f32 %v16382_v27, %v16382_v27  ;;  %v6161_v37 = vld [vmem:[%s17146_s5] sm:$0x3] }
 0x9f2   : > { %v6124_v47 = vpop.f32.mrf.mxu0 }
 0x9f3   : > { %18096 = vst [vmem:[#allocation34_spill] sm:$0xff] %v16385_v48  ;;  %v6191_v51 = vmul.f32 %v16385_v48, %v16385_v48  ;;  %v16392_v20 = vadd.f32 %v11724_v23, %v6124_v47  ;;  %6234 = vadd.xlane.f32.xlu1 %v6233_v58 }
 0x9f4   : > { %v6126_v46 = vpop.f32.mrf.mxu0 }
 0x9f5   : > { %18097 = vst [vmem:[#allocation27_spill] sm:$0xff] %v16392_v20  ;;  %v16395_v63 = vadd.f32 %v11725_v44, %v6126_v46  ;;  %v6236_v38 = vadd.f32 %v6191_v51, %v6190_v9  ;;  %v6192_v36 = vmul.f32 %v16392_v20, %v16392_v20  ;;  %v18099_v9 = vld [vmem:[#allocation23_spill] sm:$0xff] }
 0x9f6   : > { %v18100_v51 = vsub.s32 0, %v18099_v9  ;;  %v18101_v46 = vsub.s32 1, %v18099_v9 }
 0x9f7   : > { %18098 = vst [vmem:[#allocation70_spill] sm:$0xff] %v16395_v63  ;;  %v6193_v49 = vmul.f32 %v16395_v63, %v16395_v63  ;;  %6237 = vadd.xlane.f32.xlu0 %v6236_v38 }
 0x9f8   : > { %v16406_v23 = vrot.slane %v6161_v37, %v18100_v51  ;;  %v16410_v44 = vrot.slane %v6161_v37, %v18101_v46  ;;  %v6436_v37 = vld [vmem:[#allocation13 + $0x1b8] sm:$0xff] }
 0x9f9   : > { %v6239_v53 = vadd.f32 %v6193_v49, %v6192_v36 }
 0x9fb   : > { %6240 = vadd.xlane.f32.xlu1 %v6239_v53 }
 0xa29   : > { %v6196_v4 = vpop.xlane.xlu0 %6195 }
 0xa2a   : > { %v6242_v19 = vmul.f32 0.00390625, %v6196_v4 }
 0xa2c   : > { %v6258_v2 = vadd.f32 1e-05, %v6242_v19 }
 0xa2d   : > { %v6199_v14 = vpop.xlane.xlu1 %6198 }
 0xa2e   : > { %11406 = vrsqrt.f32 %v6258_v2  ;;  %v6243_v0 = vmul.f32 0.00390625, %v6199_v14 }
 0xa30   : > { %v6259_v42 = vadd.f32 1e-05, %v6243_v0 }
 0xa31   : > { %v6202_v8 = vpop.xlane.xlu0 %6201 }
 0xa32   : > { %11408 = vrsqrt.f32 %v6259_v42  ;;  %v6244_v56 = vmul.f32 0.00390625, %v6202_v8 }
 0xa34   : > { %v6260_v5 = vadd.f32 1e-05, %v6244_v56  ;;  %v6431_v56 = vld [vmem:[#allocation13 + $0x190] sm:$0xff] }
 0xa35   : > { %v6205_v6 = vpop.xlane.xlu0 %6204 }
 0xa36   : > { %11410 = vrsqrt.f32 %v6260_v5  ;;  %v6245_v39 = vmul.f32 0.00390625, %v6205_v6 }
 0xa38   : > { %v6261_v15 = vadd.f32 1e-05, %v6245_v39 }
 0xa39   : > { %v6208_v31 = vpop.xlane.xlu0 %6207 }
 0xa3a   : > { %11412 = vrsqrt.f32 %v6261_v15  ;;  %v6246_v24 = vmul.f32 0.00390625, %v6208_v31  ;;  %v6435_v15 = vld [vmem:[#allocation13 + $0x1b0] sm:$0xff]  ;;  %v6432_v31 = vld [vmem:[#allocation13 + $0x198] sm:$0xff] }
 0xa3b   : > { %v11407_v58 = vpop.eup %11406 }
 0xa3c   : > { %v6262_v47 = vadd.f32 1e-05, %v6246_v24  ;;  %v6290_v38 = vmul.f32 %v11407_v58, %v16226_v54  ;;  %v6291_v49 = vmul.f32 %v11407_v58, %v16229_v41 }
 0xa3d   : > { %v6211_v36 = vpop.xlane.xlu1 %6210 }
 0xa3e   : > { %11414 = vrsqrt.f32 %v6262_v47  ;;  %v6247_v53 = vmul.f32 0.00390625, %v6211_v36  ;;  %v6333_v0 = vmul.f32 %v16406_v23, %v6290_v38  ;;  %v6334_v8 = vmul.f32 %v16410_v44, %v6291_v49 }
 0xa3f   : > { %v11409_v4 = vpop.eup %11408  ;;  %v9209_v38 = vcombine.high %v6431_v56, %v6435_v15  ;;  %v9211_v36 = vcombine.high %v6432_v31, %v6436_v37 }
 0xa40   : > { %v6292_v19 = vmul.f32 %v11409_v4, %v16236_v21  ;;  %v6263_v2 = vadd.f32 1e-05, %v6247_v53  ;;  %v6293_v14 = vmul.f32 %v11409_v4, %v16239_v50  ;;  %v6423_v4 = vld [vmem:[#allocation13 + $0x150] sm:$0xff] }
 0xa41   : > { %v6214_v42 = vpop.xlane.xlu0 %6213 }
 0xa42   : > { %v6335_v5 = vmul.f32 %v16406_v23, %v6292_v19  ;;  %11416 = vrsqrt.f32 %v6263_v2  ;;  %v6248_v6 = vmul.f32 0.00390625, %v6214_v42  ;;  %v6336_v39 = vmul.f32 %v16410_v44, %v6293_v14  ;;  %v6427_v19 = vld [vmem:[#allocation13 + $0x170] sm:$0xff] }
 0xa43   : > { %v11411_v24 = vpop.eup %11410 }
 0xa44   : > { %v6264_v58 = vadd.f32 1e-05, %v6248_v6  ;;  %v16420_v47 = vpack.c.bf16 %v6336_v39, %v6334_v8  ;;  %v16422_v9 = vpack.c.bf16 %v6335_v5, %v6333_v0  ;;  %v6295_v46 = vmul.f32 %v11411_v24, %v16249_v22 }
 0xa45   : > { %v6217_v51 = vpop.xlane.xlu1 %6216  ;;  %v6294_v53 = vmul.f32 %v11411_v24, %v16244_v1  ;;  %v9208_v8 = vcombine.low %v6431_v56, %v6435_v15  ;;  %v9210_v6 = vcombine.low %v6432_v31, %v6436_v37  ;;  %v9201_v39 = vcombine.high %v6423_v4, %v6427_v19  ;;  %v6424_v24 = vld [vmem:[#allocation13 + $0x158] sm:$0xff] }
 0xa46   : > { %11418 = vrsqrt.f32 %v6264_v58  ;;  %v6249_v49 = vmul.f32 0.00390625, %v6217_v51  ;;  %7181 = vmatprep.mubr.bf16.mxu1 %v16420_v47  ;;  %7294 = vmatprep.mubr.bf16.mxu0 %v16420_v47  ;;  %v6338_v5 = vmul.f32 %v16410_v44, %v6295_v46  ;;  %v6428_v58 = vld [vmem:[#allocation13 + $0x178] sm:$0xff]  ;;  %v9200_v31 = vcombine.low %v6423_v4, %v6427_v19 }
 0xa47   : > { %v11413_v2 = vpop.eup %11412  ;;  %7182 = vmatmul.mubr.bf16.vlgmr.msra.gmra.mxu1 %v16422_v9  ;;  %7295 = vmatmul.mubr.bf16.vlgmr.msra.gmra.mxu0 %v16422_v9  ;;  %v9203_v37 = vcombine.high %v6424_v24, %v6428_v58  ;;  %v9202_v46 = vcombine.low %v6424_v24, %v6428_v58  ;;  %v6412_v24 = vld [vmem:[#allocation13 + $0xf8] sm:$0xff] }
 0xa48   : > { %v6265_v14 = vadd.f32 1e-05, %v6249_v49  ;;  %v6297_v0 = vmul.f32 %v11413_v2, %v16259_v33  ;;  %v6296_v42 = vmul.f32 %v11413_v2, %v16256_v62  ;;  %7376 = vmatpush1.bf16.msra.mxu1 %v9216_v26  ;;  %7489 = vmatpush1.bf16.msra.mxu0 %v9218_v45  ;;  %v6337_v49 = vmul.f32 %v16406_v23, %v6294_v53  ;;  %v6419_v26 = vld [vmem:[#allocation13 + $0x130] sm:$0xff]  ;;  %v6420_v45 = vld [vmem:[#allocation13 + $0x138] sm:$0xff] }
 0xa49   : > { %7377 = vmatprep.subr.bf16.mxu1 %v9209_v38  ;;  %7490 = vmatprep.subr.bf16.mxu0 %v9211_v36  ;;  %v9193_v38 = vcombine.high %v6415_v17, %v6419_v26  ;;  %v9195_v2 = vcombine.high %v6416_v29, %v6420_v45 }
 0xa4a   : > { %11420 = vrsqrt.f32 %v6265_v14  ;;  %v6340_v51 = vmul.f32 %v16410_v44, %v6297_v0  ;;  %v6339_v60 = vmul.f32 %v16406_v23, %v6296_v42  ;;  %v6407_v14 = vld [vmem:[#allocation13 + $0xd0] sm:$0xff] }
 0xa4b   : > { %v11415_v32 = vpop.eup %11414  ;;  %v6411_v0 = vld [vmem:[#allocation13 + $0xf0] sm:$0xff] }
 0xa4c   : > { %v16442_v56 = vpack.c.bf16 %v6340_v51, %v6338_v5  ;;  %v16444_v15 = vpack.c.bf16 %v6339_v60, %v6337_v49  ;;  %7378 = vmatpush1.bf16.msra.mxu1 %v9208_v8  ;;  %7491 = vmatpush1.bf16.msra.mxu0 %v9210_v6  ;;  %v6299_v36 = vmul.f32 %v11415_v32, %v16269_v55 }
 0xa4d   : > { %7379 = vmatprep.subr.bf16.mxu1 %v9201_v39  ;;  %v6298_v53 = vmul.f32 %v11415_v32, %v16264_v61  ;;  %7492 = vmatprep.subr.bf16.mxu0 %v9203_v37  ;;  %v9192_v8 = vcombine.low %v6415_v17, %v6419_v26  ;;  %v9194_v5 = vcombine.low %v6416_v29, %v6420_v45  ;;  %v6408_v39 = vld [vmem:[#allocation13 + $0xd8] sm:$0xff]  ;;  %v6399_v32 = vld [vmem:[#allocation13 + $0x90] sm:$0xff] }
 0xa4e   : > { %7191 = vmatprep.mubr.bf16.mxu1 %v16442_v56  ;;  %7304 = vmatprep.mubr.bf16.mxu0 %v16442_v56  ;;  %v9185_v6 = vcombine.high %v6407_v14, %v6411_v0  ;;  %v6342_v58 = vmul.f32 %v16410_v44, %v6299_v36  ;;  %v6404_v17 = vld [vmem:[#allocation13 + $0xb8] sm:$0xff]  ;;  %v9184_v45 = vcombine.low %v6407_v14, %v6411_v0 }
 0xa4f   : > { %v11417_v42 = vpop.eup %11416  ;;  %7192 = vmatmul.mubr.bf16.gmra.mxu1 %v16444_v15  ;;  %7305 = vmatmul.mubr.bf16.gmra.mxu0 %v16444_v15  ;;  %v6341_v49 = vmul.f32 %v16406_v23, %v6298_v53 }
 0xa50   : > { %v6301_v4 = vmul.f32 %v11417_v42, %v16279_v16  ;;  %v6300_v19 = vmul.f32 %v11417_v42, %v16276_v59  ;;  %7380 = vmatpush1.bf16.msra.mxu1 %v9200_v31  ;;  %7493 = vmatpush1.bf16.msra.mxu0 %v9202_v46  ;;  %v6403_v42 = vld [vmem:[#allocation13 + $0xb0] sm:$0xff]  ;;  %v6400_v31 = vld [vmem:[#allocation13 + $0x98] sm:$0xff]  ;;  %v9187_v46 = vcombine.high %v6408_v39, %v6412_v24 }
 0xa51   : > { %7381 = vmatprep.subr.bf16.mxu1 %v9193_v38  ;;  %7494 = vmatprep.subr.bf16.mxu0 %v9195_v2  ;;  %v9186_v38 = vcombine.low %v6408_v39, %v6412_v24  ;;  %v9177_v36 = vcombine.high %v6399_v32, %v6403_v42  ;;  %v6392_v39 = vld [vmem:[#allocation13 + $0x58] sm:$0xff] }
 0xa52   : > { %v6344_v51 = vmul.f32 %v16410_v44, %v6301_v4  ;;  %v6343_v60 = vmul.f32 %v16406_v23, %v6300_v19  ;;  %v9179_v4 = vcombine.high %v6400_v31, %v6404_v17  ;;  %v6391_v19 = vld [vmem:[#allocation13 + $0x50] sm:$0xff]  ;;  %v6396_v24 = vld [vmem:[#allocation13 + $0x78] sm:$0xff] }
 0xa53   : > { %v11419_v37 = vpop.eup %11418 }
 0xa54   : > { %v16458_v26 = vpack.c.bf16 %v6344_v51, %v6342_v58  ;;  %v16460_v29 = vpack.c.bf16 %v6343_v60, %v6341_v49  ;;  %7382 = vmatpush1.bf16.msra.mxu1 %v9192_v8  ;;  %7495 = vmatpush1.bf16.msra.mxu0 %v9194_v5  ;;  %v6303_v53 = vmul.f32 %v11419_v37, %v16289_v34  ;;  %v6395_v58 = vld [vmem:[#allocation13 + $0x70] sm:$0xff] }
 0xa55   : > { %7383 = vmatprep.subr.bf16.mxu1 %v9185_v6  ;;  %v6302_v2 = vmul.f32 %v11419_v37, %v16284_v10  ;;  %7496 = vmatprep.subr.bf16.mxu0 %v9187_v46  ;;  %v9176_v8 = vcombine.low %v6399_v32, %v6403_v42  ;;  %v9178_v5 = vcombine.low %v6400_v31, %v6404_v17  ;;  %v6384_v46 = vld [vmem:[#allocation13 + $0x18] sm:$0xff] }
 0xa56   : > { %7201 = vmatprep.mubr.bf16.mxu1 %v16458_v26  ;;  %7314 = vmatprep.mubr.bf16.mxu0 %v16458_v26  ;;  %v9169_v6 = vcombine.high %v6391_v19, %v6395_v58  ;;  %v6346_v49 = vmul.f32 %v16410_v44, %v6303_v53  ;;  %v9168_v31 = vcombine.low %v6391_v19, %v6395_v58 }
 0xa57   : > { %v11421_v51 = vpop.eup %11420  ;;  %7202 = vmatmul.mubr.bf16.gmra.mxu1 %v16460_v29  ;;  %7315 = vmatmul.mubr.bf16.gmra.mxu0 %v16460_v29  ;;  %v6345_v37 = vmul.f32 %v16406_v23, %v6302_v2  ;;  %v9171_v17 = vcombine.high %v6392_v39, %v6396_v24  ;;  %v6503_v2 = vld [vmem:[#allocation13 + $0x3d0] sm:$0xff] }
 0xa58   : > { %v6305_v14 = vmul.f32 %v11421_v51, %v16299_v25  ;;  %v6304_v0 = vmul.f32 %v11421_v51, %v16296_v52  ;;  %7384 = vmatpush1.bf16.msra.mxu1 %v9184_v45  ;;  %7497 = vmatpush1.bf16.msra.mxu0 %v9186_v38  ;;  %v6383_v25 = vld [vmem:[#allocation13 + $0x10] sm:$0xff]  ;;  %v6388_v45 = vld [vmem:[#allocation13 + $0x38] sm:$0xff]  ;;  %v9170_v38 = vcombine.low %v6392_v39, %v6396_v24 }
 0xa59   : > { %7385 = vmatprep.subr.bf16.mxu1 %v9177_v36  ;;  %7498 = vmatprep.subr.bf16.mxu0 %v9179_v4  ;;  %v6387_v51 = vld [vmem:[#allocation13 + $0x30] sm:$0xff]  ;;  %v9163_v53 = vcombine.high %v6384_v46, %v6388_v45  ;;  %v9162_v58 = vcombine.low %v6384_v46, %v6388_v45  ;;  %v6496_v39 = vld [vmem:[#allocation13 + $0x398] sm:$0xff] }
 0xa5a   : > { %v6348_v60 = vmul.f32 %v16410_v44, %v6305_v14  ;;  %v6347_v34 = vmul.f32 %v16406_v23, %v6304_v0  ;;  %v9161_v36 = vcombine.high %v6383_v25, %v6387_v51  ;;  %v6507_v4 = vld [vmem:[#allocation13 + $0x3f0] sm:$0xff]  ;;  %v6508_v14 = vld [vmem:[#allocation13 + $0x3f8] sm:$0xff]  ;;  %v9160_v19 = vcombine.low %v6383_v25, %v6387_v51 }
 0xa5b   : > { %v9281_v0 = vcombine.high %v6503_v2, %v6507_v4  ;;  %v6500_v24 = vld [vmem:[#allocation13 + $0x3b8] sm:$0xff]  ;;  %v6491_v25 = vld [vmem:[#allocation13 + $0x370] sm:$0xff] }
 0xa5c   : > { %v16474_v32 = vpack.c.bf16 %v6348_v60, %v6346_v49  ;;  %v16476_v42 = vpack.c.bf16 %v6347_v34, %v6345_v37  ;;  %7386 = vmatpush1.bf16.msra.mxu1 %v9176_v8  ;;  %7499 = vmatpush1.bf16.msra.mxu0 %v9178_v5  ;;  %v6504_v34 = vld [vmem:[#allocation13 + $0x3d8] sm:$0xff]  ;;  %v6495_v5 = vld [vmem:[#allocation13 + $0x390] sm:$0xff]  ;;  %v9280_v49 = vcombine.low %v6503_v2, %v6507_v4 }
 0xa5d   : > { %7387 = vmatprep.subr.bf16.mxu1 %v9169_v6  ;;  %7500 = vmatprep.subr.bf16.mxu0 %v9171_v17  ;;  %v9283_v8 = vcombine.high %v6504_v34, %v6508_v14  ;;  %v6499_v6 = vld [vmem:[#allocation13 + $0x3b0] sm:$0xff]  ;;  %v9282_v60 = vcombine.low %v6504_v34, %v6508_v14  ;;  %v9275_v17 = vcombine.high %v6496_v39, %v6500_v24  ;;  %v6492_v46 = vld [vmem:[#allocation13 + $0x378] sm:$0xff] }
 0xa5e   : > { %7211 = vmatprep.mubr.bf16.mxu1 %v16474_v32  ;;  %7324 = vmatprep.mubr.bf16.mxu0 %v16474_v32  ;;  %v9273_v37 = vcombine.high %v6495_v5, %v6499_v6  ;;  %v6479_v4 = vld [vmem:[#allocation13 + $0x310] sm:$0xff] }
 0xa5f   : > { %7212 = vmatmul.mubr.bf16.gmra.mxu1 %v16476_v42  ;;  %7325 = vmatmul.mubr.bf16.gmra.mxu0 %v16476_v42  ;;  %v6483_v34 = vld [vmem:[#allocation13 + $0x330] sm:$0xff] }
 0xa60   : > { %7388 = vmatpush1.bf16.msra.mxu1 %v9168_v31  ;;  %7501 = vmatpush1.bf16.msra.mxu0 %v9170_v38  ;;  %v6487_v31 = vld [vmem:[#allocation13 + $0x350] sm:$0xff]  ;;  %v6488_v38 = vld [vmem:[#allocation13 + $0x358] sm:$0xff]  ;;  %v9256_v16 = vcombine.low %v6479_v4, %v6483_v34 }
 0xa61   : > { %7389 = vmatprep.subr.bf16.mxu1 %v9161_v36  ;;  %7502 = vmatprep.subr.bf16.mxu0 %v9163_v53  ;;  %v9272_v36 = vcombine.low %v6495_v5, %v6499_v6  ;;  %v9274_v53 = vcombine.low %v6496_v39, %v6500_v24  ;;  %v9265_v52 = vcombine.high %v6487_v31, %v6491_v25  ;;  %v6471_v24 = vld [vmem:[#allocation13 + $0x2d0] sm:$0xff] }
 0xa62   : > { %v9267_v2 = vcombine.high %v6488_v38, %v6492_v46  ;;  %v9264_v10 = vcombine.low %v6487_v31, %v6491_v25  ;;  %v9257_v5 = vcombine.high %v6479_v4, %v6483_v34 }
 0xa64   : > { %7390 = vmatpush1.bf16.msra.mxu1 %v9160_v19  ;;  %7503 = vmatpush1.bf16.msra.mxu0 %v9162_v58  ;;  %v6480_v58 = vld [vmem:[#allocation13 + $0x318] sm:$0xff] }
 0xa65   : > { %7391 = vmatprep.subr.bf16.mxu1 %v9281_v0  ;;  %7504 = vmatprep.subr.bf16.mxu0 %v9283_v8  ;;  %v6484_v0 = vld [vmem:[#allocation13 + $0x338] sm:$0xff] }
 0xa66   : > { %v9259_v39 = vcombine.high %v6480_v58, %v6484_v0 }
 0xa68   : > { %v6220_v51 = vpop.xlane.xlu0 %6219  ;;  %7392 = vmatpush2.bf16.msra.mxu1 %v9280_v49  ;;  %7505 = vmatpush2.bf16.msra.mxu0 %v9282_v60  ;;  %v9266_v49 = vcombine.low %v6488_v38, %v6492_v46  ;;  %v6475_v60 = vld [vmem:[#allocation13 + $0x2f0] sm:$0xff] }
 0xa69   : > { %v6250_v45 = vmul.f32 0.00390625, %v6220_v51  ;;  %7393 = vmatprep.subr.bf16.mxu1 %v9273_v37  ;;  %7506 = vmatprep.subr.bf16.mxu0 %v9275_v17  ;;  %v6472_v17 = vld [vmem:[#allocation13 + $0x2d8] sm:$0xff]  ;;  %v9249_v31 = vcombine.high %v6471_v24, %v6475_v60  ;;  %v6463_v38 = vld [vmem:[#allocation13 + $0x290] sm:$0xff] }
 0xa6a   : > { %v6476_v51 = vld [vmem:[#allocation13 + $0x2f8] sm:$0xff]  ;;  %v6467_v46 = vld [vmem:[#allocation13 + $0x2b0] sm:$0xff] }
 0xa6b   : > { %v6266_v19 = vadd.f32 1e-05, %v6250_v45  ;;  %v9241_v4 = vcombine.high %v6463_v38, %v6467_v46 }
 0xa6c   : > { %v6223_v14 = vpop.xlane.xlu1 %6222  ;;  %7394 = vmatpush2.bf16.msra.mxu1 %v9272_v36  ;;  %7507 = vmatpush2.bf16.msra.mxu0 %v9274_v53  ;;  %v9258_v36 = vcombine.low %v6480_v58, %v6484_v0  ;;  %v6455_v0 = vld [vmem:[#allocation13 + $0x250] sm:$0xff] }
 0xa6d   : > { %11422 = vrsqrt.f32 %v6266_v19  ;;  %v6251_v8 = vmul.f32 0.00390625, %v6223_v14  ;;  %7395 = vmatprep.subr.bf16.mxu1 %v9265_v52  ;;  %7508 = vmatprep.subr.bf16.mxu0 %v9267_v2  ;;  %v9251_v52 = vcombine.high %v6472_v17, %v6476_v51  ;;  %v6464_v19 = vld [vmem:[#allocation13 + $0x298] sm:$0xff] }
 0xa6e   : > { %v6468_v2 = vld [vmem:[#allocation13 + $0x2b8] sm:$0xff] }
 0xa6f   : > { %v6267_v6 = vadd.f32 1e-05, %v6251_v8  ;;  %v9248_v8 = vcombine.low %v6471_v24, %v6475_v60  ;;  %v9243_v58 = vcombine.high %v6464_v19, %v6468_v2 }
 0xa70   : > { %v6226_v37 = vpop.xlane.xlu0 %6225  ;;  %7396 = vmatpush2.bf16.msra.mxu1 %v9264_v10  ;;  %7509 = vmatpush2.bf16.msra.mxu0 %v9266_v49  ;;  %v9250_v10 = vcombine.low %v6472_v17, %v6476_v51  ;;  %v6459_v49 = vld [vmem:[#allocation13 + $0x270] sm:$0xff] }
 0xa71   : > { %11424 = vrsqrt.f32 %v6267_v6  ;;  %v6252_v45 = vmul.f32 0.00390625, %v6226_v37  ;;  %7397 = vmatprep.subr.bf16.mxu1 %v9257_v5  ;;  %7510 = vmatprep.subr.bf16.mxu0 %v9259_v39  ;;  %v6456_v6 = vld [vmem:[#allocation13 + $0x258] sm:$0xff]  ;;  %v9233_v24 = vcombine.high %v6455_v0, %v6459_v49  ;;  %v6447_v51 = vld [vmem:[#allocation13 + $0x210] sm:$0xff] }
 0xa72   : > { %v6460_v39 = vld [vmem:[#allocation13 + $0x278] sm:$0xff] }
 0xa73   : > { %v6268_v25 = vadd.f32 1e-05, %v6252_v45  ;;  %v9240_v45 = vcombine.low %v6463_v38, %v6467_v46  ;;  %v9235_v17 = vcombine.high %v6456_v6, %v6460_v39  ;;  %v9232_v38 = vcombine.low %v6455_v0, %v6459_v49 }
 0xa74   : > { %v6229_v53 = vpop.xlane.xlu1 %6228  ;;  %7398 = vmatpush2.bf16.msra.mxu1 %v9256_v16  ;;  %7511 = vmatpush2.bf16.msra.mxu0 %v9258_v36  ;;  %v9242_v16 = vcombine.low %v6464_v19, %v6468_v2  ;;  %v6451_v36 = vld [vmem:[#allocation13 + $0x230] sm:$0xff]  ;;  %v9234_v19 = vcombine.low %v6456_v6, %v6460_v39 }
 0xa75   : > { %11426 = vrsqrt.f32 %v6268_v25  ;;  %v6253_v14 = vmul.f32 0.00390625, %v6229_v53  ;;  %7399 = vmatprep.subr.bf16.mxu1 %v9249_v31  ;;  %7512 = vmatprep.subr.bf16.mxu0 %v9251_v52  ;;  %v9225_v2 = vcombine.high %v6447_v51, %v6451_v36  ;;  %v9224_v39 = vcombine.low %v6447_v51, %v6451_v36 }
 0xa77   : > { %v6269_v34 = vadd.f32 1e-05, %v6253_v14  ;;  %v6448_v14 = vld [vmem:[#allocation13 + $0x218] sm:$0xff] }
 0xa78   : > { %v6232_v5 = vpop.xlane.xlu0 %6231  ;;  %7400 = vmatpush2.bf16.msra.mxu1 %v9248_v8  ;;  %7513 = vmatpush2.bf16.msra.mxu0 %v9250_v10 }
 0xa79   : > { %11428 = vrsqrt.f32 %v6269_v34  ;;  %v6254_v37 = vmul.f32 0.00390625, %v6232_v5  ;;  %7401 = vmatprep.subr.bf16.mxu1 %v9241_v4  ;;  %7514 = vmatprep.subr.bf16.mxu0 %v9243_v58  ;;  %v6452_v34 = vld [vmem:[#allocation13 + $0x238] sm:$0xff] }
 0xa7a   : > { %v11423_v25 = vpop.eup %11422  ;;  %v9227_v5 = vcombine.high %v6448_v14, %v6452_v34 }
 0xa7b   : > { %v6270_v60 = vadd.f32 1e-05, %v6254_v37  ;;  %v6307_v52 = vmul.f32 %v11423_v25, %v16309_v7  ;;  %v6306_v53 = vmul.f32 %v11423_v25, %v16306_v30 }
 0xa7c   : > { %v6235_v31 = vpop.xlane.xlu1 %6234  ;;  %7402 = vmatpush2.bf16.msra.mxu1 %v9240_v45  ;;  %7515 = vmatpush2.bf16.msra.mxu0 %v9242_v16 }
 0xa7d   : > { %11430 = vrsqrt.f32 %v6270_v60  ;;  %v6255_v8 = vmul.f32 0.00390625, %v6235_v31  ;;  %7403 = vmatprep.subr.bf16.mxu1 %v9233_v24  ;;  %7516 = vmatprep.subr.bf16.mxu0 %v9235_v17  ;;  %v6350_v25 = vmul.f32 %v16410_v44, %v6307_v52  ;;  %v6349_v60 = vmul.f32 %v16406_v23, %v6306_v53 }
 0xa7e   : > { %v11425_v46 = vpop.eup %11424  ;;  %v9226_v31 = vcombine.low %v6448_v14, %v6452_v34 }
 0xa7f   : > { %v6271_v10 = vadd.f32 1e-05, %v6255_v8  ;;  %v6309_v4 = vmul.f32 %v11425_v46, %v16319_v18  ;;  %v6308_v58 = vmul.f32 %v11425_v46, %v16316_v13 }
 0xa80   : > { %v6238_v37 = vpop.xlane.xlu0 %6237  ;;  %7404 = vmatpush2.bf16.msra.mxu1 %v9232_v38  ;;  %7517 = vmatpush2.bf16.msra.mxu0 %v9234_v19 }
 0xa81   : > { %11432 = vrsqrt.f32 %v6271_v10  ;;  %v6256_v45 = vmul.f32 0.00390625, %v6238_v37  ;;  %v6352_v0 = vmul.f32 %v16410_v44, %v6309_v4  ;;  %v6351_v49 = vmul.f32 %v16406_v23, %v6308_v58  ;;  %7405 = vmatprep.subr.bf16.mxu1 %v9225_v2  ;;  %7518 = vmatprep.subr.bf16.mxu0 %v9227_v5 }
 0xa82   : > { %v11427_v6 = vpop.eup %11426 }
 0xa83   : > { %v6272_v16 = vadd.f32 1e-05, %v6256_v45  ;;  %v16490_v24 = vpack.c.bf16 %v6352_v0, %v6350_v25  ;;  %v16492_v17 = vpack.c.bf16 %v6351_v49, %v6349_v60  ;;  %v6311_v53 = vmul.f32 %v11427_v6, %v16335_v57 }
 0xa84   : > { %v6241_v52 = vpop.xlane.xlu1 %6240  ;;  %v6310_v38 = vmul.f32 %v11427_v6, %v16326_v35  ;;  %7406 = vmatpush2.bf16.msra.mxu1 %v9224_v39  ;;  %7519 = vmatpush2.bf16.msra.mxu0 %v9226_v31 }
 0xa85   : > { %11434 = vrsqrt.f32 %v6272_v16  ;;  %v6257_v8 = vmul.f32 0.00390625, %v6241_v52  ;;  %7221 = vmatprep.mubr.bf16.mxu1 %v16490_v24  ;;  %7334 = vmatprep.mubr.bf16.mxu0 %v16490_v24  ;;  %v6354_v46 = vmul.f32 %v16410_v44, %v6311_v53 }
 0xa86   : > { %v11429_v51 = vpop.eup %11428  ;;  %7222 = vmatmul.mubr.bf16.gmra.mxu1 %v16492_v17  ;;  %7335 = vmatmul.mubr.bf16.gmra.mxu0 %v16492_v17  ;;  %v6353_v2 = vmul.f32 %v16406_v23, %v6310_v38 }
 0xa87   : > { %v6273_v36 = vadd.f32 1e-05, %v6257_v8  ;;  %v6313_v14 = vmul.f32 %v11429_v51, %v16355_v3  ;;  %v6312_v34 = vmul.f32 %v11429_v51, %v16352_v12 }
 0xa89   : > { %11436 = vrsqrt.f32 %v6273_v36  ;;  %v6356_v19 = vmul.f32 %v16410_v44, %v6313_v14  ;;  %v6355_v10 = vmul.f32 %v16406_v23, %v6312_v34 }
 0xa8a   : > { %v11431_v4 = vpop.eup %11430 }
 0xa8b   : > { %v16506_v58 = vpack.c.bf16 %v6356_v19, %v6354_v46  ;;  %v16508_v5 = vpack.c.bf16 %v6355_v10, %v6353_v2  ;;  %v6315_v37 = vmul.f32 %v11431_v4, %v16365_v43  ;;  %v6314_v25 = vmul.f32 %v11431_v4, %v16362_v11 }
 0xa8d   : > { %7231 = vmatprep.mubr.bf16.mxu1 %v16506_v58  ;;  %7344 = vmatprep.mubr.bf16.mxu0 %v16506_v58  ;;  %v6358_v49 = vmul.f32 %v16410_v44, %v6315_v37  ;;  %v6357_v39 = vmul.f32 %v16406_v23, %v6314_v25  ;;  %v10781_v37 = vld [vmem:[#allocation14 + $0x150] ss:$8 sps:$4 sm:$0xff]   ;;  %v10784_v25 = vld [vmem:[#allocation14 + $0x40] ss:$8 sps:$4 sm:$0xff]  }
 0xa8e   : > { %v11433_v60 = vpop.eup %11432  ;;  %7232 = vmatmul.mubr.bf16.gmra.mxu1 %v16508_v5  ;;  %7345 = vmatmul.mubr.bf16.gmra.mxu0 %v16508_v5 }
 0xa8f   : > { %v6317_v45 = vmul.f32 %v11433_v60, %v16375_v28  ;;  %v6316_v0 = vmul.f32 %v11433_v60, %v16372_v40  ;;  %v10787_v60 = vld [vmem:[#allocation14 + $0x140] ss:$8 sps:$4 sm:$0xff]  }
 0xa91   : > { %v6360_v6 = vmul.f32 %v16410_v44, %v6317_v45  ;;  %v6359_v16 = vmul.f32 %v16406_v23, %v6316_v0  ;;  %v10792_v45 = vld [vmem:[#allocation14 + $0x34] ss:$8 sps:$4 sm:$0xff]  }
 0xa92   : > { %v11435_v31 = vpop.eup %11434  ;;  %v10795_v0 = vld [vmem:[#allocation14 + $0x134] ss:$8 sps:$4 sm:$0xff]  }
 0xa93   : > { %v16522_v52 = vpack.c.bf16 %v6360_v6, %v6358_v49  ;;  %v16524_v53 = vpack.c.bf16 %v6359_v16, %v6357_v39  ;;  %v6319_v8 = vmul.f32 %v11435_v31, %v16385_v48  ;;  %v6318_v38 = vmul.f32 %v11435_v31, %v16382_v27  ;;  %v10790_v49 = vld [vmem:[#allocation14 + $0x30] ss:$8 sps:$4 sm:$0xff]   ;;  %v10801_v39 = vld [vmem:[#allocation14 + $0x124] ss:$8 sps:$4 sm:$0xff]   ;;  %v10796_v16 = vld [vmem:[#allocation14 + $0x20] ss:$8 sps:$4 sm:$0xff]  }
 0xa94   : > { %v10793_v6 = vld [vmem:[#allocation14 + $0x130] ss:$8 sps:$4 sm:$0xff]   ;;  %v10799_v31 = vld [vmem:[#allocation14 + $0x120] ss:$8 sps:$4 sm:$0xff]  }
 0xa95   : > { %7241 = vmatprep.mubr.bf16.mxu1 %v16522_v52  ;;  %7354 = vmatprep.mubr.bf16.mxu0 %v16522_v52  ;;  %v6362_v34 = vmul.f32 %v16410_v44, %v6319_v8  ;;  %v6361_v19 = vmul.f32 %v16406_v23, %v6318_v38  ;;  %v10807_v8 = vld [vmem:[#allocation14 + $0x114] ss:$8 sps:$4 sm:$0xff]   ;;  %v10802_v38 = vld [vmem:[#allocation14 + $0x10] ss:$8 sps:$4 sm:$0xff]  }
 0xa96   : > { %v11437_v51 = vpop.eup %11436  ;;  %7242 = vmatmul.mubr.bf16.gmra.mxu1 %v16524_v53  ;;  %7355 = vmatmul.mubr.bf16.gmra.mxu0 %v16524_v53 }
 0xa97   : > { %v6321_v36 = vmul.f32 %v11437_v51, %v16395_v63  ;;  %v6320_v14 = vmul.f32 %v11437_v51, %v16392_v20  ;;  %v10805_v51 = vld [vmem:[#allocation14 + $0x110] ss:$8 sps:$4 sm:$0xff]  }
 0xa99   : > { %v6364_v46 = vmul.f32 %v16410_v44, %v6321_v36  ;;  %v6363_v2 = vmul.f32 %v16406_v23, %v6320_v14  ;;  %v10768_v23 = vld [vmem:[#allocation14 + $0x74] ss:$8 sps:$4 sm:$0xff]   ;;  %v10813_v36 = vld [vmem:[#allocation14 + $0x104] ss:$8 sps:$4 sm:$0xff]   ;;  %v10808_v14 = vld [vmem:[#allocation14] ss:$8 sps:$4 sm:$0xff]  }
 0xa9a   : > { %v10771_v44 = vld [vmem:[#allocation14 + $0x174] ss:$8 sps:$4 sm:$0xff]   ;;  %8529 = vmatprep.subr.bf16.mxu1 %v10768_v23  ;;  %v10822_v23 = vld [vmem:[#allocation14 + $0xe4] ss:$8 sps:$4 sm:$0xff]  }
 0xa9b   : > { %v16538_v10 = vpack.c.bf16 %v6364_v46, %v6362_v34  ;;  %v16540_v4 = vpack.c.bf16 %v6363_v2, %v6361_v19  ;;  %8642 = vmatprep.subr.bf16.mxu0 %v10771_v44  ;;  %v10811_v34 = vld [vmem:[#allocation14 + $0x100] ss:$8 sps:$4 sm:$0xff]   ;;  %v10816_v46 = vld [vmem:[#allocation14 + $0xf4] ss:$8 sps:$4 sm:$0xff]   ;;  %v10814_v2 = vld [vmem:[#allocation14 + $0xf0] ss:$8 sps:$4 sm:$0xff]  }
 0xa9c   : > { %v10819_v19 = vld [vmem:[#allocation14 + $0x1f4] ss:$8 sps:$4 sm:$0xff]   ;;  %v10825_v44 = vld [vmem:[#allocation14 + $0x1e4] ss:$8 sps:$4 sm:$0xff]  }
 0xa9d   : > { %7251 = vmatprep.mubr.bf16.mxu1 %v16538_v10  ;;  %7364 = vmatprep.mubr.bf16.mxu0 %v16538_v10 }
 0xa9e   : > { %7252 = vmatmul.mubr.bf16.gmra.mxu1 %v16540_v4  ;;  %7365 = vmatmul.mubr.bf16.gmra.mxu0 %v16540_v4 }
 0xa9f   : > { %7407 = vmatprep.mubr.bf16.mxu1 %v16420_v47  ;;  %7520 = vmatprep.mubr.bf16.mxu0 %v16420_v47  ;;  %v10766_v47 = vld [vmem:[#allocation14 + $0x70] ss:$8 sps:$4 sm:$0xff]  }
 0xaa6   : > { %7408 = vmatmul.mubr.bf16.vlgmr.msra.gmra.mxu1 %v16422_v9  ;;  %7521 = vmatmul.mubr.bf16.vlgmr.msra.gmra.mxu0 %v16422_v9  ;;  %v10769_v9 = vld [vmem:[#allocation14 + $0x170] ss:$8 sps:$4 sm:$0xff]  }
 0xaa7   : > { %7417 = vmatprep.mubr.bf16.mxu1 %v16442_v56  ;;  %7530 = vmatprep.mubr.bf16.mxu0 %v16442_v56  ;;  %v10774_v56 = vld [vmem:[#allocation14 + $0x64] ss:$8 sps:$4 sm:$0xff]  }
 0xaa8   : > { %8530 = vmatpush1.bf16.msra.mxu1 %v10766_v47  ;;  %8643 = vmatpush1.bf16.msra.mxu0 %v10769_v9  ;;  %v10820_v47 = vld [vmem:[#allocation14 + $0xe0] ss:$8 sps:$4 sm:$0xff]   ;;  %v10828_v9 = vld [vmem:[#allocation14 + $0xd4] ss:$8 sps:$4 sm:$0xff]  }
 0xaa9   : > { %8531 = vmatprep.subr.bf16.mxu1 %v10774_v56  ;;  %v10831_v56 = vld [vmem:[#allocation14 + $0x1d4] ss:$8 sps:$4 sm:$0xff]  }
 0xaae   : > { %7418 = vmatmul.mubr.bf16.gmra.mxu1 %v16444_v15  ;;  %7531 = vmatmul.mubr.bf16.gmra.mxu0 %v16444_v15  ;;  %v10777_v15 = vld [vmem:[#allocation14 + $0x164] ss:$8 sps:$4 sm:$0xff]  }
 0xaaf   : > { %7427 = vmatprep.mubr.bf16.mxu1 %v16458_v26  ;;  %7540 = vmatprep.mubr.bf16.mxu0 %v16458_v26  ;;  %v10772_v26 = vld [vmem:[#allocation14 + $0x60] ss:$8 sps:$4 sm:$0xff]  }
 0xab0   : > { %8644 = vmatprep.subr.bf16.mxu0 %v10777_v15  ;;  %8532 = vmatpush1.bf16.msra.mxu1 %v10772_v26  ;;  %v10826_v15 = vld [vmem:[#allocation14 + $0xd0] ss:$8 sps:$4 sm:$0xff]  }
 0xab1   : > { %v10829_v26 = vld [vmem:[#allocation14 + $0x1d0] ss:$8 sps:$4 sm:$0xff]  }
 0xab6   : > { %7428 = vmatmul.mubr.bf16.gmra.mxu1 %v16460_v29  ;;  %7541 = vmatmul.mubr.bf16.gmra.mxu0 %v16460_v29  ;;  %v10775_v29 = vld [vmem:[#allocation14 + $0x160] ss:$8 sps:$4 sm:$0xff]  }
 0xab7   : > { %7437 = vmatprep.mubr.bf16.mxu1 %v16474_v32  ;;  %7550 = vmatprep.mubr.bf16.mxu0 %v16474_v32  ;;  %v10780_v32 = vld [vmem:[#allocation14 + $0x54] ss:$8 sps:$4 sm:$0xff]  }
 0xab8   : > { %8645 = vmatpush1.bf16.msra.mxu0 %v10775_v29  ;;  %8533 = vmatprep.subr.bf16.mxu1 %v10780_v32  ;;  %v10834_v29 = vld [vmem:[#allocation14 + $0xc4] ss:$8 sps:$4 sm:$0xff]  }
 0xab9   : > { %v10837_v32 = vld [vmem:[#allocation14 + $0x1c4] ss:$8 sps:$4 sm:$0xff]  }
 0xabe   : > { %7438 = vmatmul.mubr.bf16.gmra.mxu1 %v16476_v42  ;;  %7551 = vmatmul.mubr.bf16.gmra.mxu0 %v16476_v42  ;;  %v10783_v42 = vld [vmem:[#allocation14 + $0x154] ss:$8 sps:$4 sm:$0xff]  }
 0xabf   : > { %7447 = vmatprep.mubr.bf16.mxu1 %v16490_v24  ;;  %7560 = vmatprep.mubr.bf16.mxu0 %v16490_v24  ;;  %v10778_v24 = vld [vmem:[#allocation14 + $0x50] ss:$8 sps:$4 sm:$0xff]  }
 0xac0   : > { %8646 = vmatprep.subr.bf16.mxu0 %v10783_v42  ;;  %8534 = vmatpush1.bf16.msra.mxu1 %v10778_v24  ;;  %v10832_v42 = vld [vmem:[#allocation14 + $0xc0] ss:$8 sps:$4 sm:$0xff]  }
 0xac1   : > { %8647 = vmatpush1.bf16.msra.mxu0 %v10781_v37  ;;  %v10835_v24 = vld [vmem:[#allocation14 + $0x1c0] ss:$8 sps:$4 sm:$0xff]   ;;  %v10840_v37 = vld [vmem:[#allocation14 + $0xb4] ss:$8 sps:$4 sm:$0xff]  }
 0xac6   : > { %7448 = vmatmul.mubr.bf16.gmra.mxu1 %v16492_v17  ;;  %7561 = vmatmul.mubr.bf16.gmra.mxu0 %v16492_v17  ;;  %v10786_v17 = vld [vmem:[#allocation14 + $0x44] ss:$8 sps:$4 sm:$0xff]  }
 0xac7   : > { %7457 = vmatprep.mubr.bf16.mxu1 %v16506_v58  ;;  %7570 = vmatprep.mubr.bf16.mxu0 %v16506_v58  ;;  %v10789_v58 = vld [vmem:[#allocation14 + $0x144] ss:$8 sps:$4 sm:$0xff]  }
 0xac8   : > { %8535 = vmatprep.subr.bf16.mxu1 %v10786_v17  ;;  %8648 = vmatprep.subr.bf16.mxu0 %v10789_v58  ;;  %v10843_v17 = vld [vmem:[#allocation14 + $0x1b4] ss:$8 sps:$4 sm:$0xff]   ;;  %v10838_v58 = vld [vmem:[#allocation14 + $0xb0] ss:$8 sps:$4 sm:$0xff]  }
 0xac9   : > { %8536 = vmatpush1.bf16.msra.mxu1 %v10784_v25  ;;  %8649 = vmatpush1.bf16.msra.mxu0 %v10787_v60  ;;  %v10841_v25 = vld [vmem:[#allocation14 + $0x1b0] ss:$8 sps:$4 sm:$0xff]   ;;  %v10846_v60 = vld [vmem:[#allocation14 + $0xa4] ss:$8 sps:$4 sm:$0xff]  }
 0xaca   : > { %8537 = vmatprep.subr.bf16.mxu1 %v10792_v45  ;;  %8650 = vmatprep.subr.bf16.mxu0 %v10795_v0  ;;  %v10849_v45 = vld [vmem:[#allocation14 + $0x1a4] ss:$8 sps:$4 sm:$0xff]   ;;  %v10844_v0 = vld [vmem:[#allocation14 + $0xa0] ss:$8 sps:$4 sm:$0xff]  }
 0xacd   : > { %8538 = vmatpush1.bf16.msra.mxu1 %v10790_v49  ;;  %8651 = vmatpush1.bf16.msra.mxu0 %v10793_v6  ;;  %v10847_v49 = vld [vmem:[#allocation14 + $0x1a0] ss:$8 sps:$4 sm:$0xff]   ;;  %v10852_v6 = vld [vmem:[#allocation14 + $0x94] ss:$8 sps:$4 sm:$0xff]  }
 0xace   : > { %7458 = vmatmul.mubr.bf16.gmra.mxu1 %v16508_v5  ;;  %7571 = vmatmul.mubr.bf16.gmra.mxu0 %v16508_v5  ;;  %v10798_v5 = vld [vmem:[#allocation14 + $0x24] ss:$8 sps:$4 sm:$0xff]  }
 0xacf   : > { %7467 = vmatprep.mubr.bf16.mxu1 %v16522_v52  ;;  %7580 = vmatprep.mubr.bf16.mxu0 %v16522_v52  ;;  %v10804_v52 = vld [vmem:[#allocation14 + $0x14] ss:$8 sps:$4 sm:$0xff]  }
 0xad0   : > { %8539 = vmatprep.subr.bf16.mxu1 %v10798_v5  ;;  %8652 = vmatprep.subr.bf16.mxu0 %v10801_v39  ;;  %v10855_v5 = vld [vmem:[#allocation14 + $0x194] ss:$8 sps:$4 sm:$0xff]   ;;  %v10850_v39 = vld [vmem:[#allocation14 + $0x90] ss:$8 sps:$4 sm:$0xff]  }
 0xad1   : > { %8540 = vmatpush1.bf16.msra.mxu1 %v10796_v16  ;;  %8653 = vmatpush1.bf16.msra.mxu0 %v10799_v31  ;;  %v10853_v16 = vld [vmem:[#allocation14 + $0x190] ss:$8 sps:$4 sm:$0xff]   ;;  %v10858_v31 = vld [vmem:[#allocation14 + $0x84] ss:$8 sps:$4 sm:$0xff]  }
 0xad2   : > { %8541 = vmatprep.subr.bf16.mxu1 %v10804_v52  ;;  %8654 = vmatprep.subr.bf16.mxu0 %v10807_v8  ;;  %v10861_v52 = vld [vmem:[#allocation14 + $0x184] ss:$8 sps:$4 sm:$0xff]   ;;  %v10856_v8 = vld [vmem:[#allocation14 + $0x80] ss:$8 sps:$4 sm:$0xff]  }
 0xad5   : > { %8542 = vmatpush1.bf16.msra.mxu1 %v10802_v38  ;;  %8655 = vmatpush1.bf16.msra.mxu0 %v10805_v51  ;;  %v10859_v38 = vld [vmem:[#allocation14 + $0x180] ss:$8 sps:$4 sm:$0xff]  }
 0xad6   : > { %7468 = vmatmul.mubr.bf16.gmra.mxu1 %v16524_v53  ;;  %7581 = vmatmul.mubr.bf16.gmra.mxu0 %v16524_v53  ;;  %v10810_v53 = vld [vmem:[#allocation14 + $0x4] ss:$8 sps:$4 sm:$0xff]  }
 0xad7   : > { %7477 = vmatprep.mubr.bf16.mxu1 %v16538_v10  ;;  %7590 = vmatprep.mubr.bf16.mxu0 %v16538_v10  ;;  %v10817_v10 = vld [vmem:[#allocation14 + $0x1f0] ss:$8 sps:$4 sm:$0xff]  }
 0xad8   : > { %8543 = vmatprep.subr.bf16.mxu1 %v10810_v53  ;;  %8656 = vmatprep.subr.bf16.mxu0 %v10813_v36 }
 0xad9   : > { %8544 = vmatpush1.bf16.msra.mxu1 %v10808_v14  ;;  %8657 = vmatpush1.bf16.msra.mxu0 %v10811_v34 }
 0xada   : > { %8545 = vmatprep.subr.bf16.mxu1 %v10816_v46  ;;  %8658 = vmatprep.subr.bf16.mxu0 %v10819_v19 }
 0xadd   : > { %8546 = vmatpush2.bf16.msra.mxu1 %v10814_v2  ;;  %8659 = vmatpush2.bf16.msra.mxu0 %v10817_v10 }
 0xade   : > { %7478 = vmatmul.mubr.bf16.gmra.mxu1 %v16540_v4  ;;  %7591 = vmatmul.mubr.bf16.gmra.mxu0 %v16540_v4  ;;  %v10823_v4 = vld [vmem:[#allocation14 + $0x1e0] ss:$8 sps:$4 sm:$0xff]  }
 0xadf   : > { %8547 = vmatprep.subr.bf16.mxu1 %v10822_v23  ;;  %8660 = vmatprep.subr.bf16.mxu0 %v10825_v44 }
 0xae1   : > { %8548 = vmatpush2.bf16.msra.mxu1 %v10820_v47  ;;  %8661 = vmatpush2.bf16.msra.mxu0 %v10823_v4 }
 0xae2   : > { %8549 = vmatprep.subr.bf16.mxu1 %v10828_v9  ;;  %8662 = vmatprep.subr.bf16.mxu0 %v10831_v56 }
 0xae5   : > { %8550 = vmatpush2.bf16.msra.mxu1 %v10826_v15  ;;  %8663 = vmatpush2.bf16.msra.mxu0 %v10829_v26 }
 0xae6   : > { %8551 = vmatprep.subr.bf16.mxu1 %v10834_v29  ;;  %8664 = vmatprep.subr.bf16.mxu0 %v10837_v32 }
 0xae9   : > { %8552 = vmatpush2.bf16.msra.mxu1 %v10832_v42  ;;  %8665 = vmatpush2.bf16.msra.mxu0 %v10835_v24 }
 0xaea   : > { %8553 = vmatprep.subr.bf16.mxu1 %v10840_v37  ;;  %8666 = vmatprep.subr.bf16.mxu0 %v10843_v17 }
 0xaed   : > { %8554 = vmatpush2.bf16.msra.mxu1 %v10838_v58  ;;  %8667 = vmatpush2.bf16.msra.mxu0 %v10841_v25 }
 0xaee   : > { %8555 = vmatprep.subr.bf16.mxu1 %v10846_v60  ;;  %8668 = vmatprep.subr.bf16.mxu0 %v10849_v45 }
 0xaf1   : > { %8556 = vmatpush2.bf16.msra.mxu1 %v10844_v0  ;;  %8669 = vmatpush2.bf16.msra.mxu0 %v10847_v49 }
 0xaf2   : > { %8557 = vmatprep.subr.bf16.mxu1 %v10852_v6  ;;  %8670 = vmatprep.subr.bf16.mxu0 %v10855_v5 }
 0xaf5   : > { %8558 = vmatpush2.bf16.msra.mxu1 %v10850_v39  ;;  %8671 = vmatpush2.bf16.msra.mxu0 %v10853_v16 }
 0xaf6   : > { %8559 = vmatprep.subr.bf16.mxu1 %v10858_v31  ;;  %8672 = vmatprep.subr.bf16.mxu0 %v10861_v52 }
 0xaf9   : > { %8560 = vmatpush2.bf16.msra.mxu1 %v10856_v8  ;;  %8673 = vmatpush2.bf16.msra.mxu0 %v10859_v38 }
 0xb07   : > { %v16578_v51 = vpop.f32.mrf.mxu1  ;;  %v16580_v53 = vpop.f32.mrf.mxu0 }
 0xb08   : > { %v9284_v36 = vmul.f32 -1.442695, %v16578_v51  ;;  %v9286_v14 = vmul.f32 -1.442695, %v16580_v53 }
 0xb09   : > { %v16584_v34 = vpop.f32.mrf.mxu1  ;;  %v16586_v46 = vpop.f32.mrf.mxu0 }
 0xb0a   : > { %11438 = vpow2.f32 %v9284_v36  ;;  %v9285_v19 = vmul.f32 -1.442695, %v16584_v34  ;;  %v9287_v2 = vmul.f32 -1.442695, %v16586_v46 }
 0xb0b   : > { %11440 = vpow2.f32 %v9286_v14  ;;  %v16590_v10 = vpop.f32.mrf.mxu1  ;;  %v16592_v23 = vpop.f32.mrf.mxu0 }
 0xb0c   : > { %11442 = vpow2.f32 %v9285_v19  ;;  %v9288_v44 = vmul.f32 -1.442695, %v16590_v10  ;;  %v9290_v47 = vmul.f32 -1.442695, %v16592_v23 }
 0xb0d   : > { %11444 = vpow2.f32 %v9287_v2  ;;  %v16596_v4 = vpop.f32.mrf.mxu1  ;;  %v16598_v9 = vpop.f32.mrf.mxu0 }
 0xb0e   : > { %11446 = vpow2.f32 %v9288_v44  ;;  %v9289_v56 = vmul.f32 -1.442695, %v16596_v4  ;;  %v9291_v15 = vmul.f32 -1.442695, %v16598_v9 }
 0xb0f   : > { %11448 = vpow2.f32 %v9290_v47  ;;  %v16602_v26 = vpop.f32.mrf.mxu1  ;;  %v16604_v29 = vpop.f32.mrf.mxu0 }
 0xb10   : > { %11450 = vpow2.f32 %v9289_v56  ;;  %v9292_v32 = vmul.f32 -1.442695, %v16602_v26  ;;  %v9294_v42 = vmul.f32 -1.442695, %v16604_v29 }
 0xb11   : > { %11452 = vpow2.f32 %v9291_v15  ;;  %v16608_v24 = vpop.f32.mrf.mxu1  ;;  %v16610_v37 = vpop.f32.mrf.mxu0 }
 0xb12   : > { %11454 = vpow2.f32 %v9292_v32  ;;  %v9293_v17 = vmul.f32 -1.442695, %v16608_v24  ;;  %v9295_v58 = vmul.f32 -1.442695, %v16610_v37 }
 0xb13   : > { %11456 = vpow2.f32 %v9294_v42  ;;  %v16614_v25 = vpop.f32.mrf.mxu1  ;;  %v16616_v60 = vpop.f32.mrf.mxu0 }
 0xb14   : > { %11458 = vpow2.f32 %v9293_v17  ;;  %v9296_v45 = vmul.f32 -1.442695, %v16614_v25  ;;  %v9298_v6 = vmul.f32 -1.442695, %v16616_v60 }
 0xb15   : > { %11460 = vpow2.f32 %v9295_v58  ;;  %v16619_v0 = vpop.f32.mrf.mxu1  ;;  %v16621_v49 = vpop.f32.mrf.mxu0 }
 0xb16   : > { %11462 = vpow2.f32 %v9296_v45  ;;  %v9297_v39 = vmul.f32 -1.442695, %v16619_v0  ;;  %v9299_v52 = vmul.f32 -1.442695, %v16621_v49 }
 0xb17   : > { %v11439_v5 = vpop.eup %11438  ;;  %v16625_v16 = vpop.f32.mrf.mxu1  ;;  %11464 = vpow2.f32 %v9298_v6 }
 0xb18   : > { %v11441_v31 = vpop.eup %11440  ;;  %v7793_v38 = vadd.f32 1.0, %v11439_v5  ;;  %v16628_v36 = vpop.f32.mrf.mxu0  ;;  %11466 = vpow2.f32 %v9297_v39 }
 0xb19   : > { %v11443_v8 = vpop.eup %11442  ;;  %v7795_v19 = vadd.f32 1.0, %v11441_v31  ;;  %v16630_v47 = vpop.f32.mrf.mxu1  ;;  %11468 = vpow2.f32 %v9299_v52 }
 0xb1a   : > { %v11445_v14 = vpop.eup %11444  ;;  %v7794_v44 = vadd.f32 1.0, %v11443_v8  ;;  %11470 = vrcp.f32 %v7793_v38  ;;  %v16632_v17 = vpop.f32.mrf.mxu0 }
 0xb1b   : > { %v11447_v2 = vpop.eup %11446  ;;  %v7796_v15 = vadd.f32 1.0, %v11445_v14  ;;  %18102 = vst [vmem:[#allocation67_spill] sm:$0xff] %v16632_v17  ;;  %11472 = vrcp.f32 %v7795_v19  ;;  %v16634_v6 = vpop.f32.mrf.mxu1 }
 0xb1c   : > { %v11449_v56 = vpop.eup %11448  ;;  %v7797_v42 = vadd.f32 1.0, %v11447_v2  ;;  %11474 = vrcp.f32 %v7794_v44  ;;  %18103 = vst [vmem:[#allocation59_spill] sm:$0xff] %v16634_v6  ;;  %v16636_v52 = vpop.f32.mrf.mxu0 }
 0xb1d   : > { %v11451_v32 = vpop.eup %11450  ;;  %v7799_v45 = vadd.f32 1.0, %v11449_v56  ;;  %11476 = vrcp.f32 %v7796_v15  ;;  %18104 = vst [vmem:[#allocation52_spill] sm:$0xff] %v16636_v52  ;;  %v16638_v56 = vpop.f32.mrf.mxu1  ;;  %v9300_v15 = vmul.f32 -1.442695, %v16625_v16 }
 0xb1e   : > { %v11453_v58 = vpop.eup %11452  ;;  %v7798_v31 = vadd.f32 1.0, %v11451_v32  ;;  %11478 = vrcp.f32 %v7797_v42  ;;  %18105 = vst [vmem:[#allocation32_spill] sm:$0xff] %v16638_v56  ;;  %v16640_v48 = vpop.f32.mrf.mxu0 }
 0xb1f   : > { %v11455_v5 = vpop.eup %11454  ;;  %v7800_v39 = vadd.f32 1.0, %v11453_v58  ;;  %11480 = vrcp.f32 %v7799_v45  ;;  %18106 = vst [vmem:[#allocation71_spill] sm:$0xff] %v16640_v48  ;;  %v9302_v58 = vmul.f32 -1.442695, %v16628_v36  ;;  %v16644_v45 = vpop.f32.mrf.mxu1  ;;  %v9307_v28 = vmul.f32 -1.442695, %v16640_v48 }
 0xb20   : > { %v11457_v8 = vpop.eup %11456  ;;  %v7801_v14 = vadd.f32 1.0, %v11455_v5  ;;  %11482 = vrcp.f32 %v7798_v31  ;;  %18107 = vst [vmem:[#allocation65_spill] sm:$0xff] %v16644_v45 }
 0xb21   : > { %v11459_v63 = vpop.eup %11458  ;;  %v7803_v2 = vadd.f32 1.0, %v11457_v8  ;;  %11484 = vrcp.f32 %v7800_v39  ;;  %v9303_v8 = vmul.f32 -1.442695, %v16632_v17 }
 0xb22   : > { %v11461_v38 = vpop.eup %11460  ;;  %v7802_v19 = vadd.f32 1.0, %v11459_v63  ;;  %11486 = vrcp.f32 %v7801_v14  ;;  %v9301_v63 = vmul.f32 -1.442695, %v16630_v47  ;;  %v9304_v14 = vmul.f32 -1.442695, %v16634_v6 }
 0xb23   : > { %v11463_v20 = vpop.eup %11462  ;;  %v7804_v44 = vadd.f32 1.0, %v11461_v38  ;;  %11488 = vrcp.f32 %v7803_v2  ;;  %v9306_v2 = vmul.f32 -1.442695, %v16636_v52 }
 0xb24   : > { %v7805_v32 = vadd.f32 1.0, %v11463_v20  ;;  %v11465_v42 = vpop.eup %11464  ;;  %11490 = vrcp.f32 %v7802_v19  ;;  %v16648_v20 = vpop.f32.mrf.mxu0 }
 0xb25   : > { %v11467_v5 = vpop.eup %11466  ;;  %11492 = vrcp.f32 %v7804_v44  ;;  %18108 = vst [vmem:[#allocation62_spill] sm:$0xff] %v16648_v20  ;;  %v16656_v19 = vpop.f32.mrf.mxu1  ;;  %v9310_v11 = vmul.f32 -1.442695, %v16648_v20  ;;  %v7807_v13 = vadd.f32 1.0, %v11465_v42 }
 0xb26   : > { %v11469_v31 = vpop.eup %11468  ;;  %11494 = vrcp.f32 %v7805_v32  ;;  %18109 = vst [vmem:[#allocation31_spill] sm:$0xff] %v16656_v19  ;;  %v9305_v32 = vmul.f32 -1.442695, %v16638_v56 }
 0xb27   : > { %v16650_v39 = vpop.eup %11470  ;;  %11496 = vpow2.f32 %v9300_v15  ;;  %v16664_v15 = vpop.f32.mrf.mxu0  ;;  %v7808_v59 = vadd.f32 1.0, %v11469_v31 }
 0xb28   : > { %v16653_v38 = vpop.eup %11472  ;;  %11498 = vpow2.f32 %v9302_v58  ;;  %18110 = vst [vmem:[#allocation38_spill] sm:$0xff] %v16664_v15  ;;  %v9308_v58 = vmul.f32 -1.442695, %v16644_v45  ;;  %v9311_v57 = vmul.f32 -1.442695, %v16664_v15 }
 0xb29   : > { %v16658_v44 = vpop.eup %11474  ;;  %11500 = vpow2.f32 %v9301_v63  ;;  %v16672_v63 = vpop.f32.mrf.mxu1 }
 0xb2a   : > { %v16661_v27 = vpop.eup %11476  ;;  %11502 = vpow2.f32 %v9303_v8  ;;  %18111 = vst [vmem:[#allocation58_spill] sm:$0xff] %v16672_v63  ;;  %v9309_v8 = vmul.f32 -1.442695, %v16656_v19 }
 0xb2b   : > { %v16666_v40 = vpop.eup %11478  ;;  %11504 = vpow2.f32 %v9304_v14  ;;  %v16680_v14 = vpop.f32.mrf.mxu0 }
 0xb2c   : > { %v16669_v43 = vpop.eup %11480  ;;  %11506 = vpow2.f32 %v9306_v2  ;;  %18112 = vst [vmem:[#allocation36_spill] sm:$0xff] %v16680_v14  ;;  %v9312_v2 = vmul.f32 -1.442695, %v16672_v63  ;;  %v16689_v30 = vpop.f32.mrf.mxu1 }
 0xb2d   : > { %v16674_v3 = vpop.eup %11482  ;;  %11508 = vpow2.f32 %v9305_v32  ;;  %v7806_v32 = vadd.f32 1.0, %v11467_v5  ;;  %18113 = vst [vmem:[#allocation64_spill] sm:$0xff] %v16689_v30  ;;  %v16693_v55 = vpop.f32.mrf.mxu0 }
 0xb2e   : > { %v16677_v12 = vpop.eup %11484  ;;  %11510 = vpow2.f32 %v9307_v28  ;;  %18114 = vst [vmem:[#allocation73_spill] sm:$0xff] %v16693_v55  ;;  %v9315_v5 = vmul.f32 -1.442695, %v16693_v55 }
 0xb2f   : > { %v16682_v35 = vpop.eup %11486  ;;  %11512 = vpow2.f32 %v9308_v58  ;;  %v9314_v58 = vmul.f32 -1.442695, %v16680_v14 }
 0xb30   : > { %v16685_v18 = vpop.eup %11488  ;;  %11514 = vpow2.f32 %v9310_v11  ;;  %v9313_v11 = vmul.f32 -1.442695, %v16689_v30 }
 0xb31   : > { %v16687_v7 = vpop.eup %11490  ;;  %11516 = vpow2.f32 %v9309_v8 }
 0xb32   : > { %v16691_v28 = vpop.eup %11492  ;;  %11518 = vpow2.f32 %v9311_v57 }
 0xb33   : > { %v16695_v61 = vpop.eup %11494  ;;  %11520 = vpow2.f32 %v9312_v2 }
 0xb34   : > { %v11497_v33 = vpop.eup %11496  ;;  %11522 = vrcp.f32 %v7807_v13 }
 0xb35   : > { %v11499_v42 = vpop.eup %11498  ;;  %11524 = vrcp.f32 %v7806_v32  ;;  %v7809_v62 = vadd.f32 1.0, %v11497_v33 }
 0xb36   : > { %v11501_v8 = vpop.eup %11500  ;;  %11526 = vrcp.f32 %v7808_v59  ;;  %v7811_v57 = vadd.f32 1.0, %v11499_v42 }
 0xb37   : > { %v11503_v31 = vpop.eup %11502  ;;  %11528 = vpow2.f32 %v9314_v58  ;;  %v7810_v1 = vadd.f32 1.0, %v11501_v8 }
 0xb38   : > { %v11505_v22 = vpop.eup %11504  ;;  %11530 = vpow2.f32 %v9313_v11  ;;  %v7812_v50 = vadd.f32 1.0, %v11503_v31 }
 0xb39   : > { %v11507_v2 = vpop.eup %11506  ;;  %11532 = vpow2.f32 %v9315_v5  ;;  %v7813_v13 = vadd.f32 1.0, %v11505_v22 }
 0xb3a   : > { %v11509_v21 = vpop.eup %11508  ;;  %11534 = vrcp.f32 %v7809_v62  ;;  %v7815_v32 = vadd.f32 1.0, %v11507_v2 }
 0xb3b   : > { %v11511_v41 = vpop.eup %11510  ;;  %11536 = vrcp.f32 %v7811_v57  ;;  %v7814_v55 = vadd.f32 1.0, %v11509_v21 }
 0xb3c   : > { %v11513_v54 = vpop.eup %11512  ;;  %11538 = vrcp.f32 %v7810_v1  ;;  %v7816_v33 = vadd.f32 1.0, %v11511_v41 }
 0xb3d   : > { %v11515_v59 = vpop.eup %11514  ;;  %11540 = vrcp.f32 %v7812_v50  ;;  %v7817_v58 = vadd.f32 1.0, %v11513_v54 }
 0xb3e   : > { %v11517_v42 = vpop.eup %11516  ;;  %11542 = vrcp.f32 %v7813_v13  ;;  %v7819_v11 = vadd.f32 1.0, %v11515_v59 }
 0xb3f   : > { %v11519_v8 = vpop.eup %11518  ;;  %11544 = vrcp.f32 %v7815_v32  ;;  %v7818_v5 = vadd.f32 1.0, %v11517_v42 }
 0xb40   : > { %v11521_v31 = vpop.eup %11520  ;;  %11546 = vrcp.f32 %v7814_v55  ;;  %v7820_v22 = vadd.f32 1.0, %v11519_v8 }
 0xb41   : > { %v16700_v62 = vpop.eup %11522  ;;  %11548 = vrcp.f32 %v7816_v33  ;;  %v7821_v21 = vadd.f32 1.0, %v11521_v31 }
 0xb42   : > { %v16702_v57 = vpop.eup %11524  ;;  %11550 = vrcp.f32 %v7817_v58 }
 0xb43   : > { %v16708_v50 = vpop.eup %11526  ;;  %11552 = vrcp.f32 %v7819_v11 }
 0xb44   : > { %v11529_v2 = vpop.eup %11528  ;;  %11554 = vrcp.f32 %v7818_v5 }
 0xb45   : > { %v11531_v59 = vpop.eup %11530  ;;  %11556 = vrcp.f32 %v7820_v22  ;;  %v7823_v48 = vadd.f32 1.0, %v11529_v2 }
 0xb46   : > { %v16704_v1 = vpop.f32.mrf.mxu1  ;;  %v16706_v41 = vpop.f32.mrf.mxu0  ;;  %11558 = vrcp.f32 %v7821_v21 }
 0xb47   : > { %18115 = vst [vmem:[#allocation33_spill] sm:$0xff] %v16704_v1  ;;  %18116 = vst [vmem:[#allocation69_spill] sm:$0xff] %v16706_v41  ;;  %v9316_v54 = vmul.f32 -1.442695, %v16704_v1  ;;  %v9318_v55 = vmul.f32 -1.442695, %v16706_v41  ;;  %v11533_v42 = vpop.eup %11532 }
 0xb48   : > { %v16712_v13 = vpop.f32.mrf.mxu1  ;;  %v16714_v32 = vpop.f32.mrf.mxu0 }
 0xb49   : > { %18117 = vst [vmem:[#allocation46_spill] sm:$0xff] %v16712_v13  ;;  %18118 = vst [vmem:[#allocation29_spill] sm:$0xff] %v16714_v32  ;;  %v9317_v33 = vmul.f32 -1.442695, %v16712_v13  ;;  %v9319_v58 = vmul.f32 -1.442695, %v16714_v32  ;;  %v16722_v31 = vpop.eup %11534  ;;  %11560 = vpow2.f32 %v9316_v54 }
 0xb4a   : > { %v16718_v8 = vpop.f32.mrf.mxu1  ;;  %v16720_v11 = vpop.f32.mrf.mxu0  ;;  %11562 = vpow2.f32 %v9318_v55 }
 0xb4b   : > { %18119 = vst [vmem:[#allocation41_spill] sm:$0xff] %v16718_v8  ;;  %18120 = vst [vmem:[#allocation156_spill] sm:$0xff] %v16720_v11  ;;  %v9320_v5 = vmul.f32 -1.442695, %v16718_v8  ;;  %v16725_v41 = vpop.eup %11536  ;;  %v9322_v22 = vmul.f32 -1.442695, %v16720_v11  ;;  %11564 = vpow2.f32 %v9317_v33 }
 0xb4c   : > { %v16728_v1 = vpop.f32.mrf.mxu1  ;;  %v16730_v13 = vpop.f32.mrf.mxu0  ;;  %11566 = vpow2.f32 %v9319_v58 }
 0xb4d   : > { %18121 = vst [vmem:[#allocation150_spill] sm:$0xff] %v16728_v1  ;;  %18122 = vst [vmem:[#allocation153_spill] sm:$0xff] %v16730_v13  ;;  %v16732_v21 = vpop.eup %11538  ;;  %v9321_v32 = vmul.f32 -1.442695, %v16728_v1  ;;  %v9323_v54 = vmul.f32 -1.442695, %v16730_v13  ;;  %11568 = vpow2.f32 %v9320_v5 }
 0xb4e   : > { %18123 = vst [vmem:[#allocation96_spill] sm:$0xff] %v16732_v21  ;;  %v16735_v30 = vpop.eup %11540  ;;  %v16738_v8 = vpop.f32.mrf.mxu1  ;;  %11570 = vpow2.f32 %v9322_v22 }
 0xb4f   : > { %18124 = vst [vmem:[#allocation152_spill] sm:$0xff] %v16735_v30  ;;  %18125 = vst [vmem:[#allocation155_spill] sm:$0xff] %v16738_v8  ;;  %v16740_v15 = vpop.f32.mrf.mxu0  ;;  %v16742_v55 = vpop.eup %11542  ;;  %v9324_v11 = vmul.f32 -1.442695, %v16738_v8  ;;  %11572 = vpow2.f32 %v9321_v32 }
 0xb50   : > { %18126 = vst [vmem:[#allocation151_spill] sm:$0xff] %v16740_v15  ;;  %18127 = vst [vmem:[#allocation75_spill] sm:$0xff] %v16742_v55  ;;  %v16745_v19 = vpop.eup %11544  ;;  %v9326_v33 = vmul.f32 -1.442695, %v16740_v15  ;;  %v16748_v1 = vpop.f32.mrf.mxu1  ;;  %11574 = vpow2.f32 %v9323_v54 }
 0xb51   : > { %18128 = vst [vmem:[#allocation105_spill] sm:$0xff] %v16745_v19  ;;  %18129 = vst [vmem:[#allocation154_spill] sm:$0xff] %v16748_v1  ;;  %v16750_v14 = vpop.f32.mrf.mxu0  ;;  %v16752_v58 = vpop.eup %11546  ;;  %v9325_v13 = vmul.f32 -1.442695, %v16748_v1  ;;  %11576 = vpow2.f32 %v9324_v11 }
 0xb52   : > { %18130 = vst [vmem:[#allocation157_spill] sm:$0xff] %v16750_v14  ;;  %18131 = vst [vmem:[#allocation74_spill] sm:$0xff] %v16752_v58  ;;  %v16755_v63 = vpop.eup %11548  ;;  %v9327_v5 = vmul.f32 -1.442695, %v16750_v14  ;;  %v16758_v8 = vpop.f32.mrf.mxu1  ;;  %11578 = vpow2.f32 %v9326_v33  ;;  %v7822_v14 = vadd.f32 1.0, %v11531_v59  ;;  %v7824_v58 = vadd.f32 1.0, %v11533_v42 }
 0xb53   : > { %18132 = vst [vmem:[#allocation126_spill] sm:$0xff] %v16755_v63  ;;  %18133 = vst [vmem:[#allocation72_spill] sm:$0xff] %v16758_v8  ;;  %v16760_v20 = vpop.f32.mrf.mxu0  ;;  %v16762_v22 = vpop.eup %11550  ;;  %v9328_v15 = vmul.f32 -1.442695, %v16758_v8  ;;  %11580 = vpow2.f32 %v9325_v13 }
 0xb54   : > { %18134 = vst [vmem:[#allocation129_spill] sm:$0xff] %v16760_v20  ;;  %18135 = vst [vmem:[#allocation88_spill] sm:$0xff] %v16762_v22  ;;  %v16765_v45 = vpop.eup %11552  ;;  %v16767_v32 = vpop.f32.mrf.mxu1  ;;  %11582 = vpow2.f32 %v9327_v5  ;;  %v9330_v2 = vmul.f32 -1.442695, %v16760_v20 }
 0xb55   : > { %18136 = vst [vmem:[#allocation77_spill] sm:$0xff] %v16765_v45  ;;  %18137 = vst [vmem:[#allocation103_spill] sm:$0xff] %v16767_v32  ;;  %v16769_v1 = vpop.f32.mrf.mxu0  ;;  %v16771_v54 = vpop.eup %11554  ;;  %11584 = vpow2.f32 %v9328_v15  ;;  %v9329_v45 = vmul.f32 -1.442695, %v16767_v32 }
 0xb56   : > { %18138 = vst [vmem:[#allocation132_spill] sm:$0xff] %v16769_v1  ;;  %18139 = vst [vmem:[#allocation26_spill] sm:$0xff] %v16771_v54  ;;  %v16773_v63 = vpop.eup %11556  ;;  %v16775_v22 = vpop.f32.mrf.mxu1  ;;  %11586 = vrcp.f32 %v7823_v48  ;;  %v9331_v42 = vmul.f32 -1.442695, %v16769_v1 }
 0xb57   : > { %18140 = vst [vmem:[#allocation79_spill] sm:$0xff] %v16773_v63  ;;  %v16777_v11 = vpop.f32.mrf.mxu0  ;;  %v16779_v8 = vpop.eup %11558  ;;  %11588 = vrcp.f32 %v7822_v14 }
 0xb58   : > { %18141 = vst [vmem:[#allocation24_spill] sm:$0xff] %v16779_v8  ;;  %v11561_v33 = vpop.eup %11560  ;;  %v16783_v54 = vpop.f32.mrf.mxu1  ;;  %11590 = vrcp.f32 %v7824_v58 }
 0xb59   : > { %18142 = vst [vmem:[#allocation76_spill] sm:$0xff] %v16783_v54  ;;  %v16785_v13 = vpop.f32.mrf.mxu0  ;;  %v11563_v59 = vpop.eup %11562  ;;  %v7825_v63 = vadd.f32 1.0, %v11561_v33  ;;  %11592 = vpow2.f32 %v9330_v2 }
 0xb5a   : > { %18143 = vst [vmem:[#allocation87_spill] sm:$0xff] %v16785_v13  ;;  %v11565_v5 = vpop.eup %11564  ;;  %v16788_v56 = vpop.f32.mrf.mxu1  ;;  %v7827_v8 = vadd.f32 1.0, %v11563_v59  ;;  %11594 = vpow2.f32 %v9329_v45 }
 0xb5b   : > { %18144 = vst [vmem:[#allocation86_spill] sm:$0xff] %v16788_v56  ;;  %v16790_v15 = vpop.f32.mrf.mxu0  ;;  %v11567_v20 = vpop.eup %11566  ;;  %v7826_v32 = vadd.f32 1.0, %v11565_v5  ;;  %11596 = vpow2.f32 %v9331_v42 }
 0xb5c   : > { %v11569_v48 = vpop.eup %11568  ;;  %v16792_v19 = vpop.f32.mrf.mxu1  ;;  %v7828_v55 = vadd.f32 1.0, %v11567_v20  ;;  %11598 = vrcp.f32 %v7825_v63  ;;  %v7985_v63 = vmul.f32 %v16650_v39, %v16578_v51  ;;  %v7991_v39 = vmul.f32 %v16669_v43, %v16592_v23 }
 0xb5d   : > { %v16794_v52 = vpop.f32.mrf.mxu0  ;;  %v11571_v14 = vpop.eup %11570  ;;  %v7829_v58 = vadd.f32 1.0, %v11569_v48  ;;  %11600 = vrcp.f32 %v7827_v8  ;;  %v7987_v48 = vmul.f32 %v16653_v38, %v16580_v53  ;;  %v7989_v53 = vmul.f32 %v16666_v40, %v16590_v10 }
 0xb5e   : > { %v11573_v1 = vpop.eup %11572  ;;  %v16796_v33 = vpop.f32.mrf.mxu1  ;;  %v7831_v2 = vadd.f32 1.0, %v11571_v14  ;;  %11602 = vrcp.f32 %v7826_v32  ;;  %v16836_v43 = vmul.f32 %v16682_v35, %v16602_v26  ;;  %v16840_v10 = vmul.f32 %v16685_v18, %v16604_v29 }
 0xb5f   : > { %v16798_v6 = vpop.f32.mrf.mxu0  ;;  %v11575_v30 = vpop.eup %11574  ;;  %v7830_v45 = vadd.f32 1.0, %v11573_v1  ;;  %11604 = vrcp.f32 %v7828_v55  ;;  %v9332_v35 = vmul.f32 -1.442695, %v16775_v22  ;;  %v16855_v18 = vmul.f32 %v16695_v61, %v16614_v25 }
 0xb60   : > { %v11577_v59 = vpop.eup %11576  ;;  %v16800_v5 = vpop.f32.mrf.mxu1  ;;  %v7832_v20 = vadd.f32 1.0, %v11575_v30  ;;  %11606 = vrcp.f32 %v7829_v58  ;;  %v16816_v30 = vmul.f32 %v16661_v27, %v16586_v46  ;;  %v7990_v27 = vmul.f32 %v16674_v3, %v16596_v4 }
 0xb61   : > { %v16802_v17 = vpop.f32.mrf.mxu0  ;;  %v11579_v21 = vpop.eup %11578  ;;  %v7833_v8 = vadd.f32 1.0, %v11577_v59  ;;  %11608 = vrcp.f32 %v7831_v2  ;;  %v7992_v46 = vmul.f32 %v16677_v12, %v16598_v9  ;;  %v16846_v12 = vmul.f32 %v16687_v7, %v16608_v24 }
 0xb62   : > { %18145 = vst [vmem:[#allocation30_spill] sm:$0xff] %v16802_v17  ;;  %v11581_v42 = vpop.eup %11580  ;;  %v16808_v14 = vpop.f32.mrf.mxu1  ;;  %v7986_v17 = vmul.f32 %v16658_v44, %v16584_v34  ;;  %v7835_v55 = vadd.f32 1.0, %v11579_v21  ;;  %11610 = vrcp.f32 %v7830_v45  ;;  %v16850_v4 = vmul.f32 %v16691_v28, %v16610_v37 }
 0xb63   : > { %v16810_v32 = vpop.f32.mrf.mxu0  ;;  %v11583_v1 = vpop.eup %11582  ;;  %v7834_v38 = vadd.f32 1.0, %v11581_v42  ;;  %11612 = vrcp.f32 %v7832_v20  ;;  %v16859_v26 = vmul.f32 %v16700_v62, %v16616_v60  ;;  %v9334_v7 = vmul.f32 -1.442695, %v16777_v11 }
 0xb64   : > { %v11585_v51 = vpop.eup %11584  ;;  %v16822_v58 = vpop.f32.mrf.mxu1  ;;  %v7836_v44 = vadd.f32 1.0, %v11583_v1  ;;  %11614 = vrcp.f32 %v7833_v8  ;;  %v16864_v37 = vmul.f32 %v16702_v57, %v16619_v0  ;;  %v16868_v28 = vmul.f32 %v16708_v50, %v16621_v49 }
 0xb65   : > { %v16824_v59 = vpop.f32.mrf.mxu0  ;;  %v16826_v34 = vpop.eup %11586  ;;  %v7837_v23 = vadd.f32 1.0, %v11585_v51  ;;  %11616 = vrcp.f32 %v7835_v55  ;;  %v9333_v61 = vmul.f32 -1.442695, %v16783_v54  ;;  %v9335_v60 = vmul.f32 -1.442695, %v16785_v13 }
 0xb66   : > { %v16832_v40 = vpop.eup %11588  ;;  %v7409_v21 = vpop.f32.mrf.mxu1  ;;  %11618 = vrcp.f32 %v7834_v38  ;;  %v9336_v62 = vmul.f32 -1.442695, %v16788_v56  ;;  %v9338_v38 = vmul.f32 -1.442695, %v16790_v15 }
 0xb67   : > { %v7522_v2 = vpop.f32.mrf.mxu0  ;;  %v16842_v3 = vpop.eup %11590  ;;  %11620 = vrcp.f32 %v7836_v44  ;;  %v8049_v20 = vmul.f32 %v7985_v63, %v7409_v21 }
 0xb68   : > { %v11593_v9 = vpop.eup %11592  ;;  %v7411_v29 = vpop.f32.mrf.mxu1  ;;  %11622 = vrcp.f32 %v7837_v23  ;;  %v8051_v0 = vmul.f32 %v7987_v48, %v7522_v2 }
 0xb69   : > { %v7524_v24 = vpop.f32.mrf.mxu0  ;;  %v11595_v45 = vpop.eup %11594  ;;  %11624 = vpow2.f32 %v9332_v35  ;;  %v7839_v50 = vadd.f32 1.0, %v11593_v9  ;;  %v8050_v63 = vmul.f32 %v7986_v17, %v7411_v29  ;;  %v16891_v17 = vmul.f32 %v16725_v41, %v16628_v36  ;;  %v18147_v36 = vld [vmem:[#allocation67_spill] sm:$0xff]  ;;  %v18148_v41 = vld [vmem:[#allocation152_spill] sm:$0xff] }
 0xb6a   : > { %v11597_v25 = vpop.eup %11596  ;;  %v7413_v42 = vpop.f32.mrf.mxu1  ;;  %v7838_v51 = vadd.f32 1.0, %v11595_v45  ;;  %11626 = vpow2.f32 %v9334_v7  ;;  %v8052_v48 = vmul.f32 %v16816_v30, %v7524_v24  ;;  %v16887_v7 = vmul.f32 %v16722_v31, %v16625_v16  ;;  %v18146_v16 = vld [vmem:[#allocation96_spill] sm:$0xff] }
 0xb6b   : > { %v7526_v8 = vpop.f32.mrf.mxu0  ;;  %v16873_v1 = vpop.eup %11598  ;;  %v8053_v57 = vmul.f32 %v7989_v53, %v7413_v42  ;;  %11628 = vpow2.f32 %v9333_v61  ;;  %v9337_v29 = vmul.f32 -1.442695, %v16792_v19  ;;  %v9339_v30 = vmul.f32 -1.442695, %v16794_v52 }
 0xb6c   : > { %v8055_v55 = vmul.f32 %v7991_v39, %v7526_v8  ;;  %v16875_v49 = vpop.eup %11600  ;;  %v7415_v44 = vpop.f32.mrf.mxu1  ;;  %11630 = vpow2.f32 %v9335_v60  ;;  %v16901_v31 = vmul.f32 %v18146_v16, %v16630_v47  ;;  %v7840_v8 = vadd.f32 1.0, %v11597_v25  ;;  %v18150_v16 = vld [vmem:[#allocation59_spill] sm:$0xff] }
 0xb6d   : > { %v7528_v23 = vpop.f32.mrf.mxu0  ;;  %v16878_v13 = vpop.eup %11602  ;;  %v8113_v21 = vpack.c.bf16 %v8053_v57, %v8049_v20  ;;  %v8054_v53 = vmul.f32 %v7990_v27, %v7415_v44  ;;  %11632 = vpow2.f32 %v9336_v62  ;;  %v16905_v62 = vmul.f32 %v18148_v41, %v18147_v36  ;;  %v18151_v36 = vld [vmem:[#allocation75_spill] sm:$0xff] }
 0xb6e   : > { %v8115_v56 = vpack.c.bf16 %v8055_v55, %v8051_v0  ;;  %v16880_v54 = vpop.eup %11604  ;;  %v8056_v39 = vmul.f32 %v7992_v46, %v7528_v23  ;;  %v7419_v2 = vpop.f32.mrf.mxu1  ;;  %11634 = vpow2.f32 %v9338_v38  ;;  %v9340_v20 = vmul.f32 -1.442695, %v16796_v33 }
 0xb6f   : > { %v7532_v35 = vpop.f32.mrf.mxu0  ;;  %v16883_v9 = vpop.eup %11606  ;;  %v8114_v27 = vpack.c.bf16 %v8054_v53, %v8050_v63  ;;  %11636 = vrcp.f32 %v7839_v50  ;;  %v9342_v0 = vmul.f32 -1.442695, %v16798_v6  ;;  %v8057_v57 = vmul.f32 %v16836_v43, %v7419_v2 }
 0xb70   : > { %v16894_v45 = vpop.eup %11608  ;;  %v8116_v46 = vpack.c.bf16 %v8056_v39, %v8052_v48  ;;  %v7421_v24 = vpop.f32.mrf.mxu1  ;;  %11638 = vrcp.f32 %v7838_v51  ;;  %v8059_v44 = vmul.f32 %v16840_v10, %v7532_v35  ;;  %v9341_v43 = vmul.f32 -1.442695, %v16800_v5  ;;  %v18149_v51 = vld [vmem:[#allocation30_spill] sm:$0xff] }
 0xb71   : > { %v7534_v61 = vpop.f32.mrf.mxu0  ;;  %v16897_v60 = vpop.eup %11610  ;;  %8561 = vmatprep.mubr.bf16.mxu1 %v8114_v27  ;;  %11640 = vpow2.f32 %v9337_v29  ;;  %v9343_v63 = vmul.f32 -1.442695, %v18149_v51  ;;  %v9344_v48 = vmul.f32 -1.442695, %v16808_v14  ;;  %v8058_v10 = vmul.f32 %v16846_v12, %v7421_v24  ;;  %v18153_v12 = vld [vmem:[#allocation105_spill] sm:$0xff] }
 0xb72   : > { %v16908_v42 = vpop.eup %11612  ;;  %8674 = vmatprep.mubr.bf16.mxu0 %v8116_v46  ;;  %v7423_v55 = vpop.f32.mrf.mxu1  ;;  %8562 = vmatmul.mubr.bf16.vlgmr.msra.gmra.mxu1 %v8113_v21  ;;  %11642 = vpow2.f32 %v9339_v30  ;;  %v8005_v41 = vmul.f32 %v18151_v36, %v18150_v16 }
 0xb73   : > { %v7536_v47 = vpop.f32.mrf.mxu0  ;;  %v16912_v38 = vpop.eup %11614  ;;  %v8061_v50 = vmul.f32 %v16855_v18, %v7423_v55  ;;  %8675 = vmatmul.mubr.bf16.vlgmr.msra.gmra.mxu0 %v8115_v56  ;;  %11644 = vpow2.f32 %v9340_v20  ;;  %v8060_v56 = vmul.f32 %v16850_v4, %v7534_v61  ;;  %v18152_v20 = vld [vmem:[#allocation52_spill] sm:$0xff]  ;;  %v9345_v4 = vmul.f32 -1.442695, %v16822_v58 }
 0xb74   : > { %v8063_v23 = vmul.f32 %v16859_v26, %v7536_v47  ;;  %v16917_v25 = vpop.eup %11616  ;;  %v7425_v53 = vpop.f32.mrf.mxu1  ;;  %11646 = vpow2.f32 %v9342_v0  ;;  %v8007_v24 = vmul.f32 %v18153_v12, %v18152_v20 }
 0xb75   : > { %v7538_v39 = vpop.f32.mrf.mxu0  ;;  %v16922_v2 = vpop.eup %11618  ;;  %v8117_v18 = vpack.c.bf16 %v8061_v50, %v8057_v57  ;;  %v8062_v35 = vmul.f32 %v16864_v37, %v7425_v53  ;;  %11648 = vrcp.f32 %v7840_v8  ;;  %v9346_v57 = vmul.f32 -1.442695, %v16810_v32  ;;  %v18155_v50 = vld [vmem:[#allocation74_spill] sm:$0xff]  ;;  %v18156_v53 = vld [vmem:[#allocation71_spill] sm:$0xff] }
 0xb76   : > { %v8119_v26 = vpack.c.bf16 %v8063_v23, %v8059_v44  ;;  %v16925_v21 = vpop.eup %11620  ;;  %v8064_v29 = vmul.f32 %v16868_v28, %v7538_v39  ;;  %v7429_v30 = vpop.f32.mrf.mxu1  ;;  %11650 = vpow2.f32 %v9341_v43  ;;  %v18154_v44 = vld [vmem:[#allocation32_spill] sm:$0xff]  ;;  %v18157_v39 = vld [vmem:[#allocation126_spill] sm:$0xff]  ;;  %v9347_v8 = vmul.f32 -1.442695, %v16824_v59 }
 0xb77   : > { %v7542_v27 = vpop.f32.mrf.mxu0  ;;  %v16930_v46 = vpop.eup %11622  ;;  %v8118_v37 = vpack.c.bf16 %v8062_v35, %v8058_v10  ;;  %v8006_v23 = vmul.f32 %v18155_v50, %v18154_v44  ;;  %v8008_v16 = vmul.f32 %v18157_v39, %v18156_v53  ;;  %11652 = vpow2.f32 %v9343_v63 }
 0xb78   : > { %v11625_v0 = vpop.eup %11624  ;;  %v8120_v61 = vpack.c.bf16 %v8064_v29, %v8060_v56  ;;  %v7431_v28 = vpop.f32.mrf.mxu1  ;;  %11654 = vpow2.f32 %v9344_v48  ;;  %v8065_v43 = vmul.f32 %v16887_v7, %v7429_v30  ;;  %v8067_v10 = vmul.f32 %v16891_v17, %v7542_v27 }
 0xb79   : > { %v7544_v55 = vpop.f32.mrf.mxu0  ;;  %v11627_v47 = vpop.eup %11626  ;;  %v7841_v20 = vadd.f32 1.0, %v11625_v0  ;;  %8571 = vmatprep.mubr.bf16.mxu1 %v8118_v37  ;;  %11656 = vpow2.f32 %v9346_v57  ;;  %v8066_v48 = vmul.f32 %v16901_v31, %v7431_v28  ;;  %v18158_v31 = vld [vmem:[#allocation65_spill] sm:$0xff]  ;;  %v18159_v28 = vld [vmem:[#allocation88_spill] sm:$0xff] }
 0xb7a   : > { %v11629_v36 = vpop.eup %11628  ;;  %8684 = vmatprep.mubr.bf16.mxu0 %v8120_v61  ;;  %v7433_v56 = vpop.f32.mrf.mxu1  ;;  %v7843_v12 = vadd.f32 1.0, %v11627_v47  ;;  %8572 = vmatmul.mubr.bf16.gmra.mxu1 %v8117_v18  ;;  %11658 = vpow2.f32 %v9345_v4  ;;  %v8068_v7 = vmul.f32 %v16905_v62, %v7544_v55  ;;  %v8009_v62 = vmul.f32 %v18159_v28, %v18158_v31 }
 0xb7b   : > { %v7546_v35 = vpop.f32.mrf.mxu0  ;;  %v11631_v29 = vpop.eup %11630  ;;  %v8069_v44 = vmul.f32 %v8005_v41, %v7433_v56  ;;  %8685 = vmatmul.mubr.bf16.gmra.mxu0 %v8119_v26  ;;  %v7842_v53 = vadd.f32 1.0, %v11629_v36  ;;  %11660 = vpow2.f32 %v9347_v8 }
 0xb7c   : > { %v8071_v50 = vmul.f32 %v8007_v24, %v7546_v35  ;;  %v11633_v63 = vpop.eup %11632  ;;  %v7435_v30 = vpop.f32.mrf.mxu1  ;;  %v7844_v0 = vadd.f32 1.0, %v11631_v29  ;;  %11662 = vrcp.f32 %v7841_v20  ;;  %v18160_v20 = vld [vmem:[#allocation62_spill] sm:$0xff]  ;;  %v18161_v35 = vld [vmem:[#allocation77_spill] sm:$0xff]  ;;  %v18163_v29 = vld [vmem:[#allocation24_spill] sm:$0xff] }
 0xb7d   : > { %v7548_v17 = vpop.f32.mrf.mxu0  ;;  %v11635_v27 = vpop.eup %11634  ;;  %v8121_v37 = vpack.c.bf16 %v8069_v44, %v8065_v43  ;;  %v7845_v41 = vadd.f32 1.0, %v11633_v63  ;;  %v8070_v18 = vmul.f32 %v8006_v23, %v7435_v30  ;;  %11664 = vrcp.f32 %v7843_v12  ;;  %v18165_v12 = vld [vmem:[#allocation31_spill] sm:$0xff] }
 0xb7e   : > { %v8123_v61 = vpack.c.bf16 %v8071_v50, %v8067_v10  ;;  %v16947_v47 = vpop.eup %11636  ;;  %v8072_v26 = vmul.f32 %v8008_v16, %v7548_v17  ;;  %v7439_v24 = vpop.f32.mrf.mxu1  ;;  %11666 = vrcp.f32 %v7842_v53  ;;  %v7847_v39 = vadd.f32 1.0, %v11635_v27  ;;  %v18162_v16 = vld [vmem:[#allocation58_spill] sm:$0xff]  ;;  %v18164_v50 = vld [vmem:[#allocation36_spill] sm:$0xff] }
 0xb7f   : > { %v7552_v57 = vpop.f32.mrf.mxu0  ;;  %v16949_v4 = vpop.eup %11638  ;;  %v8122_v8 = vpack.c.bf16 %v8070_v18, %v8066_v48  ;;  %v8011_v23 = vmul.f32 %v18161_v35, %v18160_v20  ;;  %v8013_v44 = vmul.f32 %v18163_v29, %v18162_v16  ;;  %v8015_v63 = vmul.f32 %v16826_v34, %v18164_v50  ;;  %v18166_v17 = vld [vmem:[#allocation26_spill] sm:$0xff]  ;;  %v18168_v48 = vld [vmem:[#allocation79_spill] sm:$0xff] }
 0xb80   : > { %v11641_v55 = vpop.eup %11640  ;;  %v8124_v36 = vpack.c.bf16 %v8072_v26, %v8068_v7  ;;  %v7441_v43 = vpop.f32.mrf.mxu1  ;;  %11668 = vrcp.f32 %v7844_v0  ;;  %v8010_v53 = vmul.f32 %v18166_v17, %v18165_v12  ;;  %v18167_v27 = vld [vmem:[#allocation38_spill] sm:$0xff]  ;;  %v8073_v18 = vmul.f32 %v8009_v62, %v7439_v24  ;;  %v18169_v0 = vld [vmem:[#allocation64_spill] sm:$0xff]  ;;  %v18170_v12 = vld [vmem:[#allocation73_spill] sm:$0xff] }
 0xb81   : > { %v7554_v10 = vpop.f32.mrf.mxu0  ;;  %v11643_v56 = vpop.eup %11642  ;;  %v8012_v7 = vmul.f32 %v18168_v48, %v18167_v27  ;;  %11670 = vrcp.f32 %v7845_v41  ;;  %8581 = vmatprep.mubr.bf16.mxu1 %v8122_v8  ;;  %v7846_v20 = vadd.f32 1.0, %v11641_v55  ;;  %v8075_v35 = vmul.f32 %v8011_v23, %v7552_v57 }
 0xb82   : > { %v11645_v30 = vpop.eup %11644  ;;  %8694 = vmatprep.mubr.bf16.mxu0 %v8124_v36  ;;  %v7443_v26 = vpop.f32.mrf.mxu1  ;;  %8582 = vmatmul.mubr.bf16.gmra.mxu1 %v8121_v37  ;;  %v8014_v50 = vmul.f32 %v16832_v40, %v18169_v0  ;;  %v8016_v41 = vmul.f32 %v16842_v3, %v18170_v12  ;;  %11672 = vrcp.f32 %v7847_v39  ;;  %v7848_v24 = vadd.f32 1.0, %v11643_v56  ;;  %v18172_v39 = vld [vmem:[#allocation69_spill] sm:$0xff]  ;;  %v18173_v0 = vld [vmem:[#allocation46_spill] sm:$0xff]  ;;  %v18176_v12 = vld [vmem:[#allocation156_spill] sm:$0xff] }
 0xb83   : > { %v7556_v31 = vpop.f32.mrf.mxu0  ;;  %v11647_v28 = vpop.eup %11646  ;;  %v8077_v16 = vmul.f32 %v8013_v44, %v7443_v26  ;;  %8695 = vmatmul.mubr.bf16.gmra.mxu0 %v8123_v61  ;;  %v7849_v17 = vadd.f32 1.0, %v11645_v30  ;;  %v8074_v55 = vmul.f32 %v8010_v53, %v7441_v43  ;;  %v8076_v61 = vmul.f32 %v8012_v7, %v7554_v10 }
 0xb84   : > { %v8079_v29 = vmul.f32 %v8015_v63, %v7556_v31  ;;  %v16963_v34 = vpop.eup %11648  ;;  %v7445_v62 = vpop.f32.mrf.mxu1  ;;  %v7851_v37 = vadd.f32 1.0, %v11647_v28  ;;  %v18171_v31 = vld [vmem:[#allocation33_spill] sm:$0xff]  ;;  %v8019_v56 = vmul.f32 %v16875_v49, %v18172_v39  ;;  %v8018_v30 = vmul.f32 %v16878_v13, %v18173_v0 }
 0xb85   : > { %v7558_v8 = vpop.f32.mrf.mxu0  ;;  %v11651_v36 = vpop.eup %11650  ;;  %v8125_v57 = vpack.c.bf16 %v8077_v16, %v8073_v18  ;;  %v8078_v63 = vmul.f32 %v8014_v50, %v7445_v62  ;;  %v8017_v3 = vmul.f32 %v16873_v1, %v18171_v31  ;;  %11674 = vrcp.f32 %v7846_v20  ;;  %v18174_v16 = vld [vmem:[#allocation29_spill] sm:$0xff]  ;;  %v18177_v20 = vld [vmem:[#allocation150_spill] sm:$0xff] }
 0xb86   : > { %v8127_v23 = vpack.c.bf16 %v8079_v29, %v8075_v35  ;;  %v11653_v44 = vpop.eup %11652  ;;  %v8080_v27 = vmul.f32 %v8016_v41, %v7558_v8  ;;  %v7449_v48 = vpop.f32.mrf.mxu1  ;;  %11676 = vrcp.f32 %v7848_v24  ;;  %v7850_v53 = vadd.f32 1.0, %v11651_v36  ;;  %v18175_v50 = vld [vmem:[#allocation41_spill] sm:$0xff] }
 0xb87   : > { %v7562_v26 = vpop.f32.mrf.mxu0  ;;  %v11655_v40 = vpop.eup %11654  ;;  %v8126_v18 = vpack.c.bf16 %v8078_v63, %v8074_v55  ;;  %v8020_v29 = vmul.f32 %v16880_v54, %v18174_v16  ;;  %v8021_v1 = vmul.f32 %v16883_v9, %v18175_v50  ;;  %v8023_v49 = vmul.f32 %v16894_v45, %v18176_v12 }
 0xb88   : > { %v11657_v43 = vpop.eup %11656  ;;  %v8128_v10 = vpack.c.bf16 %v8080_v27, %v8076_v61  ;;  %v7451_v7 = vpop.f32.mrf.mxu1  ;;  %11678 = vrcp.f32 %v7849_v17  ;;  %v8022_v41 = vmul.f32 %v16897_v60, %v18177_v20  ;;  %v7852_v24 = vadd.f32 1.0, %v11653_v44  ;;  %v18178_v17 = vld [vmem:[#allocation153_spill] sm:$0xff]  ;;  %v18183_v20 = vld [vmem:[#allocation154_spill] sm:$0xff] }
 0xb89   : > { %v7564_v28 = vpop.f32.mrf.mxu0  ;;  %v11659_v35 = vpop.eup %11658  ;;  %11680 = vrcp.f32 %v7851_v37  ;;  %v8081_v62 = vmul.f32 %v8017_v3, %v7449_v48  ;;  %8591 = vmatprep.mubr.bf16.mxu1 %v8126_v18  ;;  %v7853_v54 = vadd.f32 1.0, %v11655_v40  ;;  %v8083_v61 = vmul.f32 %v8019_v56, %v7562_v26 }
 0xb8a   : > { %v11661_v13 = vpop.eup %11660  ;;  %8704 = vmatprep.mubr.bf16.mxu0 %v8128_v10  ;;  %v7453_v8 = vpop.f32.mrf.mxu1  ;;  %8592 = vmatmul.mubr.bf16.gmra.mxu1 %v8125_v57  ;;  %v8024_v60 = vmul.f32 %v16908_v42, %v18178_v17  ;;  %11682 = vrcp.f32 %v7850_v53  ;;  %v7855_v44 = vadd.f32 1.0, %v11657_v43  ;;  %v7854_v37 = vadd.f32 1.0, %v11659_v35  ;;  %v18179_v53 = vld [vmem:[#allocation155_spill] sm:$0xff] }
 0xb8b   : > { %v7566_v36 = vpop.f32.mrf.mxu0  ;;  %v16983_v55 = vpop.eup %11662  ;;  %v8085_v9 = vmul.f32 %v8021_v1, %v7453_v8  ;;  %8705 = vmatmul.mubr.bf16.gmra.mxu0 %v8127_v23  ;;  %v8082_v3 = vmul.f32 %v8018_v30, %v7451_v7  ;;  %11684 = vrcp.f32 %v7852_v24  ;;  %v7856_v56 = vadd.f32 1.0, %v11661_v13  ;;  %v18180_v1 = vld [vmem:[#allocation151_spill] sm:$0xff] }
 0xb8c   : > { %v8087_v63 = vmul.f32 %v8023_v49, %v7566_v36  ;;  %v16985_v45 = vpop.eup %11664  ;;  %v7455_v27 = vpop.f32.mrf.mxu1  ;;  %v8084_v57 = vmul.f32 %v8020_v29, %v7564_v28  ;;  %11686 = vrcp.f32 %v7853_v54  ;;  %v8025_v43 = vmul.f32 %v16912_v38, %v18179_v53  ;;  %v18181_v49 = vld [vmem:[#allocation72_spill] sm:$0xff]  ;;  %v18182_v29 = vld [vmem:[#allocation129_spill] sm:$0xff]  ;;  %v18184_v38 = vld [vmem:[#allocation103_spill] sm:$0xff] }
 0xb8d   : > { %v7568_v48 = vpop.f32.mrf.mxu0  ;;  %v11667_v31 = vpop.eup %11666  ;;  %v8129_v39 = vpack.c.bf16 %v8085_v9, %v8081_v62  ;;  %v8086_v40 = vmul.f32 %v8022_v41, %v7455_v27  ;;  %11688 = vrcp.f32 %v7855_v44  ;;  %v8027_v12 = vmul.f32 %v16917_v25, %v18180_v1 }
 0xb8e   : > { %v8131_v0 = vpack.c.bf16 %v8087_v63, %v8083_v61  ;;  %v11669_v26 = vpop.eup %11668  ;;  %v8088_v23 = vmul.f32 %v8024_v60, %v7568_v48  ;;  %v7459_v18 = vpop.f32.mrf.mxu1  ;;  %v8029_v28 = vmul.f32 %v16930_v46, %v18181_v49  ;;  %v8031_v13 = vmul.f32 %v16947_v47, %v18182_v29  ;;  %v18185_v47 = vld [vmem:[#allocation157_spill] sm:$0xff]  ;;  %v18186_v63 = vld [vmem:[#allocation132_spill] sm:$0xff] }
 0xb8f   : > { %v7572_v10 = vpop.f32.mrf.mxu0  ;;  %v11671_v16 = vpop.eup %11670  ;;  %v8130_v42 = vpack.c.bf16 %v8086_v40, %v8082_v3  ;;  %11690 = vrcp.f32 %v7854_v37  ;;  %v8026_v41 = vmul.f32 %v16922_v2, %v18183_v20  ;;  %v8030_v24 = vmul.f32 %v16949_v4, %v18184_v38 }
 0xb90   : > { %v8132_v35 = vpack.c.bf16 %v8088_v23, %v8084_v57  ;;  %v7461_v50 = vpop.f32.mrf.mxu1  ;;  %v11673_v7 = vpop.eup %11672  ;;  %11692 = vrcp.f32 %v7856_v56  ;;  %v8089_v62 = vmul.f32 %v8025_v43, %v7459_v18  ;;  %v8091_v25 = vmul.f32 %v8027_v12, %v7572_v10  ;;  %v18187_v43 = vld [vmem:[#allocation76_spill] sm:$0xff]  ;;  %v18189_v12 = vld [vmem:[#allocation87_spill] sm:$0xff] }
 0xb91   : > { %v7574_v30 = vpop.f32.mrf.mxu0  ;;  %8601 = vmatprep.mubr.bf16.mxu1 %v8130_v42  ;;  %v8028_v9 = vmul.f32 %v16925_v21, %v18185_v47  ;;  %v8032_v2 = vmul.f32 %v16963_v34, %v18186_v63  ;;  %v8090_v44 = vmul.f32 %v8026_v41, %v7461_v50  ;;  %v8033_v21 = vmul.f32 %v16983_v55, %v16775_v22  ;;  %v18188_v50 = vld [vmem:[#allocation86_spill] sm:$0xff] }
 0xb92   : > { %8714 = vmatprep.mubr.bf16.mxu0 %v8132_v35  ;;  %v7463_v8 = vpop.f32.mrf.mxu1  ;;  %8602 = vmatmul.mubr.bf16.gmra.mxu1 %v8129_v39  ;;  %v11675_v46 = vpop.eup %11674  ;;  %v8035_v53 = vmul.f32 %v16985_v45, %v16777_v11  ;;  %v8034_v35 = vmul.f32 %v11667_v31, %v18187_v43  ;;  %v8037_v1 = vmul.f32 %v11671_v16, %v18188_v50 }
 0xb93   : > { %v7576_v36 = vpop.f32.mrf.mxu0  ;;  %v8093_v54 = vmul.f32 %v8029_v28, %v7463_v8  ;;  %8715 = vmatmul.mubr.bf16.gmra.mxu0 %v8131_v0  ;;  %v11677_v4 = vpop.eup %11676  ;;  %v8092_v40 = vmul.f32 %v8028_v9, %v7574_v30  ;;  %v8039_v30 = vmul.f32 %v11673_v7, %v16790_v15  ;;  %v8036_v49 = vmul.f32 %v11669_v26, %v18189_v12 }
 0xb94   : > { %v8095_v61 = vmul.f32 %v8031_v13, %v7576_v36  ;;  %v7465_v17 = vpop.f32.mrf.mxu1  ;;  %v8038_v28 = vmul.f32 %v11675_v46, %v16792_v19  ;;  %v8040_v22 = vmul.f32 %v11677_v4, %v16794_v52 }
 0xb95   : > { %v7578_v60 = vpop.f32.mrf.mxu0  ;;  %v8133_v37 = vpack.c.bf16 %v8093_v54, %v8089_v62  ;;  %v8094_v48 = vmul.f32 %v8030_v24, %v7465_v17  ;;  %v11679_v3 = vpop.eup %11678 }
 0xb96   : > { %v8135_v27 = vpack.c.bf16 %v8095_v61, %v8091_v25  ;;  %v8096_v56 = vmul.f32 %v8032_v2, %v7578_v60  ;;  %v7469_v57 = vpop.f32.mrf.mxu1  ;;  %v11681_v0 = vpop.eup %11680  ;;  %v8041_v47 = vmul.f32 %v11679_v3, %v16796_v33 }
 0xb97   : > { %v7582_v39 = vpop.f32.mrf.mxu0  ;;  %v8134_v23 = vpack.c.bf16 %v8094_v48, %v8090_v44  ;;  %v11683_v42 = vpop.eup %11682  ;;  %v8097_v55 = vmul.f32 %v8033_v21, %v7469_v57  ;;  %v8043_v9 = vmul.f32 %v11681_v0, %v16798_v6 }
 0xb98   : > { %v8136_v18 = vpack.c.bf16 %v8096_v56, %v8092_v40  ;;  %v7471_v10 = vpop.f32.mrf.mxu1  ;;  %v11685_v20 = vpop.eup %11684  ;;  %v8099_v41 = vmul.f32 %v8035_v53, %v7582_v39  ;;  %v8042_v17 = vmul.f32 %v11683_v42, %v16800_v5  ;;  %v18190_v53 = vld [vmem:[#allocation114_spill] sm:$0xff] }
 0xb99   : > { %v7584_v34 = vpop.f32.mrf.mxu0  ;;  %8611 = vmatprep.mubr.bf16.mxu1 %v8134_v23  ;;  %v11687_v31 = vpop.eup %11686  ;;  %v8098_v16 = vmul.f32 %v8034_v35, %v7471_v10  ;;  %v8044_v44 = vmul.f32 %v11685_v20, %v18149_v51 }
 0xb9a   : > { %8724 = vmatprep.mubr.bf16.mxu0 %v8136_v18  ;;  %v7473_v29 = vpop.f32.mrf.mxu1  ;;  %8612 = vmatmul.mubr.bf16.gmra.mxu1 %v8133_v37  ;;  %v8100_v15 = vmul.f32 %v8036_v49, %v7584_v34  ;;  %v11689_v26 = vpop.eup %11688  ;;  %v8045_v60 = vmul.f32 %v11687_v31, %v16808_v14 }
 0xb9b   : > { %v7586_v13 = vpop.f32.mrf.mxu0  ;;  %v8101_v11 = vmul.f32 %v8037_v1, %v7473_v29  ;;  %8725 = vmatmul.mubr.bf16.gmra.mxu0 %v8135_v27  ;;  %v8047_v4 = vmul.f32 %v11689_v26, %v16810_v32 }
 0xb9c   : > { %v8103_v45 = vmul.f32 %v8039_v30, %v7586_v13  ;;  %v7475_v7 = vpop.f32.mrf.mxu1  ;;  %v11691_v8 = vpop.eup %11690  ;;  %v18191_v30 = vld [vmem:[#allocation112_spill] sm:$0xff] }
 0xb9d   : > { %v7588_v38 = vpop.f32.mrf.mxu0  ;;  %v8137_v24 = vpack.c.bf16 %v8101_v11, %v8097_v55  ;;  %v8102_v62 = vmul.f32 %v8038_v28, %v7475_v7  ;;  %v11693_v54 = vpop.eup %11692  ;;  %v8046_v37 = vmul.f32 %v11691_v8, %v16822_v58  ;;  %v18192_v55 = vld [vmem:[#allocation116_spill] sm:$0xff]  ;;  %v18193_v11 = vld [vmem:[#allocation37_spill] sm:$0xff] }
 0xb9e   : > { %v8139_v19 = vpack.c.bf16 %v8103_v45, %v8099_v41  ;;  %v8104_v52 = vmul.f32 %v8040_v22, %v7588_v38  ;;  %v7479_v36 = vpop.f32.mrf.mxu1  ;;  %v8048_v27 = vmul.f32 %v11693_v54, %v16824_v59  ;;  %v18194_v7 = vld [vmem:[#allocation44_spill] sm:$0xff]  ;;  %v18196_v54 = vld [vmem:[#allocation43_spill] sm:$0xff] }
 0xb9f   : > { %v7592_v25 = vpop.f32.mrf.mxu0  ;;  %v8138_v61 = vpack.c.bf16 %v8102_v62, %v8098_v16  ;;  %v8105_v48 = vmul.f32 %v8041_v47, %v7479_v36  ;;  %v18195_v62 = vld [vmem:[#allocation117_spill] sm:$0xff] }
 0xba0   : > { %v8140_v46 = vpack.c.bf16 %v8104_v52, %v8100_v15  ;;  %v7481_v63 = vpop.f32.mrf.mxu1  ;;  %v8107_v6 = vmul.f32 %v8043_v9, %v7592_v25 }
 0xba1   : > { %v7594_v2 = vpop.f32.mrf.mxu0  ;;  %8621 = vmatprep.mubr.bf16.mxu1 %v8138_v61  ;;  %v8106_v5 = vmul.f32 %v8042_v17, %v7481_v63  ;;  %v18197_v63 = vld [vmem:[#allocation120_spill] sm:$0xff] }
 0xba2   : > { %8734 = vmatprep.mubr.bf16.mxu0 %v8140_v46  ;;  %v7483_v33 = vpop.f32.mrf.mxu1  ;;  %8622 = vmatmul.mubr.bf16.gmra.mxu1 %v8137_v24  ;;  %v8108_v14 = vmul.f32 %v8044_v44, %v7594_v2  ;;  %v18198_v44 = vld [vmem:[#allocation131_spill] sm:$0xff] }
 0xba3   : > { %v7596_v3 = vpop.f32.mrf.mxu0  ;;  %v8109_v40 = vmul.f32 %v8045_v60, %v7483_v33  ;;  %8735 = vmatmul.mubr.bf16.gmra.mxu0 %v8139_v19 }
 0xba4   : > { %v8111_v56 = vmul.f32 %v8047_v4, %v7596_v3  ;;  %v7485_v57 = vpop.f32.mrf.mxu1  ;;  %v18199_v3 = vld [vmem:[#allocation133_spill] sm:$0xff] }
 0xba5   : > { %v7598_v32 = vpop.f32.mrf.mxu0  ;;  %v8141_v39 = vpack.c.bf16 %v8109_v40, %v8105_v48  ;;  %v8110_v23 = vmul.f32 %v8046_v37, %v7485_v57 }
 0xba6   : > { %v8143_v0 = vpack.c.bf16 %v8111_v56, %v8107_v6  ;;  %v8112_v51 = vmul.f32 %v8048_v27, %v7598_v32 }
 0xba7   : > { %v8142_v58 = vpack.c.bf16 %v8110_v23, %v8106_v5  ;;  %v18201_v23 = vld [vmem:[#allocation127_spill] sm:$0xff] }
 0xba8   : > { %v8144_v21 = vpack.c.bf16 %v8112_v51, %v8108_v14  ;;  %v18200_v14 = vld [vmem:[#allocation137_spill] sm:$0xff] }
 0xba9   : > { %8631 = vmatprep.mubr.bf16.mxu1 %v8142_v58 }
 0xbaa   : > { %8744 = vmatprep.mubr.bf16.mxu0 %v8144_v21  ;;  %8632 = vmatmul.mubr.bf16.gmra.mxu1 %v8141_v39 }
 0xbab   : > { %8745 = vmatmul.mubr.bf16.gmra.mxu0 %v8143_v0 }
 0xc32   : > { %v8563_v59 = vpop.f32.mrf.mxu1 }
 0xc33   : > { %v8676_v18 = vpop.f32.mrf.mxu0 }
 0xc34   : > { %v8677_v10 = vadd.f32 %v8676_v18, %v8563_v59  ;;  %v8565_v34 = vpop.f32.mrf.mxu1  ;;  %v18202_v18 = vld [vmem:[#allocation122_spill] sm:$0xff] }
 0xc35   : > { %v8678_v42 = vpop.f32.mrf.mxu0 }
 0xc36   : > { %v8755_v43 = vadd.f32 %v8677_v10, %v18190_v53  ;;  %v8679_v35 = vadd.f32 %v8678_v42, %v8565_v34  ;;  %v8567_v50 = vpop.f32.mrf.mxu1 }
 0xc37   : > { %v8680_v1 = vpop.f32.mrf.mxu0 }
 0xc38   : > { %8787 = vst [vmem:[%s17026_s2] sm:$0xff] %v8755_v43  ;;  %v8756_v12 = vadd.f32 %v8679_v35, %v18191_v30  ;;  %v8681_v49 = vadd.f32 %v8680_v1, %v8567_v50  ;;  %v8569_v28 = vpop.f32.mrf.mxu1  ;;  %v18203_v43 = vld [vmem:[#allocation42_spill] sm:$0xff] }
 0xc39   : > { %v8682_v22 = vpop.f32.mrf.mxu0 }
 0xc3a   : > { %8788 = vst [vmem:[%s17026_s2 + $0x8] sm:$0xff] %v8756_v12  ;;  %v8757_v29 = vadd.f32 %v8681_v49, %v18192_v55  ;;  %v8683_v13 = vadd.f32 %v8682_v22, %v8569_v28  ;;  %v8573_v20 = vpop.f32.mrf.mxu1  ;;  %v18204_v12 = vld [vmem:[#allocation40_spill] sm:$0xff] }
 0xc3b   : > { %v8686_v41 = vpop.f32.mrf.mxu0 }
 0xc3c   : > { %8789 = vst [vmem:[%s17026_s2 + $0x10] sm:$0xff] %v8757_v29  ;;  %v8758_v45 = vadd.f32 %v8683_v13, %v18193_v11  ;;  %v8687_v31 = vadd.f32 %v8686_v41, %v8573_v20  ;;  %v8575_v16 = vpop.f32.mrf.mxu1  ;;  %v18205_v29 = vld [vmem:[#allocation125_spill] sm:$0xff] }
 0xc3d   : > { %v8688_v15 = vpop.f32.mrf.mxu0 }
 0xc3e   : > { %8790 = vst [vmem:[%s17026_s2 + $0x18] sm:$0xff] %v8758_v45  ;;  %v8759_v38 = vadd.f32 %v8687_v31, %v18194_v7  ;;  %v8689_v26 = vadd.f32 %v8688_v15, %v8575_v16  ;;  %v8577_v24 = vpop.f32.mrf.mxu1  ;;  %v18206_v45 = vld [vmem:[#allocation124_spill] sm:$0xff] }
 0xc3f   : > { %v8690_v19 = vpop.f32.mrf.mxu0 }
 0xc40   : > { %8791 = vst [vmem:[%s17026_s2 + $0x20] sm:$0xff] %v8759_v38  ;;  %v8760_v52 = vadd.f32 %v8689_v26, %v18195_v62  ;;  %v8691_v8 = vadd.f32 %v8690_v19, %v8577_v24  ;;  %v8579_v36 = vpop.f32.mrf.mxu1  ;;  %v18207_v38 = vld [vmem:[#allocation121_spill] sm:$0xff] }
 0xc41   : > { %v8692_v25 = vpop.f32.mrf.mxu0 }
 0xc42   : > { %8792 = vst [vmem:[%s17026_s2 + $0x28] sm:$0xff] %v8760_v52  ;;  %v8761_v61 = vadd.f32 %v8691_v8, %v18196_v54  ;;  %v8693_v46 = vadd.f32 %v8692_v25, %v8579_v36  ;;  %v8583_v47 = vpop.f32.mrf.mxu1  ;;  %v18208_v52 = vld [vmem:[#allocation48_spill] sm:$0xff] }
 0xc43   : > { %v8696_v9 = vpop.f32.mrf.mxu0 }
 0xc44   : > { %8793 = vst [vmem:[%s17026_s2 + $0x30] sm:$0xff] %v8761_v61  ;;  %v8762_v2 = vadd.f32 %v8693_v46, %v18197_v63  ;;  %v8697_v17 = vadd.f32 %v8696_v9, %v8583_v47  ;;  %v8585_v60 = vpop.f32.mrf.mxu1  ;;  %v18209_v61 = vld [vmem:[#allocation128_spill] sm:$0xff] }
 0xc45   : > { %v8698_v4 = vpop.f32.mrf.mxu0 }
 0xc46   : > { %8794 = vst [vmem:[%s17026_s2 + $0x38] sm:$0xff] %v8762_v2  ;;  %v8763_v37 = vadd.f32 %v8697_v17, %v18198_v44  ;;  %v8699_v27 = vadd.f32 %v8698_v4, %v8585_v60  ;;  %v8587_v48 = vpop.f32.mrf.mxu1  ;;  %v18210_v2 = vld [vmem:[#allocation123_spill] sm:$0xff] }
 0xc47   : > { %v8700_v33 = vpop.f32.mrf.mxu0 }
 0xc48   : > { %8795 = vst [vmem:[%s17026_s2 + $0x40] sm:$0xff] %v8763_v37  ;;  %v8764_v6 = vadd.f32 %v8699_v27, %v18199_v3  ;;  %v8701_v40 = vadd.f32 %v8700_v33, %v8587_v48  ;;  %v8589_v56 = vpop.f32.mrf.mxu1  ;;  %v18211_v37 = vld [vmem:[#allocation135_spill] sm:$0xff] }
 0xc49   : > { %v8702_v5 = vpop.f32.mrf.mxu0 }
 0xc4a   : > { %8796 = vst [vmem:[%s17026_s2 + $0x48] sm:$0xff] %v8764_v6  ;;  %v8765_v57 = vadd.f32 %v8701_v40, %v18200_v14  ;;  %v8703_v32 = vadd.f32 %v8702_v5, %v8589_v56  ;;  %v8593_v39 = vpop.f32.mrf.mxu1  ;;  %v18212_v6 = vld [vmem:[#allocation143_spill] sm:$0xff] }
 0xc4b   : > { %v8706_v0 = vpop.f32.mrf.mxu0 }
 0xc4c   : > { %8797 = vst [vmem:[%s17026_s2 + $0x50] sm:$0xff] %v8765_v57  ;;  %v8766_v51 = vadd.f32 %v8703_v32, %v18201_v23  ;;  %v8707_v58 = vadd.f32 %v8706_v0, %v8593_v39  ;;  %v8595_v21 = vpop.f32.mrf.mxu1  ;;  %v18213_v57 = vld [vmem:[#allocation148_spill] sm:$0xff] }
 0xc4d   : > { %v8708_v59 = vpop.f32.mrf.mxu0 }
 0xc4e   : > { %8798 = vst [vmem:[%s17026_s2 + $0x58] sm:$0xff] %v8766_v51  ;;  %v8767_v10 = vadd.f32 %v8707_v58, %v18202_v18  ;;  %v8709_v34 = vadd.f32 %v8708_v59, %v8595_v21  ;;  %v8597_v42 = vpop.f32.mrf.mxu1  ;;  %v18214_v51 = vld [vmem:[#allocation147_spill] sm:$0xff] }
 0xc4f   : > { %v8710_v53 = vpop.f32.mrf.mxu0 }
 0xc50   : > { %8799 = vst [vmem:[%s17026_s2 + $0x60] sm:$0xff] %v8767_v10  ;;  %v8768_v35 = vadd.f32 %v8709_v34, %v18203_v43  ;;  %v8711_v50 = vadd.f32 %v8710_v53, %v8597_v42  ;;  %v8599_v1 = vpop.f32.mrf.mxu1  ;;  %v18215_v10 = vld [vmem:[#allocation140_spill] sm:$0xff] }
 0xc51   : > { %v8712_v30 = vpop.f32.mrf.mxu0 }
 0xc52   : > { %8800 = vst [vmem:[%s17026_s2 + $0x68] sm:$0xff] %v8768_v35  ;;  %v8769_v49 = vadd.f32 %v8711_v50, %v18204_v12  ;;  %v8713_v28 = vadd.f32 %v8712_v30, %v8599_v1  ;;  %v8603_v22 = vpop.f32.mrf.mxu1  ;;  %v18216_v35 = vld [vmem:[#allocation139_spill] sm:$0xff] }
 0xc53   : > { %v8716_v55 = vpop.f32.mrf.mxu0 }
 0xc54   : > { %8801 = vst [vmem:[%s17026_s2 + $0x70] sm:$0xff] %v8769_v49  ;;  %v8770_v13 = vadd.f32 %v8713_v28, %v18205_v29  ;;  %v8717_v20 = vadd.f32 %v8716_v55, %v8603_v22  ;;  %v8605_v41 = vpop.f32.mrf.mxu1  ;;  %v18217_v49 = vld [vmem:[#allocation149_spill] sm:$0xff] }
 0xc55   : > { %v8718_v11 = vpop.f32.mrf.mxu0 }
 0xc56   : > { %8802 = vst [vmem:[%s17026_s2 + $0x78] sm:$0xff] %v8770_v13  ;;  %v8771_v31 = vadd.f32 %v8717_v20, %v18206_v45  ;;  %v8719_v16 = vadd.f32 %v8718_v11, %v8605_v41  ;;  %v8607_v15 = vpop.f32.mrf.mxu1  ;;  %v18218_v13 = vld [vmem:[#allocation144_spill] sm:$0xff] }
 0xc57   : > { %v8720_v7 = vpop.f32.mrf.mxu0 }
 0xc58   : > { %8803 = vst [vmem:[%s17026_s2 + $0x80] sm:$0xff] %v8771_v31  ;;  %v8772_v26 = vadd.f32 %v8719_v16, %v18207_v38  ;;  %v8721_v24 = vadd.f32 %v8720_v7, %v8607_v15  ;;  %v8609_v19 = vpop.f32.mrf.mxu1  ;;  %v18219_v31 = vld [vmem:[#allocation34_spill] sm:$0xff] }
 0xc59   : > { %v8722_v62 = vpop.f32.mrf.mxu0 }
 0xc5a   : > { %8804 = vst [vmem:[%s17026_s2 + $0x88] sm:$0xff] %v8772_v26  ;;  %v8773_v8 = vadd.f32 %v8721_v24, %v18208_v52  ;;  %v8723_v36 = vadd.f32 %v8722_v62, %v8609_v19  ;;  %v8613_v25 = vpop.f32.mrf.mxu1  ;;  %v18220_v26 = vld [vmem:[#allocation27_spill] sm:$0xff]  ;;  %v18221_v62 = vld [vmem:[#allocation70_spill] sm:$0xff] }
 0xc5b   : > { %v8726_v54 = vpop.f32.mrf.mxu0 }
 0xc5c   : > { %8805 = vst [vmem:[%s17026_s2 + $0x90] sm:$0xff] %v8773_v8  ;;  %v8774_v46 = vadd.f32 %v8723_v36, %v18209_v61  ;;  %v8727_v47 = vadd.f32 %v8726_v54, %v8613_v25  ;;  %v8615_v9 = vpop.f32.mrf.mxu1 }
 0xc5d   : > { %v8728_v63 = vpop.f32.mrf.mxu0 }
 0xc5e   : > { %8806 = vst [vmem:[%s17026_s2 + $0x98] sm:$0xff] %v8774_v46  ;;  %v8775_v17 = vadd.f32 %v8727_v47, %v18210_v2  ;;  %v8729_v60 = vadd.f32 %v8728_v63, %v8615_v9  ;;  %v8617_v4 = vpop.f32.mrf.mxu1 }
 0xc5f   : > { %v8730_v44 = vpop.f32.mrf.mxu0 }
 0xc60   : > { %8807 = vst [vmem:[%s17026_s2 + $0xa0] sm:$0xff] %v8775_v17  ;;  %v8776_v27 = vadd.f32 %v8729_v60, %v18211_v37  ;;  %v8731_v48 = vadd.f32 %v8730_v44, %v8617_v4  ;;  %v8619_v33 = vpop.f32.mrf.mxu1 }
 0xc61   : > { %v8732_v3 = vpop.f32.mrf.mxu0 }
 0xc62   : > { %8808 = vst [vmem:[%s17026_s2 + $0xa8] sm:$0xff] %v8776_v27  ;;  %v8777_v40 = vadd.f32 %v8731_v48, %v18212_v6  ;;  %v8733_v56 = vadd.f32 %v8732_v3, %v8619_v33  ;;  %v8623_v5 = vpop.f32.mrf.mxu1 }
 0xc63   : > { %v8736_v14 = vpop.f32.mrf.mxu0 }
 0xc64   : > { %8809 = vst [vmem:[%s17026_s2 + $0xb0] sm:$0xff] %v8777_v40  ;;  %v8778_v32 = vadd.f32 %v8733_v56, %v18213_v57  ;;  %v8737_v39 = vadd.f32 %v8736_v14, %v8623_v5  ;;  %v8625_v0 = vpop.f32.mrf.mxu1 }
 0xc65   : > { %v8738_v23 = vpop.f32.mrf.mxu0 }
 0xc66   : > { %8810 = vst [vmem:[%s17026_s2 + $0xb8] sm:$0xff] %v8778_v32  ;;  %v8779_v58 = vadd.f32 %v8737_v39, %v18214_v51  ;;  %v8739_v21 = vadd.f32 %v8738_v23, %v8625_v0  ;;  %v8627_v59 = vpop.f32.mrf.mxu1 }
 0xc67   : > { %v8740_v18 = vpop.f32.mrf.mxu0 }
 0xc68   : > { %8811 = vst [vmem:[%s17026_s2 + $0xc0] sm:$0xff] %v8779_v58  ;;  %v8780_v34 = vadd.f32 %v8739_v21, %v18215_v10  ;;  %v8741_v42 = vadd.f32 %v8740_v18, %v8627_v59  ;;  %v8629_v53 = vpop.f32.mrf.mxu1 }
 0xc69   : > { %v8742_v43 = vpop.f32.mrf.mxu0 }
 0xc6a   : > { %8812 = vst [vmem:[%s17026_s2 + $0xc8] sm:$0xff] %v8780_v34  ;;  %v8781_v50 = vadd.f32 %v8741_v42, %v18216_v35  ;;  %v8743_v1 = vadd.f32 %v8742_v43, %v8629_v53  ;;  %v8633_v30 = vpop.f32.mrf.mxu1 }
 0xc6b   : > { %v8746_v12 = vpop.f32.mrf.mxu0 }
 0xc6c   : > { %8813 = vst [vmem:[%s17026_s2 + $0xd0] sm:$0xff] %v8781_v50  ;;  %v8782_v28 = vadd.f32 %v8743_v1, %v18217_v49  ;;  %v8747_v22 = vadd.f32 %v8746_v12, %v8633_v30  ;;  %v8635_v55 = vpop.f32.mrf.mxu1 }
 0xc6d   : > { %v8748_v29 = vpop.f32.mrf.mxu0 }
 0xc6e   : > { %8814 = vst [vmem:[%s17026_s2 + $0xd8] sm:$0xff] %v8782_v28  ;;  %v8783_v20 = vadd.f32 %v8747_v22, %v18218_v13  ;;  %v8749_v41 = vadd.f32 %v8748_v29, %v8635_v55  ;;  %v8637_v11 = vpop.f32.mrf.mxu1 }
 0xc6f   : > { %v8750_v45 = vpop.f32.mrf.mxu0 }
 0xc70   : > { %8815 = vst [vmem:[%s17026_s2 + $0xe0] sm:$0xff] %v8783_v20  ;;  %v8784_v16 = vadd.f32 %v8749_v41, %v18219_v31  ;;  %v8751_v15 = vadd.f32 %v8750_v45, %v8637_v11  ;;  %v8639_v7 = vpop.f32.mrf.mxu1 }
 0xc71   : > { %v8752_v38 = vpop.f32.mrf.mxu0 }
 0xc72   : > { %8816 = vst [vmem:[%s17026_s2 + $0xe8] sm:$0xff] %v8784_v16  ;;  %v8785_v24 = vadd.f32 %v8751_v15, %v18220_v26  ;;  %v8753_v19 = vadd.f32 %v8752_v38, %v8639_v7 }
 0xc74   : > { %8817 = vst [vmem:[%s17026_s2 + $0xf0] sm:$0xff] %v8785_v24  ;;  %v8786_v52 = vadd.f32 %v8753_v19, %v18221_v62 }
 0xc76   : > { %8818 = vst [vmem:[%s17026_s2 + $0xf8] sm:$0xff] %v8786_v52 }
 0xc77   : > { %11949 = shalt.err (!%p11946_p8)
}
 0xc78   : > { %s11950_s18 = scalar_lea.hbm %s17093_s1, 4096  ;;  %s11954_s12 = scalar_lea.hbm %s17151_s10, 8192 }
 0xc79   : > { %p11951_p6 = scmp.ne.s32.totalorder %s17093_s1, %s11950_s18  ;;  %p11955_p0 = scmp.lt.s32.totalorder %s17093_s1, %s17151_s10 }
 0xc7a   : > { %p11956_p2 = scmp.lt.s32.totalorder %s11954_s12, %s11950_s18 }
 0xc7b   : > { %p11952_p11 = pnand %p11951_p6, %p18222_p10 }
 0xc7c   : > { %p11957_p5 = por %p11956_p2, %p11955_p0 }
 0xc7d   : > { %p11953_p7 = pneg %p11952_p11 }
 0xc7f   : > { %p11958_p9 = pnand %p11957_p5, %p11953_p7 }
 0xc81   : > { %11961 = shalt.err (!%p11958_p9)
}
 0xc82   : > { %s12039_s17 = smov 256   ;;  %s12040_s23 = smov 16  }
 0xc83   : > { %10281 = dma.vmem_to_hbm [thread:$0]  (%p18222_p10), %s17095_s6, 4096, %s17093_s1, %s8820_s19, %s12039_s17, %s12039_s17, %s12040_s23  }
 0xc84 PF: > { %s8848_s20 = sand.u32 1, %s12004_s13   ;;  %p18223_p12 = scmp.ne.s32.totalorder %s17488_s21, 0 }
 0xc85   : > { %p18224_p13 = scmp.ge.s32.totalorder %s12016_s16, 2  ;;  %s8849_s29 = scalar_lea.sflag [#allocation4], %s8848_s20 }
 0xc87   : > { %p10310_p1 = pnand %p18224_p13, %p18223_p12 }
 0xc89   : > { %p10311_p3 = pneg %p10310_p1 }
 0xc8b   : > { %11999 = dma.done.wait (%p10311_p3), %s8849_s29, 4096  }
 0xc8c   : > { %12001 = vsyncadd (%p10311_p3), %s8849_s29, 4294963200  ;;  %p27_p4 = scmp.ge.s32.totalorder %s12224_s26, 4   ;;  %s18225_s13 = smov %s12008_s14 }
 0xc8d   : > { %s18226_s14 = smov %s12012_s15  ;;  %s18227_s15 = smov %s12236_s30 }
 0xc8e   : > { %s18228_s16 = smov %s12224_s26  ;;  %29 = sbr.rel (!%p27_p4) target bundleno = 14 (0xe), region = 133 }
 0xc93   :  { %8854 = vsyncpa [#allocation3], 1 }
 0xc94   :  { %8856 = vsyncpa [#allocation3 + $0x1], 1 }
 0xc95   :  { %8857 = vsyncpa [#allocation6], 1 }
 0xc96   :  { %8858 = vsyncpa [#allocation9], 1 }
 0xc97   :  { %8859 = vsyncpa [#allocation12], 1 }
 0xc98   :  { %8860 = vsyncpa [#allocation15], 1 }
 0xc99   :  { %8861 = vsyncpa [#allocation4], 1 }
 0xc9a   :  { %8863 = vsyncpa [#allocation4 + $0x1], 1 }

</bundles_post_ra>
